<compile_context>
chip_gen: v5e
topology: v5e:2x2
jax: 0.10.0
libtpu: 0.0.40
codegen_flags: <defaults>
</compile_context>

<pallas_src>
import functools

import jax
import jax.numpy as jnp
from jax.experimental import pallas as pl
from jax.experimental.pallas import tpu as pltpu


# ---------------------------------------------------------------------------
# Fused conv3x3(pad=1) + bias + ReLU + L1-partial kernel
# ---------------------------------------------------------------------------
def _fused_conv3x3_relu_l1_kernel(x_ref, xh_ref, w_ref, b_ref,
                                  fx_ref, fxh_ref, l1_ref,
                                  xpad_ref, xhpad_ref,
                                  *, H, W, Cin, Cout):
    """One batch element: conv+ReLU for x and x_hat plus sum|f(x)-f(x_hat)|.

    x_ref, xh_ref   : (1, H, W, Cin)    f32 inputs
    w_ref           : (9, Cin, Cout)    f32 taps, t = 3*dy + dx
    b_ref           : (1, Cout)         f32 bias
    fx_ref, fxh_ref : (1, H, W, Cout)   f32 feature outputs (next layer input)
    l1_ref          : (1, 1, 1)         f32 per-batch-element L1 partial sum
    xpad_ref/xhpad_ref : (H+2, W+2, Cin) f32 VMEM scratch with zero halo
    """
    HW = H * W

    # In-kernel zero padding (avoids materializing padded activation copies in HBM).
    xpad_ref[...] = jnp.zeros_like(xpad_ref)
    xhpad_ref[...] = jnp.zeros_like(xhpad_ref)
    xpad_ref[1:H + 1, 1:W + 1, :] = x_ref[0]
    xhpad_ref[1:H + 1, 1:W + 1, :] = xh_ref[0]

    def tap(pref, dy, dx):
        return pref[dy:dy + H, dx:dx + W, :].reshape(HW, Cin)

    if Cin % 8 == 0:
        # im2col: one big MXU matmul, K = 9*Cin, M = 2*H*W (x and x_hat stacked).
        w2 = w_ref[...].reshape(9 * Cin, Cout).astype(jnp.bfloat16)
        patches = jnp.concatenate(
            [jnp.concatenate(
                [tap(p, dy, dx) for dy in range(3) for dx in range(3)], axis=-1)
             for p in (xpad_ref, xhpad_ref)],
            axis=0).astype(jnp.bfloat16)                       # (2*HW, 9*Cin)
        acc = jnp.dot(patches, w2, preferred_element_type=jnp.float32)
    else:
        # Tiny-Cin first layer (Cin == 3): per-tap accumulation, still M = 2*HW.
        acc = jnp.zeros((2 * HW, Cout), jnp.float32)
        for t in range(9):
            dy, dx = divmod(t, 3)
            patch = jnp.concatenate(
                [tap(xpad_ref, dy, dx), tap(xhpad_ref, dy, dx)],
                axis=0).astype(jnp.bfloat16)                   # (2*HW, Cin)
            acc = acc + jnp.dot(patch, w_ref[t].astype(jnp.bfloat16),
                                preferred_element_type=jnp.float32)

    acc = jnp.maximum(acc + b_ref[...], 0.0)                   # bias + ReLU in f32
    fx = acc[:HW]
    fxh = acc[HW:]
    fx_ref[0] = fx.reshape(H, W, Cout)
    fxh_ref[0] = fxh.reshape(H, W, Cout)
    # Fused L1 epilogue: only this scalar is needed by the loss.
    l1_ref[...] = jnp.sum(jnp.abs(fx - fxh)).reshape(1, 1, 1)


def conv3x3_relu_l1(x, x_hat, w, b):
    """x, x_hat: (B,H,W,Cin) f32; w: (9,Cin,Cout) f32; b: (1,Cout) f32.

    Returns (f(x), f(x_hat), per-batch-element sum|f(x)-f(x_hat)| of shape (B,1,1)).
    NOTE: for real VGG resolutions a spatial (row) grid axis with a 2-row halo
    would be added to keep tiles inside v7x's 64 MiB VMEM; whole-image tiles
    are fine at these demo sizes.
    """
    B, H, W, Cin = x.shape
    Cout = w.shape[-1]
    kernel = functools.partial(_fused_conv3x3_relu_l1_kernel,
                               H=H, W=W, Cin=Cin, Cout=Cout)
    flops = 2 * B * (2 * H * W) * (9 * Cin) * Cout
    bytes_accessed = 4 * B * H * W * (2 * Cin + 2 * Cout) + 4 * 9 * Cin * Cout

    fx, fxh, l1 = pl.pallas_call(
        kernel,
        out_shape=(
            jax.ShapeDtypeStruct((B, H, W, Cout), jnp.float32),
            jax.ShapeDtypeStruct((B, H, W, Cout), jnp.float32),
            jax.ShapeDtypeStruct((B, 1, 1), jnp.float32),
        ),
        grid=(B,),
        in_specs=[
            pl.BlockSpec((1, H, W, Cin), lambda bi: (bi, 0, 0, 0)),
            pl.BlockSpec((1, H, W, Cin), lambda bi: (bi, 0, 0, 0)),
            pl.BlockSpec((9, Cin, Cout), lambda bi: (0, 0, 0)),
            pl.BlockSpec((1, Cout), lambda bi: (0, 0)),
        ],
        out_specs=(
            pl.BlockSpec((1, H, W, Cout), lambda bi: (bi, 0, 0, 0)),
            pl.BlockSpec((1, H, W, Cout), lambda bi: (bi, 0, 0, 0)),
            pl.BlockSpec((1, 1, 1), lambda bi: (bi, 0, 0)),
        ),
        scratch_shapes=[
            pltpu.VMEM((H + 2, W + 2, Cin), jnp.float32),
            pltpu.VMEM((H + 2, W + 2, Cin), jnp.float32),
        ],
        compiler_params=pltpu.CompilerParams(
            dimension_semantics=("parallel",),   # batch axis -> both TCs on v7x
        ),
        cost_estimate=pl.CostEstimate(flops=flops, transcendentals=0,
                                      bytes_accessed=bytes_accessed),
    )(x, x_hat, w, b)
    return fx, fxh, l1


# ---------------------------------------------------------------------------
# VGG-style feature extractors (synthetic, deterministic weights)
# ---------------------------------------------------------------------------
# TODO(synk): real VGG19 / VGGFace weights come from .pt checkpoints; the conv
# stacks here are synthetic (deterministic random weights) — the forward-pass
# *structure* (multi conv+ReLU layers, 2x2 maxpools, per-layer L1, weighted
# branch sum) matches the PyTorch module.
def init_vgg_params(key, channels):
    params = []
    for cin, cout in zip(channels[:-1], channels[1:]):
        key, k_w, k_b = jax.random.split(key, 3)
        w = jax.random.normal(k_w, (9, cin, cout), jnp.float32) / jnp.sqrt(9.0 * cin)
        b = 0.01 * jax.random.normal(k_b, (1, cout), jnp.float32)
        params.append((w, b))
    return params


def maxpool2x2(x):
    # TODO(synk): assumes even H and W (true for the VGG-style shapes used here).
    B, H, W, C = x.shape
    return x.reshape(B, H // 2, 2, W // 2, 2, C).max(axis=(2, 4))


def branch_l1(params, xh, xhh):
    """Sum over layers of mean|f_l(x) - f_l(x_hat)|  (== summed nn.L1Loss())."""
    total = jnp.float32(0.0)
    hx, hxh = xh, xhh
    for i, (w, b) in enumerate(params):
        hx, hxh, l1 = conv3x3_relu_l1(hx, hxh, w, b)
        total = total + jnp.sum(l1) / hx.size        # L1Loss mean per layer
        if i < len(params) - 1:
            hx = maxpool2x2(hx)
            hxh = maxpool2x2(hxh)
    return total


# ---------------------------------------------------------------------------
# LossCnt forward
# ---------------------------------------------------------------------------
def loss_cnt(params_face, params_vgg19, x, x_hat,
             vgg19_weight=0.15, vggface_weight=0.025):
    # x, x_hat: NCHW float32 (matching the PyTorch module's inputs).
    xh = jnp.transpose(x, (0, 2, 3, 1)).astype(jnp.float32)
    xhh = jnp.transpose(x_hat, (0, 2, 3, 1)).astype(jnp.float32)
    lossface = branch_l1(params_face, xh, xhh)
    loss19 = branch_l1(params_vgg19, xh, xhh)
    return vgg19_weight * loss19 + vggface_weight * lossface


# ---------------------------------------------------------------------------
# main
# ---------------------------------------------------------------------------
if __name__ == "__main__":
    key = jax.random.PRNGKey(0)
    k_x, k_xh, k_face, k_v19 = jax.random.split(key, 4)

    B, C, Hs, Ws = 2, 3, 16, 16                 # small NCHW image inputs
    x = jax.random.normal(k_x, (B, C, Hs, Ws), jnp.float32)
    x_hat = jax.random.normal(k_xh, (B, C, Hs, Ws), jnp.float32)

    # Lane-friendlier synthetic channel progression (Cout 32/64/128 keeps the
    # 128-lane axis dense; real VGG would use 64..512 channels).
    channels = [3, 32, 64, 128]
    params_face = init_vgg_params(k_face, channels)
    params_vgg19 = init_vgg_params(k_v19, channels)

    loss_fn = jax.jit(loss_cnt)
    loss = loss_fn(params_face, params_vgg19, x, x_hat)
    jax.block_until_ready(loss)
    assert loss.shape == () and bool(jnp.isfinite(loss))
    print("KERNEL_OK")
</pallas_src>

<mosaic_0001>
module attributes {stable_mosaic.version = 11 : i64} {
  func.func @_fused_conv3x3_relu_l1_kernel(%arg0: i32, %arg1: memref<1x16x16x3xf32, #tpu.memory_space<vmem>>, %arg2: memref<1x16x16x3xf32, #tpu.memory_space<vmem>>, %arg3: memref<9x3x32xf32, #tpu.memory_space<vmem>>, %arg4: memref<1x32xf32, #tpu.memory_space<vmem>>, %arg5: memref<1x16x16x32xf32, #tpu.memory_space<vmem>>, %arg6: memref<1x16x16x32xf32, #tpu.memory_space<vmem>>, %arg7: memref<1x1x1xf32, #tpu.memory_space<vmem>>, %arg8: memref<18x18x3xf32, #tpu.memory_space<vmem>>, %arg9: memref<18x18x3xf32, #tpu.memory_space<vmem>>) attributes {dimension_semantics = [#tpu.dimension_semantics<parallel>], iteration_bounds = array<i64: 2>, scalar_prefetch = 0 : i64, scratch_operands = 2 : i64, tpu.core_type = #tpu.core_type<tc>, window_params = [{transform_indices = @transform_0, window_bounds = array<i64: 1, 16, 16, 3>}, {transform_indices = @transform_1, window_bounds = array<i64: 1, 16, 16, 3>}, {pipeline_mode = #tpu.pipeline_mode<synchronous>, transform_indices = @transform_2, window_bounds = array<i64: 9, 3, 32>}, {pipeline_mode = #tpu.pipeline_mode<synchronous>, transform_indices = @transform_3, window_bounds = array<i64: 1, 32>}, {transform_indices = @transform_4, window_bounds = array<i64: 1, 16, 16, 32>}, {transform_indices = @transform_5, window_bounds = array<i64: 1, 16, 16, 32>}, {transform_indices = @transform_6, window_bounds = array<i64: 1, 1, 1>}]} {
    %cst = arith.constant 0.000000e+00 : f32
    %0 = vector.broadcast %cst : f32 to vector<18x18x3xf32>
    %c0 = arith.constant 0 : index
    %c0_0 = arith.constant 0 : index
    %c0_1 = arith.constant 0 : index
    %1 = vector.load %arg8[%c0, %c0_0, %c0_1] : memref<18x18x3xf32, #tpu.memory_space<vmem>>, vector<18x18x3xf32>
    tpu.vector_store %arg8[%c0, %c0_0, %c0_1], %0 {strides = array<i32>} : memref<18x18x3xf32, #tpu.memory_space<vmem>>, vector<18x18x3xf32>,
    %cst_2 = arith.constant 0.000000e+00 : f32
    %2 = vector.broadcast %cst_2 : f32 to vector<18x18x3xf32>
    %c0_3 = arith.constant 0 : index
    %c0_4 = arith.constant 0 : index
    %c0_5 = arith.constant 0 : index
    %3 = vector.load %arg9[%c0_3, %c0_4, %c0_5] : memref<18x18x3xf32, #tpu.memory_space<vmem>>, vector<18x18x3xf32>
    tpu.vector_store %arg9[%c0_3, %c0_4, %c0_5], %2 {strides = array<i32>} : memref<18x18x3xf32, #tpu.memory_space<vmem>>, vector<18x18x3xf32>,
    %c0_6 = arith.constant 0 : index
    %c0_7 = arith.constant 0 : index
    %c0_8 = arith.constant 0 : index
    %c0_9 = arith.constant 0 : index
    %4 = vector.load %arg1[%c0_6, %c0_7, %c0_8, %c0_9] : memref<1x16x16x3xf32, #tpu.memory_space<vmem>>, vector<1x16x16x3xf32>
    %5 = vector.shape_cast %4 : vector<1x16x16x3xf32> to vector<16x16x3xf32>
    %c1 = arith.constant 1 : index
    %c1_10 = arith.constant 1 : index
    %c0_11 = arith.constant 0 : index
    %6 = vector.load %arg8[%c1, %c1_10, %c0_11] : memref<18x18x3xf32, #tpu.memory_space<vmem>>, vector<16x16x3xf32>
    tpu.vector_store %arg8[%c1, %c1_10, %c0_11], %5 {strides = array<i32>} : memref<18x18x3xf32, #tpu.memory_space<vmem>>, vector<16x16x3xf32>,
    %c0_12 = arith.constant 0 : index
    %c0_13 = arith.constant 0 : index
    %c0_14 = arith.constant 0 : index
    %c0_15 = arith.constant 0 : index
    %7 = vector.load %arg2[%c0_12, %c0_13, %c0_14, %c0_15] : memref<1x16x16x3xf32, #tpu.memory_space<vmem>>, vector<1x16x16x3xf32>
    %8 = vector.shape_cast %7 : vector<1x16x16x3xf32> to vector<16x16x3xf32>
    %c1_16 = arith.constant 1 : index
    %c1_17 = arith.constant 1 : index
    %c0_18 = arith.constant 0 : index
    %9 = vector.load %arg9[%c1_16, %c1_17, %c0_18] : memref<18x18x3xf32, #tpu.memory_space<vmem>>, vector<16x16x3xf32>
    tpu.vector_store %arg9[%c1_16, %c1_17, %c0_18], %8 {strides = array<i32>} : memref<18x18x3xf32, #tpu.memory_space<vmem>>, vector<16x16x3xf32>,
    %cst_19 = arith.constant 0.000000e+00 : f32
    %10 = vector.broadcast %cst_19 : f32 to vector<512x32xf32>
    %c0_20 = arith.constant 0 : index
    %c0_21 = arith.constant 0 : index
    %c0_22 = arith.constant 0 : index
    %11 = vector.load %arg8[%c0_20, %c0_21, %c0_22] : memref<18x18x3xf32, #tpu.memory_space<vmem>>, vector<16x16x3xf32>
    %12 = vector.shape_cast %11 : vector<16x16x3xf32> to vector<256x3xf32>
    %c0_23 = arith.constant 0 : index
    %c0_24 = arith.constant 0 : index
    %c0_25 = arith.constant 0 : index
    %13 = vector.load %arg9[%c0_23, %c0_24, %c0_25] : memref<18x18x3xf32, #tpu.memory_space<vmem>>, vector<16x16x3xf32>
    %14 = vector.shape_cast %13 : vector<16x16x3xf32> to vector<256x3xf32>
    %15 = tpu.concatenate %12, %14 in 0 : vector<256x3xf32>, vector<256x3xf32> -> vector<512x3xf32>
    %16 = arith.truncf %15 : vector<512x3xf32> to vector<512x3xbf16>
    %c0_26 = arith.constant 0 : index
    %c0_27 = arith.constant 0 : index
    %c0_28 = arith.constant 0 : index
    %17 = vector.load %arg3[%c0_26, %c0_27, %c0_28] : memref<9x3x32xf32, #tpu.memory_space<vmem>>, vector<1x3x32xf32>
    %18 = vector.shape_cast %17 : vector<1x3x32xf32> to vector<3x32xf32>
    %19 = arith.truncf %18 : vector<3x32xf32> to vector<3x32xbf16>
    %cst_29 = arith.constant dense<0.000000e+00> : vector<512x32xf32>
    %20 = tpu.matmul %16, %19, %cst_29 {dimension_numbers = #tpu.dot_dimension_numbers<[1], [0], [0], [1], [0, 0, 1, 1], [], []>} : vector<512x3xbf16>, vector<3x32xbf16>, vector<512x32xf32> -> vector<512x32xf32>
    %21 = arith.addf %10, %20 : vector<512x32xf32>
    %c0_30 = arith.constant 0 : index
    %c1_31 = arith.constant 1 : index
    %c0_32 = arith.constant 0 : index
    %22 = vector.load %arg8[%c0_30, %c1_31, %c0_32] : memref<18x18x3xf32, #tpu.memory_space<vmem>>, vector<16x16x3xf32>
    %23 = vector.shape_cast %22 : vector<16x16x3xf32> to vector<256x3xf32>
    %c0_33 = arith.constant 0 : index
    %c1_34 = arith.constant 1 : index
    %c0_35 = arith.constant 0 : index
    %24 = vector.load %arg9[%c0_33, %c1_34, %c0_35] : memref<18x18x3xf32, #tpu.memory_space<vmem>>, vector<16x16x3xf32>
    %25 = vector.shape_cast %24 : vector<16x16x3xf32> to vector<256x3xf32>
    %26 = tpu.concatenate %23, %25 in 0 : vector<256x3xf32>, vector<256x3xf32> -> vector<512x3xf32>
    %27 = arith.truncf %26 : vector<512x3xf32> to vector<512x3xbf16>
    %c1_36 = arith.constant 1 : index
    %c0_37 = arith.constant 0 : index
    %c0_38 = arith.constant 0 : index
    %28 = vector.load %arg3[%c1_36, %c0_37, %c0_38] : memref<9x3x32xf32, #tpu.memory_space<vmem>>, vector<1x3x32xf32>
    %29 = vector.shape_cast %28 : vector<1x3x32xf32> to vector<3x32xf32>
    %30 = arith.truncf %29 : vector<3x32xf32> to vector<3x32xbf16>
    %cst_39 = arith.constant dense<0.000000e+00> : vector<512x32xf32>
    %31 = tpu.matmul %27, %30, %cst_39 {dimension_numbers = #tpu.dot_dimension_numbers<[1], [0], [0], [1], [0, 0, 1, 1], [], []>} : vector<512x3xbf16>, vector<3x32xbf16>, vector<512x32xf32> -> vector<512x32xf32>
    %32 = arith.addf %21, %31 : vector<512x32xf32>
    %c0_40 = arith.constant 0 : index
    %c2 = arith.constant 2 : index
    %c0_41 = arith.constant 0 : index
    %33 = vector.load %arg8[%c0_40, %c2, %c0_41] : memref<18x18x3xf32, #tpu.memory_space<vmem>>, vector<16x16x3xf32>
    %34 = vector.shape_cast %33 : vector<16x16x3xf32> to vector<256x3xf32>
    %c0_42 = arith.constant 0 : index
    %c2_43 = arith.constant 2 : index
    %c0_44 = arith.constant 0 : index
    %35 = vector.load %arg9[%c0_42, %c2_43, %c0_44] : memref<18x18x3xf32, #tpu.memory_space<vmem>>, vector<16x16x3xf32>
    %36 = vector.shape_cast %35 : vector<16x16x3xf32> to vector<256x3xf32>
    %37 = tpu.concatenate %34, %36 in 0 : vector<256x3xf32>, vector<256x3xf32> -> vector<512x3xf32>
    %38 = arith.truncf %37 : vector<512x3xf32> to vector<512x3xbf16>
    %c2_45 = arith.constant 2 : index
    %c0_46 = arith.constant 0 : index
    %c0_47 = arith.constant 0 : index
    %39 = vector.load %arg3[%c2_45, %c0_46, %c0_47] : memref<9x3x32xf32, #tpu.memory_space<vmem>>, vector<1x3x32xf32>
    %40 = vector.shape_cast %39 : vector<1x3x32xf32> to vector<3x32xf32>
    %41 = arith.truncf %40 : vector<3x32xf32> to vector<3x32xbf16>
    %cst_48 = arith.constant dense<0.000000e+00> : vector<512x32xf32>
    %42 = tpu.matmul %38, %41, %cst_48 {dimension_numbers = #tpu.dot_dimension_numbers<[1], [0], [0], [1], [0, 0, 1, 1], [], []>} : vector<512x3xbf16>, vector<3x32xbf16>, vector<512x32xf32> -> vector<512x32xf32>
    %43 = arith.addf %32, %42 : vector<512x32xf32>
    %c1_49 = arith.constant 1 : index
    %c0_50 = arith.constant 0 : index
    %c0_51 = arith.constant 0 : index
    %44 = vector.load %arg8[%c1_49, %c0_50, %c0_51] : memref<18x18x3xf32, #tpu.memory_space<vmem>>, vector<16x16x3xf32>
    %45 = vector.shape_cast %44 : vector<16x16x3xf32> to vector<256x3xf32>
    %c1_52 = arith.constant 1 : index
    %c0_53 = arith.constant 0 : index
    %c0_54 = arith.constant 0 : index
    %46 = vector.load %arg9[%c1_52, %c0_53, %c0_54] : memref<18x18x3xf32, #tpu.memory_space<vmem>>, vector<16x16x3xf32>
    %47 = vector.shape_cast %46 : vector<16x16x3xf32> to vector<256x3xf32>
    %48 = tpu.concatenate %45, %47 in 0 : vector<256x3xf32>, vector<256x3xf32> -> vector<512x3xf32>
    %49 = arith.truncf %48 : vector<512x3xf32> to vector<512x3xbf16>
    %c3 = arith.constant 3 : index
    %c0_55 = arith.constant 0 : index
    %c0_56 = arith.constant 0 : index
    %50 = vector.load %arg3[%c3, %c0_55, %c0_56] : memref<9x3x32xf32, #tpu.memory_space<vmem>>, vector<1x3x32xf32>
    %51 = vector.shape_cast %50 : vector<1x3x32xf32> to vector<3x32xf32>
    %52 = arith.truncf %51 : vector<3x32xf32> to vector<3x32xbf16>
    %cst_57 = arith.constant dense<0.000000e+00> : vector<512x32xf32>
    %53 = tpu.matmul %49, %52, %cst_57 {dimension_numbers = #tpu.dot_dimension_numbers<[1], [0], [0], [1], [0, 0, 1, 1], [], []>} : vector<512x3xbf16>, vector<3x32xbf16>, vector<512x32xf32> -> vector<512x32xf32>
    %54 = arith.addf %43, %53 : vector<512x32xf32>
    %c1_58 = arith.constant 1 : index
    %c1_59 = arith.constant 1 : index
    %c0_60 = arith.constant 0 : index
    %55 = vector.load %arg8[%c1_58, %c1_59, %c0_60] : memref<18x18x3xf32, #tpu.memory_space<vmem>>, vector<16x16x3xf32>
    %56 = vector.shape_cast %55 : vector<16x16x3xf32> to vector<256x3xf32>
    %c1_61 = arith.constant 1 : index
    %c1_62 = arith.constant 1 : index
    %c0_63 = arith.constant 0 : index
    %57 = vector.load %arg9[%c1_61, %c1_62, %c0_63] : memref<18x18x3xf32, #tpu.memory_space<vmem>>, vector<16x16x3xf32>
    %58 = vector.shape_cast %57 : vector<16x16x3xf32> to vector<256x3xf32>
    %59 = tpu.concatenate %56, %58 in 0 : vector<256x3xf32>, vector<256x3xf32> -> vector<512x3xf32>
    %60 = arith.truncf %59 : vector<512x3xf32> to vector<512x3xbf16>
    %c4 = arith.constant 4 : index
    %c0_64 = arith.constant 0 : index
    %c0_65 = arith.constant 0 : index
    %61 = vector.load %arg3[%c4, %c0_64, %c0_65] : memref<9x3x32xf32, #tpu.memory_space<vmem>>, vector<1x3x32xf32>
    %62 = vector.shape_cast %61 : vector<1x3x32xf32> to vector<3x32xf32>
    %63 = arith.truncf %62 : vector<3x32xf32> to vector<3x32xbf16>
    %cst_66 = arith.constant dense<0.000000e+00> : vector<512x32xf32>
    %64 = tpu.matmul %60, %63, %cst_66 {dimension_numbers = #tpu.dot_dimension_numbers<[1], [0], [0], [1], [0, 0, 1, 1], [], []>} : vector<512x3xbf16>, vector<3x32xbf16>, vector<512x32xf32> -> vector<512x32xf32>
    %65 = arith.addf %54, %64 : vector<512x32xf32>
    %c1_67 = arith.constant 1 : index
    %c2_68 = arith.constant 2 : index
    %c0_69 = arith.constant 0 : index
    %66 = vector.load %arg8[%c1_67, %c2_68, %c0_69] : memref<18x18x3xf32, #tpu.memory_space<vmem>>, vector<16x16x3xf32>
    %67 = vector.shape_cast %66 : vector<16x16x3xf32> to vector<256x3xf32>
    %c1_70 = arith.constant 1 : index
    %c2_71 = arith.constant 2 : index
    %c0_72 = arith.constant 0 : index
    %68 = vector.load %arg9[%c1_70, %c2_71, %c0_72] : memref<18x18x3xf32, #tpu.memory_space<vmem>>, vector<16x16x3xf32>
    %69 = vector.shape_cast %68 : vector<16x16x3xf32> to vector<256x3xf32>
    %70 = tpu.concatenate %67, %69 in 0 : vector<256x3xf32>, vector<256x3xf32> -> vector<512x3xf32>
    %71 = arith.truncf %70 : vector<512x3xf32> to vector<512x3xbf16>
    %c5 = arith.constant 5 : index
    %c0_73 = arith.constant 0 : index
    %c0_74 = arith.constant 0 : index
    %72 = vector.load %arg3[%c5, %c0_73, %c0_74] : memref<9x3x32xf32, #tpu.memory_space<vmem>>, vector<1x3x32xf32>
    %73 = vector.shape_cast %72 : vector<1x3x32xf32> to vector<3x32xf32>
    %74 = arith.truncf %73 : vector<3x32xf32> to vector<3x32xbf16>
    %cst_75 = arith.constant dense<0.000000e+00> : vector<512x32xf32>
    %75 = tpu.matmul %71, %74, %cst_75 {dimension_numbers = #tpu.dot_dimension_numbers<[1], [0], [0], [1], [0, 0, 1, 1], [], []>} : vector<512x3xbf16>, vector<3x32xbf16>, vector<512x32xf32> -> vector<512x32xf32>
    %76 = arith.addf %65, %75 : vector<512x32xf32>
    %c2_76 = arith.constant 2 : index
    %c0_77 = arith.constant 0 : index
    %c0_78 = arith.constant 0 : index
    %77 = vector.load %arg8[%c2_76, %c0_77, %c0_78] : memref<18x18x3xf32, #tpu.memory_space<vmem>>, vector<16x16x3xf32>
    %78 = vector.shape_cast %77 : vector<16x16x3xf32> to vector<256x3xf32>
    %c2_79 = arith.constant 2 : index
    %c0_80 = arith.constant 0 : index
    %c0_81 = arith.constant 0 : index
    %79 = vector.load %arg9[%c2_79, %c0_80, %c0_81] : memref<18x18x3xf32, #tpu.memory_space<vmem>>, vector<16x16x3xf32>
    %80 = vector.shape_cast %79 : vector<16x16x3xf32> to vector<256x3xf32>
    %81 = tpu.concatenate %78, %80 in 0 : vector<256x3xf32>, vector<256x3xf32> -> vector<512x3xf32>
    %82 = arith.truncf %81 : vector<512x3xf32> to vector<512x3xbf16>
    %c6 = arith.constant 6 : index
    %c0_82 = arith.constant 0 : index
    %c0_83 = arith.constant 0 : index
    %83 = vector.load %arg3[%c6, %c0_82, %c0_83] : memref<9x3x32xf32, #tpu.memory_space<vmem>>, vector<1x3x32xf32>
    %84 = vector.shape_cast %83 : vector<1x3x32xf32> to vector<3x32xf32>
    %85 = arith.truncf %84 : vector<3x32xf32> to vector<3x32xbf16>
    %cst_84 = arith.constant dense<0.000000e+00> : vector<512x32xf32>
    %86 = tpu.matmul %82, %85, %cst_84 {dimension_numbers = #tpu.dot_dimension_numbers<[1], [0], [0], [1], [0, 0, 1, 1], [], []>} : vector<512x3xbf16>, vector<3x32xbf16>, vector<512x32xf32> -> vector<512x32xf32>
    %87 = arith.addf %76, %86 : vector<512x32xf32>
    %c2_85 = arith.constant 2 : index
    %c1_86 = arith.constant 1 : index
    %c0_87 = arith.constant 0 : index
    %88 = vector.load %arg8[%c2_85, %c1_86, %c0_87] : memref<18x18x3xf32, #tpu.memory_space<vmem>>, vector<16x16x3xf32>
    %89 = vector.shape_cast %88 : vector<16x16x3xf32> to vector<256x3xf32>
    %c2_88 = arith.constant 2 : index
    %c1_89 = arith.constant 1 : index
    %c0_90 = arith.constant 0 : index
    %90 = vector.load %arg9[%c2_88, %c1_89, %c0_90] : memref<18x18x3xf32, #tpu.memory_space<vmem>>, vector<16x16x3xf32>
    %91 = vector.shape_cast %90 : vector<16x16x3xf32> to vector<256x3xf32>
    %92 = tpu.concatenate %89, %91 in 0 : vector<256x3xf32>, vector<256x3xf32> -> vector<512x3xf32>
    %93 = arith.truncf %92 : vector<512x3xf32> to vector<512x3xbf16>
    %c7 = arith.constant 7 : index
    %c0_91 = arith.constant 0 : index
    %c0_92 = arith.constant 0 : index
    %94 = vector.load %arg3[%c7, %c0_91, %c0_92] : memref<9x3x32xf32, #tpu.memory_space<vmem>>, vector<1x3x32xf32>
    %95 = vector.shape_cast %94 : vector<1x3x32xf32> to vector<3x32xf32>
    %96 = arith.truncf %95 : vector<3x32xf32> to vector<3x32xbf16>
    %cst_93 = arith.constant dense<0.000000e+00> : vector<512x32xf32>
    %97 = tpu.matmul %93, %96, %cst_93 {dimension_numbers = #tpu.dot_dimension_numbers<[1], [0], [0], [1], [0, 0, 1, 1], [], []>} : vector<512x3xbf16>, vector<3x32xbf16>, vector<512x32xf32> -> vector<512x32xf32>
    %98 = arith.addf %87, %97 : vector<512x32xf32>
    %c2_94 = arith.constant 2 : index
    %c2_95 = arith.constant 2 : index
    %c0_96 = arith.constant 0 : index
    %99 = vector.load %arg8[%c2_94, %c2_95, %c0_96] : memref<18x18x3xf32, #tpu.memory_space<vmem>>, vector<16x16x3xf32>
    %100 = vector.shape_cast %99 : vector<16x16x3xf32> to vector<256x3xf32>
    %c2_97 = arith.constant 2 : index
    %c2_98 = arith.constant 2 : index
    %c0_99 = arith.constant 0 : index
    %101 = vector.load %arg9[%c2_97, %c2_98, %c0_99] : memref<18x18x3xf32, #tpu.memory_space<vmem>>, vector<16x16x3xf32>
    %102 = vector.shape_cast %101 : vector<16x16x3xf32> to vector<256x3xf32>
    %103 = tpu.concatenate %100, %102 in 0 : vector<256x3xf32>, vector<256x3xf32> -> vector<512x3xf32>
    %104 = arith.truncf %103 : vector<512x3xf32> to vector<512x3xbf16>
    %c8 = arith.constant 8 : index
    %c0_100 = arith.constant 0 : index
    %c0_101 = arith.constant 0 : index
    %105 = vector.load %arg3[%c8, %c0_100, %c0_101] : memref<9x3x32xf32, #tpu.memory_space<vmem>>, vector<1x3x32xf32>
    %106 = vector.shape_cast %105 : vector<1x3x32xf32> to vector<3x32xf32>
    %107 = arith.truncf %106 : vector<3x32xf32> to vector<3x32xbf16>
    %cst_102 = arith.constant dense<0.000000e+00> : vector<512x32xf32>
    %108 = tpu.matmul %104, %107, %cst_102 {dimension_numbers = #tpu.dot_dimension_numbers<[1], [0], [0], [1], [0, 0, 1, 1], [], []>} : vector<512x3xbf16>, vector<3x32xbf16>, vector<512x32xf32> -> vector<512x32xf32>
    %109 = arith.addf %98, %108 : vector<512x32xf32>
    %c0_103 = arith.constant 0 : index
    %c0_104 = arith.constant 0 : index
    %110 = vector.load %arg4[%c0_103, %c0_104] : memref<1x32xf32, #tpu.memory_space<vmem>>, vector<1x32xf32>
    %111 = vector.broadcast %110 : vector<1x32xf32> to vector<512x32xf32>
    %112 = arith.addf %109, %111 : vector<512x32xf32>
    %cst_105 = arith.constant 0.000000e+00 : f32
    %113 = vector.broadcast %cst_105 : f32 to vector<512x32xf32>
    %114 = arith.maximumf %112, %113 : vector<512x32xf32>
    %115 = vector.extract_strided_slice %114 {offsets = [0, 0], sizes = [256, 32], strides = [1, 1]} : vector<512x32xf32> to vector<256x32xf32>
    %116 = vector.extract_strided_slice %114 {offsets = [256, 0], sizes = [256, 32], strides = [1, 1]} : vector<512x32xf32> to vector<256x32xf32>
    %117 = vector.shape_cast %115 : vector<256x32xf32> to vector<16x16x32xf32>
    %c0_106 = arith.constant 0 : index
    %c0_107 = arith.constant 0 : index
    %c0_108 = arith.constant 0 : index
    %c0_109 = arith.constant 0 : index
    %118 = vector.load %arg5[%c0_106, %c0_107, %c0_108, %c0_109] : memref<1x16x16x32xf32, #tpu.memory_space<vmem>>, vector<1x16x16x32xf32>
    %119 = vector.shape_cast %118 : vector<1x16x16x32xf32> to vector<16x16x32xf32>
    %120 = vector.shape_cast %117 : vector<16x16x32xf32> to vector<1x16x16x32xf32>
    tpu.vector_store %arg5[%c0_106, %c0_107, %c0_108, %c0_109], %120 {strides = array<i32>} : memref<1x16x16x32xf32, #tpu.memory_space<vmem>>, vector<1x16x16x32xf32>,
    %121 = vector.shape_cast %116 : vector<256x32xf32> to vector<16x16x32xf32>
    %c0_110 = arith.constant 0 : index
    %c0_111 = arith.constant 0 : index
    %c0_112 = arith.constant 0 : index
    %c0_113 = arith.constant 0 : index
    %122 = vector.load %arg6[%c0_110, %c0_111, %c0_112, %c0_113] : memref<1x16x16x32xf32, #tpu.memory_space<vmem>>, vector<1x16x16x32xf32>
    %123 = vector.shape_cast %122 : vector<1x16x16x32xf32> to vector<16x16x32xf32>
    %124 = vector.shape_cast %121 : vector<16x16x32xf32> to vector<1x16x16x32xf32>
    tpu.vector_store %arg6[%c0_110, %c0_111, %c0_112, %c0_113], %124 {strides = array<i32>} : memref<1x16x16x32xf32, #tpu.memory_space<vmem>>, vector<1x16x16x32xf32>,
    %125 = arith.subf %115, %116 : vector<256x32xf32>
    %126 = math.absf %125 : vector<256x32xf32>
    %127 = vector.shape_cast %126 : vector<256x32xf32> to vector<1x256x32xf32>
    %cst_114 = arith.constant dense<0.000000e+00> : vector<1xf32>
    %128 = vector.multi_reduction <add>, %127, %cst_114 [1, 2] : vector<1x256x32xf32> to vector<1xf32>
    %129 = vector.shape_cast %128 : vector<1xf32> to vector<1x1x1xf32>
    %130 = vector.extract %129[0, 0, 0] : f32 from vector<1x1x1xf32>
    %131 = vector.broadcast %130 : f32 to vector<1x1x1xf32>
    %c0_115 = arith.constant 0 : index
    %c0_116 = arith.constant 0 : index
    %c0_117 = arith.constant 0 : index
    %132 = vector.load %arg7[%c0_115, %c0_116, %c0_117] : memref<1x1x1xf32, #tpu.memory_space<vmem>>, vector<1x1x1xf32>
    tpu.vector_store %arg7[%c0_115, %c0_116, %c0_117], %131 {strides = array<i32>} : memref<1x1x1xf32, #tpu.memory_space<vmem>>, vector<1x1x1xf32>,
    return
  }
  func.func @transform_0(%arg0: i32) -> (i32, i32, i32, i32) {
    %c0_i32 = arith.constant 0 : i32
    %c0_i32_0 = arith.constant 0 : i32
    %c0_i32_1 = arith.constant 0 : i32
    %c0_i32_2 = arith.constant 0 : i32
    return %arg0, %c0_i32, %c0_i32_0, %c0_i32_1 : i32, i32, i32, i32
  }
  func.func @transform_1(%arg0: i32) -> (i32, i32, i32, i32) {
    %c0_i32 = arith.constant 0 : i32
    %c0_i32_0 = arith.constant 0 : i32
    %c0_i32_1 = arith.constant 0 : i32
    %c0_i32_2 = arith.constant 0 : i32
    return %arg0, %c0_i32, %c0_i32_0, %c0_i32_1 : i32, i32, i32, i32
  }
  func.func @transform_2(%arg0: i32) -> (i32, i32, i32) {
    %c0_i32 = arith.constant 0 : i32
    %c0_i32_0 = arith.constant 0 : i32
    %c0_i32_1 = arith.constant 0 : i32
    %c0_i32_2 = arith.constant 0 : i32
    return %c0_i32, %c0_i32_0, %c0_i32_1 : i32, i32, i32
  }
  func.func @transform_3(%arg0: i32) -> (i32, i32) {
    %c0_i32 = arith.constant 0 : i32
    %c0_i32_0 = arith.constant 0 : i32
    %c0_i32_1 = arith.constant 0 : i32
    return %c0_i32, %c0_i32_0 : i32, i32
  }
  func.func @transform_4(%arg0: i32) -> (i32, i32, i32, i32) {
    %c0_i32 = arith.constant 0 : i32
    %c0_i32_0 = arith.constant 0 : i32
    %c0_i32_1 = arith.constant 0 : i32
    %c0_i32_2 = arith.constant 0 : i32
    return %arg0, %c0_i32, %c0_i32_0, %c0_i32_1 : i32, i32, i32, i32
  }
  func.func @transform_5(%arg0: i32) -> (i32, i32, i32, i32) {
    %c0_i32 = arith.constant 0 : i32
    %c0_i32_0 = arith.constant 0 : i32
    %c0_i32_1 = arith.constant 0 : i32
    %c0_i32_2 = arith.constant 0 : i32
    return %arg0, %c0_i32, %c0_i32_0, %c0_i32_1 : i32, i32, i32, i32
  }
  func.func @transform_6(%arg0: i32) -> (i32, i32, i32) {
    %c0_i32 = arith.constant 0 : i32
    %c0_i32_0 = arith.constant 0 : i32
    %c0_i32_1 = arith.constant 0 : i32
    return %arg0, %c0_i32, %c0_i32_0 : i32, i32, i32
  }
}

module attributes {stable_mosaic.version = 11 : i64} {
  func.func @_fused_conv3x3_relu_l1_kernel(%arg0: i32, %arg1: memref<1x8x8x32xf32, #tpu.memory_space<vmem>>, %arg2: memref<1x8x8x32xf32, #tpu.memory_space<vmem>>, %arg3: memref<9x32x64xf32, #tpu.memory_space<vmem>>, %arg4: memref<1x64xf32, #tpu.memory_space<vmem>>, %arg5: memref<1x8x8x64xf32, #tpu.memory_space<vmem>>, %arg6: memref<1x8x8x64xf32, #tpu.memory_space<vmem>>, %arg7: memref<1x1x1xf32, #tpu.memory_space<vmem>>, %arg8: memref<10x10x32xf32, #tpu.memory_space<vmem>>, %arg9: memref<10x10x32xf32, #tpu.memory_space<vmem>>) attributes {dimension_semantics = [#tpu.dimension_semantics<parallel>], iteration_bounds = array<i64: 2>, scalar_prefetch = 0 : i64, scratch_operands = 2 : i64, tpu.core_type = #tpu.core_type<tc>, window_params = [{transform_indices = @transform_0, window_bounds = array<i64: 1, 8, 8, 32>}, {transform_indices = @transform_1, window_bounds = array<i64: 1, 8, 8, 32>}, {pipeline_mode = #tpu.pipeline_mode<synchronous>, transform_indices = @transform_2, window_bounds = array<i64: 9, 32, 64>}, {pipeline_mode = #tpu.pipeline_mode<synchronous>, transform_indices = @transform_3, window_bounds = array<i64: 1, 64>}, {transform_indices = @transform_4, window_bounds = array<i64: 1, 8, 8, 64>}, {transform_indices = @transform_5, window_bounds = array<i64: 1, 8, 8, 64>}, {transform_indices = @transform_6, window_bounds = array<i64: 1, 1, 1>}]} {
    %cst = arith.constant 0.000000e+00 : f32
    %0 = vector.broadcast %cst : f32 to vector<10x10x32xf32>
    %c0 = arith.constant 0 : index
    %c0_0 = arith.constant 0 : index
    %c0_1 = arith.constant 0 : index
    %1 = vector.load %arg8[%c0, %c0_0, %c0_1] : memref<10x10x32xf32, #tpu.memory_space<vmem>>, vector<10x10x32xf32>
    tpu.vector_store %arg8[%c0, %c0_0, %c0_1], %0 {strides = array<i32>} : memref<10x10x32xf32, #tpu.memory_space<vmem>>, vector<10x10x32xf32>,
    %cst_2 = arith.constant 0.000000e+00 : f32
    %2 = vector.broadcast %cst_2 : f32 to vector<10x10x32xf32>
    %c0_3 = arith.constant 0 : index
    %c0_4 = arith.constant 0 : index
    %c0_5 = arith.constant 0 : index
    %3 = vector.load %arg9[%c0_3, %c0_4, %c0_5] : memref<10x10x32xf32, #tpu.memory_space<vmem>>, vector<10x10x32xf32>
    tpu.vector_store %arg9[%c0_3, %c0_4, %c0_5], %2 {strides = array<i32>} : memref<10x10x32xf32, #tpu.memory_space<vmem>>, vector<10x10x32xf32>,
    %c0_6 = arith.constant 0 : index
    %c0_7 = arith.constant 0 : index
    %c0_8 = arith.constant 0 : index
    %c0_9 = arith.constant 0 : index
    %4 = vector.load %arg1[%c0_6, %c0_7, %c0_8, %c0_9] : memref<1x8x8x32xf32, #tpu.memory_space<vmem>>, vector<1x8x8x32xf32>
    %5 = vector.shape_cast %4 : vector<1x8x8x32xf32> to vector<8x8x32xf32>
    %c1 = arith.constant 1 : index
    %c1_10 = arith.constant 1 : index
    %c0_11 = arith.constant 0 : index
    %6 = vector.load %arg8[%c1, %c1_10, %c0_11] : memref<10x10x32xf32, #tpu.memory_space<vmem>>, vector<8x8x32xf32>
    tpu.vector_store %arg8[%c1, %c1_10, %c0_11], %5 {strides = array<i32>} : memref<10x10x32xf32, #tpu.memory_space<vmem>>, vector<8x8x32xf32>,
    %c0_12 = arith.constant 0 : index
    %c0_13 = arith.constant 0 : index
    %c0_14 = arith.constant 0 : index
    %c0_15 = arith.constant 0 : index
    %7 = vector.load %arg2[%c0_12, %c0_13, %c0_14, %c0_15] : memref<1x8x8x32xf32, #tpu.memory_space<vmem>>, vector<1x8x8x32xf32>
    %8 = vector.shape_cast %7 : vector<1x8x8x32xf32> to vector<8x8x32xf32>
    %c1_16 = arith.constant 1 : index
    %c1_17 = arith.constant 1 : index
    %c0_18 = arith.constant 0 : index
    %9 = vector.load %arg9[%c1_16, %c1_17, %c0_18] : memref<10x10x32xf32, #tpu.memory_space<vmem>>, vector<8x8x32xf32>
    tpu.vector_store %arg9[%c1_16, %c1_17, %c0_18], %8 {strides = array<i32>} : memref<10x10x32xf32, #tpu.memory_space<vmem>>, vector<8x8x32xf32>,
    %c0_19 = arith.constant 0 : index
    %c0_20 = arith.constant 0 : index
    %c0_21 = arith.constant 0 : index
    %10 = vector.load %arg3[%c0_19, %c0_20, %c0_21] : memref<9x32x64xf32, #tpu.memory_space<vmem>>, vector<9x32x64xf32>
    %11 = vector.shape_cast %10 : vector<9x32x64xf32> to vector<288x64xf32>
    %12 = arith.truncf %11 : vector<288x64xf32> to vector<288x64xbf16>
    %c0_22 = arith.constant 0 : index
    %c0_23 = arith.constant 0 : index
    %c0_24 = arith.constant 0 : index
    %13 = vector.load %arg8[%c0_22, %c0_23, %c0_24] : memref<10x10x32xf32, #tpu.memory_space<vmem>>, vector<8x8x32xf32>
    %14 = vector.shape_cast %13 : vector<8x8x32xf32> to vector<64x32xf32>
    %c0_25 = arith.constant 0 : index
    %c1_26 = arith.constant 1 : index
    %c0_27 = arith.constant 0 : index
    %15 = vector.load %arg8[%c0_25, %c1_26, %c0_27] : memref<10x10x32xf32, #tpu.memory_space<vmem>>, vector<8x8x32xf32>
    %16 = vector.shape_cast %15 : vector<8x8x32xf32> to vector<64x32xf32>
    %c0_28 = arith.constant 0 : index
    %c2 = arith.constant 2 : index
    %c0_29 = arith.constant 0 : index
    %17 = vector.load %arg8[%c0_28, %c2, %c0_29] : memref<10x10x32xf32, #tpu.memory_space<vmem>>, vector<8x8x32xf32>
    %18 = vector.shape_cast %17 : vector<8x8x32xf32> to vector<64x32xf32>
    %c1_30 = arith.constant 1 : index
    %c0_31 = arith.constant 0 : index
    %c0_32 = arith.constant 0 : index
    %19 = vector.load %arg8[%c1_30, %c0_31, %c0_32] : memref<10x10x32xf32, #tpu.memory_space<vmem>>, vector<8x8x32xf32>
    %20 = vector.shape_cast %19 : vector<8x8x32xf32> to vector<64x32xf32>
    %c1_33 = arith.constant 1 : index
    %c1_34 = arith.constant 1 : index
    %c0_35 = arith.constant 0 : index
    %21 = vector.load %arg8[%c1_33, %c1_34, %c0_35] : memref<10x10x32xf32, #tpu.memory_space<vmem>>, vector<8x8x32xf32>
    %22 = vector.shape_cast %21 : vector<8x8x32xf32> to vector<64x32xf32>
    %c1_36 = arith.constant 1 : index
    %c2_37 = arith.constant 2 : index
    %c0_38 = arith.constant 0 : index
    %23 = vector.load %arg8[%c1_36, %c2_37, %c0_38] : memref<10x10x32xf32, #tpu.memory_space<vmem>>, vector<8x8x32xf32>
    %24 = vector.shape_cast %23 : vector<8x8x32xf32> to vector<64x32xf32>
    %c2_39 = arith.constant 2 : index
    %c0_40 = arith.constant 0 : index
    %c0_41 = arith.constant 0 : index
    %25 = vector.load %arg8[%c2_39, %c0_40, %c0_41] : memref<10x10x32xf32, #tpu.memory_space<vmem>>, vector<8x8x32xf32>
    %26 = vector.shape_cast %25 : vector<8x8x32xf32> to vector<64x32xf32>
    %c2_42 = arith.constant 2 : index
    %c1_43 = arith.constant 1 : index
    %c0_44 = arith.constant 0 : index
    %27 = vector.load %arg8[%c2_42, %c1_43, %c0_44] : memref<10x10x32xf32, #tpu.memory_space<vmem>>, vector<8x8x32xf32>
    %28 = vector.shape_cast %27 : vector<8x8x32xf32> to vector<64x32xf32>
    %c2_45 = arith.constant 2 : index
    %c2_46 = arith.constant 2 : index
    %c0_47 = arith.constant 0 : index
    %29 = vector.load %arg8[%c2_45, %c2_46, %c0_47] : memref<10x10x32xf32, #tpu.memory_space<vmem>>, vector<8x8x32xf32>
    %30 = vector.shape_cast %29 : vector<8x8x32xf32> to vector<64x32xf32>
    %31 = tpu.concatenate %14, %16, %18, %20, %22, %24, %26, %28, %30 in 1 : vector<64x32xf32>, vector<64x32xf32>, vector<64x32xf32>, vector<64x32xf32>, vector<64x32xf32>, vector<64x32xf32>, vector<64x32xf32>, vector<64x32xf32>, vector<64x32xf32> -> vector<64x288xf32>
    %c0_48 = arith.constant 0 : index
    %c0_49 = arith.constant 0 : index
    %c0_50 = arith.constant 0 : index
    %32 = vector.load %arg9[%c0_48, %c0_49, %c0_50] : memref<10x10x32xf32, #tpu.memory_space<vmem>>, vector<8x8x32xf32>
    %33 = vector.shape_cast %32 : vector<8x8x32xf32> to vector<64x32xf32>
    %c0_51 = arith.constant 0 : index
    %c1_52 = arith.constant 1 : index
    %c0_53 = arith.constant 0 : index
    %34 = vector.load %arg9[%c0_51, %c1_52, %c0_53] : memref<10x10x32xf32, #tpu.memory_space<vmem>>, vector<8x8x32xf32>
    %35 = vector.shape_cast %34 : vector<8x8x32xf32> to vector<64x32xf32>
    %c0_54 = arith.constant 0 : index
    %c2_55 = arith.constant 2 : index
    %c0_56 = arith.constant 0 : index
    %36 = vector.load %arg9[%c0_54, %c2_55, %c0_56] : memref<10x10x32xf32, #tpu.memory_space<vmem>>, vector<8x8x32xf32>
    %37 = vector.shape_cast %36 : vector<8x8x32xf32> to vector<64x32xf32>
    %c1_57 = arith.constant 1 : index
    %c0_58 = arith.constant 0 : index
    %c0_59 = arith.constant 0 : index
    %38 = vector.load %arg9[%c1_57, %c0_58, %c0_59] : memref<10x10x32xf32, #tpu.memory_space<vmem>>, vector<8x8x32xf32>
    %39 = vector.shape_cast %38 : vector<8x8x32xf32> to vector<64x32xf32>
    %c1_60 = arith.constant 1 : index
    %c1_61 = arith.constant 1 : index
    %c0_62 = arith.constant 0 : index
    %40 = vector.load %arg9[%c1_60, %c1_61, %c0_62] : memref<10x10x32xf32, #tpu.memory_space<vmem>>, vector<8x8x32xf32>
    %41 = vector.shape_cast %40 : vector<8x8x32xf32> to vector<64x32xf32>
    %c1_63 = arith.constant 1 : index
    %c2_64 = arith.constant 2 : index
    %c0_65 = arith.constant 0 : index
    %42 = vector.load %arg9[%c1_63, %c2_64, %c0_65] : memref<10x10x32xf32, #tpu.memory_space<vmem>>, vector<8x8x32xf32>
    %43 = vector.shape_cast %42 : vector<8x8x32xf32> to vector<64x32xf32>
    %c2_66 = arith.constant 2 : index
    %c0_67 = arith.constant 0 : index
    %c0_68 = arith.constant 0 : index
    %44 = vector.load %arg9[%c2_66, %c0_67, %c0_68] : memref<10x10x32xf32, #tpu.memory_space<vmem>>, vector<8x8x32xf32>
    %45 = vector.shape_cast %44 : vector<8x8x32xf32> to vector<64x32xf32>
    %c2_69 = arith.constant 2 : index
    %c1_70 = arith.constant 1 : index
    %c0_71 = arith.constant 0 : index
    %46 = vector.load %arg9[%c2_69, %c1_70, %c0_71] : memref<10x10x32xf32, #tpu.memory_space<vmem>>, vector<8x8x32xf32>
    %47 = vector.shape_cast %46 : vector<8x8x32xf32> to vector<64x32xf32>
    %c2_72 = arith.constant 2 : index
    %c2_73 = arith.constant 2 : index
    %c0_74 = arith.constant 0 : index
    %48 = vector.load %arg9[%c2_72, %c2_73, %c0_74] : memref<10x10x32xf32, #tpu.memory_space<vmem>>, vector<8x8x32xf32>
    %49 = vector.shape_cast %48 : vector<8x8x32xf32> to vector<64x32xf32>
    %50 = tpu.concatenate %33, %35, %37, %39, %41, %43, %45, %47, %49 in 1 : vector<64x32xf32>, vector<64x32xf32>, vector<64x32xf32>, vector<64x32xf32>, vector<64x32xf32>, vector<64x32xf32>, vector<64x32xf32>, vector<64x32xf32>, vector<64x32xf32> -> vector<64x288xf32>
    %51 = tpu.concatenate %31, %50 in 0 : vector<64x288xf32>, vector<64x288xf32> -> vector<128x288xf32>
    %52 = arith.truncf %51 : vector<128x288xf32> to vector<128x288xbf16>
    %cst_75 = arith.constant dense<0.000000e+00> : vector<128x64xf32>
    %53 = tpu.matmul %52, %12, %cst_75 {dimension_numbers = #tpu.dot_dimension_numbers<[1], [0], [0], [1], [0, 0, 1, 1], [], []>} : vector<128x288xbf16>, vector<288x64xbf16>, vector<128x64xf32> -> vector<128x64xf32>
    %c0_76 = arith.constant 0 : index
    %c0_77 = arith.constant 0 : index
    %54 = vector.load %arg4[%c0_76, %c0_77] : memref<1x64xf32, #tpu.memory_space<vmem>>, vector<1x64xf32>
    %55 = vector.broadcast %54 : vector<1x64xf32> to vector<128x64xf32>
    %56 = arith.addf %53, %55 : vector<128x64xf32>
    %cst_78 = arith.constant 0.000000e+00 : f32
    %57 = vector.broadcast %cst_78 : f32 to vector<128x64xf32>
    %58 = arith.maximumf %56, %57 : vector<128x64xf32>
    %59 = vector.extract_strided_slice %58 {offsets = [0, 0], sizes = [64, 64], strides = [1, 1]} : vector<128x64xf32> to vector<64x64xf32>
    %60 = vector.extract_strided_slice %58 {offsets = [64, 0], sizes = [64, 64], strides = [1, 1]} : vector<128x64xf32> to vector<64x64xf32>
    %61 = vector.shape_cast %59 : vector<64x64xf32> to vector<8x8x64xf32>
    %c0_79 = arith.constant 0 : index
    %c0_80 = arith.constant 0 : index
    %c0_81 = arith.constant 0 : index
    %c0_82 = arith.constant 0 : index
    %62 = vector.load %arg5[%c0_79, %c0_80, %c0_81, %c0_82] : memref<1x8x8x64xf32, #tpu.memory_space<vmem>>, vector<1x8x8x64xf32>
    %63 = vector.shape_cast %62 : vector<1x8x8x64xf32> to vector<8x8x64xf32>
    %64 = vector.shape_cast %61 : vector<8x8x64xf32> to vector<1x8x8x64xf32>
    tpu.vector_store %arg5[%c0_79, %c0_80, %c0_81, %c0_82], %64 {strides = array<i32>} : memref<1x8x8x64xf32, #tpu.memory_space<vmem>>, vector<1x8x8x64xf32>,
    %65 = vector.shape_cast %60 : vector<64x64xf32> to vector<8x8x64xf32>
    %c0_83 = arith.constant 0 : index
    %c0_84 = arith.constant 0 : index
    %c0_85 = arith.constant 0 : index
    %c0_86 = arith.constant 0 : index
    %66 = vector.load %arg6[%c0_83, %c0_84, %c0_85, %c0_86] : memref<1x8x8x64xf32, #tpu.memory_space<vmem>>, vector<1x8x8x64xf32>
    %67 = vector.shape_cast %66 : vector<1x8x8x64xf32> to vector<8x8x64xf32>
    %68 = vector.shape_cast %65 : vector<8x8x64xf32> to vector<1x8x8x64xf32>
    tpu.vector_store %arg6[%c0_83, %c0_84, %c0_85, %c0_86], %68 {strides = array<i32>} : memref<1x8x8x64xf32, #tpu.memory_space<vmem>>, vector<1x8x8x64xf32>,
    %69 = arith.subf %59, %60 : vector<64x64xf32>
    %70 = math.absf %69 : vector<64x64xf32>
    %71 = vector.shape_cast %70 : vector<64x64xf32> to vector<1x64x64xf32>
    %cst_87 = arith.constant dense<0.000000e+00> : vector<1xf32>
    %72 = vector.multi_reduction <add>, %71, %cst_87 [1, 2] : vector<1x64x64xf32> to vector<1xf32>
    %73 = vector.shape_cast %72 : vector<1xf32> to vector<1x1x1xf32>
    %74 = vector.extract %73[0, 0, 0] : f32 from vector<1x1x1xf32>
    %75 = vector.broadcast %74 : f32 to vector<1x1x1xf32>
    %c0_88 = arith.constant 0 : index
    %c0_89 = arith.constant 0 : index
    %c0_90 = arith.constant 0 : index
    %76 = vector.load %arg7[%c0_88, %c0_89, %c0_90] : memref<1x1x1xf32, #tpu.memory_space<vmem>>, vector<1x1x1xf32>
    tpu.vector_store %arg7[%c0_88, %c0_89, %c0_90], %75 {strides = array<i32>} : memref<1x1x1xf32, #tpu.memory_space<vmem>>, vector<1x1x1xf32>,
    return
  }
  func.func @transform_0(%arg0: i32) -> (i32, i32, i32, i32) {
    %c0_i32 = arith.constant 0 : i32
    %c0_i32_0 = arith.constant 0 : i32
    %c0_i32_1 = arith.constant 0 : i32
    %c0_i32_2 = arith.constant 0 : i32
    return %arg0, %c0_i32, %c0_i32_0, %c0_i32_1 : i32, i32, i32, i32
  }
  func.func @transform_1(%arg0: i32) -> (i32, i32, i32, i32) {
    %c0_i32 = arith.constant 0 : i32
    %c0_i32_0 = arith.constant 0 : i32
    %c0_i32_1 = arith.constant 0 : i32
    %c0_i32_2 = arith.constant 0 : i32
    return %arg0, %c0_i32, %c0_i32_0, %c0_i32_1 : i32, i32, i32, i32
  }
  func.func @transform_2(%arg0: i32) -> (i32, i32, i32) {
    %c0_i32 = arith.constant 0 : i32
    %c0_i32_0 = arith.constant 0 : i32
    %c0_i32_1 = arith.constant 0 : i32
    %c0_i32_2 = arith.constant 0 : i32
    return %c0_i32, %c0_i32_0, %c0_i32_1 : i32, i32, i32
  }
  func.func @transform_3(%arg0: i32) -> (i32, i32) {
    %c0_i32 = arith.constant 0 : i32
    %c0_i32_0 = arith.constant 0 : i32
    %c0_i32_1 = arith.constant 0 : i32
    return %c0_i32, %c0_i32_0 : i32, i32
  }
  func.func @transform_4(%arg0: i32) -> (i32, i32, i32, i32) {
    %c0_i32 = arith.constant 0 : i32
    %c0_i32_0 = arith.constant 0 : i32
    %c0_i32_1 = arith.constant 0 : i32
    %c0_i32_2 = arith.constant 0 : i32
    return %arg0, %c0_i32, %c0_i32_0, %c0_i32_1 : i32, i32, i32, i32
  }
  func.func @transform_5(%arg0: i32) -> (i32, i32, i32, i32) {
    %c0_i32 = arith.constant 0 : i32
    %c0_i32_0 = arith.constant 0 : i32
    %c0_i32_1 = arith.constant 0 : i32
    %c0_i32_2 = arith.constant 0 : i32
    return %arg0, %c0_i32, %c0_i32_0, %c0_i32_1 : i32, i32, i32, i32
  }
  func.func @transform_6(%arg0: i32) -> (i32, i32, i32) {
    %c0_i32 = arith.constant 0 : i32
    %c0_i32_0 = arith.constant 0 : i32
    %c0_i32_1 = arith.constant 0 : i32
    return %arg0, %c0_i32, %c0_i32_0 : i32, i32, i32
  }
}

module attributes {stable_mosaic.version = 11 : i64} {
  func.func @_fused_conv3x3_relu_l1_kernel(%arg0: i32, %arg1: memref<1x4x4x64xf32, #tpu.memory_space<vmem>>, %arg2: memref<1x4x4x64xf32, #tpu.memory_space<vmem>>, %arg3: memref<9x64x128xf32, #tpu.memory_space<vmem>>, %arg4: memref<1x128xf32, #tpu.memory_space<vmem>>, %arg5: memref<1x4x4x128xf32, #tpu.memory_space<vmem>>, %arg6: memref<1x4x4x128xf32, #tpu.memory_space<vmem>>, %arg7: memref<1x1x1xf32, #tpu.memory_space<vmem>>, %arg8: memref<6x6x64xf32, #tpu.memory_space<vmem>>, %arg9: memref<6x6x64xf32, #tpu.memory_space<vmem>>) attributes {dimension_semantics = [#tpu.dimension_semantics<parallel>], iteration_bounds = array<i64: 2>, scalar_prefetch = 0 : i64, scratch_operands = 2 : i64, tpu.core_type = #tpu.core_type<tc>, window_params = [{transform_indices = @transform_0, window_bounds = array<i64: 1, 4, 4, 64>}, {transform_indices = @transform_1, window_bounds = array<i64: 1, 4, 4, 64>}, {pipeline_mode = #tpu.pipeline_mode<synchronous>, transform_indices = @transform_2, window_bounds = array<i64: 9, 64, 128>}, {pipeline_mode = #tpu.pipeline_mode<synchronous>, transform_indices = @transform_3, window_bounds = array<i64: 1, 128>}, {transform_indices = @transform_4, window_bounds = array<i64: 1, 4, 4, 128>}, {transform_indices = @transform_5, window_bounds = array<i64: 1, 4, 4, 128>}, {transform_indices = @transform_6, window_bounds = array<i64: 1, 1, 1>}]} {
    %cst = arith.constant 0.000000e+00 : f32
    %0 = vector.broadcast %cst : f32 to vector<6x6x64xf32>
    %c0 = arith.constant 0 : index
    %c0_0 = arith.constant 0 : index
    %c0_1 = arith.constant 0 : index
    %1 = vector.load %arg8[%c0, %c0_0, %c0_1] : memref<6x6x64xf32, #tpu.memory_space<vmem>>, vector<6x6x64xf32>
    tpu.vector_store %arg8[%c0, %c0_0, %c0_1], %0 {strides = array<i32>} : memref<6x6x64xf32, #tpu.memory_space<vmem>>, vector<6x6x64xf32>,
    %cst_2 = arith.constant 0.000000e+00 : f32
    %2 = vector.broadcast %cst_2 : f32 to vector<6x6x64xf32>
    %c0_3 = arith.constant 0 : index
    %c0_4 = arith.constant 0 : index
    %c0_5 = arith.constant 0 : index
    %3 = vector.load %arg9[%c0_3, %c0_4, %c0_5] : memref<6x6x64xf32, #tpu.memory_space<vmem>>, vector<6x6x64xf32>
    tpu.vector_store %arg9[%c0_3, %c0_4, %c0_5], %2 {strides = array<i32>} : memref<6x6x64xf32, #tpu.memory_space<vmem>>, vector<6x6x64xf32>,
    %c0_6 = arith.constant 0 : index
    %c0_7 = arith.constant 0 : index
    %c0_8 = arith.constant 0 : index
    %c0_9 = arith.constant 0 : index
    %4 = vector.load %arg1[%c0_6, %c0_7, %c0_8, %c0_9] : memref<1x4x4x64xf32, #tpu.memory_space<vmem>>, vector<1x4x4x64xf32>
    %5 = vector.shape_cast %4 : vector<1x4x4x64xf32> to vector<4x4x64xf32>
    %c1 = arith.constant 1 : index
    %c1_10 = arith.constant 1 : index
    %c0_11 = arith.constant 0 : index
    %6 = vector.load %arg8[%c1, %c1_10, %c0_11] : memref<6x6x64xf32, #tpu.memory_space<vmem>>, vector<4x4x64xf32>
    tpu.vector_store %arg8[%c1, %c1_10, %c0_11], %5 {strides = array<i32>} : memref<6x6x64xf32, #tpu.memory_space<vmem>>, vector<4x4x64xf32>,
    %c0_12 = arith.constant 0 : index
    %c0_13 = arith.constant 0 : index
    %c0_14 = arith.constant 0 : index
    %c0_15 = arith.constant 0 : index
    %7 = vector.load %arg2[%c0_12, %c0_13, %c0_14, %c0_15] : memref<1x4x4x64xf32, #tpu.memory_space<vmem>>, vector<1x4x4x64xf32>
    %8 = vector.shape_cast %7 : vector<1x4x4x64xf32> to vector<4x4x64xf32>
    %c1_16 = arith.constant 1 : index
    %c1_17 = arith.constant 1 : index
    %c0_18 = arith.constant 0 : index
    %9 = vector.load %arg9[%c1_16, %c1_17, %c0_18] : memref<6x6x64xf32, #tpu.memory_space<vmem>>, vector<4x4x64xf32>
    tpu.vector_store %arg9[%c1_16, %c1_17, %c0_18], %8 {strides = array<i32>} : memref<6x6x64xf32, #tpu.memory_space<vmem>>, vector<4x4x64xf32>,
    %c0_19 = arith.constant 0 : index
    %c0_20 = arith.constant 0 : index
    %c0_21 = arith.constant 0 : index
    %10 = vector.load %arg3[%c0_19, %c0_20, %c0_21] : memref<9x64x128xf32, #tpu.memory_space<vmem>>, vector<9x64x128xf32>
    %11 = vector.shape_cast %10 : vector<9x64x128xf32> to vector<576x128xf32>
    %12 = arith.truncf %11 : vector<576x128xf32> to vector<576x128xbf16>
    %c0_22 = arith.constant 0 : index
    %c0_23 = arith.constant 0 : index
    %c0_24 = arith.constant 0 : index
    %13 = vector.load %arg8[%c0_22, %c0_23, %c0_24] : memref<6x6x64xf32, #tpu.memory_space<vmem>>, vector<4x4x64xf32>
    %14 = vector.shape_cast %13 : vector<4x4x64xf32> to vector<16x64xf32>
    %c0_25 = arith.constant 0 : index
    %c1_26 = arith.constant 1 : index
    %c0_27 = arith.constant 0 : index
    %15 = vector.load %arg8[%c0_25, %c1_26, %c0_27] : memref<6x6x64xf32, #tpu.memory_space<vmem>>, vector<4x4x64xf32>
    %16 = vector.shape_cast %15 : vector<4x4x64xf32> to vector<16x64xf32>
    %c0_28 = arith.constant 0 : index
    %c2 = arith.constant 2 : index
    %c0_29 = arith.constant 0 : index
    %17 = vector.load %arg8[%c0_28, %c2, %c0_29] : memref<6x6x64xf32, #tpu.memory_space<vmem>>, vector<4x4x64xf32>
    %18 = vector.shape_cast %17 : vector<4x4x64xf32> to vector<16x64xf32>
    %c1_30 = arith.constant 1 : index
    %c0_31 = arith.constant 0 : index
    %c0_32 = arith.constant 0 : index
    %19 = vector.load %arg8[%c1_30, %c0_31, %c0_32] : memref<6x6x64xf32, #tpu.memory_space<vmem>>, vector<4x4x64xf32>
    %20 = vector.shape_cast %19 : vector<4x4x64xf32> to vector<16x64xf32>
    %c1_33 = arith.constant 1 : index
    %c1_34 = arith.constant 1 : index
    %c0_35 = arith.constant 0 : index
    %21 = vector.load %arg8[%c1_33, %c1_34, %c0_35] : memref<6x6x64xf32, #tpu.memory_space<vmem>>, vector<4x4x64xf32>
    %22 = vector.shape_cast %21 : vector<4x4x64xf32> to vector<16x64xf32>
    %c1_36 = arith.constant 1 : index
    %c2_37 = arith.constant 2 : index
    %c0_38 = arith.constant 0 : index
    %23 = vector.load %arg8[%c1_36, %c2_37, %c0_38] : memref<6x6x64xf32, #tpu.memory_space<vmem>>, vector<4x4x64xf32>
    %24 = vector.shape_cast %23 : vector<4x4x64xf32> to vector<16x64xf32>
    %c2_39 = arith.constant 2 : index
    %c0_40 = arith.constant 0 : index
    %c0_41 = arith.constant 0 : index
    %25 = vector.load %arg8[%c2_39, %c0_40, %c0_41] : memref<6x6x64xf32, #tpu.memory_space<vmem>>, vector<4x4x64xf32>
    %26 = vector.shape_cast %25 : vector<4x4x64xf32> to vector<16x64xf32>
    %c2_42 = arith.constant 2 : index
    %c1_43 = arith.constant 1 : index
    %c0_44 = arith.constant 0 : index
    %27 = vector.load %arg8[%c2_42, %c1_43, %c0_44] : memref<6x6x64xf32, #tpu.memory_space<vmem>>, vector<4x4x64xf32>
    %28 = vector.shape_cast %27 : vector<4x4x64xf32> to vector<16x64xf32>
    %c2_45 = arith.constant 2 : index
    %c2_46 = arith.constant 2 : index
    %c0_47 = arith.constant 0 : index
    %29 = vector.load %arg8[%c2_45, %c2_46, %c0_47] : memref<6x6x64xf32, #tpu.memory_space<vmem>>, vector<4x4x64xf32>
    %30 = vector.shape_cast %29 : vector<4x4x64xf32> to vector<16x64xf32>
    %31 = tpu.concatenate %14, %16, %18, %20, %22, %24, %26, %28, %30 in 1 : vector<16x64xf32>, vector<16x64xf32>, vector<16x64xf32>, vector<16x64xf32>, vector<16x64xf32>, vector<16x64xf32>, vector<16x64xf32>, vector<16x64xf32>, vector<16x64xf32> -> vector<16x576xf32>
    %c0_48 = arith.constant 0 : index
    %c0_49 = arith.constant 0 : index
    %c0_50 = arith.constant 0 : index
    %32 = vector.load %arg9[%c0_48, %c0_49, %c0_50] : memref<6x6x64xf32, #tpu.memory_space<vmem>>, vector<4x4x64xf32>
    %33 = vector.shape_cast %32 : vector<4x4x64xf32> to vector<16x64xf32>
    %c0_51 = arith.constant 0 : index
    %c1_52 = arith.constant 1 : index
    %c0_53 = arith.constant 0 : index
    %34 = vector.load %arg9[%c0_51, %c1_52, %c0_53] : memref<6x6x64xf32, #tpu.memory_space<vmem>>, vector<4x4x64xf32>
    %35 = vector.shape_cast %34 : vector<4x4x64xf32> to vector<16x64xf32>
    %c0_54 = arith.constant 0 : index
    %c2_55 = arith.constant 2 : index
    %c0_56 = arith.constant 0 : index
    %36 = vector.load %arg9[%c0_54, %c2_55, %c0_56] : memref<6x6x64xf32, #tpu.memory_space<vmem>>, vector<4x4x64xf32>
    %37 = vector.shape_cast %36 : vector<4x4x64xf32> to vector<16x64xf32>
    %c1_57 = arith.constant 1 : index
    %c0_58 = arith.constant 0 : index
    %c0_59 = arith.constant 0 : index
    %38 = vector.load %arg9[%c1_57, %c0_58, %c0_59] : memref<6x6x64xf32, #tpu.memory_space<vmem>>, vector<4x4x64xf32>
    %39 = vector.shape_cast %38 : vector<4x4x64xf32> to vector<16x64xf32>
    %c1_60 = arith.constant 1 : index
    %c1_61 = arith.constant 1 : index
    %c0_62 = arith.constant 0 : index
    %40 = vector.load %arg9[%c1_60, %c1_61, %c0_62] : memref<6x6x64xf32, #tpu.memory_space<vmem>>, vector<4x4x64xf32>
    %41 = vector.shape_cast %40 : vector<4x4x64xf32> to vector<16x64xf32>
    %c1_63 = arith.constant 1 : index
    %c2_64 = arith.constant 2 : index
    %c0_65 = arith.constant 0 : index
    %42 = vector.load %arg9[%c1_63, %c2_64, %c0_65] : memref<6x6x64xf32, #tpu.memory_space<vmem>>, vector<4x4x64xf32>
    %43 = vector.shape_cast %42 : vector<4x4x64xf32> to vector<16x64xf32>
    %c2_66 = arith.constant 2 : index
    %c0_67 = arith.constant 0 : index
    %c0_68 = arith.constant 0 : index
    %44 = vector.load %arg9[%c2_66, %c0_67, %c0_68] : memref<6x6x64xf32, #tpu.memory_space<vmem>>, vector<4x4x64xf32>
    %45 = vector.shape_cast %44 : vector<4x4x64xf32> to vector<16x64xf32>
    %c2_69 = arith.constant 2 : index
    %c1_70 = arith.constant 1 : index
    %c0_71 = arith.constant 0 : index
    %46 = vector.load %arg9[%c2_69, %c1_70, %c0_71] : memref<6x6x64xf32, #tpu.memory_space<vmem>>, vector<4x4x64xf32>
    %47 = vector.shape_cast %46 : vector<4x4x64xf32> to vector<16x64xf32>
    %c2_72 = arith.constant 2 : index
    %c2_73 = arith.constant 2 : index
    %c0_74 = arith.constant 0 : index
    %48 = vector.load %arg9[%c2_72, %c2_73, %c0_74] : memref<6x6x64xf32, #tpu.memory_space<vmem>>, vector<4x4x64xf32>
    %49 = vector.shape_cast %48 : vector<4x4x64xf32> to vector<16x64xf32>
    %50 = tpu.concatenate %33, %35, %37, %39, %41, %43, %45, %47, %49 in 1 : vector<16x64xf32>, vector<16x64xf32>, vector<16x64xf32>, vector<16x64xf32>, vector<16x64xf32>, vector<16x64xf32>, vector<16x64xf32>, vector<16x64xf32>, vector<16x64xf32> -> vector<16x576xf32>
    %51 = tpu.concatenate %31, %50 in 0 : vector<16x576xf32>, vector<16x576xf32> -> vector<32x576xf32>
    %52 = arith.truncf %51 : vector<32x576xf32> to vector<32x576xbf16>
    %cst_75 = arith.constant dense<0.000000e+00> : vector<32x128xf32>
    %53 = tpu.matmul %52, %12, %cst_75 {dimension_numbers = #tpu.dot_dimension_numbers<[1], [0], [0], [1], [0, 0, 1, 1], [], []>} : vector<32x576xbf16>, vector<576x128xbf16>, vector<32x128xf32> -> vector<32x128xf32>
    %c0_76 = arith.constant 0 : index
    %c0_77 = arith.constant 0 : index
    %54 = vector.load %arg4[%c0_76, %c0_77] : memref<1x128xf32, #tpu.memory_space<vmem>>, vector<1x128xf32>
    %55 = vector.broadcast %54 : vector<1x128xf32> to vector<32x128xf32>
    %56 = arith.addf %53, %55 : vector<32x128xf32>
    %cst_78 = arith.constant 0.000000e+00 : f32
    %57 = vector.broadcast %cst_78 : f32 to vector<32x128xf32>
    %58 = arith.maximumf %56, %57 : vector<32x128xf32>
    %59 = vector.extract_strided_slice %58 {offsets = [0, 0], sizes = [16, 128], strides = [1, 1]} : vector<32x128xf32> to vector<16x128xf32>
    %60 = vector.extract_strided_slice %58 {offsets = [16, 0], sizes = [16, 128], strides = [1, 1]} : vector<32x128xf32> to vector<16x128xf32>
    %61 = vector.shape_cast %59 : vector<16x128xf32> to vector<4x4x128xf32>
    %c0_79 = arith.constant 0 : index
    %c0_80 = arith.constant 0 : index
    %c0_81 = arith.constant 0 : index
    %c0_82 = arith.constant 0 : index
    %62 = vector.load %arg5[%c0_79, %c0_80, %c0_81, %c0_82] : memref<1x4x4x128xf32, #tpu.memory_space<vmem>>, vector<1x4x4x128xf32>
    %63 = vector.shape_cast %62 : vector<1x4x4x128xf32> to vector<4x4x128xf32>
    %64 = vector.shape_cast %61 : vector<4x4x128xf32> to vector<1x4x4x128xf32>
    tpu.vector_store %arg5[%c0_79, %c0_80, %c0_81, %c0_82], %64 {strides = array<i32>} : memref<1x4x4x128xf32, #tpu.memory_space<vmem>>, vector<1x4x4x128xf32>,
    %65 = vector.shape_cast %60 : vector<16x128xf32> to vector<4x4x128xf32>
    %c0_83 = arith.constant 0 : index
    %c0_84 = arith.constant 0 : index
    %c0_85 = arith.constant 0 : index
    %c0_86 = arith.constant 0 : index
    %66 = vector.load %arg6[%c0_83, %c0_84, %c0_85, %c0_86] : memref<1x4x4x128xf32, #tpu.memory_space<vmem>>, vector<1x4x4x128xf32>
    %67 = vector.shape_cast %66 : vector<1x4x4x128xf32> to vector<4x4x128xf32>
    %68 = vector.shape_cast %65 : vector<4x4x128xf32> to vector<1x4x4x128xf32>
    tpu.vector_store %arg6[%c0_83, %c0_84, %c0_85, %c0_86], %68 {strides = array<i32>} : memref<1x4x4x128xf32, #tpu.memory_space<vmem>>, vector<1x4x4x128xf32>,
    %69 = arith.subf %59, %60 : vector<16x128xf32>
    %70 = math.absf %69 : vector<16x128xf32>
    %71 = vector.shape_cast %70 : vector<16x128xf32> to vector<1x16x128xf32>
    %cst_87 = arith.constant dense<0.000000e+00> : vector<1xf32>
    %72 = vector.multi_reduction <add>, %71, %cst_87 [1, 2] : vector<1x16x128xf32> to vector<1xf32>
    %73 = vector.shape_cast %72 : vector<1xf32> to vector<1x1x1xf32>
    %74 = vector.extract %73[0, 0, 0] : f32 from vector<1x1x1xf32>
    %75 = vector.broadcast %74 : f32 to vector<1x1x1xf32>
    %c0_88 = arith.constant 0 : index
    %c0_89 = arith.constant 0 : index
    %c0_90 = arith.constant 0 : index
    %76 = vector.load %arg7[%c0_88, %c0_89, %c0_90] : memref<1x1x1xf32, #tpu.memory_space<vmem>>, vector<1x1x1xf32>
    tpu.vector_store %arg7[%c0_88, %c0_89, %c0_90], %75 {strides = array<i32>} : memref<1x1x1xf32, #tpu.memory_space<vmem>>, vector<1x1x1xf32>,
    return
  }
  func.func @transform_0(%arg0: i32) -> (i32, i32, i32, i32) {
    %c0_i32 = arith.constant 0 : i32
    %c0_i32_0 = arith.constant 0 : i32
    %c0_i32_1 = arith.constant 0 : i32
    %c0_i32_2 = arith.constant 0 : i32
    return %arg0, %c0_i32, %c0_i32_0, %c0_i32_1 : i32, i32, i32, i32
  }
  func.func @transform_1(%arg0: i32) -> (i32, i32, i32, i32) {
    %c0_i32 = arith.constant 0 : i32
    %c0_i32_0 = arith.constant 0 : i32
    %c0_i32_1 = arith.constant 0 : i32
    %c0_i32_2 = arith.constant 0 : i32
    return %arg0, %c0_i32, %c0_i32_0, %c0_i32_1 : i32, i32, i32, i32
  }
  func.func @transform_2(%arg0: i32) -> (i32, i32, i32) {
    %c0_i32 = arith.constant 0 : i32
    %c0_i32_0 = arith.constant 0 : i32
    %c0_i32_1 = arith.constant 0 : i32
    %c0_i32_2 = arith.constant 0 : i32
    return %c0_i32, %c0_i32_0, %c0_i32_1 : i32, i32, i32
  }
  func.func @transform_3(%arg0: i32) -> (i32, i32) {
    %c0_i32 = arith.constant 0 : i32
    %c0_i32_0 = arith.constant 0 : i32
    %c0_i32_1 = arith.constant 0 : i32
    return %c0_i32, %c0_i32_0 : i32, i32
  }
  func.func @transform_4(%arg0: i32) -> (i32, i32, i32, i32) {
    %c0_i32 = arith.constant 0 : i32
    %c0_i32_0 = arith.constant 0 : i32
    %c0_i32_1 = arith.constant 0 : i32
    %c0_i32_2 = arith.constant 0 : i32
    return %arg0, %c0_i32, %c0_i32_0, %c0_i32_1 : i32, i32, i32, i32
  }
  func.func @transform_5(%arg0: i32) -> (i32, i32, i32, i32) {
    %c0_i32 = arith.constant 0 : i32
    %c0_i32_0 = arith.constant 0 : i32
    %c0_i32_1 = arith.constant 0 : i32
    %c0_i32_2 = arith.constant 0 : i32
    return %arg0, %c0_i32, %c0_i32_0, %c0_i32_1 : i32, i32, i32, i32
  }
  func.func @transform_6(%arg0: i32) -> (i32, i32, i32) {
    %c0_i32 = arith.constant 0 : i32
    %c0_i32_0 = arith.constant 0 : i32
    %c0_i32_1 = arith.constant 0 : i32
    return %arg0, %c0_i32, %c0_i32_0 : i32, i32, i32
  }
}

</mosaic_0001>

<bundles_post_ra>
// kernel: loss_cnt.10
= control target key start
LH: loop header
LB: loop body
LE: loop exit
PB: predicated region body
PF: predicated region fallthrough
CT: control target
= control target key end

     0   :  { %s1796_s21 = smov 0   ;;  %s2573_s0 = inlined_call_operand.vmem [shape: f32[2,8,8,32], index: 0, kind: input, shape index: {}]   ;;  %s2574_s1 = inlined_call_operand.vmem [shape: f32[2,8,8,32], index: 1, kind: input, shape index: {}]   ;;  %s2575_s2 = inlined_call_operand.vmem [shape: f32[9,32,64], index: 2, kind: input, shape index: {}]   ;;  %s2576_s3 = inlined_call_operand.vmem [shape: f32[1,64], index: 3, kind: input, shape index: {}]   ;;  %s2577_s4 = inlined_call_operand.vmem [shape: f32[2,8,8,64], index: 4, kind: output, shape index: {0}]   ;;  %s2578_s5 = inlined_call_operand.vmem [shape: f32[2,8,8,64], index: 5, kind: output, shape index: {1}]   ;;  %s2579_s6 = inlined_call_operand.vmem [shape: f32[2,1,1], index: 6, kind: output, shape index: {2}]  }
   0x1 LB: > { %s1451_s22 = sadd.s32 4294967295, %s1755_s21   ;;  %p1455_p0 = scmp.ge.s32.totalorder %s1755_s21, 1  ;;  %s1755_s21 = sphi %s1796_s21, %s17_s21  }
   0x2   : > { %p227_p1 = scmp.lt.s32.totalorder %s1755_s21, 3 }
   0x4   : > { %p228_p2 = pnand %p1455_p0, %p227_p1 }
   0x5   : > { %p270_p3 = scmp.lt.s32.totalorder (!%p228_p2), %s1451_s22, 1  ;;  %s1758_s27 = smov (!%p228_p2), 32  }
   0x6   : > { %231 = sbr.rel (%p228_p2) target bundleno = 624 (0x270), region = 36  ;;  %s1759_s28 = smov (!%p228_p2), 96  }
   0x7   : > { %s1760_s29 = smov (!%p228_p2), 64  }
   0xb   : > { %vm294_vm0 = vcmask 261120   ;;  %vm296_vm1 = vcmask 254976   ;;  %v1757_v0 = vmov 0.0   ;;  %s2581_s22 = smov (!%p270_p3, %s1451_s22), 1  ;;  %vm697_vm2 = vcmask 523264  }
   0xc   : > { %298 = vst.msk [vmem:[#allocation2 + $0x10] sm:$0xff] %vm294_vm0, %v1757_v0  ;;  %s1813_s23 = sshll.u32 %s2581_s22, 6  ;;  %vm706_vm3 = vcmask 785408   ;;  %s292_s15 = scalar_lea.vmem %s2579_s6, %s2581_s22  ;;  %vm1324_vm4 = vcmask 0  }
   0xd   : > { %299 = vst.msk [vmem:[#allocation2 + $0x18] sm:$0x3] %vm296_vm1, %v1757_v0  ;;  %s1821_s26 = scalar_lea.vmem %s2573_s0, %s1813_s23  ;;  %s1922_s8 = scalar_lea.vmem %s2574_s1, %s1813_s23 }
   0xe   : > { %300 = vst.msk [vmem:[#allocation2 + $0x20] sm:$0xff] %vm294_vm0, %v1757_v0  ;;  %v336_v1 = vld [vmem:[%s1821_s26] sm:$0xff]  ;;  %v337_v2 = vld [vmem:[%s1821_s26 + $0x8] sm:$0xff]  ;;  %v338_v14 = vld [vmem:[%s1821_s26 + $0x10] sm:$0xff]  ;;  %s2449_s10 = scalar_lea.vmem %s2577_s4, %s1813_s23  ;;  %s2517_s13 = scalar_lea.vmem %s2578_s5, %s1813_s23 }
   0xf   : > { %301 = vst.msk [vmem:[#allocation2 + $0x28] sm:$0x3] %vm296_vm1, %v1757_v0  ;;  %v339_v15 = vld [vmem:[%s1821_s26 + $0x18] sm:$0xff]  ;;  %v340_v16 = vld [vmem:[%s1821_s26 + $0x20] sm:$0xff]  ;;  %v341_v17 = vld [vmem:[%s1821_s26 + $0x28] sm:$0xff] }
  0x10   : > { %295 = vst.msk [vmem:[#allocation2] sm:$0xff] %vm294_vm0, %v1757_v0  ;;  %v342_v18 = vld [vmem:[%s1821_s26 + $0x30] sm:$0xff]  ;;  %v356_v19 = vld [vmem:[%s1922_s8 + $0x18] sm:$0xff]  ;;  %v357_v20 = vld [vmem:[%s1922_s8 + $0x20] sm:$0xff] }
  0x11   : > { %297 = vst.msk [vmem:[#allocation2 + $0x8] sm:$0x3] %vm296_vm1, %v1757_v0  ;;  %v343_v33 = vld [vmem:[%s1821_s26 + $0x38] sm:$0xff]  ;;  %v358_v40 = vld [vmem:[%s1922_s8 + $0x28] sm:$0xff]  ;;  %v359_v41 = vld [vmem:[%s1922_s8 + $0x30] sm:$0xff] }
  0x12   : > { %345 = vst.msk [vmem:[#allocation2 + $0x11] sm:$0xff] %vm294_vm0, %v336_v1  ;;  %v353_v47 = vld [vmem:[%s1922_s8] sm:$0xff]  ;;  %v354_v55 = vld [vmem:[%s1922_s8 + $0x8] sm:$0xff]  ;;  %v355_v56 = vld [vmem:[%s1922_s8 + $0x10] sm:$0xff] }
  0x13   : > { %346 = vst.msk [vmem:[#allocation2 + $0x21] sm:$0xff] %vm294_vm0, %v337_v2  ;;  %v360_v62 = vld [vmem:[%s1922_s8 + $0x38] sm:$0xff] }
  0x14   : > { %302 = vst.msk [vmem:[#allocation2 + $0x30] sm:$0xff] %vm294_vm0, %v1757_v0 }
  0x15   : > { %303 = vst.msk [vmem:[#allocation2 + $0x38] sm:$0x3] %vm296_vm1, %v1757_v0 }
  0x16   : > { %304 = vst.msk [vmem:[#allocation2 + $0x40] sm:$0xff] %vm294_vm0, %v1757_v0 }
  0x17   : > { %305 = vst.msk [vmem:[#allocation2 + $0x48] sm:$0x3] %vm296_vm1, %v1757_v0 }
  0x18   : > { %306 = vst.msk [vmem:[#allocation2 + $0x50] sm:$0xff] %vm294_vm0, %v1757_v0  ;;  %v432_v3 = vld [vmem:[#allocation2 + $0x1] sm:$0xff] }
  0x19   : > { %v1841_v4 = vld [vmem:[#allocation2 + $0x10] sm:$0xff]  ;;  %307 = vst.msk [vmem:[#allocation2 + $0x58] sm:$0x3] %vm296_vm1, %v1757_v0  ;;  %v440_v10 = vld [vmem:[#allocation2 + $0x2] sm:$0xff] }
  0x1a   : > { %v1845_v5 = vld [vmem:[#allocation2 + $0x11] sm:$0xff]  ;;  %v1847_v6 = vld [vmem:[#allocation2 + $0x20] sm:$0xff]  ;;  %308 = vst.msk [vmem:[#allocation2 + $0x60] sm:$0xff] %vm294_vm0, %v1757_v0 }
  0x1b   : > { %v1508_v7 = vpack.i.bf16 %v1845_v5, %v432_v3  ;;  %v1518_v8 = vpack.i.bf16 %v1847_v6, %v1841_v4  ;;  %309 = vst.msk [vmem:[#allocation2 + $0x68] sm:$0x3] %vm296_vm1, %v1757_v0  ;;  %v464_v9 = vld [vmem:[#allocation2 + $0x12] sm:$0xff]  ;;  %v1864_v11 = vld [vmem:[#allocation2 + $0x22] sm:$0xff] }
  0x1c   : > { %310 = vst.msk [vmem:[#allocation2 + $0x70] sm:$0xff] %vm294_vm0, %v1757_v0  ;;  %v1513_v12 = vpack.i.bf16 %v464_v9, %v440_v10  ;;  %v1523_v13 = vpack.i.bf16 %v1864_v11, %v464_v9  ;;  %v1933_v21 = vld [vmem:[#allocation2 + $0x21] sm:$0xff] }
  0x1d   : > { %1509 = vrot.lane.b32.xlu0 %v1508_v7, %s1758_s27  ;;  %1519 = vrot.lane.b32.xlu1 %v1518_v8, %s1759_s28  ;;  %311 = vst.msk [vmem:[#allocation2 + $0x78] sm:$0x3] %vm296_vm1, %v1757_v0 }
  0x1e   : > { %312 = vst.msk [vmem:[#allocation2 + $0x80] sm:$0xff] %vm294_vm0, %v1757_v0 }
  0x1f   : > { %313 = vst.msk [vmem:[#allocation2 + $0x88] sm:$0x3] %vm296_vm1, %v1757_v0 }
  0x20   : > { %314 = vst.msk [vmem:[#allocation2 + $0x90] sm:$0xff] %vm294_vm0, %v1757_v0 }
  0x21   : > { %315 = vst.msk [vmem:[#allocation2 + $0x98] sm:$0x3] %vm296_vm1, %v1757_v0 }
  0x22   : > { %316 = vst.msk [vmem:[#allocation3] sm:$0xff] %vm294_vm0, %v1757_v0 }
  0x23   : > { %317 = vst.msk [vmem:[#allocation3 + $0x8] sm:$0x3] %vm296_vm1, %v1757_v0 }
  0x24   : > { %318 = vst.msk [vmem:[#allocation3 + $0x10] sm:$0xff] %vm294_vm0, %v1757_v0 }
  0x25   : > { %1514 = vrot.lane.b32.xlu0 %v1513_v12, %s1760_s29  ;;  %319 = vst.msk [vmem:[#allocation3 + $0x18] sm:$0x3] %vm296_vm1, %v1757_v0  ;;  %1524 = vrot.lane.b32.xlu1 %v1523_v13, %s1758_s27 }
  0x26   : > { %320 = vst.msk [vmem:[#allocation3 + $0x20] sm:$0xff] %vm294_vm0, %v1757_v0 }
  0x27   : > { %321 = vst.msk [vmem:[#allocation3 + $0x28] sm:$0x3] %vm296_vm1, %v1757_v0 }
  0x28   : > { %322 = vst.msk [vmem:[#allocation3 + $0x30] sm:$0xff] %vm294_vm0, %v1757_v0 }
  0x29   : > { %323 = vst.msk [vmem:[#allocation3 + $0x38] sm:$0x3] %vm296_vm1, %v1757_v0 }
  0x2a   : > { %324 = vst.msk [vmem:[#allocation3 + $0x40] sm:$0xff] %vm294_vm0, %v1757_v0 }
  0x2b   : > { %325 = vst.msk [vmem:[#allocation3 + $0x48] sm:$0x3] %vm296_vm1, %v1757_v0 }
  0x2c   : > { %326 = vst.msk [vmem:[#allocation3 + $0x50] sm:$0xff] %vm294_vm0, %v1757_v0 }
  0x2d   : > { %327 = vst.msk [vmem:[#allocation3 + $0x58] sm:$0x3] %vm296_vm1, %v1757_v0 }
  0x2e   : > { %328 = vst.msk [vmem:[#allocation3 + $0x60] sm:$0xff] %vm294_vm0, %v1757_v0 }
  0x2f   : > { %329 = vst.msk [vmem:[#allocation3 + $0x68] sm:$0x3] %vm296_vm1, %v1757_v0 }
  0x30   : > { %330 = vst.msk [vmem:[#allocation3 + $0x70] sm:$0xff] %vm294_vm0, %v1757_v0 }
  0x31   : > { %331 = vst.msk [vmem:[#allocation3 + $0x78] sm:$0x3] %vm296_vm1, %v1757_v0 }
  0x32   : > { %332 = vst.msk [vmem:[#allocation3 + $0x80] sm:$0xff] %vm294_vm0, %v1757_v0 }
  0x33   : > { %333 = vst.msk [vmem:[#allocation3 + $0x88] sm:$0x3] %vm296_vm1, %v1757_v0 }
  0x34   : > { %334 = vst.msk [vmem:[#allocation3 + $0x90] sm:$0xff] %vm294_vm0, %v1757_v0 }
  0x35   : > { %335 = vst.msk [vmem:[#allocation3 + $0x98] sm:$0x3] %vm296_vm1, %v1757_v0  ;;  %v480_v0 = vld [vmem:[#allocation2 + $0x90] sm:$0xff] }
  0x36   : > { %347 = vst.msk [vmem:[#allocation2 + $0x31] sm:$0xff] %vm294_vm0, %v338_v14  ;;  %v384_v14 = vld [vmem:[%s2575_s2 + $0x70] sm:$0xff] }
  0x37   : > { %348 = vst.msk [vmem:[#allocation2 + $0x41] sm:$0xff] %vm294_vm0, %v339_v15  ;;  %v385_v15 = vld [vmem:[%s2575_s2 + $0x78] sm:$0xff] }
  0x38   : > { %349 = vst.msk [vmem:[#allocation2 + $0x51] sm:$0xff] %vm294_vm0, %v340_v16 }
  0x39   : > { %350 = vst.msk [vmem:[#allocation2 + $0x61] sm:$0xff] %vm294_vm0, %v341_v17  ;;  %v413_v17 = vpack.c.bf16 %v385_v15, %v384_v14 }
  0x3a   : > { %351 = vst.msk [vmem:[#allocation2 + $0x71] sm:$0xff] %vm294_vm0, %v342_v18  ;;  %v400_v18 = vld [vmem:[%s2575_s2 + $0xf0] sm:$0xff] }
  0x3b   : > { %365 = vst.msk [vmem:[#allocation3 + $0x41] sm:$0xff] %vm294_vm0, %v356_v19  ;;  %v401_v19 = vld [vmem:[%s2575_s2 + $0xf8] sm:$0xff]  ;;  %1104 = vmatpush.bf16.msra.mxu0 %v413_v17  ;;  %1478 = vmatpush.bf16.msra.mxu3 %v413_v17 }
  0x3c   : > { %366 = vst.msk [vmem:[#allocation3 + $0x51] sm:$0xff] %vm294_vm0, %v357_v20  ;;  %v2070_v20 = vpack.c.bf16 %v401_v19, %v400_v18 }
  0x3d   : > { %v1937_v22 = vld [vmem:[#allocation2 + $0x32] sm:$0xff]  ;;  %352 = vst.msk [vmem:[#allocation2 + $0x81] sm:$0xff] %vm294_vm0, %v343_v33 }
  0x3e   : > { %v1939_v23 = vld [vmem:[#allocation2 + $0x31] sm:$0xff]  ;;  %v1543_v25 = vpack.i.bf16 %v1937_v22, %v1864_v11  ;;  %v1951_v28 = vld [vmem:[#allocation2 + $0x40] sm:$0xff]  ;;  %367 = vst.msk [vmem:[#allocation3 + $0x61] sm:$0xff] %vm294_vm0, %v358_v40  ;;  %1153 = vmatpush.bf16.msra.mxu1 %v2070_v20 }
  0x3f   : > { %v1941_v24 = vld [vmem:[#allocation2 + $0x30] sm:$0xff]  ;;  %v1538_v26 = vpack.i.bf16 %v1939_v23, %v1933_v21  ;;  %v1955_v30 = vld [vmem:[#allocation2 + $0x42] sm:$0xff]  ;;  %368 = vst.msk [vmem:[#allocation3 + $0x71] sm:$0xff] %vm294_vm0, %v359_v41 }
  0x40   : > { %v1528_v27 = vpack.i.bf16 %v1941_v24, %v1847_v6  ;;  %1544 = vrot.lane.b32.xlu1 %v1543_v25, %s1760_s29  ;;  %v1953_v29 = vld [vmem:[#allocation2 + $0x50] sm:$0xff]  ;;  %v1553_v32 = vpack.i.bf16 %v1955_v30, %v1937_v22  ;;  %v1968_v35 = vld [vmem:[#allocation2 + $0x41] sm:$0xff]  ;;  %v1548_v39 = vpack.i.bf16 %v1951_v28, %v1941_v24  ;;  %362 = vst.msk [vmem:[#allocation3 + $0x11] sm:$0xff] %vm294_vm0, %v353_v47  ;;  %v381_v47 = vld [vmem:[%s2575_s2 + $0x58] sm:$0xff] }
  0x41   : > { %1539 = vrot.lane.b32.xlu0 %v1538_v26, %s1758_s27  ;;  %v1558_v31 = vpack.i.bf16 %v1953_v29, %v1951_v28  ;;  %v1966_v34 = vld [vmem:[#allocation2 + $0x52] sm:$0xff]  ;;  %v1985_v42 = vld [vmem:[#allocation2 + $0x60] sm:$0xff]  ;;  %363 = vst.msk [vmem:[#allocation3 + $0x21] sm:$0xff] %vm294_vm0, %v354_v55 }
  0x42   : > { %1529 = vrot.lane.b32.xlu2 %v1528_v27, %s1760_s29  ;;  %v1970_v36 = vld [vmem:[#allocation2 + $0x51] sm:$0xff]  ;;  %v1573_v37 = vpack.i.bf16 %v1966_v34, %v1955_v30  ;;  %v1989_v44 = vld [vmem:[#allocation2 + $0x62] sm:$0xff]  ;;  %v1578_v54 = vpack.i.bf16 %v1985_v42, %v1953_v29  ;;  %364 = vst.msk [vmem:[#allocation3 + $0x31] sm:$0xff] %vm294_vm0, %v355_v56 }
  0x43   : > { %v1568_v38 = vpack.i.bf16 %v1970_v36, %v1968_v35  ;;  %v1987_v43 = vld [vmem:[#allocation2 + $0x70] sm:$0xff]  ;;  %v1583_v46 = vpack.i.bf16 %v1989_v44, %v1966_v34  ;;  %v2000_v48 = vld [vmem:[#allocation3 + $0x42] sm:$0xff]  ;;  %369 = vst.msk [vmem:[#allocation3 + $0x81] sm:$0xff] %vm294_vm0, %v360_v62  ;;  %v397_v55 = vld [vmem:[%s2575_s2 + $0xd8] sm:$0xff] }
  0x44   : > { %v1588_v45 = vpack.i.bf16 %v1987_v43, %v1985_v42  ;;  %v2002_v49 = vld [vmem:[#allocation3 + $0x52] sm:$0xff]  ;;  %v751_v50 = vld [vmem:[#allocation3 + $0x41] sm:$0xff] }
  0x45   : > { %v2004_v51 = vld [vmem:[#allocation3 + $0x51] sm:$0xff]  ;;  %v1603_v52 = vpack.i.bf16 %v2002_v49, %v2000_v48  ;;  %v2023_v58 = vld [vmem:[#allocation2 + $0x61] sm:$0xff] }
  0x46   : > { %v2010_v53 = vpack.i.bf16 %v2004_v51, %v751_v50  ;;  %v2021_v57 = vld [vmem:[#allocation2 + $0x72] sm:$0xff]  ;;  %v479_v63 = vld [vmem:[#allocation2 + $0x80] sm:$0xff] }
  0x47   : > { %v2025_v59 = vld [vmem:[#allocation2 + $0x71] sm:$0xff]  ;;  %v1618_v60 = vpack.i.bf16 %v2021_v57, %v1989_v44  ;;  %v2036_v1 = vld [vmem:[#allocation2 + $0x82] sm:$0xff]  ;;  %v1633_v7 = vpack.i.bf16 %v480_v0, %v479_v63 }
  0x48   : > { %1559 = vrot.lane.b32.xlu1 %v1558_v31, %s1760_s29  ;;  %v1613_v61 = vpack.i.bf16 %v2025_v59, %v2023_v58  ;;  %v2039_v2 = vld [vmem:[#allocation3 + $0x50] sm:$0xff]  ;;  %v2041_v3 = vld [vmem:[#allocation3 + $0x60] sm:$0xff]  ;;  %v1628_v8 = vpack.i.bf16 %v2036_v1, %v2021_v57 }
  0x49   : > { %1554 = vrot.lane.b32.xlu0 %v1553_v32, %s1758_s27  ;;  %v1608_v9 = vpack.i.bf16 %v2041_v3, %v2039_v2  ;;  %v2047_v10 = vld [vmem:[#allocation3 + $0x62] sm:$0xff]  ;;  %v2049_v12 = vld [vmem:[#allocation3 + $0x72] sm:$0xff] }
  0x4a   : > { %1534 = vrot.lane.b32.xlu2 %v1538_v26, %s1759_s28  ;;  %v2051_v13 = vld [vmem:[#allocation3 + $0x61] sm:$0xff]  ;;  %v2061_v16 = vld [vmem:[#allocation3 + $0x71] sm:$0xff] }
  0x4b   : > { %v382_v25 = vld [vmem:[%s2575_s2 + $0x60] sm:$0xff]  ;;  %v383_v26 = vld [vmem:[%s2575_s2 + $0x68] sm:$0xff]  ;;  %v2094_v41 = vld [vmem:[#allocation3 + $0x12] sm:$0xff] }
  0x4c   : > { %v398_v27 = vld [vmem:[%s2575_s2 + $0xe0] sm:$0xff]  ;;  %v412_v31 = vpack.c.bf16 %v383_v26, %v382_v25  ;;  %v399_v32 = vld [vmem:[%s2575_s2 + $0xe8] sm:$0xff]  ;;  %v2106_v50 = vld [vmem:[#allocation3 + $0x11] sm:$0xff] }
  0x4d   : > { %v2085_v33 = vpack.c.bf16 %v399_v32, %v398_v27  ;;  %v755_v40 = vld [vmem:[#allocation3 + $0x2] sm:$0xff]  ;;  %v488_v0 = vld [vmem:[#allocation2 + $0x91] sm:$0xff] }
  0x4e   : > { %1105 = vmatpush.bf16.msra.mxu0 %v412_v31  ;;  %1479 = vmatpush.bf16.msra.mxu3 %v412_v31  ;;  %v394_v62 = vld [vmem:[%s2575_s2 + $0xc0] sm:$0xff]  ;;  %v1663_v14 = vpack.i.bf16 %v2094_v41, %v755_v40  ;;  %v2139_v19 = vld [vmem:[#allocation3 + $0x30] sm:$0xff]  ;;  %v377_v27 = vld [vmem:[%s2575_s2 + $0x38] sm:$0xff] }
  0x4f   : > { %1154 = vmatpush.bf16.msra.mxu1 %v2085_v33  ;;  %v2137_v18 = vld [vmem:[#allocation3 + $0x20] sm:$0xff]  ;;  %v376_v26 = vld [vmem:[%s2575_s2 + $0x30] sm:$0xff]  ;;  %v393_v40 = vld [vmem:[%s2575_s2 + $0xb8] sm:$0xff] }
  0x50   : > { %1574 = vrot.lane.b32.xlu1 %v1573_v37, %s1760_s29  ;;  %v1648_v37 = vpack.i.bf16 %v2049_v12, %v2047_v10  ;;  %v2141_v25 = vld [vmem:[#allocation3 + $0x22] sm:$0xff]  ;;  %v2152_v31 = vld [vmem:[#allocation3 + $0x70] sm:$0xff] }
  0x51   : > { %1569 = vrot.lane.b32.xlu0 %v1568_v38, %s1758_s27  ;;  %v2154_v32 = vld [vmem:[#allocation3 + $0x80] sm:$0xff] }
  0x52   : > { %1549 = vrot.lane.b32.xlu2 %v1548_v39, %s1759_s28  ;;  %v1623_v39 = vpack.i.bf16 %v479_v63, %v1987_v43  ;;  %v2126_v63 = vld [vmem:[#allocation2 + $0x81] sm:$0xff] }
  0x53   : > { %v1638_v17 = vpack.i.bf16 %v488_v0, %v2126_v63 }
  0x58   : > { %1589 = vrot.lane.b32.xlu1 %v1588_v45, %s1760_s29  ;;  %v747_v45 = vld [vmem:[#allocation3 + $0x1] sm:$0xff] }
  0x59   : > { %1584 = vrot.lane.b32.xlu0 %v1583_v46, %s1758_s27  ;;  %v380_v46 = vld [vmem:[%s2575_s2 + $0x50] sm:$0xff]  ;;  %v1658_v15 = vpack.i.bf16 %v2106_v50, %v747_v45 }
  0x5a   : > { %1564 = vrot.lane.b32.xlu2 %v1568_v38, %s1759_s28  ;;  %v2091_v38 = vpack.i.bf16 %v2061_v16, %v2051_v13 }
  0x60   : > { %1604 = vrot.lane.b32.xlu1 %v1603_v52, %s1760_s29  ;;  %v411_v52 = vpack.c.bf16 %v381_v47, %v380_v46  ;;  %v404_v46 = vld [vmem:[%s2575_s2 + $0x110] sm:$0xff]  ;;  %v405_v47 = vld [vmem:[%s2575_s2 + $0x118] sm:$0xff] }
  0x61   : > { %1599 = vrot.lane.b32.xlu0 %v2010_v53, %s1758_s27 }
  0x62   : > { %1579 = vrot.lane.b32.xlu2 %v1578_v54, %s1759_s28  ;;  %v396_v54 = vld [vmem:[%s2575_s2 + $0xd0] sm:$0xff]  ;;  %1106 = vmatpush.bf16.msra.mxu0 %v411_v52 }
  0x63   : > { %v2115_v56 = vpack.c.bf16 %v397_v55, %v396_v54  ;;  %1480 = vmatpush.bf16.msra.mxu3 %v411_v52  ;;  %v374_v52 = vld [vmem:[%s2575_s2 + $0x20] sm:$0xff]  ;;  %v423_v54 = vpack.c.bf16 %v405_v47, %v404_v46  ;;  %v375_v55 = vld [vmem:[%s2575_s2 + $0x28] sm:$0xff]  ;;  %v388_v46 = vld [vmem:[%s2575_s2 + $0x90] sm:$0xff] }
  0x64   : > { %v389_v47 = vld [vmem:[%s2575_s2 + $0x98] sm:$0xff] }
  0x65   : > { %1155 = vmatpush.bf16.msra.mxu1 %v2115_v56  ;;  %1208 = vmatpush.bf16.msra.mxu2 %v423_v54  ;;  %v2220_v54 = vpack.c.bf16 %v389_v47, %v388_v46  ;;  %v1683_v47 = vpack.i.bf16 %v2047_v10, %v2002_v49 }
  0x68   : > { %1619 = vrot.lane.b32.xlu1 %v1618_v60, %s1760_s29  ;;  %v378_v60 = vld [vmem:[%s2575_s2 + $0x40] sm:$0xff] }
  0x69   : > { %1614 = vrot.lane.b32.xlu0 %v1613_v61, %s1758_s27 }
  0x6a   : > { %1594 = vrot.lane.b32.xlu2 %v1613_v61, %s1759_s28  ;;  %v379_v61 = vld [vmem:[%s2575_s2 + $0x48] sm:$0xff] }
  0x70   : > { %1634 = vrot.lane.b32.xlu1 %v1633_v7, %s1760_s29  ;;  %v410_v7 = vpack.c.bf16 %v379_v61, %v378_v60  ;;  %v390_v60 = vld [vmem:[%s2575_s2 + $0xa0] sm:$0xff]  ;;  %v391_v61 = vld [vmem:[%s2575_s2 + $0xa8] sm:$0xff] }
  0x71   : > { %1629 = vrot.lane.b32.xlu0 %v1628_v8, %s1758_s27  ;;  %v395_v8 = vld [vmem:[%s2575_s2 + $0xc8] sm:$0xff]  ;;  %v2184_v0 = vpack.c.bf16 %v391_v61, %v390_v60  ;;  %v386_v61 = vld [vmem:[%s2575_s2 + $0x80] sm:$0xff] }
  0x72   : > { %1609 = vrot.lane.b32.xlu2 %v1608_v9, %s1759_s28  ;;  %v2132_v9 = vpack.c.bf16 %v395_v8, %v394_v62  ;;  %1107 = vmatpush.bf16.msra.mxu0 %v410_v7  ;;  %v408_v62 = vpack.c.bf16 %v375_v55, %v374_v52  ;;  %v403_v8 = vld [vmem:[%s2575_s2 + $0x108] sm:$0xff]  ;;  %v1054_v52 = vpack.c.bf16 %v1937_v22, %v1864_v11  ;;  %v370_v55 = vld [vmem:[%s2575_s2] sm:$0xff] }
  0x73   : > { %1481 = vmatpush.bf16.msra.mxu3 %v410_v7  ;;  %v402_v7 = vld [vmem:[%s2575_s2 + $0x100] sm:$0xff]  ;;  %v371_v60 = vld [vmem:[%s2575_s2 + $0x8] sm:$0xff] }
  0x74   : > { %1156 = vmatpush.bf16.msra.mxu1 %v2132_v9  ;;  %v406_v11 = vpack.c.bf16 %v371_v60, %v370_v55  ;;  %v387_v22 = vld [vmem:[%s2575_s2 + $0x88] sm:$0xff] }
  0x78   : > { %1649 = vrot.lane.b32.xlu1 %v1648_v37, %s1760_s29  ;;  %v409_v37 = vpack.c.bf16 %v377_v27, %v376_v26  ;;  %v422_v26 = vpack.c.bf16 %v403_v8, %v402_v7  ;;  %v2198_v27 = vld [vmem:[#allocation3 + $0x21] sm:$0xff]  ;;  %v2237_v7 = vpack.c.bf16 %v387_v22, %v386_v61  ;;  %v1693_v8 = vpack.i.bf16 %v2152_v31, %v2041_v3 }
  0x79   : > { %1644 = vrot.lane.b32.xlu0 %v2091_v38, %s1758_s27 }
  0x7a   : > { %1624 = vrot.lane.b32.xlu2 %v1623_v39, %s1759_s28  ;;  %v392_v39 = vld [vmem:[%s2575_s2 + $0xb0] sm:$0xff]  ;;  %1108 = vmatpush.bf16.msra.mxu0 %v409_v37 }
  0x7b   : > { %v2163_v45 = vpack.c.bf16 %v393_v40, %v392_v39  ;;  %1482 = vmatpush.bf16.msra.mxu3 %v409_v37  ;;  %v372_v37 = vld [vmem:[%s2575_s2 + $0x10] sm:$0xff]  ;;  %v373_v39 = vld [vmem:[%s2575_s2 + $0x18] sm:$0xff]  ;;  %1209 = vmatpush.bf16.msra.mxu2 %v422_v26 }
  0x7c   : > { %v407_v40 = vpack.c.bf16 %v373_v39, %v372_v37  ;;  %v2250_v37 = vld [vmem:[#allocation3 + $0x32] sm:$0xff] }
  0x7d   : > { %1157 = vmatpush.bf16.msra.mxu1 %v2163_v45  ;;  %v1708_v39 = vpack.i.bf16 %v2250_v37, %v2141_v25 }
  0x7e   : > { %1109 = vmatpush.bf16.msra.mxu0 %v408_v62  ;;  %1464 = vmatmul.msk.bf16.vlgmr.msra.gmra.mxu2 %vm294_vm0, %v1054_v52  ;;  %v424_v52 = vld [vmem:[#allocation2] sm:$0xff] }
  0x7f   : > { %1483 = vmatpush.bf16.msra.mxu3 %v408_v62  ;;  %v2231_v62 = vld [vmem:[#allocation3 + $0x10] sm:$0xff] }
  0x80   : > { %1664 = vrot.lane.b32.xlu1 %v1663_v14, %s1760_s29  ;;  %v1678_v14 = vpack.i.bf16 %v2139_v19, %v2137_v18 }
  0x81   : > { %1659 = vrot.lane.b32.xlu0 %v1658_v15, %s1758_s27  ;;  %v1673_v15 = vpack.i.bf16 %v2141_v25, %v2094_v41  ;;  %1158 = vmatpush.bf16.msra.mxu1 %v2184_v0  ;;  %v2209_v41 = vld [vmem:[#allocation3 + $0x31] sm:$0xff] }
  0x82   : > { %1639 = vrot.lane.b32.xlu2 %v1638_v17, %s1759_s28  ;;  %v1653_v17 = vpack.i.bf16 %v2154_v32, %v2152_v31  ;;  %1110 = vmatpush.bf16.msra.mxu0 %v407_v40 }
  0x83   : > { %1484 = vmatpush.bf16.msra.mxu3 %v407_v40 }
  0x85   : > { %1159 = vmatpush.bf16.msra.mxu1 %v2220_v54 }
  0x86   : > { %1111 = vmatpush.bf16.msra.mxu0 %v406_v11 }
  0x87   : > { %1485 = vmatpush.bf16.msra.mxu3 %v406_v11 }
  0x88   : > { %1679 = vrot.lane.b32.xlu1 %v1678_v14, %s1760_s29  ;;  %v1688_v14 = vpack.i.bf16 %v2209_v41, %v2198_v27 }
  0x89   : > { %1674 = vrot.lane.b32.xlu0 %v1673_v15, %s1758_s27  ;;  %v1668_v15 = vpack.i.bf16 %v2137_v18, %v2231_v62  ;;  %1160 = vmatpush.bf16.msra.mxu1 %v2237_v7 }
  0x8a   : > { %1654 = vrot.lane.b32.xlu2 %v1653_v17, %s1759_s28 }
  0x8b   : > { %1486 = vmatpush.bf16.msrb.mxu3 %v2070_v20 }
  0x8f   : > { %v1510_v17 = vpop.permute.xlu0 %1509  ;;  %v1520_v26 = vpop.permute.xlu1 %1519  ;;  %1487 = vmatpush.bf16.msrb.mxu3 %v2085_v33 }
  0x90   : > { %1694 = vrot.lane.b32.xlu1 %v1693_v8, %s1760_s29  ;;  %v1512_v40 = vunpack.i.h.bf16 %v1510_v17  ;;  %v1511_v46 = vunpack.i.l.bf16 %v1510_v17  ;;  %v1522_v33 = vunpack.i.h.bf16 %v1520_v26  ;;  %v1521_v61 = vunpack.i.l.bf16 %v1520_v26  ;;  %v2264_v8 = vld [vmem:[#allocation3 + $0x40] sm:$0xff] }
  0x91   : > { %1689 = vrot.lane.b32.xlu0 %v1688_v14, %s1759_s28 }
  0x92   : > { %1669 = vrot.lane.b32.xlu2 %v1668_v15, %s1759_s28  ;;  %v689_v11 = vsel %vm294_vm0, %v424_v52, %v1511_v46  ;;  %v690_v22 = vsel %vm294_vm0, %v1841_v4, %v1512_v40  ;;  %v1723_v4 = vpack.i.bf16 %v2039_v2, %v2264_v8  ;;  %v1718_v40 = vpack.i.bf16 %v2000_v48, %v2250_v37 }
  0x93   : > { %1488 = vmatpush.bf16.msrb.mxu3 %v2115_v56 }
  0x97   : > { %v1515_v20 = vpop.permute.xlu0 %1514  ;;  %v1525_v15 = vpop.permute.xlu1 %1524  ;;  %1489 = vmatpush.bf16.msrb.mxu3 %v2132_v9 }
  0x98   : > { %v1517_v55 = vunpack.i.h.bf16 %v1515_v20  ;;  %v1516_v60 = vunpack.i.l.bf16 %v1515_v20  ;;  %1709 = vrot.lane.b32.xlu1 %v1708_v39, %s1760_s29  ;;  %v1057_v39 = vpack.c.bf16 %v1966_v34, %v1955_v30  ;;  %v1526_v20 = vunpack.i.l.bf16 %v1525_v15 }
  0x99   : > { %1704 = vrot.lane.b32.xlu0 %v1688_v14, %s1758_s27 }
  0x9a   : > { %1684 = vrot.lane.b32.xlu2 %v1683_v47, %s1758_s27  ;;  %v698_v17 = vsel %vm697_vm2, %v689_v11, %v1516_v60  ;;  %v699_v56 = vsel %vm697_vm2, %v690_v22, %v1517_v55  ;;  %v1527_v47 = vunpack.i.h.bf16 %v1525_v15  ;;  %1465 = vmatmul.msk.bf16.gmra.mxu2 %vm294_vm0, %v1057_v39  ;;  %v715_v34 = vsel %vm294_vm0, %v1845_v5, %v1526_v20  ;;  %v795_v60 = vld [vmem:[#allocation3 + $0x90] sm:$0xff] }
  0x9b   : > { %v707_v14 = vsel %vm706_vm3, %v698_v17, %v1521_v61  ;;  %v708_v26 = vsel %vm706_vm3, %v699_v56, %v1522_v33  ;;  %1490 = vmatpush.bf16.msrb.mxu3 %v2163_v45  ;;  %v1738_v11 = vpack.i.bf16 %v795_v60, %v2154_v32  ;;  %v1713_v5 = vpack.i.bf16 %v2264_v8, %v2139_v19  ;;  %v2303_v32 = vld [vmem:[#allocation3 + $0x82] sm:$0xff] }
  0x9c   : > { %v1530_v46 = vpop.permute.xlu2 %1529  ;;  %v1052_v52 = vpack.c.bf16 %v708_v26, %v707_v14  ;;  %v716_v30 = vsel %vm294_vm0, %v1933_v21, %v1527_v47 }
  0x9d   : > { %v1532_v9 = vunpack.i.h.bf16 %v1530_v46  ;;  %v1531_v55 = vunpack.i.l.bf16 %v1530_v46  ;;  %v2310_v46 = vld [vmem:[#allocation3 + $0x81] sm:$0xff] }
  0x9e   : > { %1112 = vmatmul.bf16.vlgmr.msra.gmra.mxu0 %v1052_v52  ;;  %v803_v52 = vld [vmem:[#allocation3 + $0x91] sm:$0xff] }
  0x9f   : > { %v723_v61 = vsel %vm697_vm2, %v715_v34, %v1531_v55  ;;  %v724_v45 = vsel %vm697_vm2, %v716_v30, %v1532_v9  ;;  %1491 = vmatpush.bf16.msrb.mxu3 %v2184_v0  ;;  %v1743_v30 = vpack.i.bf16 %v803_v52, %v2310_v46 }
  0xa0   : > { %1724 = vrot.lane.b32.xlu1 %v1723_v4, %s1760_s29 }
  0xa1   : > { %1719 = vrot.lane.b32.xlu0 %v1718_v40, %s1758_s27 }
  0xa2   : > { %1699 = vrot.lane.b32.xlu2 %v2091_v38, %s1759_s28  ;;  %v1060_v38 = vpack.c.bf16 %v2021_v57, %v1989_v44 }
  0xa3   : > { %1492 = vmatpush.bf16.msrb.mxu3 %v2220_v54  ;;  %v1728_v54 = vpack.i.bf16 %v2303_v32, %v2049_v12 }
  0xa4   : > { %v1535_v33 = vpop.permute.xlu2 %1534 }
  0xa5   : > { %v1537_v22 = vunpack.i.h.bf16 %v1535_v33  ;;  %v1536_v21 = vunpack.i.l.bf16 %v1535_v33 }
  0xa7   : > { %v731_v15 = vsel %vm706_vm3, %v723_v61, %v1536_v21  ;;  %v732_v17 = vsel %vm706_vm3, %v724_v45, %v1537_v22  ;;  %1493 = vmatpush.bf16.msrb.mxu3 %v2237_v7  ;;  %v496_v61 = vld [vmem:[#allocation2 + $0x92] sm:$0xff] }
  0xa8   : > { %v1053_v56 = vpack.c.bf16 %v732_v17, %v731_v15  ;;  %1739 = vrot.lane.b32.xlu1 %v1738_v11, %s1760_s29  ;;  %v1063_v45 = vpack.c.bf16 %v496_v61, %v2036_v1 }
  0xa9   : > { %1734 = vrot.lane.b32.xlu0 %v2010_v53, %s1759_s28 }
  0xaa   : > { %1714 = vrot.lane.b32.xlu2 %v1713_v5, %s1759_s28  ;;  %1161 = vmatmul.bf16.vlgmr.msra.gmra.mxu1 %v1053_v56 }
  0xab   : > { %1466 = vmatmul.msk.bf16.gmra.mxu2 %vm294_vm0, %v1060_v38 }
  0xac   : > { %v1550_v0 = vpop.permute.xlu2 %1549 }
  0xad   : > { %v1552_v14 = vunpack.i.h.bf16 %v1550_v0  ;;  %v1551_v26 = vunpack.i.l.bf16 %v1550_v0 }
  0xb2   : > { %1729 = vrot.lane.b32.xlu2 %v1728_v54, %s1758_s27  ;;  %v1545_v39 = vpop.permute.xlu1 %1544 }
  0xb3   : > { %v1540_v53 = vpop.permute.xlu0 %1539  ;;  %v1547_v44 = vunpack.i.h.bf16 %v1545_v39  ;;  %v1546_v57 = vunpack.i.l.bf16 %v1545_v39 }
  0xb4   : > { %v1542_v4 = vunpack.i.h.bf16 %v1540_v53  ;;  %v1541_v40 = vunpack.i.l.bf16 %v1540_v53  ;;  %v1565_v47 = vpop.permute.xlu2 %1564 }
  0xb5   : > { %v1567_v22 = vunpack.i.h.bf16 %v1565_v47 }
  0xb6   : > { %v692_v7 = vsel %vm294_vm0, %v1941_v24, %v1542_v4  ;;  %v691_v20 = vsel %vm294_vm0, %v1847_v6, %v1541_v40  ;;  %v1566_v6 = vunpack.i.l.bf16 %v1565_v47 }
  0xb7   : > { %v700_v34 = vsel %vm697_vm2, %v691_v20, %v1546_v57  ;;  %v701_v9 = vsel %vm697_vm2, %v692_v7, %v1547_v44 }
  0xb8   : > { %v709_v55 = vsel %vm706_vm3, %v700_v34, %v1551_v26  ;;  %v710_v60 = vsel %vm706_vm3, %v701_v9, %v1552_v14 }
  0xb9   : > { %v1055_v33 = vpack.c.bf16 %v710_v60, %v709_v55 }
  0xba   : > { %1744 = vrot.lane.b32.xlu2 %v1743_v30, %s1759_s28  ;;  %v1560_v24 = vpop.permute.xlu1 %1559 }
  0xbb   : > { %v1555_v11 = vpop.permute.xlu0 %1554  ;;  %1117 = vmatmul.bf16.gmra.mxu0 %v1055_v33  ;;  %v1562_v21 = vunpack.i.h.bf16 %v1560_v24  ;;  %v1561_v5 = vunpack.i.l.bf16 %v1560_v24  ;;  %1467 = vmatmul.msk.bf16.gmra.mxu2 %vm294_vm0, %v1063_v45  ;;  %v1066_v33 = vpack.c.bf16 %v2250_v37, %v2141_v25 }
  0xbc   : > { %v1557_v15 = vunpack.i.h.bf16 %v1555_v11  ;;  %v1556_v17 = vunpack.i.l.bf16 %v1555_v11  ;;  %v1580_v56 = vpop.permute.xlu2 %1579 }
  0xbd   : > { %v1582_v44 = vunpack.i.h.bf16 %v1580_v56  ;;  %v1581_v57 = vunpack.i.l.bf16 %v1580_v56 }
  0xbe   : > { %v718_v38 = vsel %vm294_vm0, %v1968_v35, %v1557_v15  ;;  %v717_v0 = vsel %vm294_vm0, %v1939_v23, %v1556_v17 }
  0xbf   : > { %v725_v1 = vsel %vm697_vm2, %v717_v0, %v1561_v5  ;;  %v726_v54 = vsel %vm697_vm2, %v718_v38, %v1562_v21 }
  0xc0   : > { %v733_v39 = vsel %vm706_vm3, %v725_v1, %v1566_v6  ;;  %v734_v53 = vsel %vm706_vm3, %v726_v54, %v1567_v22 }
  0xc1   : > { %v1056_v14 = vpack.c.bf16 %v734_v53, %v733_v39 }
  0xc2   : > { %v1575_v26 = vpop.permute.xlu1 %1574 }
  0xc3   : > { %v1570_v52 = vpop.permute.xlu0 %1569  ;;  %1166 = vmatmul.bf16.gmra.mxu1 %v1056_v14  ;;  %v1577_v4 = vunpack.i.h.bf16 %v1575_v26  ;;  %v1576_v40 = vunpack.i.l.bf16 %v1575_v26 }
  0xc4   : > { %v1572_v35 = vunpack.i.h.bf16 %v1570_v52  ;;  %v1571_v47 = vunpack.i.l.bf16 %v1570_v52  ;;  %v1595_v7 = vpop.permute.xlu2 %1594 }
  0xc5   : > { %v1597_v24 = vunpack.i.h.bf16 %v1595_v7  ;;  %v1596_v11 = vunpack.i.l.bf16 %v1595_v7  ;;  %v1069_v7 = vpack.c.bf16 %v2002_v49, %v2000_v48 }
  0xc6   : > { %v694_v23 = vsel %vm294_vm0, %v1953_v29, %v1572_v35  ;;  %v693_v20 = vsel %vm294_vm0, %v1951_v28, %v1571_v47 }
  0xc7   : > { %v702_v30 = vsel %vm697_vm2, %v693_v20, %v1576_v40  ;;  %v703_v34 = vsel %vm697_vm2, %v694_v23, %v1577_v4 }
  0xc8   : > { %v711_v9 = vsel %vm706_vm3, %v702_v30, %v1581_v57  ;;  %v712_v55 = vsel %vm706_vm3, %v703_v34, %v1582_v44 }
  0xc9   : > { %v1058_v60 = vpack.c.bf16 %v712_v55, %v711_v9 }
  0xca   : > { %v1590_v61 = vpop.permute.xlu1 %1589 }
  0xcb   : > { %v1585_v45 = vpop.permute.xlu0 %1584  ;;  %1122 = vmatmul.bf16.gmra.mxu0 %v1058_v60  ;;  %v1592_v29 = vunpack.i.h.bf16 %v1590_v61  ;;  %v1591_v22 = vunpack.i.l.bf16 %v1590_v61  ;;  %1468 = vmatmul.msk.bf16.gmra.mxu2 %vm294_vm0, %v1066_v33 }
  0xcc   : > { %v1587_v28 = vunpack.i.h.bf16 %v1585_v45  ;;  %v1586_v6 = vunpack.i.l.bf16 %v1585_v45  ;;  %v1610_v21 = vpop.permute.xlu2 %1609 }
  0xcd   : > { %v1612_v54 = vunpack.i.h.bf16 %v1610_v21  ;;  %v1611_v39 = vunpack.i.l.bf16 %v1610_v21 }
  0xce   : > { %v720_v5 = vsel %vm294_vm0, %v2023_v58, %v1587_v28  ;;  %v719_v15 = vsel %vm294_vm0, %v1970_v36, %v1586_v6 }
  0xcf   : > { %v727_v25 = vsel %vm697_vm2, %v719_v15, %v1591_v22  ;;  %v728_v37 = vsel %vm697_vm2, %v720_v5, %v1592_v29 }
  0xd0   : > { %v735_v17 = vsel %vm706_vm3, %v727_v25, %v1596_v11  ;;  %v736_v56 = vsel %vm706_vm3, %v728_v37, %v1597_v24 }
  0xd1   : > { %v1059_v38 = vpack.c.bf16 %v736_v56, %v735_v17 }
  0xd2   : > { %v1605_v0 = vpop.permute.xlu1 %1604 }
  0xd3   : > { %v1600_v1 = vpop.permute.xlu0 %1599  ;;  %1171 = vmatmul.bf16.gmra.mxu1 %v1059_v38  ;;  %v1607_v53 = vunpack.i.h.bf16 %v1605_v0  ;;  %v1606_v14 = vunpack.i.l.bf16 %v1605_v0 }
  0xd4   : > { %v1602_v58 = vunpack.i.h.bf16 %v1600_v1  ;;  %v1601_v26 = vunpack.i.l.bf16 %v1600_v1  ;;  %v1625_v52 = vpop.permute.xlu2 %1624 }
  0xd5   : > { %v1627_v30 = vunpack.i.h.bf16 %v1625_v52 }
  0xd6   : > { %v1009_v36 = vsel %vm294_vm0, %v2039_v2, %v1602_v58  ;;  %v1008_v44 = vsel %vm294_vm0, %v2264_v8, %v1601_v26  ;;  %v1626_v2 = vunpack.i.l.bf16 %v1625_v52 }
  0xd7   : > { %v1016_v57 = vsel %vm697_vm2, %v1008_v44, %v1606_v14  ;;  %v1017_v4 = vsel %vm697_vm2, %v1009_v36, %v1607_v53 }
  0xd8   : > { %v1024_v40 = vsel %vm706_vm3, %v1016_v57, %v1611_v39  ;;  %v1025_v35 = vsel %vm706_vm3, %v1017_v4, %v1612_v54  ;;  %v1072_v54 = vpack.c.bf16 %v2049_v12, %v2047_v10 }
  0xd9   : > { %v1070_v47 = vpack.c.bf16 %v1025_v35, %v1024_v40 }
  0xda   : > { %v1620_v23 = vpop.permute.xlu1 %1619 }
  0xdb   : > { %v1615_v20 = vpop.permute.xlu0 %1614  ;;  %1142 = vmatmul.bf16.vlgmr.msra.gmra.mxu3 %v1070_v47  ;;  %v1622_v34 = vunpack.i.h.bf16 %v1620_v23  ;;  %v1621_v9 = vunpack.i.l.bf16 %v1620_v23  ;;  %1469 = vmatmul.msk.bf16.gmra.mxu2 %vm294_vm0, %v1069_v7  ;;  %v739_v7 = vld [vmem:[#allocation3] sm:$0xff] }
  0xdc   : > { %v1617_v8 = vunpack.i.h.bf16 %v1615_v20  ;;  %v1616_v55 = vunpack.i.l.bf16 %v1615_v20  ;;  %v1640_v60 = vpop.permute.xlu2 %1639 }
  0xdd   : > { %v1642_v28 = vunpack.i.h.bf16 %v1640_v60  ;;  %v1641_v6 = vunpack.i.l.bf16 %v1640_v60 }
  0xde   : > { %v696_v33 = vsel %vm294_vm0, %v1987_v43, %v1617_v8  ;;  %v695_v61 = vsel %vm294_vm0, %v1985_v42, %v1616_v55 }
  0xdf   : > { %v704_v48 = vsel %vm697_vm2, %v695_v61, %v1621_v9  ;;  %v705_v49 = vsel %vm697_vm2, %v696_v33, %v1622_v34 }
  0xe0   : > { %v713_v45 = vsel %vm706_vm3, %v704_v48, %v1626_v2  ;;  %v714_v24 = vsel %vm706_vm3, %v705_v49, %v1627_v30 }
  0xe1   : > { %v1061_v11 = vpack.c.bf16 %v714_v24, %v713_v45  ;;  %v811_v45 = vld [vmem:[#allocation3 + $0x92] sm:$0xff] }
  0xe2   : > { %v1635_v29 = vpop.permute.xlu1 %1634 }
  0xe3   : > { %v1630_v22 = vpop.permute.xlu0 %1629  ;;  %1127 = vmatmul.bf16.gmra.mxu0 %v1061_v11  ;;  %v1637_v21 = vunpack.i.h.bf16 %v1635_v29  ;;  %v1636_v5 = vunpack.i.l.bf16 %v1635_v29  ;;  %v1075_v29 = vpack.c.bf16 %v811_v45, %v2303_v32 }
  0xe4   : > { %v1632_v43 = vunpack.i.h.bf16 %v1630_v22  ;;  %v1631_v15 = vunpack.i.l.bf16 %v1630_v22  ;;  %v1655_v25 = vpop.permute.xlu2 %1654 }
  0xe5   : > { %v1657_v14 = vunpack.i.h.bf16 %v1655_v25 }
  0xe6   : > { %v722_v42 = vsel %vm294_vm0, %v2126_v63, %v1632_v43  ;;  %v721_v37 = vsel %vm294_vm0, %v2025_v59, %v1631_v15  ;;  %v1656_v63 = vunpack.i.l.bf16 %v1655_v25 }
  0xe7   : > { %v729_v17 = vsel %vm697_vm2, %v721_v37, %v1636_v5  ;;  %v730_v56 = vsel %vm697_vm2, %v722_v42, %v1637_v21 }
  0xe8   : > { %v737_v38 = vsel %vm706_vm3, %v729_v17, %v1641_v6  ;;  %v738_v0 = vsel %vm706_vm3, %v730_v56, %v1642_v28 }
  0xe9   : > { %v1062_v1 = vpack.c.bf16 %v738_v0, %v737_v38 }
  0xea   : > { %v1650_v39 = vpop.permute.xlu1 %1649 }
  0xeb   : > { %v1645_v53 = vpop.permute.xlu0 %1644  ;;  %1176 = vmatmul.bf16.gmra.mxu1 %v1062_v1  ;;  %v1652_v58 = vunpack.i.h.bf16 %v1650_v39  ;;  %v1651_v26 = vunpack.i.l.bf16 %v1650_v39  ;;  %1470 = vmatmul.msk.bf16.gmra.mxu2 %vm294_vm0, %v1072_v54 }
  0xec   : > { %v1647_v59 = vunpack.i.h.bf16 %v1645_v53  ;;  %v1646_v52 = vunpack.i.l.bf16 %v1645_v53  ;;  %v1670_v36 = vpop.permute.xlu2 %1669 }
  0xed   : > { %v1672_v20 = vunpack.i.h.bf16 %v1670_v36  ;;  %v1671_v30 = vunpack.i.l.bf16 %v1670_v36 }
  0xee   : > { %v1011_v44 = vsel %vm294_vm0, %v2152_v31, %v1647_v59  ;;  %v1010_v57 = vsel %vm294_vm0, %v2041_v3, %v1646_v52 }
  0xef   : > { %v1018_v10 = vsel %vm697_vm2, %v1010_v57, %v1651_v26  ;;  %v1019_v12 = vsel %vm697_vm2, %v1011_v44, %v1652_v58 }
  0xf0   : > { %v1026_v4 = vsel %vm706_vm3, %v1018_v10, %v1656_v63  ;;  %v1027_v40 = vsel %vm706_vm3, %v1019_v12, %v1657_v14 }
  0xf1   : > { %v1073_v35 = vpack.c.bf16 %v1027_v40, %v1026_v4 }
  0xf2   : > { %v1665_v47 = vpop.permute.xlu1 %1664 }
  0xf3   : > { %v1660_v23 = vpop.permute.xlu0 %1659  ;;  %1147 = vmatmul.bf16.gmra.mxu3 %v1073_v35  ;;  %v1667_v2 = vunpack.i.h.bf16 %v1665_v47  ;;  %v1666_v31 = vunpack.i.l.bf16 %v1665_v47 }
  0xf4   : > { %v1662_v34 = vunpack.i.h.bf16 %v1660_v23  ;;  %v1661_v9 = vunpack.i.l.bf16 %v1660_v23  ;;  %v1685_v3 = vpop.permute.xlu2 %1684 }
  0xf5   : > { %v1687_v5 = vunpack.i.h.bf16 %v1685_v3  ;;  %v1686_v43 = vunpack.i.l.bf16 %v1685_v3 }
  0xf6   : > { %v1005_v8 = vsel %vm294_vm0, %v2231_v62, %v1662_v34  ;;  %v1004_v55 = vsel %vm294_vm0, %v739_v7, %v1661_v9 }
  0xf7   : > { %v1012_v60 = vsel %vm697_vm2, %v1004_v55, %v1666_v31  ;;  %v1013_v33 = vsel %vm697_vm2, %v1005_v8, %v1667_v2  ;;  %v1033_v39 = vsel %vm294_vm0, %v2051_v13, %v1687_v5  ;;  %v1032_v53 = vsel %vm294_vm0, %v2004_v51, %v1686_v43 }
  0xf8   : > { %v1020_v61 = vsel %vm706_vm3, %v1012_v60, %v1671_v30  ;;  %v1021_v48 = vsel %vm706_vm3, %v1013_v33, %v1672_v20 }
  0xf9   : > { %v1064_v49 = vpack.c.bf16 %v1021_v48, %v1020_v61 }
  0xfa   : > { %v1680_v24 = vpop.permute.xlu1 %1679 }
  0xfb   : > { %v1675_v11 = vpop.permute.xlu0 %1674  ;;  %1132 = vmatmul.bf16.gmra.mxu0 %v1064_v49  ;;  %1471 = vmatmul.msk.bf16.gmra.mxu2 %vm294_vm0, %v1075_v29  ;;  %v1682_v6 = vunpack.i.h.bf16 %v1680_v24  ;;  %v1681_v21 = vunpack.i.l.bf16 %v1680_v24 }
  0xfc   : > { %v1700_v22 = vpop.permute.xlu2 %1699  ;;  %v1677_v62 = vunpack.i.h.bf16 %v1675_v11  ;;  %v1676_v28 = vunpack.i.l.bf16 %v1675_v11 }
  0xfd   : > { %v1702_v17 = vunpack.i.h.bf16 %v1700_v22  ;;  %v1701_v56 = vunpack.i.l.bf16 %v1700_v22 }
  0xfe   : > { %v1029_v15 = vsel %vm294_vm0, %v2198_v27, %v1677_v62  ;;  %v1028_v25 = vsel %vm294_vm0, %v2106_v50, %v1676_v28 }
  0xff   : > { %v1036_v27 = vsel %vm697_vm2, %v1028_v25, %v1681_v21  ;;  %v1037_v14 = vsel %vm697_vm2, %v1029_v15, %v1682_v6 }
 0x101   : > { %v1211_v9 = vpop.f32.mrf.mxu2 }
 0x102   : > { %v1695_v42 = vpop.permute.xlu1 %1694 }
 0x103   : > { %v1690_v37 = vpop.permute.xlu0 %1689  ;;  %v1697_v32 = vunpack.i.h.bf16 %v1695_v42  ;;  %v1696_v38 = vunpack.i.l.bf16 %v1695_v42 }
 0x104   : > { %v1692_v0 = vunpack.i.h.bf16 %v1690_v37  ;;  %v1691_v1 = vunpack.i.l.bf16 %v1690_v37  ;;  %v1715_v54 = vpop.permute.xlu2 %1714 }
 0x105   : > { %v1041_v50 = vsel %vm697_vm2, %v1033_v39, %v1697_v32  ;;  %v1040_v63 = vsel %vm697_vm2, %v1032_v53, %v1696_v38  ;;  %v1717_v57 = vunpack.i.h.bf16 %v1715_v54  ;;  %v1716_v10 = vunpack.i.l.bf16 %v1715_v54  ;;  %v2440_v54 = vld [vmem:[%s2576_s3] ss:$0 sm:$0xff] }
 0x106   : > { %v1044_v58 = vsel %vm706_vm3, %v1036_v27, %v1691_v1  ;;  %v1045_v26 = vsel %vm706_vm3, %v1037_v14, %v1692_v0  ;;  %v1048_v52 = vsel %vm706_vm3, %v1040_v63, %v1701_v56  ;;  %v1049_v13 = vsel %vm706_vm3, %v1041_v50, %v1702_v17 }
 0x107   : > { %v1065_v59 = vpack.c.bf16 %v1045_v26, %v1044_v58  ;;  %v1071_v36 = vpack.c.bf16 %v1049_v13, %v1048_v52 }
 0x109   : > { %1181 = vmatmul.bf16.gmra.mxu1 %v1065_v59  ;;  %1191 = vmatmul.bf16.vlgmr.msrb.gmra.mxu3 %v1071_v36  ;;  %v1213_v37 = vpop.f32.mrf.mxu2 }
 0x10a   : > { %v1710_v51 = vpop.permute.xlu1 %1709 }
 0x10b   : > { %v1705_v44 = vpop.permute.xlu0 %1704  ;;  %v1712_v12 = vunpack.i.h.bf16 %v1710_v51  ;;  %v1711_v4 = vunpack.i.l.bf16 %v1710_v51 }
 0x10c   : > { %v1707_v40 = vunpack.i.h.bf16 %v1705_v44  ;;  %v1706_v35 = vunpack.i.l.bf16 %v1705_v44  ;;  %v1730_v23 = vpop.permute.xlu2 %1729 }
 0x10d   : > { %v1732_v48 = vunpack.i.h.bf16 %v1730_v23  ;;  %v1731_v49 = vunpack.i.l.bf16 %v1730_v23 }
 0x10e   : > { %v1007_v47 = vsel %vm294_vm0, %v2139_v19, %v1707_v40  ;;  %v1006_v7 = vsel %vm294_vm0, %v2137_v18, %v1706_v35  ;;  %v774_v19 = vld [vmem:[#allocation3 + $0x41] sm:$0xff] }
 0x10f   : > { %v1014_v20 = vsel %vm697_vm2, %v1006_v7, %v1711_v4  ;;  %v1015_v30 = vsel %vm697_vm2, %v1007_v47, %v1712_v12  ;;  %v1035_v43 = vsel %vm294_vm0, %v2310_v46, %v1732_v48  ;;  %v1034_v15 = vsel %vm294_vm0, %v2061_v16, %v1731_v49 }
 0x110   : > { %v1022_v2 = vsel %vm706_vm3, %v1014_v20, %v1716_v10  ;;  %v1023_v31 = vsel %vm706_vm3, %v1015_v30, %v1717_v57 }
 0x111   : > { %v1067_v34 = vpack.c.bf16 %v1023_v31, %v1022_v2 }
 0x112   : > { %v1725_v3 = vpop.permute.xlu1 %1724 }
 0x113   : > { %v1720_v8 = vpop.permute.xlu0 %1719  ;;  %1137 = vmatmul.bf16.gmra.mxu0 %v1067_v34  ;;  %v1727_v61 = vunpack.i.h.bf16 %v1725_v3  ;;  %v1726_v18 = vunpack.i.l.bf16 %v1725_v3 }
 0x114   : > { %v1722_v55 = vunpack.i.h.bf16 %v1720_v8  ;;  %v1721_v60 = vunpack.i.l.bf16 %v1720_v8  ;;  %v1745_v33 = vpop.permute.xlu2 %1744 }
 0x115   : > { %v1747_v22 = vunpack.i.h.bf16 %v1745_v33  ;;  %v1746_v62 = vunpack.i.l.bf16 %v1745_v33 }
 0x116   : > { %v1031_v45 = vsel %vm294_vm0, %v774_v19, %v1722_v55  ;;  %v1030_v24 = vsel %vm294_vm0, %v2209_v41, %v1721_v60 }
 0x117   : > { %v1038_v25 = vsel %vm697_vm2, %v1030_v24, %v1726_v18  ;;  %v1039_v42 = vsel %vm697_vm2, %v1031_v45, %v1727_v61 }
 0x11a   : > { %v1740_v11 = vpop.permute.xlu1 %1739 }
 0x11b   : > { %v1735_v29 = vpop.permute.xlu0 %1734  ;;  %v1742_v28 = vunpack.i.h.bf16 %v1740_v11  ;;  %v1741_v6 = vunpack.i.l.bf16 %v1740_v11  ;;  %v1113_v16 = vpop.f32.mrf.mxu0 }
 0x11c   : > { %v1737_v21 = vunpack.i.h.bf16 %v1735_v29  ;;  %v1736_v5 = vunpack.i.l.bf16 %v1735_v29  ;;  %v1114_v39 = vadd.f32 %v2440_v54, %v1113_v16 }
 0x11d   : > { %v1042_v56 = vsel %vm697_vm2, %v1034_v15, %v1741_v6  ;;  %v1043_v32 = vsel %vm697_vm2, %v1035_v43, %v1742_v28  ;;  %v1216_v27 = vpop.f32.mrf.mxu2 }
 0x11e   : > { %v1046_v41 = vsel %vm706_vm3, %v1038_v25, %v1736_v5  ;;  %v1047_v17 = vsel %vm706_vm3, %v1039_v42, %v1737_v21  ;;  %v1050_v46 = vsel %vm706_vm3, %v1042_v56, %v1746_v62  ;;  %v1051_v0 = vsel %vm706_vm3, %v1043_v32, %v1747_v22 }
 0x11f   : > { %v1068_v38 = vpack.c.bf16 %v1047_v17, %v1046_v41  ;;  %v1074_v1 = vpack.c.bf16 %v1051_v0, %v1050_v46 }
 0x121   : > { %1186 = vmatmul.bf16.gmra.mxu1 %v1068_v38  ;;  %1196 = vmatmul.bf16.gmra.mxu3 %v1074_v1 }
 0x123   : > { %v1115_v50 = vpop.f32.mrf.mxu0 }
 0x124   : > { %v1116_v26 = vadd.f32 %v2440_v54, %v1115_v50 }
 0x125   : > { %v1218_v13 = vpop.f32.mrf.mxu2 }
 0x127   : > { %v1162_v53 = vpop.f32.mrf.mxu1 }
 0x128   : > { %v1163_v14 = vadd.f32 %v1162_v53, %v1114_v39 }
 0x12a   : > { %v2443_v63 = vadd.f32 %v1211_v9, %v1163_v14 }
 0x12c   : > { %v1251_v58 = vmax.f32 %v2443_v63, 0.0 }
 0x12e   : > { %1267 = vst.msk [vmem:[%s2449_s10] sm:$0xff] %vm697_vm2, %v1251_v58  ;;  %v1221_v57 = vpop.f32.mrf.mxu2 }
 0x12f   : > { %v1164_v59 = vpop.f32.mrf.mxu1 }
 0x130   : > { %v1165_v52 = vadd.f32 %v1164_v59, %v1116_v26 }
 0x132   : > { %v2457_v36 = vadd.f32 %v1213_v37, %v1165_v52 }
 0x134   : > { %v1252_v51 = vmax.f32 %v2457_v36, 0.0 }
 0x136   : > { %1268 = vst.msk [vmem:[%s2449_s10 + $0x8] sm:$0xff] %vm697_vm2, %v1252_v51  ;;  %v1223_v23 = vpop.f32.mrf.mxu2 }
 0x138   : > { %v1118_v44 = vpop.f32.mrf.mxu0 }
 0x139   : > { %v1119_v10 = vadd.f32 %v2440_v54, %v1118_v44 }
 0x13e   : > { %v1226_v3 = vpop.f32.mrf.mxu2 }
 0x140   : > { %v1167_v12 = vpop.f32.mrf.mxu1  ;;  %v1120_v4 = vpop.f32.mrf.mxu0 }
 0x141   : > { %v1168_v40 = vadd.f32 %v1167_v12, %v1119_v10  ;;  %v1121_v7 = vadd.f32 %v2440_v54, %v1120_v4 }
 0x143   : > { %v2465_v35 = vadd.f32 %v1216_v27, %v1168_v40 }
 0x145   : > { %v1253_v47 = vmax.f32 %v2465_v35, 0.0 }
 0x146   : > { %v1228_v49 = vpop.f32.mrf.mxu2 }
 0x147   : > { %1269 = vst.msk [vmem:[%s2449_s10 + $0x10] sm:$0xff] %vm697_vm2, %v1253_v47 }
 0x148   : > { %v1169_v20 = vpop.f32.mrf.mxu1  ;;  %v1123_v30 = vpop.f32.mrf.mxu0 }
 0x149   : > { %v1170_v2 = vadd.f32 %v1169_v20, %v1121_v7  ;;  %v1124_v9 = vadd.f32 %v2440_v54, %v1123_v30 }
 0x14b   : > { %v2473_v31 = vadd.f32 %v1218_v13, %v1170_v2 }
 0x14d   : > { %v1254_v34 = vmax.f32 %v2473_v31, 0.0 }
 0x14e   : > { %v1231_v29 = vpop.f32.mrf.mxu2 }
 0x14f   : > { %1270 = vst.msk [vmem:[%s2449_s10 + $0x18] sm:$0xff] %vm697_vm2, %v1254_v34 }
 0x150   : > { %v1172_v8 = vpop.f32.mrf.mxu1  ;;  %v1125_v60 = vpop.f32.mrf.mxu0 }
 0x151   : > { %v1173_v55 = vadd.f32 %v1172_v8, %v1124_v9  ;;  %v1126_v61 = vadd.f32 %v2440_v54, %v1125_v60 }
 0x153   : > { %v2481_v19 = vadd.f32 %v1221_v57, %v1173_v55 }
 0x155   : > { %v1255_v33 = vmax.f32 %v2481_v19, 0.0 }
 0x156   : > { %v1233_v15 = vpop.f32.mrf.mxu2 }
 0x157   : > { %1271 = vst.msk [vmem:[%s2449_s10 + $0x20] sm:$0xff] %vm697_vm2, %v1255_v33 }
 0x158   : > { %v1174_v18 = vpop.f32.mrf.mxu1 }
 0x159   : > { %v1175_v48 = vadd.f32 %v1174_v18, %v1126_v61 }
 0x15b   : > { %v2489_v45 = vadd.f32 %v1223_v23, %v1175_v48 }
 0x15d   : > { %v1256_v24 = vmax.f32 %v2489_v45, 0.0 }
 0x15e   : > { %v1143_v28 = vpop.f32.mrf.mxu3  ;;  %v1236_v32 = vpop.f32.mrf.mxu2 }
 0x15f   : > { %1272 = vst.msk [vmem:[%s2449_s10 + $0x28] sm:$0xff] %vm697_vm2, %v1256_v24  ;;  %v1144_v59 = vadd.f32 %v2440_v54, %v1143_v28 }
 0x160   : > { %v1128_v11 = vpop.f32.mrf.mxu0 }
 0x161   : > { %v1129_v22 = vadd.f32 %v2440_v54, %v1128_v11 }
 0x166   : > { %v1145_v41 = vpop.f32.mrf.mxu3  ;;  %v1238_v0 = vpop.f32.mrf.mxu2 }
 0x167   : > { %v1146_v23 = vadd.f32 %v2440_v54, %v1145_v41 }
 0x168   : > { %v1177_v62 = vpop.f32.mrf.mxu1  ;;  %v1130_v5 = vpop.f32.mrf.mxu0 }
 0x169   : > { %v1178_v6 = vadd.f32 %v1177_v62, %v1129_v22  ;;  %v1131_v25 = vadd.f32 %v2440_v54, %v1130_v5 }
 0x16b   : > { %v2497_v21 = vadd.f32 %v1226_v3, %v1178_v6 }
 0x16d   : > { %v1257_v43 = vmax.f32 %v2497_v21, 0.0 }
 0x16e   : > { %v1241_v26 = vpop.f32.mrf.mxu2 }
 0x16f   : > { %1273 = vst.msk [vmem:[%s2449_s10 + $0x30] sm:$0xff] %vm697_vm2, %v1257_v43 }
 0x170   : > { %v1179_v42 = vpop.f32.mrf.mxu1 }
 0x171   : > { %v1180_v37 = vadd.f32 %v1179_v42, %v1131_v25 }
 0x173   : > { %v2505_v17 = vadd.f32 %v1228_v49, %v1180_v37 }
 0x175   : > { %v1258_v56 = vmax.f32 %v2505_v17, 0.0 }
 0x176   : > { %v1148_v38 = vpop.f32.mrf.mxu3  ;;  %v1243_v30 = vpop.f32.mrf.mxu2 }
 0x177   : > { %1274 = vst.msk [vmem:[%s2449_s10 + $0x38] sm:$0xff] %vm697_vm2, %v1258_v56 }
 0x178   : > { %v1133_v46 = vpop.f32.mrf.mxu0 }
 0x179   : > { %v1134_v16 = vadd.f32 %v2440_v54, %v1133_v46 }
 0x17e   : > { %v1150_v1 = vpop.f32.mrf.mxu3  ;;  %v1246_v6 = vpop.f32.mrf.mxu2 }
 0x180   : > { %v1135_v14 = vpop.f32.mrf.mxu0 }
 0x181   : > { %v1136_v52 = vadd.f32 %v2440_v54, %v1135_v14 }
 0x186   : > { %v1182_v39 = vpop.f32.mrf.mxu1  ;;  %v1248_v14 = vpop.f32.mrf.mxu2 }
 0x187   : > { %v1183_v53 = vadd.f32 %v1182_v39, %v1134_v16 }
 0x189   : > { %v1232_v27 = vadd.f32 %v1231_v29, %v1183_v53  ;;  %v1149_v29 = vadd.f32 %v2440_v54, %v1148_v38 }
 0x18b   : > { %v1259_v50 = vmax.f32 %v1232_v27, 0.0 }
 0x18c   : > { %v1192_v13 = vpop.f32.mrf.mxu3 }
 0x18d   : > { %1275 = vst.msk [vmem:[%s2517_s13] sm:$0xff] %vm697_vm2, %v1259_v50  ;;  %v1193_v44 = vadd.f32 %v1192_v13, %v1144_v59  ;;  %v1283_v22 = vsub.f32 %v1251_v58, %v1259_v50 }
 0x18e   : > { %v1184_v57 = vpop.f32.mrf.mxu1 }
 0x18f   : > { %v1185_v10 = vadd.f32 %v1184_v57, %v1136_v52  ;;  %v1242_v12 = vadd.f32 %v1241_v26, %v1193_v44  ;;  %v1291_v37 = vand.u32 2147483647, %v1283_v22 }
 0x190   : > { %v1138_v9 = vpop.f32.mrf.mxu0 }
 0x191   : > { %v1234_v4 = vadd.f32 %v1233_v15, %v1185_v10  ;;  %v1263_v40 = vmax.f32 %v1242_v12, 0.0  ;;  %v1139_v55 = vadd.f32 %v2440_v54, %v1138_v9  ;;  %v1299_v46 = vsel %vm697_vm2, %v1291_v37, 0.0 }
 0x193   : > { %v1260_v7 = vmax.f32 %v1234_v4, 0.0  ;;  %1279 = vst.msk [vmem:[%s2517_s13 + $0x20] sm:$0xff] %vm697_vm2, %v1263_v40  ;;  %v1287_v38 = vsub.f32 %v1255_v33, %v1263_v40 }
 0x194   : > { %v1194_v20 = vpop.f32.mrf.mxu3 }
 0x195   : > { %1276 = vst.msk [vmem:[%s2517_s13 + $0x8] sm:$0xff] %vm697_vm2, %v1260_v7  ;;  %v1195_v2 = vadd.f32 %v1194_v20, %v1146_v23  ;;  %v1284_v49 = vsub.f32 %v1252_v51, %v1260_v7  ;;  %v1295_v27 = vand.u32 2147483647, %v1287_v38 }
 0x197   : > { %v1244_v3 = vadd.f32 %v1243_v30, %v1195_v2  ;;  %v1292_v36 = vand.u32 2147483647, %v1284_v49  ;;  %v1306_v31 = vsel %vm697_vm2, %v1295_v27, 0.0 }
 0x198   : > { %v1140_v48 = vpop.f32.mrf.mxu0 }
 0x199   : > { %v1264_v8 = vmax.f32 %v1244_v3, 0.0  ;;  %v1141_v62 = vadd.f32 %v2440_v54, %v1140_v48 }
 0x19b   : > { %1280 = vst.msk [vmem:[%s2517_s13 + $0x28] sm:$0xff] %vm697_vm2, %v1264_v8  ;;  %v1288_v16 = vsub.f32 %v1256_v24, %v1264_v8 }
 0x19d   : > { %v1296_v24 = vand.u32 2147483647, %v1288_v16 }
 0x19e   : > { %v1187_v60 = vpop.f32.mrf.mxu1 }
 0x19f   : > { %v1188_v61 = vadd.f32 %v1187_v60, %v1139_v55  ;;  %v1308_v21 = vsel %vm697_vm2, %v1296_v24, 0.0 }
 0x1a1   : > { %v1237_v18 = vadd.f32 %v1236_v32, %v1188_v61  ;;  %v1300_v32 = vsel %vm697_vm2, %v1292_v36, 0.0 }
 0x1a2   : > { %v1301_v33 = vadd.f32 %v1300_v32, %v1299_v46 }
 0x1a3   : > { %v1261_v11 = vmax.f32 %v1237_v18, 0.0 }
 0x1a4   : > { %v1197_v5 = vpop.f32.mrf.mxu3 }
 0x1a5   : > { %1277 = vst.msk [vmem:[%s2517_s13 + $0x10] sm:$0xff] %vm697_vm2, %v1261_v11  ;;  %v1285_v28 = vsub.f32 %v1253_v47, %v1261_v11  ;;  %v1198_v15 = vadd.f32 %v1197_v5, %v1149_v29  ;;  %v1151_v47 = vadd.f32 %v2440_v54, %v1150_v1 }
 0x1a6   : > { %v1189_v25 = vpop.f32.mrf.mxu1 }
 0x1a7   : > { %v1190_v51 = vadd.f32 %v1189_v25, %v1141_v62  ;;  %v1247_v42 = vadd.f32 %v1246_v6, %v1198_v15  ;;  %v1293_v41 = vand.u32 2147483647, %v1285_v28 }
 0x1a9   : > { %v1239_v63 = vadd.f32 %v1238_v0, %v1190_v51  ;;  %v1265_v58 = vmax.f32 %v1247_v42, 0.0  ;;  %v1302_v39 = vsel %vm697_vm2, %v1293_v41, 0.0 }
 0x1aa   : > { %v1303_v50 = vadd.f32 %v1302_v39, %v1301_v33 }
 0x1ab   : > { %v1262_v35 = vmax.f32 %v1239_v63, 0.0  ;;  %1281 = vst.msk [vmem:[%s2517_s13 + $0x30] sm:$0xff] %vm697_vm2, %v1265_v58  ;;  %v1289_v54 = vsub.f32 %v1257_v43, %v1265_v58 }
 0x1ac   : > { %v1199_v19 = vpop.f32.mrf.mxu3 }
 0x1ad   : > { %1278 = vst.msk [vmem:[%s2517_s13 + $0x18] sm:$0xff] %vm697_vm2, %v1262_v35  ;;  %v1286_v0 = vsub.f32 %v1254_v34, %v1262_v35  ;;  %v1200_v53 = vadd.f32 %v1199_v19, %v1151_v47  ;;  %v1297_v34 = vand.u32 2147483647, %v1289_v54 }
 0x1af   : > { %v1294_v1 = vand.u32 2147483647, %v1286_v0  ;;  %v1249_v45 = vadd.f32 %v1248_v14, %v1200_v53  ;;  %v1310_v10 = vsel %vm697_vm2, %v1297_v34, 0.0 }
 0x1b1   : > { %v1304_v26 = vsel %vm697_vm2, %v1294_v1, 0.0  ;;  %v1266_v52 = vmax.f32 %v1249_v45, 0.0 }
 0x1b2   : > { %v1305_v59 = vadd.f32 %v1304_v26, %v1303_v50 }
 0x1b3   : > { %1282 = vst.msk [vmem:[%s2517_s13 + $0x38] sm:$0xff] %vm697_vm2, %v1266_v52  ;;  %v1290_v13 = vsub.f32 %v1258_v56, %v1266_v52 }
 0x1b4   : > { %v1307_v44 = vadd.f32 %v1306_v31, %v1305_v59 }
 0x1b5   : > { %v1298_v43 = vand.u32 2147483647, %v1290_v13 }
 0x1b6   : > { %v1309_v57 = vadd.f32 %v1308_v21, %v1307_v44 }
 0x1b7   : > { %v1312_v4 = vsel %vm697_vm2, %v1298_v43, 0.0 }
 0x1b8   : > { %v1311_v12 = vadd.f32 %v1310_v10, %v1309_v57 }
 0x1ba   : > { %v1313_v40 = vadd.f32 %v1312_v4, %v1311_v12 }
 0x1bc   : > { %1314 = vadd.xlane.f32.xlu0 %v1313_v40 }
 0x22f   : > { %v1315_v7 = vpop.xlane.xlu0 %1314 }
 0x230   : > { %v1316_v23 = vrot.slane %v1315_v7, 4 }
 0x232   : > { %v1317_v20 = vadd.f32 %v1316_v23, %v1315_v7 }
 0x234   : > { %v1318_v30 = vrot.slane %v1317_v20, 2 }
 0x236   : > { %v1319_v2 = vadd.f32 %v1318_v30, %v1317_v20 }
 0x238   : > { %v1320_v17 = vrot.slane %v1319_v2, 1 }
 0x23a   : > { %v1321_v56 = vadd.f32 %v1320_v17, %v1319_v2 }
 0x23c   : > { %1494 = vpush %v1321_v56 }
 0x26d   : > { %s1495_s16 = spop %1494 }
 0x26e   : > { %v1323_v9 = vstv %s1495_s16 }
 0x26f   : > { %1325 = vst.msk [vmem:[%s292_s15] sm:$0x1] %vm1324_vm4, %v1323_v9 }
 0x270 PF: > { %s17_s21 = sadd.s32 1, %s1755_s21  }
 0x271   : > { %p14_p4 = scmp.ge.s32.totalorder %s17_s21, 4  }
 0x273   :  { %16 = sbr.rel (!%p14_p4) target bundleno = 1 (0x1), region = 97 }

// kernel: loss_cnt.8
= control target key start
LH: loop header
LB: loop body
LE: loop exit
PB: predicated region body
PF: predicated region fallthrough
CT: control target
= control target key end

     0   :  { %s1865_s0 = inlined_call_operand.vmem [shape: f32[2,4,4,64], index: 0, kind: input, shape index: {}]   ;;  %s1866_s1 = inlined_call_operand.vmem [shape: f32[2,4,4,64], index: 1, kind: input, shape index: {}]   ;;  %s1867_s2 = inlined_call_operand.vmem [shape: f32[9,64,128], index: 2, kind: input, shape index: {}]   ;;  %s1868_s3 = inlined_call_operand.vmem [shape: f32[1,128], index: 3, kind: input, shape index: {}]   ;;  %s1869_s4 = inlined_call_operand.hbm [shape: f32[2,4,4,128], index: 4, kind: output, shape index: {0}]   ;;  %s1870_s5 = inlined_call_operand.hbm [shape: f32[2,4,4,128], index: 5, kind: output, shape index: {1}]   ;;  %s1871_s6 = inlined_call_operand.vmem [shape: f32[2,1,1], index: 6, kind: output, shape index: {2}]  }
   0x1   :  { %1874 = sst [smem:[#allocation10_spill]] %s1865_s0 }
   0x2   :  { %1875 = sst [smem:[#allocation11_spill]] %s1866_s1 }
   0x3   :  { %1876 = sst [smem:[#allocation12_spill]] %s1867_s2 }
   0x4   :  { %12 = vsyncpa [#allocation5], 0 }
   0x5   :  { %14 = vsyncpa [#allocation5 + $0x1], 0 }
   0x6   :  { %15 = vsyncpa [#allocation7], 0 }
   0x7   :  { %17 = vsyncpa [#allocation7 + $0x1], 0  ;;  %s1401_s21 = smov 0   ;;  %s1403_s22 = smov 0  }
   0x8   :  { %s1405_s23 = smov 0   ;;  %s1407_s24 = smov 0  }
   0x9 LB: > { %s1422_s25 = sadd.s32 4294967295, %s1361_s24   ;;  %s1149_s26 = sadd.s32 4294967294, %s1361_s24   ;;  %s1361_s24 = sphi %s1407_s24, %s1886_s24   ;;  %s1357_s23 = sphi %s1405_s23, %s1885_s23   ;;  %s1353_s22 = sphi %s1403_s22, %s1884_s22   ;;  %s1349_s21 = sphi %s1401_s21, %s1883_s21  }
   0xa   : > { %s1426_s27 = sadd.s32 1, %s1361_s24   ;;  %s124_s28 = sadd.s32 1, %s1357_s23 }
   0xb   : > { %s121_s29 = ssub.s32 %s1361_s24, %s1426_s27  ;;  %p134_p0 = scmp.ne.s32.totalorder %s1357_s23, %s1353_s22 }
   0xc   : > { %p122_p1 = scmp.eq.s32.totalorder %s121_s29, 0  ;;  %p135_p2 = scmp.eq.s32.totalorder %s1422_s25, 1 }
   0xd   : > { %p140_p3 = scmp.ne.s32.totalorder %s1353_s22, %s1349_s21  ;;  %p141_p4 = scmp.eq.s32.totalorder %s1149_s26, 1 }
   0xe   : > { %s1437_s30 = scalar_select %p122_p1, %s1357_s23, %s124_s28  }
   0xf   : > { %p1439_p5 = por %p135_p2, %p134_p0  ;;  %p1443_p6 = por %p141_p4, %p140_p3 }
  0x10   : > { %p1152_p7 = scmp.ge.s32.totalorder %s1361_s24, 1  ;;  %p233_p8 = scmp.lt.s32.totalorder %s1361_s24, 3 }
  0x12   : > { %p234_p9 = pnand %p1152_p7, %p233_p8 }
  0x13   : > { %p276_p10 = scmp.lt.s32.totalorder (!%p234_p9), %s1422_s25, 1  ;;  %s1879_s0 = sld [smem:[#allocation10_spill]] (!%p234_p9) }
  0x14   : > { %237 = sbr.rel (%p234_p9) target bundleno = 647 (0x287), region = 36  ;;  %s1872_s14 = smov (!%p234_p9), 64  }
  0x15   : > { %s1880_s1 = sld [smem:[#allocation11_spill]] (!%p234_p9)  ;;  %s1790_s26 = sand.u32 (!%p234_p9), 1, %s1353_s22  }
  0x16   : > { %s1881_s2 = sld [smem:[#allocation12_spill]] (!%p234_p9)  ;;  %s1153_s28 = sshll.u32 (!%p234_p9), %s1790_s26, 4 }
  0x17   : > { %s1795_s29 = scalar_lea.vmem (!%p234_p9), [#allocation4], %s1153_s28  ;;  %s1171_s12 = sshll.u32 (!%p234_p9), %s1422_s25, 4 }
  0x18   : > { %s1000_s11 = sshll.u32 (!%p234_p9), %s1795_s29, 4  ;;  %s999_s16 = scalar_lea.hbm (!%p234_p9), %s1869_s4, %s1171_s12  ;;  %s1001_s11 = int_to_ptr.vmem [resolvable:$true] %s1000_s11 }
  0x19   : > { %vm290_vm0 = vcmask 521216   ;;  %v1363_v0 = vmov 0.0   ;;  %s1452_s9 = scalar_select %p276_p10, %s1422_s25, 1  ;;  %vm308_vm1 = vcmask 519168   ;;  %vm618_vm2 = vcmask 523264  }
  0x1a   : > { %291 = vst.msk [vmem:[#allocation2] sm:$0x3f] %vm290_vm0, %v1363_v0  ;;  %s1016_s19 = scalar_lea.hbm %s1870_s5, %s1171_s12  ;;  %s1002_s20 = sshll.u32 %s999_s16, 4  ;;  %s1003_s20 = int_to_ptr.hbm [resolvable:$true] %s1002_s20 }
  0x1b   : > { %292 = vst.msk [vmem:[#allocation2 + $0x8] sm:$0x3f] %vm290_vm0, %v1363_v0  ;;  %s1169_s10 = sshll.u32 %s1452_s9, 4 }
  0x1c   : > { %293 = vst.msk [vmem:[#allocation2 + $0x10] sm:$0x3f] %vm290_vm0, %v1363_v0  ;;  %s280_s13 = scalar_lea.vmem %s1879_s0, %s1169_s10  ;;  %s1489_s17 = scalar_lea.vmem %s1880_s1, %s1169_s10 }
  0x1d   : > { %294 = vst.msk [vmem:[#allocation2 + $0x18] sm:$0x3f] %vm290_vm0, %v1363_v0  ;;  %v303_v1 = vld [vmem:[%s280_s13] sm:$0xf]  ;;  %v304_v2 = vld [vmem:[%s280_s13 + $0x4] sm:$0xf] }
  0x1e   : > { %295 = vst.msk [vmem:[#allocation2 + $0x20] sm:$0x3f] %vm290_vm0, %v1363_v0  ;;  %v305_v3 = vld [vmem:[%s280_s13 + $0x8] sm:$0xf]  ;;  %v306_v8 = vld [vmem:[%s280_s13 + $0xc] sm:$0xf] }
  0x1f   : > { %309 = vst.msk [vmem:[#allocation2 + $0x9] sm:$0xf] %vm308_vm1, %v303_v1  ;;  %v313_v34 = vld [vmem:[%s1489_s17] sm:$0xf]  ;;  %v314_v35 = vld [vmem:[%s1489_s17 + $0x4] sm:$0xf] }
  0x20   : > { %310 = vst.msk [vmem:[#allocation2 + $0x11] sm:$0xf] %vm308_vm1, %v304_v2  ;;  %v315_v36 = vld [vmem:[%s1489_s17 + $0x8] sm:$0xf]  ;;  %v316_v58 = vld [vmem:[%s1489_s17 + $0xc] sm:$0xf] }
  0x21   : > { %v430_v4 = vld [vmem:[#allocation2] sm:$0xf]  ;;  %311 = vst.msk [vmem:[#allocation2 + $0x19] sm:$0xf] %vm308_vm1, %v305_v3  ;;  %s1803_s10 = scalar_lea.vmem [#allocation6], %s1153_s28  ;;  %s1281_s0 = sshra.s32 %s1003_s20, 4  ;;  %s1282_s0 = int_to_ptr.hbm [resolvable:$true] %s1281_s0 }
  0x22   : > { %471 = vst [vmem:[#allocation1] ss:$2 sm:$0xff] %v430_v4  ;;  %v434_v9 = vld [vmem:[#allocation2 + $0x1] sm:$0xf]  ;;  %s1017_s28 = sshll.u32 %s1803_s10, 4  ;;  %s1283_s1 = scalar_lea.hbm %s1282_s0, 16  ;;  %s1018_s28 = int_to_ptr.vmem [resolvable:$true] %s1017_s28 }
  0x23   : > { %296 = vst.msk [vmem:[#allocation2 + $0x28] sm:$0x3f] %vm290_vm0, %v1363_v0  ;;  %v438_v15 = vld [vmem:[#allocation2 + $0x2] sm:$0xf]  ;;  %p1284_p11 = scmp.ne.s32.totalorder %s1282_s0, %s1283_s1  ;;  %s1287_s13 = scalar_lea.hbm %s1869_s4, 32 }
  0x24   : > { %297 = vst.msk [vmem:[#allocation3] sm:$0x3f] %vm290_vm0, %v1363_v0  ;;  %p1288_p0 = scmp.lt.s32.totalorder %s1282_s0, %s1869_s4  ;;  %p1289_p1 = scmp.lt.s32.totalorder %s1287_s13, %s1283_s1 }
  0x25   : > { %298 = vst.msk [vmem:[#allocation3 + $0x8] sm:$0x3f] %vm290_vm0, %v1363_v0  ;;  %p1285_p12 = pnand %p1284_p11, %p1439_p5 }
  0x26   : > { %v431_v5 = vld [vmem:[#allocation2 + $0x8] sm:$0xf]  ;;  %299 = vst.msk [vmem:[#allocation3 + $0x10] sm:$0x3f] %vm290_vm0, %v1363_v0  ;;  %p1290_p2 = por %p1289_p1, %p1288_p0 }
  0x27   : > { %v432_v6 = vld [vmem:[#allocation2 + $0x10] sm:$0xf]  ;;  %473 = vst [vmem:[#allocation1 + $0x1] ss:$2 sm:$0xff] %v431_v5  ;;  %v435_v10 = vld [vmem:[#allocation2 + $0x9] sm:$0xf]  ;;  %p1286_p13 = pneg %p1285_p12 }
  0x28   : > { %v433_v7 = vld [vmem:[#allocation2 + $0x18] sm:$0xf]  ;;  %475 = vst [vmem:[#allocation1 + $0x10] ss:$2 sm:$0xff] %v432_v6  ;;  %v436_v11 = vld [vmem:[#allocation2 + $0x11] sm:$0xf] }
  0x29   : > { %477 = vst [vmem:[#allocation1 + $0x11] ss:$2 sm:$0xff] %v433_v7  ;;  %v437_v13 = vld [vmem:[#allocation2 + $0x19] sm:$0xf]  ;;  %v439_v16 = vld [vmem:[#allocation2 + $0xa] sm:$0xf]  ;;  %p1291_p3 = pnand %p1290_p2, %p1286_p13 }
  0x2a   : > { %300 = vst.msk [vmem:[#allocation3 + $0x18] sm:$0x3f] %vm290_vm0, %v1363_v0  ;;  %v440_v18 = vld [vmem:[#allocation2 + $0x12] sm:$0xf]  ;;  %v441_v19 = vld [vmem:[#allocation2 + $0x1a] sm:$0xf] }
  0x2b   : > { %301 = vst.msk [vmem:[#allocation3 + $0x20] sm:$0x3f] %vm290_vm0, %v1363_v0  ;;  %v442_v22 = vld [vmem:[#allocation2 + $0x8] sm:$0xf]  ;;  %v443_v23 = vld [vmem:[#allocation2 + $0x10] sm:$0xf] }
  0x2c   : > { %302 = vst.msk [vmem:[#allocation3 + $0x28] sm:$0x3f] %vm290_vm0, %v1363_v0  ;;  %v444_v24 = vld [vmem:[#allocation2 + $0x18] sm:$0xf]  ;;  %v446_v28 = vld [vmem:[#allocation2 + $0x9] sm:$0xf] }
  0x2d   : > { %312 = vst.msk [vmem:[#allocation2 + $0x21] sm:$0xf] %vm308_vm1, %v306_v8  ;;  %v447_v29 = vld [vmem:[#allocation2 + $0x11] sm:$0xf]  ;;  %v448_v30 = vld [vmem:[#allocation2 + $0x19] sm:$0xf] }
  0x2e   : > { %v1475_v12 = vld.sshfl [vmem:[#allocation1] sm:$0xff pattern:$0x75316420]  ;;  %v450_v37 = vld [vmem:[#allocation2 + $0xa] sm:$0xf] }
  0x2f   : > { %486 = vst [vmem:[#allocation1] ss:$2 sm:$0xff] %v434_v9  ;;  %v451_v38 = vld [vmem:[#allocation2 + $0x12] sm:$0xf]  ;;  %v452_v39 = vld [vmem:[#allocation2 + $0x1a] sm:$0xf] }
  0x30   : > { %v1477_v14 = vld.sshfl [vmem:[#allocation1 + $0x10] sm:$0xff pattern:$0x75316420]  ;;  %488 = vst [vmem:[#allocation1 + $0x1] ss:$2 sm:$0xff] %v435_v10 }
  0x31   : > { %490 = vst [vmem:[#allocation1 + $0x10] ss:$2 sm:$0xff] %v436_v11  ;;  %v455_v44 = vld [vmem:[#allocation2 + $0x10] sm:$0xf]  ;;  %v456_v45 = vld [vmem:[#allocation2 + $0x18] sm:$0xf] }
  0x32   : > { %492 = vst [vmem:[#allocation1 + $0x11] ss:$2 sm:$0xff] %v437_v13  ;;  %v458_v48 = vld [vmem:[#allocation2 + $0x28] sm:$0xf]  ;;  %v459_v51 = vld [vmem:[#allocation2 + $0x11] sm:$0xf] }
  0x33   : > { %318 = vst.msk [vmem:[#allocation3 + $0x9] sm:$0xf] %vm308_vm1, %v313_v34  ;;  %v460_v52 = vld [vmem:[#allocation2 + $0x19] sm:$0xf]  ;;  %v462_v55 = vld [vmem:[#allocation2 + $0x29] sm:$0xf] }
  0x34   : > { %v445_v26 = vld [vmem:[#allocation2 + $0x20] sm:$0xf]  ;;  %319 = vst.msk [vmem:[#allocation3 + $0x11] sm:$0xf] %vm308_vm1, %v314_v35  ;;  %v463_v57 = vld [vmem:[#allocation2 + $0x12] sm:$0xf] }
  0x35   : > { %v449_v32 = vld [vmem:[#allocation2 + $0x21] sm:$0xf]  ;;  %320 = vst.msk [vmem:[#allocation3 + $0x19] sm:$0xf] %vm308_vm1, %v315_v36  ;;  %v464_v59 = vld [vmem:[#allocation2 + $0x1a] sm:$0xf] }
  0x36   : > { %v453_v42 = vld [vmem:[#allocation2 + $0x22] sm:$0xf]  ;;  %321 = vst.msk [vmem:[#allocation3 + $0x21] sm:$0xf] %vm308_vm1, %v316_v58  ;;  %v466_v62 = vld [vmem:[#allocation2 + $0x2a] sm:$0xf] }
  0x37   : > { %v493_v17 = vld.sshfl [vmem:[#allocation1] sm:$0xff pattern:$0x75316420]  ;;  %v457_v47 = vld [vmem:[#allocation2 + $0x20] sm:$0xf] }
  0x38   : > { %505 = vst [vmem:[#allocation1] ss:$2 sm:$0xff] %v438_v15  ;;  %v461_v53 = vld [vmem:[#allocation2 + $0x21] sm:$0xf]  ;;  %v627_v1 = vld [vmem:[#allocation3] sm:$0xf] }
  0x39   : > { %v494_v20 = vld.sshfl [vmem:[#allocation1 + $0x10] sm:$0xff pattern:$0x75316420]  ;;  %507 = vst [vmem:[#allocation1 + $0x1] ss:$2 sm:$0xff] %v439_v16 }
  0x3a   : > { %v1226_v21 = vpack.i.bf16 %v494_v20, %v493_v17  ;;  %509 = vst [vmem:[#allocation1 + $0x10] ss:$2 sm:$0xff] %v440_v18  ;;  %v465_v61 = vld [vmem:[#allocation2 + $0x22] sm:$0xf]  ;;  %v628_v2 = vld [vmem:[#allocation3 + $0x8] sm:$0xf] }
  0x3b   : > { %511 = vst [vmem:[#allocation1 + $0x11] ss:$2 sm:$0xff] %v441_v19  ;;  %v629_v4 = vld [vmem:[#allocation3 + $0x10] sm:$0xf]  ;;  %v631_v7 = vld [vmem:[#allocation3 + $0x1] sm:$0xf] }
  0x3c   : > { %1227 = vrot.lane.b32.xlu0 %v1226_v21, %s1872_s14  ;;  %v630_v5 = vld [vmem:[#allocation3 + $0x18] sm:$0xf]  ;;  %v632_v8 = vld [vmem:[#allocation3 + $0x9] sm:$0xf]  ;;  %v633_v9 = vld [vmem:[#allocation3 + $0x11] sm:$0xf] }
  0x3d   : > { %v634_v11 = vld [vmem:[#allocation3 + $0x19] sm:$0xf]  ;;  %v635_v15 = vld [vmem:[#allocation3 + $0x2] sm:$0xf]  ;;  %v636_v16 = vld [vmem:[#allocation3 + $0xa] sm:$0xf] }
  0x3e   : > { %v637_v17 = vld [vmem:[#allocation3 + $0x12] sm:$0xf]  ;;  %v638_v19 = vld [vmem:[#allocation3 + $0x1a] sm:$0xf]  ;;  %v646_v34 = vld [vmem:[#allocation3 + $0x21] sm:$0xf] }
  0x3f   : > { %v647_v36 = vld [vmem:[#allocation3 + $0xa] sm:$0xf]  ;;  %v653_v58 = vld [vmem:[#allocation3 + $0x18] sm:$0xf] }
  0x40   : > { %v1480_v25 = vld.sshfl [vmem:[#allocation1] sm:$0xff pattern:$0x75316420] }
  0x41   : > { %520 = vst [vmem:[#allocation1] ss:$2 sm:$0xff] %v442_v22  ;;  %v639_v22 = vld [vmem:[#allocation3 + $0x8] sm:$0xf] }
  0x42   : > { %v1482_v27 = vld.sshfl [vmem:[#allocation1 + $0x10] sm:$0xff pattern:$0x75316420]  ;;  %522 = vst [vmem:[#allocation1 + $0x1] ss:$2 sm:$0xff] %v443_v23 }
  0x43   : > { %524 = vst [vmem:[#allocation1 + $0x10] ss:$2 sm:$0xff] %v444_v24  ;;  %v640_v23 = vld [vmem:[#allocation3 + $0x10] sm:$0xf]  ;;  %v641_v24 = vld [vmem:[#allocation3 + $0x18] sm:$0xf] }
  0x44   : > { %526 = vst [vmem:[#allocation1 + $0x11] ss:$2 sm:$0xff] %v445_v26 }
  0x49   : > { %v527_v31 = vld.sshfl [vmem:[#allocation1] sm:$0xff pattern:$0x75316420] }
  0x4a   : > { %539 = vst [vmem:[#allocation1] ss:$2 sm:$0xff] %v446_v28  ;;  %v642_v28 = vld [vmem:[#allocation3 + $0x20] sm:$0xf] }
  0x4b   : > { %v528_v33 = vld.sshfl [vmem:[#allocation1 + $0x10] sm:$0xff pattern:$0x75316420]  ;;  %541 = vst [vmem:[#allocation1 + $0x1] ss:$2 sm:$0xff] %v447_v29 }
  0x4c   : > { %543 = vst [vmem:[#allocation1 + $0x10] ss:$2 sm:$0xff] %v448_v30  ;;  %v1231_v41 = vpack.i.bf16 %v528_v33, %v527_v31  ;;  %v643_v30 = vld [vmem:[#allocation3 + $0x9] sm:$0xf]  ;;  %v644_v31 = vld [vmem:[#allocation3 + $0x11] sm:$0xf] }
  0x4d   : > { %545 = vst [vmem:[#allocation1 + $0x11] ss:$2 sm:$0xff] %v449_v32  ;;  %v645_v32 = vld [vmem:[#allocation3 + $0x19] sm:$0xf] }
  0x4e   : > { %1232 = vrot.lane.b32.xlu0 %v1231_v41, %s1872_s14 }
  0x52   : > { %v1496_v40 = vld.sshfl [vmem:[#allocation1] sm:$0xff pattern:$0x75316420] }
  0x53   : > { %554 = vst [vmem:[#allocation1] ss:$2 sm:$0xff] %v450_v37  ;;  %v648_v37 = vld [vmem:[#allocation3 + $0x12] sm:$0xf] }
  0x54   : > { %v1499_v43 = vld.sshfl [vmem:[#allocation1 + $0x10] sm:$0xff pattern:$0x75316420]  ;;  %556 = vst [vmem:[#allocation1 + $0x1] ss:$2 sm:$0xff] %v451_v38 }
  0x55   : > { %558 = vst [vmem:[#allocation1 + $0x10] ss:$2 sm:$0xff] %v452_v39  ;;  %v649_v38 = vld [vmem:[#allocation3 + $0x1a] sm:$0xf] }
  0x56   : > { %560 = vst [vmem:[#allocation1 + $0x11] ss:$2 sm:$0xff] %v453_v42  ;;  %v336_v42 = vld [vmem:[%s1881_s2 + $0x70] sm:$0xff] }
  0x5b   : > { %v561_v46 = vld.sshfl [vmem:[#allocation1] sm:$0xff pattern:$0x75316420] }
  0x5c   : > { %573 = vst [vmem:[#allocation1] ss:$2 sm:$0xff] %v455_v44  ;;  %v337_v44 = vld [vmem:[%s1881_s2 + $0x78] sm:$0xff] }
  0x5d   : > { %v562_v49 = vld.sshfl [vmem:[#allocation1 + $0x10] sm:$0xff pattern:$0x75316420]  ;;  %575 = vst [vmem:[#allocation1 + $0x1] ss:$2 sm:$0xff] %v456_v45 }
  0x5e   : > { %v1236_v50 = vpack.i.bf16 %v562_v49, %v561_v46  ;;  %577 = vst [vmem:[#allocation1 + $0x10] ss:$2 sm:$0xff] %v457_v47  ;;  %v650_v45 = vld [vmem:[#allocation3 + $0x22] sm:$0xf]  ;;  %v401_v46 = vpack.c.bf16 %v337_v44, %v336_v42  ;;  %v334_v47 = vld [vmem:[%s1881_s2 + $0x60] sm:$0xff]  ;;  %v363_v44 = vld [vmem:[%s1881_s2 + $0x148] sm:$0xff] }
  0x5f   : > { %579 = vst [vmem:[#allocation1 + $0x11] ss:$2 sm:$0xff] %v458_v48  ;;  %v335_v48 = vld [vmem:[%s1881_s2 + $0x68] sm:$0xff]  ;;  %v362_v42 = vld [vmem:[%s1881_s2 + $0x140] sm:$0xff] }
  0x60   : > { %1237 = vrot.lane.b32.xlu1 %v1236_v50, %s1872_s14  ;;  %843 = vmatpush.bf16.msra.mxu0 %v401_v46  ;;  %v400_v50 = vpack.c.bf16 %v335_v48, %v334_v47  ;;  %v378_v46 = vld [vmem:[%s1881_s2 + $0x1c0] sm:$0xff]  ;;  %v379_v47 = vld [vmem:[%s1881_s2 + $0x1c8] sm:$0xff] }
  0x61   : > { %v656_v48 = vld [vmem:[#allocation3 + $0x11] sm:$0xf] }
  0x64   : > { %v1503_v54 = vld.sshfl [vmem:[#allocation1] sm:$0xff pattern:$0x75316420]  ;;  %844 = vmatpush.bf16.msra.mxu0 %v400_v50 }
  0x65   : > { %588 = vst [vmem:[#allocation1] ss:$2 sm:$0xff] %v459_v51  ;;  %v332_v51 = vld [vmem:[%s1881_s2 + $0x50] sm:$0xff] }
  0x66   : > { %v1505_v56 = vld.sshfl [vmem:[#allocation1 + $0x10] sm:$0xff pattern:$0x75316420]  ;;  %590 = vst [vmem:[#allocation1 + $0x1] ss:$2 sm:$0xff] %v460_v52  ;;  %v333_v52 = vld [vmem:[%s1881_s2 + $0x58] sm:$0xff] }
  0x67   : > { %592 = vst [vmem:[#allocation1 + $0x10] ss:$2 sm:$0xff] %v461_v53  ;;  %v652_v53 = vld [vmem:[#allocation3 + $0x10] sm:$0xf] }
  0x68   : > { %594 = vst [vmem:[#allocation1 + $0x11] ss:$2 sm:$0xff] %v462_v55  ;;  %v368_v55 = vld [vmem:[%s1881_s2 + $0x170] sm:$0xff] }
  0x6d   : > { %v595_v60 = vld.sshfl [vmem:[#allocation1] sm:$0xff pattern:$0x75316420] }
  0x6e   : > { %607 = vst [vmem:[#allocation1] ss:$2 sm:$0xff] %v463_v57  ;;  %v369_v57 = vld [vmem:[%s1881_s2 + $0x178] sm:$0xff] }
  0x6f   : > { %v596_v63 = vld.sshfl [vmem:[#allocation1 + $0x10] sm:$0xff pattern:$0x75316420]  ;;  %609 = vst [vmem:[#allocation1 + $0x1] ss:$2 sm:$0xff] %v464_v59  ;;  %v417_v59 = vpack.c.bf16 %v369_v57, %v368_v55  ;;  %v326_v55 = vld [vmem:[%s1881_s2 + $0x20] sm:$0xff] }
  0x70   : > { %v1241_v0 = vpack.i.bf16 %v596_v63, %v595_v60  ;;  %611 = vst [vmem:[#allocation1 + $0x10] ss:$2 sm:$0xff] %v465_v61  ;;  %v384_v60 = vld [vmem:[%s1881_s2 + $0x1f0] sm:$0xff]  ;;  %v385_v61 = vld [vmem:[%s1881_s2 + $0x1f8] sm:$0xff]  ;;  %v399_v63 = vpack.c.bf16 %v333_v52, %v332_v51  ;;  %v346_v51 = vld [vmem:[%s1881_s2 + $0xc0] sm:$0xff] }
  0x71   : > { %613 = vst [vmem:[#allocation1 + $0x11] ss:$2 sm:$0xff] %v466_v62  ;;  %v654_v62 = vld [vmem:[#allocation3 + $0x20] sm:$0xf]  ;;  %881 = vmatpush.bf16.msra.mxu2 %v417_v59  ;;  %v347_v52 = vld [vmem:[%s1881_s2 + $0xc8] sm:$0xff] }
  0x72   : > { %1242 = vrot.lane.b32.xlu1 %v1241_v0, %s1872_s14  ;;  %v425_v0 = vpack.c.bf16 %v385_v61, %v384_v60  ;;  %845 = vmatpush.bf16.msra.mxu0 %v399_v63  ;;  %v327_v57 = vld [vmem:[%s1881_s2 + $0x28] sm:$0xff]  ;;  %v658_v59 = vld [vmem:[#allocation3 + $0x21] sm:$0xf]  ;;  %v422_v60 = vpack.c.bf16 %v379_v47, %v378_v46  ;;  %v360_v61 = vld [vmem:[%s1881_s2 + $0x130] sm:$0xff] }
  0x73   : > { %v357_v47 = vld [vmem:[%s1881_s2 + $0x118] sm:$0xff] }
  0x74   : > { %900 = vmatpush.bf16.msra.mxu3 %v425_v0  ;;  %v406_v0 = vpack.c.bf16 %v347_v52, %v346_v51  ;;  %v373_v51 = vld [vmem:[%s1881_s2 + $0x198] sm:$0xff]  ;;  %v392_v52 = vld [vmem:[%s1881_s2 + $0x230] sm:$0xff] }
  0x76   : > { %v1510_v3 = vld.sshfl [vmem:[#allocation1] sm:$0xff pattern:$0x75316420] }
  0x77   : > { %668 = vst [vmem:[#allocation1] ss:$2 sm:$0xff] %v627_v1  ;;  %v352_v1 = vld [vmem:[%s1881_s2 + $0xf0] sm:$0xff] }
  0x78   : > { %v1512_v6 = vld.sshfl [vmem:[#allocation1 + $0x10] sm:$0xff pattern:$0x75316420]  ;;  %670 = vst [vmem:[#allocation1 + $0x1] ss:$2 sm:$0xff] %v628_v2  ;;  %v353_v2 = vld [vmem:[%s1881_s2 + $0xf8] sm:$0xff] }
  0x79   : > { %672 = vst [vmem:[#allocation1 + $0x10] ss:$2 sm:$0xff] %v629_v4  ;;  %v366_v4 = vld [vmem:[%s1881_s2 + $0x160] sm:$0xff] }
  0x7a   : > { %674 = vst [vmem:[#allocation1 + $0x11] ss:$2 sm:$0xff] %v630_v5  ;;  %v655_v5 = vld [vmem:[#allocation3 + $0x28] sm:$0xf] }
  0x7f   : > { %v1514_v10 = vld.sshfl [vmem:[#allocation1] sm:$0xff pattern:$0x75316420] }
  0x80   : > { %683 = vst [vmem:[#allocation1] ss:$2 sm:$0xff] %v631_v7  ;;  %v330_v7 = vld [vmem:[%s1881_s2 + $0x40] sm:$0xff] }
  0x81   : > { %v1516_v13 = vld.sshfl [vmem:[#allocation1 + $0x10] sm:$0xff pattern:$0x75316420]  ;;  %685 = vst [vmem:[#allocation1 + $0x1] ss:$2 sm:$0xff] %v632_v8  ;;  %v331_v8 = vld [vmem:[%s1881_s2 + $0x48] sm:$0xff] }
  0x82   : > { %687 = vst [vmem:[#allocation1 + $0x10] ss:$2 sm:$0xff] %v633_v9  ;;  %v409_v9 = vpack.c.bf16 %v353_v2, %v352_v1  ;;  %v376_v1 = vld [vmem:[%s1881_s2 + $0x1b0] sm:$0xff]  ;;  %v377_v2 = vld [vmem:[%s1881_s2 + $0x1b8] sm:$0xff] }
  0x83   : > { %689 = vst [vmem:[#allocation1 + $0x11] ss:$2 sm:$0xff] %v634_v11  ;;  %v367_v11 = vld [vmem:[%s1881_s2 + $0x168] sm:$0xff] }
  0x84   : > { %862 = vmatpush.bf16.msra.mxu1 %v409_v9  ;;  %v325_v9 = vld [vmem:[%s1881_s2 + $0x18] sm:$0xff] }
  0x88   : > { %v690_v18 = vld.sshfl [vmem:[#allocation1] sm:$0xff pattern:$0x75316420] }
  0x89   : > { %702 = vst [vmem:[#allocation1] ss:$2 sm:$0xff] %v635_v15 }
  0x8a   : > { %v691_v20 = vld.sshfl [vmem:[#allocation1 + $0x10] sm:$0xff pattern:$0x75316420]  ;;  %704 = vst [vmem:[#allocation1 + $0x1] ss:$2 sm:$0xff] %v636_v16  ;;  %v416_v16 = vpack.c.bf16 %v367_v11, %v366_v4 }
  0x8b   : > { %706 = vst [vmem:[#allocation1 + $0x10] ss:$2 sm:$0xff] %v637_v17  ;;  %v1246_v21 = vpack.i.bf16 %v691_v20, %v690_v18  ;;  %v382_v17 = vld [vmem:[%s1881_s2 + $0x1e0] sm:$0xff]  ;;  %v383_v18 = vld [vmem:[%s1881_s2 + $0x1e8] sm:$0xff]  ;;  %v329_v20 = vld [vmem:[%s1881_s2 + $0x38] sm:$0xff] }
  0x8c   : > { %708 = vst [vmem:[#allocation1 + $0x11] ss:$2 sm:$0xff] %v638_v19  ;;  %v328_v19 = vld [vmem:[%s1881_s2 + $0x30] sm:$0xff]  ;;  %882 = vmatpush.bf16.msra.mxu2 %v416_v16  ;;  %v659_v4 = vld [vmem:[#allocation3 + $0x29] sm:$0xf]  ;;  %v421_v16 = vpack.c.bf16 %v377_v2, %v376_v1  ;;  %v355_v1 = vld [vmem:[%s1881_s2 + $0x108] sm:$0xff] }
  0x8d   : > { %1247 = vrot.lane.b32.xlu2 %v1246_v21, %s1872_s14  ;;  %v424_v21 = vpack.c.bf16 %v383_v18, %v382_v17  ;;  %v397_v50 = vpack.c.bf16 %v329_v20, %v328_v19  ;;  %v322_v20 = vld [vmem:[%s1881_s2] sm:$0xff] }
  0x8f   : > { %901 = vmatpush.bf16.msra.mxu3 %v424_v21  ;;  %v323_v21 = vld [vmem:[%s1881_s2 + $0x8] sm:$0xff] }
  0x91   : > { %v1519_v26 = vld.sshfl [vmem:[#allocation1] sm:$0xff pattern:$0x75316420] }
  0x92   : > { %717 = vst [vmem:[#allocation1] ss:$2 sm:$0xff] %v639_v22  ;;  %v350_v22 = vld [vmem:[%s1881_s2 + $0xe0] sm:$0xff] }
  0x93   : > { %v1521_v29 = vld.sshfl [vmem:[#allocation1 + $0x10] sm:$0xff pattern:$0x75316420]  ;;  %719 = vst [vmem:[#allocation1 + $0x1] ss:$2 sm:$0xff] %v640_v23  ;;  %v351_v23 = vld [vmem:[%s1881_s2 + $0xe8] sm:$0xff] }
  0x94   : > { %721 = vst [vmem:[#allocation1 + $0x10] ss:$2 sm:$0xff] %v641_v24  ;;  %v364_v24 = vld [vmem:[%s1881_s2 + $0x150] sm:$0xff] }
  0x95   : > { %723 = vst [vmem:[#allocation1 + $0x11] ss:$2 sm:$0xff] %v642_v28 }
  0x9a   : > { %v724_v33 = vld.sshfl [vmem:[#allocation1] sm:$0xff pattern:$0x75316420] }
  0x9b   : > { %736 = vst [vmem:[#allocation1] ss:$2 sm:$0xff] %v643_v30  ;;  %v398_v30 = vpack.c.bf16 %v331_v8, %v330_v7  ;;  %v324_v7 = vld [vmem:[%s1881_s2 + $0x10] sm:$0xff] }
  0x9c   : > { %v725_v35 = vld.sshfl [vmem:[#allocation1 + $0x10] sm:$0xff pattern:$0x75316420]  ;;  %738 = vst [vmem:[#allocation1 + $0x1] ss:$2 sm:$0xff] %v644_v31  ;;  %v408_v31 = vpack.c.bf16 %v351_v23, %v350_v22  ;;  %v395_v17 = vpack.c.bf16 %v325_v9, %v324_v7  ;;  %v394_v23 = vpack.c.bf16 %v323_v21, %v322_v20  ;;  %v371_v7 = vld [vmem:[%s1881_s2 + $0x188] sm:$0xff] }
  0x9d   : > { %740 = vst [vmem:[#allocation1 + $0x10] ss:$2 sm:$0xff] %v645_v32  ;;  %v1251_v41 = vpack.i.bf16 %v725_v35, %v724_v33  ;;  %v365_v32 = vld [vmem:[%s1881_s2 + $0x158] sm:$0xff]  ;;  %v380_v35 = vld [vmem:[%s1881_s2 + $0x1d0] sm:$0xff]  ;;  %846 = vmatpush.bf16.msra.mxu0 %v398_v30  ;;  %v390_v9 = vld [vmem:[%s1881_s2 + $0x220] sm:$0xff] }
  0x9e   : > { %742 = vst [vmem:[#allocation1 + $0x11] ss:$2 sm:$0xff] %v646_v34  ;;  %v415_v34 = vpack.c.bf16 %v365_v32, %v364_v24  ;;  %863 = vmatpush.bf16.msra.mxu1 %v408_v31  ;;  %v388_v20 = vld [vmem:[%s1881_s2 + $0x210] sm:$0xff]  ;;  %v389_v21 = vld [vmem:[%s1881_s2 + $0x218] sm:$0xff] }
  0x9f   : > { %1252 = vrot.lane.b32.xlu2 %v1251_v41, %s1872_s14  ;;  %v349_v41 = vld [vmem:[%s1881_s2 + $0xd8] sm:$0xff] }
  0xa0   : > { %883 = vmatpush.bf16.msra.mxu2 %v415_v34  ;;  %v345_v34 = vld [vmem:[%s1881_s2 + $0xb8] sm:$0xff] }
  0xa1   : > { %847 = vmatpush.bf16.msra.mxu0 %v397_v50  ;;  %v372_v50 = vld [vmem:[%s1881_s2 + $0x190] sm:$0xff] }
  0xa3   : > { %v1523_v39 = vld.sshfl [vmem:[#allocation1] sm:$0xff pattern:$0x75316420] }
  0xa4   : > { %751 = vst [vmem:[#allocation1] ss:$2 sm:$0xff] %v647_v36  ;;  %v381_v36 = vld [vmem:[%s1881_s2 + $0x1d8] sm:$0xff] }
  0xa5   : > { %v1537_v49 = vld.sshfl [vmem:[#allocation1 + $0x10] sm:$0xff pattern:$0x75316420]  ;;  %753 = vst [vmem:[#allocation1 + $0x1] ss:$2 sm:$0xff] %v648_v37 }
  0xa6   : > { %755 = vst [vmem:[#allocation1 + $0x10] ss:$2 sm:$0xff] %v649_v38  ;;  %v348_v37 = vld [vmem:[%s1881_s2 + $0xd0] sm:$0xff]  ;;  %v423_v38 = vpack.c.bf16 %v381_v36, %v380_v35  ;;  %v359_v35 = vld [vmem:[%s1881_s2 + $0x128] sm:$0xff]  ;;  %v374_v36 = vld [vmem:[%s1881_s2 + $0x1a0] sm:$0xff] }
  0xa7   : > { %757 = vst [vmem:[#allocation1 + $0x11] ss:$2 sm:$0xff] %v650_v45  ;;  %v407_v45 = vpack.c.bf16 %v349_v41, %v348_v37  ;;  %v375_v37 = vld [vmem:[%s1881_s2 + $0x1a8] sm:$0xff] }
  0xa8   : > { %902 = vmatpush.bf16.msra.mxu3 %v423_v38  ;;  %v420_v41 = vpack.c.bf16 %v375_v37, %v374_v36 }
  0xa9   : > { %864 = vmatpush.bf16.msra.mxu1 %v407_v45  ;;  %v356_v45 = vld [vmem:[%s1881_s2 + $0x110] sm:$0xff] }
  0xac   : > { %v758_v15 = vld.sshfl [vmem:[#allocation1] sm:$0xff pattern:$0x75316420]  ;;  %903 = vmatpush.bf16.msra.mxu3 %v422_v60 }
  0xad   : > { %770 = vst [vmem:[#allocation1] ss:$2 sm:$0xff] %v652_v53  ;;  %v657_v53 = vld [vmem:[#allocation3 + $0x19] sm:$0xf]  ;;  %865 = vmatpush.bf16.msra.mxu1 %v406_v0  ;;  %v354_v0 = vld [vmem:[%s1881_s2 + $0x100] sm:$0xff] }
  0xae   : > { %v759_v28 = vld.sshfl [vmem:[#allocation1 + $0x10] sm:$0xff pattern:$0x75316420]  ;;  %772 = vst [vmem:[#allocation1 + $0x1] ss:$2 sm:$0xff] %v653_v58  ;;  %v414_v58 = vpack.c.bf16 %v363_v44, %v362_v42  ;;  %v1228_v11 = vpop.permute.xlu0 %1227  ;;  %v342_v42 = vld [vmem:[%s1881_s2 + $0xa0] sm:$0xff] }
  0xaf   : > { %774 = vst [vmem:[#allocation1 + $0x10] ss:$2 sm:$0xff] %v654_v62  ;;  %v1256_v33 = vpack.i.bf16 %v759_v28, %v758_v15  ;;  %v361_v62 = vld [vmem:[%s1881_s2 + $0x138] sm:$0xff]  ;;  %v1230_v18 = vunpack.i.h.bf16 %v1228_v11  ;;  %v1229_v19 = vunpack.i.l.bf16 %v1228_v11  ;;  %v343_v44 = vld [vmem:[%s1881_s2 + $0xa8] sm:$0xff] }
  0xb0   : > { %776 = vst [vmem:[#allocation1 + $0x11] ss:$2 sm:$0xff] %v655_v5  ;;  %v396_v5 = vpack.c.bf16 %v327_v57, %v326_v55  ;;  %884 = vmatpush.bf16.msra.mxu2 %v414_v58  ;;  %v413_v15 = vpack.c.bf16 %v361_v62, %v360_v61  ;;  %904 = vmatpush.bf16.msra.mxu3 %v421_v16  ;;  %v393_v57 = vld [vmem:[%s1881_s2 + $0x238] sm:$0xff]  ;;  %v340_v58 = vld [vmem:[%s1881_s2 + $0x90] sm:$0xff]  ;;  %v391_v11 = vld [vmem:[%s1881_s2 + $0x228] sm:$0xff] }
  0xb1   : > { %1257 = vrot.lane.b32.xlu0 %v1256_v33, %s1872_s14  ;;  %v619_v24 = vsel %vm618_vm2, %v1475_v12, %v1229_v19  ;;  %v620_v28 = vsel %vm618_vm2, %v1477_v14, %v1230_v18  ;;  %v344_v33 = vld [vmem:[%s1881_s2 + $0xb0] sm:$0xff]  ;;  %v358_v12 = vld [vmem:[%s1881_s2 + $0x120] sm:$0xff]  ;;  %v404_v46 = vpack.c.bf16 %v343_v44, %v342_v42  ;;  %v419_v55 = vpack.c.bf16 %v373_v51, %v372_v50  ;;  %v339_v18 = vld [vmem:[%s1881_s2 + $0x88] sm:$0xff] }
  0xb2   : > { %848 = vmatpush.bf16.msra.mxu0 %v396_v5  ;;  %v823_v32 = vpack.c.bf16 %v620_v28, %v619_v24  ;;  %v405_v14 = vpack.c.bf16 %v345_v34, %v344_v33  ;;  %v412_v38 = vpack.c.bf16 %v359_v35, %v358_v12  ;;  %v429_v61 = vpack.c.bf16 %v393_v57, %v392_v52  ;;  %v663_v57 = vld [vmem:[#allocation3 + $0x2a] sm:$0xf] }
  0xb3   : > { %v410_v5 = vpack.c.bf16 %v355_v1, %v354_v0  ;;  %v428_v16 = vpack.c.bf16 %v391_v11, %v390_v9  ;;  %v427_v33 = vpack.c.bf16 %v389_v21, %v388_v20 }
  0xb4   : > { %885 = vmatpush.bf16.msra.mxu2 %v413_v15  ;;  %866 = vmatpush.bf16.msra.mxu1 %v405_v14 }
  0xb5   : > { %v1643_v63 = vld.sshfl [vmem:[#allocation1] sm:$0xff pattern:$0x75316420]  ;;  %905 = vmatpush.bf16.msra.mxu3 %v420_v41 }
  0xb6   : > { %785 = vst [vmem:[#allocation1] ss:$2 sm:$0xff] %v656_v48  ;;  %849 = vmatpush.bf16.msra.mxu0 %v395_v17  ;;  %v411_v48 = vpack.c.bf16 %v357_v47, %v356_v45  ;;  %v338_v17 = vld [vmem:[%s1881_s2 + $0x80] sm:$0xff] }
  0xb7   : > { %v1654_v8 = vld.sshfl [vmem:[#allocation1 + $0x10] sm:$0xff pattern:$0x75316420]  ;;  %787 = vst [vmem:[#allocation1 + $0x1] ss:$2 sm:$0xff] %v657_v53  ;;  %v402_v28 = vpack.c.bf16 %v339_v18, %v338_v17 }
  0xb8   : > { %789 = vst [vmem:[#allocation1 + $0x10] ss:$2 sm:$0xff] %v658_v59  ;;  %886 = vmatpush.bf16.msra.mxu2 %v412_v38  ;;  %v341_v59 = vld [vmem:[%s1881_s2 + $0x98] sm:$0xff]  ;;  %867 = vmatpush.bf16.msra.mxu1 %v404_v46 }
  0xb9   : > { %791 = vst [vmem:[#allocation1 + $0x11] ss:$2 sm:$0xff] %v659_v4  ;;  %v403_v62 = vpack.c.bf16 %v341_v59, %v340_v58  ;;  %v370_v4 = vld [vmem:[%s1881_s2 + $0x180] sm:$0xff]  ;;  %906 = vmatpush.bf16.msra.mxu3 %v419_v55  ;;  %v662_v55 = vld [vmem:[#allocation3 + $0x22] sm:$0xf] }
  0xba   : > { %850 = vmatpush.bf16.msra.mxu0 %v394_v23  ;;  %v418_v15 = vpack.c.bf16 %v371_v7, %v370_v4 }
  0xbc   : > { %887 = vmatpush.bf16.msra.mxu2 %v411_v48  ;;  %868 = vmatpush.bf16.msra.mxu1 %v403_v62  ;;  %v827_v48 = vpack.c.bf16 %v1512_v6, %v1510_v3 }
  0xbd   : > { %851 = vmatmul.bf16.vlgmr.msra.gmra.mxu0 %v823_v32  ;;  %907 = vmatpush.bf16.msra.mxu3 %v418_v15 }
  0xbe   : > { %v792_v22 = vld.sshfl [vmem:[#allocation1] sm:$0xff pattern:$0x75316420]  ;;  %923 = vmatpush.bf16.msrb.mxu0 %v429_v61 }
  0xc0   : > { %v793_v30 = vld.sshfl [vmem:[#allocation1 + $0x10] sm:$0xff pattern:$0x75316420]  ;;  %v1233_v53 = vpop.permute.xlu0 %1232  ;;  %888 = vmatpush.bf16.msra.mxu2 %v410_v5  ;;  %869 = vmatpush.bf16.msra.mxu1 %v402_v28 }
  0xc1   : > { %v1261_v31 = vpack.i.bf16 %v793_v30, %v792_v22  ;;  %v1234_v60 = vunpack.i.l.bf16 %v1233_v53  ;;  %v1235_v2 = vunpack.i.h.bf16 %v1233_v53  ;;  %v661_v53 = vld [vmem:[#allocation3 + $0x1a] sm:$0xf]  ;;  %808 = vst [vmem:[#allocation1 + $0x10] ss:$2 sm:$0xff] %v662_v55 }
  0xc2   : > { %924 = vmatpush.bf16.msrb.mxu0 %v428_v16  ;;  %806 = vst [vmem:[#allocation1 + $0x1] ss:$2 sm:$0xff] %v661_v53 }
  0xc3   : > { %1262 = vrot.lane.b32.xlu1 %v1261_v31, %s1872_s14  ;;  %v621_v22 = vsel %vm618_vm2, %v1480_v25, %v1234_v60  ;;  %v622_v30 = vsel %vm618_vm2, %v1482_v27, %v1235_v2  ;;  %v386_v25 = vld [vmem:[%s1881_s2 + $0x200] sm:$0xff]  ;;  %v387_v27 = vld [vmem:[%s1881_s2 + $0x208] sm:$0xff]  ;;  %810 = vst [vmem:[#allocation1 + $0x11] ss:$2 sm:$0xff] %v663_v57  ;;  %s980_s14 = scalar_lea.sflag [#allocation5], %s1790_s26 }
  0xc4   : > { %v824_v12 = vpack.c.bf16 %v622_v30, %v621_v22  ;;  %1173 = vmatpush.bf16.msrb.mxu1 %v429_v61  ;;  %v426_v14 = vpack.c.bf16 %v387_v27, %v386_v25 }
  0xc6   : > { %925 = vmatpush.bf16.msrb.mxu0 %v427_v33  ;;  %870 = vmatmul.bf16.vlgmr.msra.gmra.mxu1 %v824_v12 }
  0xc8   : > { %1174 = vmatpush.bf16.msrb.mxu1 %v428_v16 }
  0xca   : > { %926 = vmatpush.bf16.msrb.mxu0 %v426_v14  ;;  %v812_v6 = vld.sshfl [vmem:[#allocation1 + $0x10] sm:$0xff pattern:$0x75316420] }
  0xcc   : > { %1175 = vmatpush.bf16.msrb.mxu1 %v427_v33 }
  0xd0   : > { %1176 = vmatpush.bf16.msrb.mxu1 %v426_v14 }
  0xd2   : > { %v1238_v19 = vpop.permute.xlu1 %1237 }
  0xd3   : > { %v1240_v23 = vunpack.i.h.bf16 %v1238_v19  ;;  %v1239_v24 = vunpack.i.l.bf16 %v1238_v19 }
  0xd5   : > { %v623_v31 = vsel %vm618_vm2, %v1496_v40, %v1239_v24  ;;  %v624_v32 = vsel %vm618_vm2, %v1499_v43, %v1240_v23 }
  0xd6   : > { %v825_v34 = vpack.c.bf16 %v624_v32, %v623_v31 }
  0xd8   : > { %889 = vmatmul.bf16.vlgmr.msra.gmra.mxu2 %v825_v34 }
  0xe4   : > { %v1243_v40 = vpop.permute.xlu1 %1242 }
  0xe5   : > { %v1245_v43 = vunpack.i.h.bf16 %v1243_v40  ;;  %v1244_v35 = vunpack.i.l.bf16 %v1243_v40 }
  0xe7   : > { %v1248_v36 = vpop.permute.xlu2 %1247  ;;  %v625_v37 = vsel %vm618_vm2, %v1503_v54, %v1244_v35  ;;  %v626_v38 = vsel %vm618_vm2, %v1505_v56, %v1245_v43 }
  0xe8   : > { %v1250_v41 = vunpack.i.h.bf16 %v1248_v36  ;;  %v1249_v42 = vunpack.i.l.bf16 %v1248_v36  ;;  %v826_v44 = vpack.c.bf16 %v626_v38, %v625_v37 }
  0xea   : > { %v815_v45 = vsel %vm618_vm2, %v1514_v10, %v1249_v42  ;;  %v816_v46 = vsel %vm618_vm2, %v1516_v13, %v1250_v41  ;;  %908 = vmatmul.bf16.vlgmr.msra.gmra.mxu3 %v826_v44  ;;  %v660_v13 = vld [vmem:[#allocation3 + $0x12] sm:$0xf] }
  0xeb   : > { %v828_v47 = vpack.c.bf16 %v816_v46, %v815_v45  ;;  %804 = vst [vmem:[#allocation1] ss:$2 sm:$0xff] %v660_v13 }
  0xed   : > { %856 = vmatmul.bf16.gmra.mxu0 %v828_v47 }
  0xf2   : > { %v811_v3 = vld.sshfl [vmem:[#allocation1] sm:$0xff pattern:$0x75316420] }
  0xf3   : > { %v832_v58 = vpack.c.bf16 %v812_v6, %v811_v3 }
  0xf9   : > { %v1253_v54 = vpop.permute.xlu2 %1252 }
  0xfa   : > { %v1255_v50 = vunpack.i.h.bf16 %v1253_v54  ;;  %v1254_v56 = vunpack.i.l.bf16 %v1253_v54 }
  0xfc   : > { %v817_v51 = vsel %vm618_vm2, %v1519_v26, %v1254_v56  ;;  %v818_v10 = vsel %vm618_vm2, %v1521_v29, %v1255_v50 }
  0xfd   : > { %1159 = vmatmul.msk.bf16.vlgmr.msrb.gmra.mxu0 %vm618_vm2, %v827_v48  ;;  %v829_v52 = vpack.c.bf16 %v818_v10, %v817_v51 }
  0xff   : > { %875 = vmatmul.bf16.gmra.mxu1 %v829_v52 }
 0x10f   : > { %1160 = vmatmul.msk.bf16.vlgmr.msrb.gmra.mxu1 %vm618_vm2, %v832_v58 }
 0x123   : > { %v1258_v59 = vpop.permute.xlu0 %1257 }
 0x124   : > { %v1260_v26 = vunpack.i.h.bf16 %v1258_v59  ;;  %v1259_v60 = vunpack.i.l.bf16 %v1258_v59 }
 0x126   : > { %v819_v29 = vsel %vm618_vm2, %v1523_v39, %v1259_v60  ;;  %v820_v61 = vsel %vm618_vm2, %v1537_v49, %v1260_v26  ;;  %v1266_v39 = vld [vmem:[%s1868_s3] ss:$0 sm:$0xff] }
 0x127   : > { %v830_v62 = vpack.c.bf16 %v820_v61, %v819_v29 }
 0x129   : > { %894 = vmatmul.bf16.gmra.mxu2 %v830_v62 }
 0x135   : > { %v1263_v0 = vpop.permute.xlu1 %1262 }
 0x136   : > { %v1265_v1 = vunpack.i.h.bf16 %v1263_v0  ;;  %v1264_v2 = vunpack.i.l.bf16 %v1263_v0 }
 0x138   : > { %v821_v4 = vsel %vm618_vm2, %v1643_v63, %v1264_v2  ;;  %v822_v5 = vsel %vm618_vm2, %v1654_v8, %v1265_v1 }
 0x139   : > { %v831_v7 = vpack.c.bf16 %v822_v5, %v821_v4 }
 0x13a   : > { %v852_v9 = vpop.f32.mrf.mxu0 }
 0x13b   : > { %913 = vmatmul.bf16.gmra.mxu3 %v831_v7  ;;  %v853_v16 = vadd.f32 %v1266_v39, %v852_v9 }
 0x142   : > { %v854_v11 = vpop.f32.mrf.mxu0 }
 0x143   : > { %v871_v15 = vpop.f32.mrf.mxu1  ;;  %v855_v21 = vadd.f32 %v1266_v39, %v854_v11 }
 0x144   : > { %v872_v19 = vadd.f32 %v871_v15, %v853_v16 }
 0x14b   : > { %v873_v23 = vpop.f32.mrf.mxu1 }
 0x14c   : > { %v874_v28 = vadd.f32 %v873_v23, %v855_v21 }
 0x15b   : > { %v890_v18 = vpop.f32.mrf.mxu2 }
 0x15c   : > { %v891_v8 = vadd.f32 %v890_v18, %v872_v19 }
 0x163   : > { %v892_v30 = vpop.f32.mrf.mxu2 }
 0x164   : > { %v893_v33 = vadd.f32 %v892_v30, %v874_v28 }
 0x16a   : > { %v857_v49 = vpop.f32.mrf.mxu0 }
 0x16b   : > { %v858_v17 = vadd.f32 %v1266_v39, %v857_v49 }
 0x16d   : > { %v909_v63 = vpop.f32.mrf.mxu3 }
 0x16e   : > { %v910_v24 = vadd.f32 %v909_v63, %v891_v8 }
 0x172   : > { %v859_v20 = vpop.f32.mrf.mxu0 }
 0x173   : > { %v860_v22 = vadd.f32 %v1266_v39, %v859_v20 }
 0x175   : > { %v911_v34 = vpop.f32.mrf.mxu3 }
 0x176   : > { %v912_v27 = vadd.f32 %v911_v34, %v893_v33 }
 0x17a   : > { %v928_v31 = vpop.f32.mrf.mxu0 }
 0x17b   : > { %v929_v32 = vadd.f32 %v928_v31, %v910_v24 }
 0x17c   : > { %v876_v36 = vpop.f32.mrf.mxu1 }
 0x17d   : > { %v938_v12 = vmax.f32 %v929_v32, 0.0  ;;  %v877_v41 = vadd.f32 %v876_v36, %v858_v17 }
 0x17f   : > { %v944_v25 = vrot.slane %v938_v12, 4  ;;  %948 = vst [vmem:[%s1795_s29] sm:$0xf] %v938_v12 }
 0x181   : > { %949 = vst [vmem:[%s1795_s29 + $0x4] sm:$0xf] %v944_v25 }
 0x182   : > { %v930_v14 = vpop.f32.mrf.mxu0 }
 0x183   : > { %v931_v40 = vadd.f32 %v930_v14, %v912_v27 }
 0x184   : > { %v878_v37 = vpop.f32.mrf.mxu1 }
 0x185   : > { %v939_v43 = vmax.f32 %v931_v40, 0.0  ;;  %v879_v54 = vadd.f32 %v878_v37, %v860_v22 }
 0x187   : > { %v945_v35 = vrot.slane %v939_v43, 4  ;;  %950 = vst [vmem:[%s1795_s29 + $0x8] sm:$0xf] %v939_v43 }
 0x189   : > { %951 = vst [vmem:[%s1795_s29 + $0xc] sm:$0xf] %v945_v35 }
 0x18c   : > { %v933_v44 = vpop.f32.mrf.mxu1 }
 0x194   : > { %v935_v13 = vpop.f32.mrf.mxu1 }
 0x1ac   : > { %v895_v38 = vpop.f32.mrf.mxu2 }
 0x1ad   : > { %v896_v42 = vadd.f32 %v895_v38, %v877_v41 }
 0x1b4   : > { %v897_v48 = vpop.f32.mrf.mxu2 }
 0x1b5   : > { %v898_v56 = vadd.f32 %v897_v48, %v879_v54 }
 0x1be   : > { %v914_v45 = vpop.f32.mrf.mxu3 }
 0x1bf   : > { %v915_v46 = vadd.f32 %v914_v45, %v896_v42 }
 0x1c1   : > { %v934_v47 = vadd.f32 %v933_v44, %v915_v46 }
 0x1c3   : > { %v940_v50 = vmax.f32 %v934_v47, 0.0 }
 0x1c5   : > { %v954_v51 = vrot.slane %v940_v50, 4  ;;  %958 = vst [vmem:[%s1803_s10] sm:$0xf] %v940_v50  ;;  %v962_v57 = vsub.f32 %v938_v12, %v940_v50 }
 0x1c6   : > { %v916_v10 = vpop.f32.mrf.mxu3 }
 0x1c7   : > { %959 = vst [vmem:[%s1803_s10 + $0x4] sm:$0xf] %v954_v51  ;;  %v917_v52 = vadd.f32 %v916_v10, %v898_v56  ;;  %v964_v58 = vand.u32 2147483647, %v962_v57 }
 0x1c9   : > { %v936_v53 = vadd.f32 %v935_v13, %v917_v52 }
 0x1cb   : > { %v941_v55 = vmax.f32 %v936_v53, 0.0 }
 0x1cd   : > { %v955_v3 = vrot.slane %v941_v55, 4  ;;  %960 = vst [vmem:[%s1803_s10 + $0x8] sm:$0xf] %v941_v55  ;;  %v963_v6 = vsub.f32 %v939_v43, %v941_v55 }
 0x1cf   : > { %961 = vst [vmem:[%s1803_s10 + $0xc] sm:$0xf] %v955_v3  ;;  %v965_v59 = vand.u32 2147483647, %v963_v6 }
 0x1d1   : > { %v966_v26 = vadd.f32 %v965_v59, %v964_v58 }
 0x1d3   : > { %967 = vadd.xlane.f32.xlu2 %v966_v26 }
 0x1d4   : > { %1294 = shalt.err (!%p1291_p3)
}
 0x1d5   : > { %s1365_s10 = smov 4   ;;  %s1882_s12 = smov 64  }
 0x1d6   : > { %1179 = dma.vmem_to_hbm [thread:$0]  (%p1439_p5), %s1001_s11, 256, %s1003_s20, %s980_s14, %s1882_s12, %s1882_s12, %s1365_s10  }
 0x1d7   : > { %s1019_s16 = sshll.u32 %s1016_s19, 4  ;;  %s985_s17 = scalar_lea.sflag [#allocation7], %s1790_s26  ;;  %s1020_s16 = int_to_ptr.hbm [resolvable:$true] %s1019_s16 }
 0x1d8   : > { %s1309_s18 = sshra.s32 %s1020_s16, 4  ;;  %s1315_s25 = scalar_lea.hbm %s1870_s5, 32  ;;  %s1310_s18 = int_to_ptr.hbm [resolvable:$true] %s1309_s18 }
 0x1d9   : > { %s1311_s2 = scalar_lea.hbm %s1310_s18, 16  ;;  %p1316_p9 = scmp.lt.s32.totalorder %s1310_s18, %s1870_s5 }
 0x1da   : > { %p1312_p4 = scmp.ne.s32.totalorder %s1310_s18, %s1311_s2  ;;  %p1317_p10 = scmp.lt.s32.totalorder %s1315_s25, %s1311_s2 }
 0x1dc   : > { %p1313_p7 = pnand %p1312_p4, %p1439_p5  ;;  %p1318_p11 = por %p1317_p10, %p1316_p9 }
 0x1de   : > { %p1314_p8 = pneg %p1313_p7 }
 0x1e0   : > { %p1319_p12 = pnand %p1318_p11, %p1314_p8 }
 0x1e2   : > { %1322 = shalt.err (!%p1319_p12)
}
 0x1e3   : > { %1180 = dma.vmem_to_hbm [thread:$0]  (%p1439_p5), %s1018_s28, 256, %s1020_s16, %s985_s17, %s1882_s12, %s1882_s12, %s1365_s10   ;;  %vm977_vm3 = vcmask 0  }
 0x1e4   : > { %s288_s11 = scalar_lea.vmem %s1871_s6, %s1452_s9 }
 0x246   : > { %v968_v60 = vpop.xlane.xlu2 %967 }
 0x247   : > { %v969_v29 = vrot.slane %v968_v60, 4 }
 0x249   : > { %v970_v61 = vadd.f32 %v969_v29, %v968_v60 }
 0x24b   : > { %v971_v62 = vrot.slane %v970_v61, 2 }
 0x24d   : > { %v972_v0 = vadd.f32 %v971_v62, %v970_v61 }
 0x24f   : > { %v973_v1 = vrot.slane %v972_v0, 1 }
 0x251   : > { %v974_v2 = vadd.f32 %v973_v1, %v972_v0 }
 0x253   : > { %1177 = vpush %v974_v2 }
 0x284   : > { %s1178_s19 = spop %1177 }
 0x285   : > { %v976_v4 = vstv %s1178_s19 }
 0x286   : > { %978 = vst.msk [vmem:[%s288_s11] sm:$0x1] %vm977_vm3, %v976_v4 }
 0x287 PF: > { %p1190_p5 = scmp.ge.s32.totalorder %s1361_s24, 2  ;;  %s1037_s7 = sand.u32 1, %s1349_s21  }
 0x288   : > { %s1038_s20 = scalar_lea.sflag [#allocation5], %s1037_s7 }
 0x289   : > { %p1184_p13 = pnand %p1190_p5, %p1443_p6 }
 0x28b   : > { %p1185_p0 = pneg %p1184_p13 }
 0x28d   : > { %1340 = dma.done.wait (%p1185_p0), %s1038_s20, 256  }
 0x28e   : > { %1342 = vsyncadd (%p1185_p0), %s1038_s20, 4294967040  ;;  %s1048_s28 = scalar_lea.sflag [#allocation7], %s1037_s7 }
 0x28f   : > { %1344 = dma.done.wait (%p1185_p0), %s1048_s28, 256  }
 0x290   : > { %1346 = vsyncadd (%p1185_p0), %s1048_s28, 4294967040  ;;  %p20_p1 = scmp.ge.s32.totalorder %s1426_s27, 4   ;;  %s1883_s21 = smov %s1353_s22 }
 0x291   : > { %s1884_s22 = smov %s1357_s23  ;;  %s1885_s23 = smov %s1437_s30 }
 0x292   : > { %s1886_s24 = smov %s1426_s27  ;;  %22 = sbr.rel (!%p20_p1) target bundleno = 9 (0x9), region = 161 }
 0x297   :  { %1060 = vsyncpa [#allocation5], 1 }
 0x298   :  { %1062 = vsyncpa [#allocation5 + $0x1], 1 }
 0x299   :  { %1063 = vsyncpa [#allocation7], 1 }
 0x29a   :  { %1065 = vsyncpa [#allocation7 + $0x1], 1 }

// kernel: loss_cnt.9
= control target key start
LH: loop header
LB: loop body
LE: loop exit
PB: predicated region body
PF: predicated region fallthrough
CT: control target
= control target key end

     0   :  { %s5129_s21 = smov 0   ;;  %s6838_s0 = inlined_call_operand.vmem [shape: f32[2,16,16,3], index: 0, kind: input, shape index: {}]   ;;  %s6839_s1 = inlined_call_operand.vmem [shape: f32[2,16,16,3], index: 1, kind: input, shape index: {}]   ;;  %s6840_s2 = inlined_call_operand.vmem [shape: f32[9,3,32], index: 2, kind: input, shape index: {}]   ;;  %s6841_s3 = inlined_call_operand.vmem [shape: f32[1,32], index: 3, kind: input, shape index: {}]   ;;  %s6842_s4 = inlined_call_operand.vmem [shape: f32[2,16,16,32], index: 4, kind: output, shape index: {0}]   ;;  %s6843_s5 = inlined_call_operand.vmem [shape: f32[2,16,16,32], index: 5, kind: output, shape index: {1}]   ;;  %s6844_s6 = inlined_call_operand.vmem [shape: f32[2,1,1], index: 6, kind: output, shape index: {2}]  }
   0x1 LB: > { %s4751_s22 = sadd.s32 4294967295, %s5090_s21   ;;  %p4755_p0 = scmp.ge.s32.totalorder %s5090_s21, 1  ;;  %s5090_s21 = sphi %s5129_s21, %s17_s21  }
   0x2   : > { %p227_p1 = scmp.lt.s32.totalorder %s5090_s21, 3 }
   0x4   : > { %p228_p2 = pnand %p4755_p0, %p227_p1 }
   0x6   : > { %231 = sbr.rel (%p228_p2) target bundleno = 1605 (0x645), region = 36 }
   0xb   : > { %v4764_v0 = vld [vmem:[%s6840_s2 + $0x4] sm:$0x7]  ;;  %vm827_vm0 = vcmask 1040384   ;;  %vm828_vm1 = vcmask 1041408   ;;  %vm294_vm2 = vcmask 23552   ;;  %v5092_v2 = vmov 65535  }
   0xc   : > { %v730_v1 = vpack.c.bf16 %v4764_v0, %v4764_v0  ;;  %v829_v3 = vsel %vm827_vm0, 4294967295, %v5092_v2  ;;  %vm297_vm3 = vcmask 17408   ;;  %v5093_v5 = vmov 0.0   ;;  %v4829_v13 = vld [vmem:[%s6840_s2 + $0x8] sm:$0x7]  ;;  %p270_p3 = scmp.lt.s32.totalorder %s4751_s22, 1 }
   0xd   : > { %v5140_v4 = vsel %vm828_vm1, %v829_v3, 0  ;;  %350 = vst.msk [vmem:[#allocation3] sm:$0xff] %vm294_vm2, %v5093_v5  ;;  %v1369_v14 = vpack.c.bf16 %v4829_v13, %v4829_v13  ;;  %v4862_v16 = vld [vmem:[%s6840_s2 + $0xc] sm:$0x7]  ;;  %v630_v17 = vld [vmem:[%s6840_s2] sm:$0x7] }
   0xe   : > { %v832_v6 = vand.u32 %v5140_v4, %v730_v1  ;;  %351 = vst.msk [vmem:[#allocation3 + $0x8] sm:$0xff] %vm294_vm2, %v5093_v5  ;;  %v1800_v18 = vpack.c.bf16 %v4862_v16, %v4862_v16  ;;  %v631_v19 = vpack.c.bf16 %v630_v17, %v630_v17  ;;  %v4895_v20 = vld [vmem:[%s6840_s2 + $0x10] sm:$0x7]  ;;  %s7012_s22 = smov (!%p270_p3, %s4751_s22), 1  ;;  %vm4422_vm4 = vcmask 261120  }
   0xf   : > { %352 = vst.msk [vmem:[#allocation3 + $0x10] sm:$0x3] %vm297_vm3, %v5093_v5  ;;  %v1467_v15 = vand.u32 %v1369_v14, %v5140_v4  ;;  %v2231_v21 = vpack.c.bf16 %v4895_v20, %v4895_v20  ;;  %s5368_s9 = sshll.u32 %s7012_s22, 8  ;;  %s292_s16 = scalar_lea.vmem %s6844_s6, %s7012_s22  ;;  %vm4624_vm5 = vcmask 0  }
  0x10   : > { %5067 = vmatpush.bf16.msra.mxu2 %v832_v6  ;;  %295 = vst.msk [vmem:[#allocation2] sm:$0xff] %vm294_vm2, %v5093_v5  ;;  %841 = vmatpush.bf16.msra.mxu0 %v832_v6  ;;  %v1898_v22 = vand.u32 %v1800_v18, %v5140_v4  ;;  %v1100_v23 = vand.u32 %v5140_v4, %v631_v19  ;;  %s5380_s12 = scalar_lea.vmem %s6838_s0, %s5368_s9  ;;  %s5390_s15 = scalar_lea.vmem %s6839_s1, %s5368_s9 }
  0x11   : > { %296 = vst.msk [vmem:[#allocation2 + $0x8] sm:$0xff] %vm294_vm2, %v5093_v5  ;;  %5066 = vmatpush.bf16.msra.mxu1 %v832_v6  ;;  %5068 = vmatpush.bf16.msra.mxu3 %v832_v6  ;;  %v2329_v24 = vand.u32 %v2231_v21, %v5140_v4  ;;  %v418_v25 = vld [vmem:[%s5380_s12 + $0x70] sm:$0xff]  ;;  %v419_v26 = vld [vmem:[%s5380_s12 + $0x78] sm:$0xff]  ;;  %v469_v29 = vld [vmem:[%s5390_s15] sm:$0xff]  ;;  %s6135_s30 = scalar_lea.vmem %s6842_s4, %s5368_s9 }
  0x12   : > { %298 = vst.msk [vmem:[#allocation2 + $0x10] sm:$0x3] %vm297_vm3, %v5093_v5  ;;  %v483_v27 = vld [vmem:[%s5390_s15 + $0x70] sm:$0xff]  ;;  %v484_v28 = vld [vmem:[%s5390_s15 + $0x78] sm:$0xff]  ;;  %v470_v30 = vld [vmem:[%s5390_s15 + $0x8] sm:$0xff] }
  0x13   : > { %299 = vst.msk [vmem:[#allocation2 + $0x18] sm:$0xff] %vm294_vm2, %v5093_v5  ;;  %v404_v31 = vld [vmem:[%s5380_s12] sm:$0xff]  ;;  %v405_v32 = vld [vmem:[%s5380_s12 + $0x8] sm:$0xff]  ;;  %v471_v41 = vld [vmem:[%s5390_s15 + $0x10] sm:$0xff] }
  0x14   : > { %300 = vst.msk [vmem:[#allocation2 + $0x20] sm:$0xff] %vm294_vm2, %v5093_v5  ;;  %1476 = vmatpush.bf16.msrb.mxu2 %v1467_v15  ;;  %2338 = vmatpush.bf16.msrb.mxu0 %v2329_v24  ;;  %v420_v33 = vld [vmem:[%s5380_s12 + $0x80] sm:$0xff]  ;;  %v421_v34 = vld [vmem:[%s5380_s12 + $0x88] sm:$0xff]  ;;  %v472_v43 = vld [vmem:[%s5390_s15 + $0x18] sm:$0xff] }
  0x15   : > { %v664_v7 = vld [vmem:[#allocation3 + $0x1] sm:$0xff]  ;;  %301 = vst.msk [vmem:[#allocation2 + $0x28] sm:$0x3] %vm297_vm3, %v5093_v5  ;;  %1907 = vmatpush.bf16.msrb.mxu3 %v1898_v22  ;;  %1109 = vmatpush.bf16.msrb.mxu1 %v1100_v23  ;;  %v485_v36 = vld [vmem:[%s5390_s15 + $0x80] sm:$0xff]  ;;  %v486_v38 = vld [vmem:[%s5390_s15 + $0x88] sm:$0xff] }
  0x16   : > { %v665_v8 = vld [vmem:[#allocation3 + $0x9] sm:$0xff]  ;;  %302 = vst.msk [vmem:[#allocation2 + $0x30] sm:$0xff] %vm294_vm2, %v5093_v5  ;;  %v406_v46 = vld [vmem:[%s5380_s12 + $0x10] sm:$0xff]  ;;  %v474_v58 = vld [vmem:[%s5390_s15 + $0x28] sm:$0xff] }
  0x17   : > { %v712_v9 = vpack.c.bf16 %v665_v8, %v664_v7  ;;  %303 = vst.msk [vmem:[#allocation2 + $0x38] sm:$0xff] %vm294_vm2, %v5093_v5  ;;  %v407_v48 = vld [vmem:[%s5380_s12 + $0x18] sm:$0xff]  ;;  %v422_v51 = vld [vmem:[%s5380_s12 + $0x90] sm:$0xff]  ;;  %v473_v57 = vld [vmem:[%s5390_s15 + $0x20] sm:$0xff] }
  0x18   : > { %304 = vst.msk [vmem:[#allocation2 + $0x40] sm:$0x3] %vm297_vm3, %v5093_v5  ;;  %v632_v10 = vld [vmem:[#allocation2 + $0x1] sm:$0xff]  ;;  %v423_v53 = vld [vmem:[%s5380_s12 + $0x98] sm:$0xff]  ;;  %v487_v55 = vld [vmem:[%s5390_s15 + $0x90] sm:$0xff] }
  0x19   : > { %4781 = vmatmul.msk.bf16.vlgmr.msra.gmra.mxu2 %vm294_vm2, %v712_v9  ;;  %305 = vst.msk [vmem:[#allocation2 + $0x48] sm:$0xff] %vm294_vm2, %v5093_v5  ;;  %v633_v11 = vld [vmem:[#allocation2 + $0x9] sm:$0xff]  ;;  %v488_v56 = vld [vmem:[%s5390_s15 + $0x98] sm:$0xff]  ;;  %v408_v59 = vld [vmem:[%s5380_s12 + $0x20] sm:$0xff] }
  0x1a   : > { %306 = vst.msk [vmem:[#allocation2 + $0x50] sm:$0xff] %vm294_vm2, %v5093_v5  ;;  %v696_v12 = vpack.c.bf16 %v633_v11, %v632_v10  ;;  %v409_v62 = vld [vmem:[%s5380_s12 + $0x28] sm:$0xff]  ;;  %v424_v63 = vld [vmem:[%s5380_s12 + $0xa0] sm:$0xff]  ;;  %v475_v13 = vld [vmem:[%s5390_s15 + $0x30] sm:$0xff] }
  0x1b   : > { %307 = vst.msk [vmem:[#allocation2 + $0x58] sm:$0x3] %vm297_vm3, %v5093_v5  ;;  %v425_v2 = vld [vmem:[%s5380_s12 + $0xa8] sm:$0xff]  ;;  %v476_v14 = vld [vmem:[%s5390_s15 + $0x38] sm:$0xff]  ;;  %v410_v16 = vld [vmem:[%s5380_s12 + $0x30] sm:$0xff] }
  0x1c   : > { %308 = vst.msk [vmem:[#allocation2 + $0x60] sm:$0xff] %vm294_vm2, %v5093_v5  ;;  %4765 = vmatmul.msk.bf16.vlgmr.msra.gmra.mxu0 %vm294_vm2, %v696_v12  ;;  %v490_v8 = vld [vmem:[%s5390_s15 + $0xa8] sm:$0xff]  ;;  %v411_v17 = vld [vmem:[%s5380_s12 + $0x38] sm:$0xff]  ;;  %v426_v18 = vld [vmem:[%s5380_s12 + $0xb0] sm:$0xff] }
  0x1d   : > { %309 = vst.msk [vmem:[#allocation2 + $0x68] sm:$0xff] %vm294_vm2, %v5093_v5  ;;  %v427_v19 = vld [vmem:[%s5380_s12 + $0xb8] sm:$0xff]  ;;  %v491_v20 = vld [vmem:[%s5390_s15 + $0xb0] sm:$0xff] }
  0x1e   : > { %310 = vst.msk [vmem:[#allocation2 + $0x70] sm:$0x3] %vm297_vm3, %v5093_v5  ;;  %v492_v21 = vld [vmem:[%s5390_s15 + $0xb8] sm:$0xff] }
  0x1f   : > { %311 = vst.msk [vmem:[#allocation2 + $0x78] sm:$0xff] %vm294_vm2, %v5093_v5 }
  0x20   : > { %312 = vst.msk [vmem:[#allocation2 + $0x80] sm:$0xff] %vm294_vm2, %v5093_v5 }
  0x21   : > { %313 = vst.msk [vmem:[#allocation2 + $0x88] sm:$0x3] %vm297_vm3, %v5093_v5 }
  0x22   : > { %314 = vst.msk [vmem:[#allocation2 + $0x90] sm:$0xff] %vm294_vm2, %v5093_v5 }
  0x23   : > { %315 = vst.msk [vmem:[#allocation2 + $0x98] sm:$0xff] %vm294_vm2, %v5093_v5 }
  0x24   : > { %316 = vst.msk [vmem:[#allocation2 + $0xa0] sm:$0x3] %vm297_vm3, %v5093_v5 }
  0x25   : > { %317 = vst.msk [vmem:[#allocation2 + $0xa8] sm:$0xff] %vm294_vm2, %v5093_v5 }
  0x26   : > { %318 = vst.msk [vmem:[#allocation2 + $0xb0] sm:$0xff] %vm294_vm2, %v5093_v5 }
  0x27   : > { %319 = vst.msk [vmem:[#allocation2 + $0xb8] sm:$0x3] %vm297_vm3, %v5093_v5 }
  0x28   : > { %320 = vst.msk [vmem:[#allocation2 + $0xc0] sm:$0xff] %vm294_vm2, %v5093_v5 }
  0x29   : > { %321 = vst.msk [vmem:[#allocation2 + $0xc8] sm:$0xff] %vm294_vm2, %v5093_v5 }
  0x2a   : > { %322 = vst.msk [vmem:[#allocation2 + $0xd0] sm:$0x3] %vm297_vm3, %v5093_v5 }
  0x2b   : > { %323 = vst.msk [vmem:[#allocation2 + $0xd8] sm:$0xff] %vm294_vm2, %v5093_v5 }
  0x2c   : > { %324 = vst.msk [vmem:[#allocation2 + $0xe0] sm:$0xff] %vm294_vm2, %v5093_v5 }
  0x2d   : > { %325 = vst.msk [vmem:[#allocation2 + $0xe8] sm:$0x3] %vm297_vm3, %v5093_v5 }
  0x2e   : > { %326 = vst.msk [vmem:[#allocation2 + $0xf0] sm:$0xff] %vm294_vm2, %v5093_v5 }
  0x2f   : > { %327 = vst.msk [vmem:[#allocation2 + $0xf8] sm:$0xff] %vm294_vm2, %v5093_v5 }
  0x30   : > { %328 = vst.msk [vmem:[#allocation2 + $0x100] sm:$0x3] %vm297_vm3, %v5093_v5 }
  0x31   : > { %329 = vst.msk [vmem:[#allocation2 + $0x108] sm:$0xff] %vm294_vm2, %v5093_v5 }
  0x32   : > { %330 = vst.msk [vmem:[#allocation2 + $0x110] sm:$0xff] %vm294_vm2, %v5093_v5 }
  0x33   : > { %331 = vst.msk [vmem:[#allocation2 + $0x118] sm:$0x3] %vm297_vm3, %v5093_v5 }
  0x34   : > { %332 = vst.msk [vmem:[#allocation2 + $0x120] sm:$0xff] %vm294_vm2, %v5093_v5 }
  0x35   : > { %333 = vst.msk [vmem:[#allocation2 + $0x128] sm:$0xff] %vm294_vm2, %v5093_v5 }
  0x36   : > { %334 = vst.msk [vmem:[#allocation2 + $0x130] sm:$0x3] %vm297_vm3, %v5093_v5 }
  0x37   : > { %335 = vst.msk [vmem:[#allocation2 + $0x138] sm:$0xff] %vm294_vm2, %v5093_v5 }
  0x38   : > { %336 = vst.msk [vmem:[#allocation2 + $0x140] sm:$0xff] %vm294_vm2, %v5093_v5 }
  0x39   : > { %337 = vst.msk [vmem:[#allocation2 + $0x148] sm:$0x3] %vm297_vm3, %v5093_v5 }
  0x3a   : > { %338 = vst.msk [vmem:[#allocation2 + $0x150] sm:$0xff] %vm294_vm2, %v5093_v5 }
  0x3b   : > { %339 = vst.msk [vmem:[#allocation2 + $0x158] sm:$0xff] %vm294_vm2, %v5093_v5 }
  0x3c   : > { %340 = vst.msk [vmem:[#allocation2 + $0x160] sm:$0x3] %vm297_vm3, %v5093_v5 }
  0x3d   : > { %341 = vst.msk [vmem:[#allocation2 + $0x168] sm:$0xff] %vm294_vm2, %v5093_v5 }
  0x3e   : > { %342 = vst.msk [vmem:[#allocation2 + $0x170] sm:$0xff] %vm294_vm2, %v5093_v5 }
  0x3f   : > { %343 = vst.msk [vmem:[#allocation2 + $0x178] sm:$0x3] %vm297_vm3, %v5093_v5 }
  0x40   : > { %344 = vst.msk [vmem:[#allocation2 + $0x180] sm:$0xff] %vm294_vm2, %v5093_v5 }
  0x41   : > { %345 = vst.msk [vmem:[#allocation2 + $0x188] sm:$0xff] %vm294_vm2, %v5093_v5 }
  0x42   : > { %346 = vst.msk [vmem:[#allocation2 + $0x190] sm:$0x3] %vm297_vm3, %v5093_v5 }
  0x43   : > { %347 = vst.msk [vmem:[#allocation2 + $0x198] sm:$0xff] %vm294_vm2, %v5093_v5 }
  0x44   : > { %348 = vst.msk [vmem:[#allocation2 + $0x1a0] sm:$0xff] %vm294_vm2, %v5093_v5 }
  0x45   : > { %349 = vst.msk [vmem:[#allocation2 + $0x1a8] sm:$0x3] %vm297_vm3, %v5093_v5 }
  0x46   : > { %353 = vst.msk [vmem:[#allocation3 + $0x18] sm:$0xff] %vm294_vm2, %v5093_v5 }
  0x47   : > { %354 = vst.msk [vmem:[#allocation3 + $0x20] sm:$0xff] %vm294_vm2, %v5093_v5 }
  0x48   : > { %355 = vst.msk [vmem:[#allocation3 + $0x28] sm:$0x3] %vm297_vm3, %v5093_v5 }
  0x49   : > { %356 = vst.msk [vmem:[#allocation3 + $0x30] sm:$0xff] %vm294_vm2, %v5093_v5 }
  0x4a   : > { %357 = vst.msk [vmem:[#allocation3 + $0x38] sm:$0xff] %vm294_vm2, %v5093_v5 }
  0x4b   : > { %358 = vst.msk [vmem:[#allocation3 + $0x40] sm:$0x3] %vm297_vm3, %v5093_v5 }
  0x4c   : > { %359 = vst.msk [vmem:[#allocation3 + $0x48] sm:$0xff] %vm294_vm2, %v5093_v5 }
  0x4d   : > { %360 = vst.msk [vmem:[#allocation3 + $0x50] sm:$0xff] %vm294_vm2, %v5093_v5 }
  0x4e   : > { %361 = vst.msk [vmem:[#allocation3 + $0x58] sm:$0x3] %vm297_vm3, %v5093_v5 }
  0x4f   : > { %362 = vst.msk [vmem:[#allocation3 + $0x60] sm:$0xff] %vm294_vm2, %v5093_v5 }
  0x50   : > { %363 = vst.msk [vmem:[#allocation3 + $0x68] sm:$0xff] %vm294_vm2, %v5093_v5 }
  0x51   : > { %364 = vst.msk [vmem:[#allocation3 + $0x70] sm:$0x3] %vm297_vm3, %v5093_v5 }
  0x52   : > { %365 = vst.msk [vmem:[#allocation3 + $0x78] sm:$0xff] %vm294_vm2, %v5093_v5 }
  0x53   : > { %366 = vst.msk [vmem:[#allocation3 + $0x80] sm:$0xff] %vm294_vm2, %v5093_v5 }
  0x54   : > { %367 = vst.msk [vmem:[#allocation3 + $0x88] sm:$0x3] %vm297_vm3, %v5093_v5 }
  0x55   : > { %368 = vst.msk [vmem:[#allocation3 + $0x90] sm:$0xff] %vm294_vm2, %v5093_v5 }
  0x56   : > { %369 = vst.msk [vmem:[#allocation3 + $0x98] sm:$0xff] %vm294_vm2, %v5093_v5 }
  0x57   : > { %370 = vst.msk [vmem:[#allocation3 + $0xa0] sm:$0x3] %vm297_vm3, %v5093_v5 }
  0x58   : > { %371 = vst.msk [vmem:[#allocation3 + $0xa8] sm:$0xff] %vm294_vm2, %v5093_v5 }
  0x59   : > { %372 = vst.msk [vmem:[#allocation3 + $0xb0] sm:$0xff] %vm294_vm2, %v5093_v5 }
  0x5a   : > { %373 = vst.msk [vmem:[#allocation3 + $0xb8] sm:$0x3] %vm297_vm3, %v5093_v5 }
  0x5b   : > { %374 = vst.msk [vmem:[#allocation3 + $0xc0] sm:$0xff] %vm294_vm2, %v5093_v5 }
  0x5c   : > { %375 = vst.msk [vmem:[#allocation3 + $0xc8] sm:$0xff] %vm294_vm2, %v5093_v5 }
  0x5d   : > { %376 = vst.msk [vmem:[#allocation3 + $0xd0] sm:$0x3] %vm297_vm3, %v5093_v5 }
  0x5e   : > { %377 = vst.msk [vmem:[#allocation3 + $0xd8] sm:$0xff] %vm294_vm2, %v5093_v5 }
  0x5f   : > { %378 = vst.msk [vmem:[#allocation3 + $0xe0] sm:$0xff] %vm294_vm2, %v5093_v5 }
  0x60   : > { %379 = vst.msk [vmem:[#allocation3 + $0xe8] sm:$0x3] %vm297_vm3, %v5093_v5 }
  0x61   : > { %380 = vst.msk [vmem:[#allocation3 + $0xf0] sm:$0xff] %vm294_vm2, %v5093_v5 }
  0x62   : > { %381 = vst.msk [vmem:[#allocation3 + $0xf8] sm:$0xff] %vm294_vm2, %v5093_v5 }
  0x63   : > { %382 = vst.msk [vmem:[#allocation3 + $0x100] sm:$0x3] %vm297_vm3, %v5093_v5 }
  0x64   : > { %383 = vst.msk [vmem:[#allocation3 + $0x108] sm:$0xff] %vm294_vm2, %v5093_v5 }
  0x65   : > { %384 = vst.msk [vmem:[#allocation3 + $0x110] sm:$0xff] %vm294_vm2, %v5093_v5 }
  0x66   : > { %385 = vst.msk [vmem:[#allocation3 + $0x118] sm:$0x3] %vm297_vm3, %v5093_v5 }
  0x67   : > { %386 = vst.msk [vmem:[#allocation3 + $0x120] sm:$0xff] %vm294_vm2, %v5093_v5 }
  0x68   : > { %387 = vst.msk [vmem:[#allocation3 + $0x128] sm:$0xff] %vm294_vm2, %v5093_v5 }
  0x69   : > { %388 = vst.msk [vmem:[#allocation3 + $0x130] sm:$0x3] %vm297_vm3, %v5093_v5 }
  0x6a   : > { %389 = vst.msk [vmem:[#allocation3 + $0x138] sm:$0xff] %vm294_vm2, %v5093_v5 }
  0x6b   : > { %390 = vst.msk [vmem:[#allocation3 + $0x140] sm:$0xff] %vm294_vm2, %v5093_v5 }
  0x6c   : > { %391 = vst.msk [vmem:[#allocation3 + $0x148] sm:$0x3] %vm297_vm3, %v5093_v5 }
  0x6d   : > { %392 = vst.msk [vmem:[#allocation3 + $0x150] sm:$0xff] %vm294_vm2, %v5093_v5 }
  0x6e   : > { %393 = vst.msk [vmem:[#allocation3 + $0x158] sm:$0xff] %vm294_vm2, %v5093_v5 }
  0x6f   : > { %394 = vst.msk [vmem:[#allocation3 + $0x160] sm:$0x3] %vm297_vm3, %v5093_v5 }
  0x70   : > { %395 = vst.msk [vmem:[#allocation3 + $0x168] sm:$0xff] %vm294_vm2, %v5093_v5 }
  0x71   : > { %396 = vst.msk [vmem:[#allocation3 + $0x170] sm:$0xff] %vm294_vm2, %v5093_v5 }
  0x72   : > { %397 = vst.msk [vmem:[#allocation3 + $0x178] sm:$0x3] %vm297_vm3, %v5093_v5 }
  0x73   : > { %398 = vst.msk [vmem:[#allocation3 + $0x180] sm:$0xff] %vm294_vm2, %v5093_v5 }
  0x74   : > { %399 = vst.msk [vmem:[#allocation3 + $0x188] sm:$0xff] %vm294_vm2, %v5093_v5 }
  0x75   : > { %400 = vst.msk [vmem:[#allocation3 + $0x190] sm:$0x3] %vm297_vm3, %v5093_v5 }
  0x76   : > { %401 = vst.msk [vmem:[#allocation3 + $0x198] sm:$0xff] %vm294_vm2, %v5093_v5 }
  0x77   : > { %402 = vst.msk [vmem:[#allocation3 + $0x1a0] sm:$0xff] %vm294_vm2, %v5093_v5 }
  0x78   : > { %403 = vst.msk [vmem:[#allocation3 + $0x1a8] sm:$0x3] %vm297_vm3, %v5093_v5  ;;  %v489_v5 = vld [vmem:[%s5390_s15 + $0xa0] sm:$0xff] }
  0x79   : > { %451 = vst.msk [vmem:[#allocation2 + $0xc1] sm:$0xff] %vm294_vm2, %v418_v25 }
  0x7a   : > { %452 = vst.msk [vmem:[#allocation2 + $0xc9] sm:$0xff] %vm294_vm2, %v419_v26 }
  0x7b   : > { %516 = vst.msk [vmem:[#allocation3 + $0xc1] sm:$0xff] %vm294_vm2, %v483_v27 }
  0x7c   : > { %517 = vst.msk [vmem:[#allocation3 + $0xc9] sm:$0xff] %vm294_vm2, %v484_v28 }
  0x7d   : > { %502 = vst.msk [vmem:[#allocation3 + $0x19] sm:$0xff] %vm294_vm2, %v469_v29 }
  0x7e   : > { %503 = vst.msk [vmem:[#allocation3 + $0x21] sm:$0xff] %vm294_vm2, %v470_v30 }
  0x7f   : > { %437 = vst.msk [vmem:[#allocation2 + $0x19] sm:$0xff] %vm294_vm2, %v404_v31 }
  0x80   : > { %v648_v35 = vld [vmem:[#allocation2 + $0xc1] sm:$0xff]  ;;  %438 = vst.msk [vmem:[#allocation2 + $0x21] sm:$0xff] %vm294_vm2, %v405_v32 }
  0x81   : > { %v649_v37 = vld [vmem:[#allocation2 + $0xc9] sm:$0xff]  ;;  %453 = vst.msk [vmem:[#allocation2 + $0xd9] sm:$0xff] %vm294_vm2, %v420_v33  ;;  %v477_v33 = vld [vmem:[%s5390_s15 + $0x40] sm:$0xff] }
  0x82   : > { %v5419_v39 = vpack.c.bf16 %v649_v37, %v648_v35  ;;  %v680_v40 = vld [vmem:[#allocation3 + $0xc1] sm:$0xff]  ;;  %454 = vst.msk [vmem:[#allocation2 + $0xe1] sm:$0xff] %vm294_vm2, %v421_v34  ;;  %v478_v34 = vld [vmem:[%s5390_s15 + $0x48] sm:$0xff] }
  0x83   : > { %v681_v42 = vld [vmem:[#allocation3 + $0xc9] sm:$0xff]  ;;  %518 = vst.msk [vmem:[#allocation3 + $0xd9] sm:$0xff] %vm294_vm2, %v485_v36  ;;  %v413_v37 = vld [vmem:[%s5380_s12 + $0x48] sm:$0xff] }
  0x84   : > { %4773 = vmatmul.msk.bf16.vlgmr.msra.gmra.mxu1 %vm294_vm2, %v5419_v39  ;;  %v720_v44 = vpack.c.bf16 %v681_v42, %v680_v40  ;;  %v666_v45 = vld [vmem:[#allocation3 + $0x19] sm:$0xff]  ;;  %519 = vst.msk [vmem:[#allocation3 + $0xe1] sm:$0xff] %vm294_vm2, %v486_v38  ;;  %v412_v36 = vld [vmem:[%s5380_s12 + $0x40] sm:$0xff] }
  0x85   : > { %v667_v47 = vld [vmem:[#allocation3 + $0x21] sm:$0xff]  ;;  %504 = vst.msk [vmem:[#allocation3 + $0x31] sm:$0xff] %vm294_vm2, %v471_v41  ;;  %v428_v38 = vld [vmem:[%s5380_s12 + $0xc0] sm:$0xff]  ;;  %v429_v40 = vld [vmem:[%s5380_s12 + $0xc8] sm:$0xff] }
  0x86   : > { %4789 = vmatmul.msk.bf16.vlgmr.msra.gmra.mxu3 %vm294_vm2, %v720_v44  ;;  %v713_v49 = vpack.c.bf16 %v667_v47, %v666_v45  ;;  %v634_v50 = vld [vmem:[#allocation2 + $0x19] sm:$0xff]  ;;  %505 = vst.msk [vmem:[#allocation3 + $0x39] sm:$0xff] %vm294_vm2, %v472_v43  ;;  %v494_v42 = vld [vmem:[%s5390_s15 + $0xc8] sm:$0xff] }
  0x87   : > { %v635_v52 = vld [vmem:[#allocation2 + $0x21] sm:$0xff]  ;;  %439 = vst.msk [vmem:[#allocation2 + $0x31] sm:$0xff] %vm294_vm2, %v406_v46 }
  0x88   : > { %4782 = vmatmul.msk.bf16.gmra.mxu2 %vm294_vm2, %v713_v49  ;;  %v5437_v54 = vpack.c.bf16 %v635_v52, %v634_v50  ;;  %440 = vst.msk [vmem:[#allocation2 + $0x39] sm:$0xff] %vm294_vm2, %v407_v48  ;;  %v650_v60 = vld [vmem:[#allocation2 + $0xd9] sm:$0xff] }
  0x89   : > { %455 = vst.msk [vmem:[#allocation2 + $0xf1] sm:$0xff] %vm294_vm2, %v422_v51  ;;  %v651_v61 = vld [vmem:[#allocation2 + $0xe1] sm:$0xff] }
  0x8a   : > { %4766 = vmatmul.msk.bf16.gmra.mxu0 %vm294_vm2, %v5437_v54  ;;  %456 = vst.msk [vmem:[#allocation2 + $0xf9] sm:$0xff] %vm294_vm2, %v423_v53  ;;  %v682_v0 = vld [vmem:[#allocation3 + $0xd9] sm:$0xff]  ;;  %v5457_v3 = vpack.c.bf16 %v651_v61, %v650_v60  ;;  %v493_v41 = vld [vmem:[%s5390_s15 + $0xc0] sm:$0xff]  ;;  %v431_v61 = vld [vmem:[%s5380_s12 + $0xd8] sm:$0xff] }
  0x8b   : > { %520 = vst.msk [vmem:[#allocation3 + $0xf1] sm:$0xff] %vm294_vm2, %v487_v55  ;;  %v683_v1 = vld [vmem:[#allocation3 + $0xe1] sm:$0xff] }
  0x8c   : > { %521 = vst.msk [vmem:[#allocation3 + $0xf9] sm:$0xff] %vm294_vm2, %v488_v56  ;;  %v668_v6 = vld [vmem:[#allocation3 + $0x31] sm:$0xff]  ;;  %v721_v9 = vpack.c.bf16 %v683_v1, %v682_v0  ;;  %v479_v55 = vld [vmem:[%s5390_s15 + $0x50] sm:$0xff]  ;;  %v480_v56 = vld [vmem:[%s5390_s15 + $0x58] sm:$0xff] }
  0x8d   : > { %506 = vst.msk [vmem:[#allocation3 + $0x49] sm:$0xff] %vm294_vm2, %v473_v57  ;;  %v669_v7 = vld [vmem:[#allocation3 + $0x39] sm:$0xff] }
  0x8e   : > { %507 = vst.msk [vmem:[#allocation3 + $0x51] sm:$0xff] %vm294_vm2, %v474_v58  ;;  %v636_v10 = vld [vmem:[#allocation2 + $0x31] sm:$0xff]  ;;  %v714_v12 = vpack.c.bf16 %v669_v7, %v668_v6 }
  0x8f   : > { %441 = vst.msk [vmem:[#allocation2 + $0x49] sm:$0xff] %vm294_vm2, %v408_v59  ;;  %v637_v11 = vld [vmem:[#allocation2 + $0x39] sm:$0xff]  ;;  %v414_v58 = vld [vmem:[%s5380_s12 + $0x50] sm:$0xff] }
  0x90   : > { %442 = vst.msk [vmem:[#allocation2 + $0x51] sm:$0xff] %vm294_vm2, %v409_v62  ;;  %v5471_v15 = vpack.c.bf16 %v637_v11, %v636_v10  ;;  %v652_v22 = vld [vmem:[#allocation2 + $0xf1] sm:$0xff] }
  0x91   : > { %457 = vst.msk [vmem:[#allocation2 + $0x109] sm:$0xff] %vm294_vm2, %v424_v63  ;;  %v653_v23 = vld [vmem:[#allocation2 + $0xf9] sm:$0xff]  ;;  %v430_v60 = vld [vmem:[%s5380_s12 + $0xd0] sm:$0xff] }
  0x92   : > { %458 = vst.msk [vmem:[#allocation2 + $0x111] sm:$0xff] %vm294_vm2, %v425_v2  ;;  %v684_v24 = vld [vmem:[#allocation3 + $0xf1] sm:$0xff]  ;;  %v5490_v26 = vpack.c.bf16 %v653_v23, %v652_v22  ;;  %v415_v59 = vld [vmem:[%s5380_s12 + $0x58] sm:$0xff]  ;;  %v495_v62 = vld [vmem:[%s5390_s15 + $0xd0] sm:$0xff] }
  0x93   : > { %522 = vst.msk [vmem:[#allocation3 + $0x109] sm:$0xff] %vm294_vm2, %v489_v5  ;;  %v685_v25 = vld [vmem:[#allocation3 + $0xf9] sm:$0xff]  ;;  %v496_v63 = vld [vmem:[%s5390_s15 + $0xd8] sm:$0xff] }
  0x94   : > { %4774 = vmatmul.msk.bf16.gmra.mxu1 %vm294_vm2, %v5457_v3  ;;  %523 = vst.msk [vmem:[#allocation3 + $0x111] sm:$0xff] %vm294_vm2, %v490_v8  ;;  %v670_v27 = vld [vmem:[#allocation3 + $0x49] sm:$0xff]  ;;  %v722_v29 = vpack.c.bf16 %v685_v25, %v684_v24  ;;  %v498_v22 = vld [vmem:[%s5390_s15 + $0xe8] sm:$0xff] }
  0x95   : > { %508 = vst.msk [vmem:[#allocation3 + $0x61] sm:$0xff] %vm294_vm2, %v475_v13  ;;  %v671_v28 = vld [vmem:[#allocation3 + $0x51] sm:$0xff] }
  0x96   : > { %4790 = vmatmul.msk.bf16.gmra.mxu3 %vm294_vm2, %v721_v9  ;;  %509 = vst.msk [vmem:[#allocation3 + $0x69] sm:$0xff] %vm294_vm2, %v476_v14  ;;  %v638_v30 = vld [vmem:[#allocation2 + $0x49] sm:$0xff]  ;;  %v715_v32 = vpack.c.bf16 %v671_v28, %v670_v27  ;;  %v481_v13 = vld [vmem:[%s5390_s15 + $0x60] sm:$0xff] }
  0x97   : > { %443 = vst.msk [vmem:[#allocation2 + $0x61] sm:$0xff] %vm294_vm2, %v410_v16  ;;  %v639_v31 = vld [vmem:[#allocation2 + $0x51] sm:$0xff]  ;;  %v482_v14 = vld [vmem:[%s5390_s15 + $0x68] sm:$0xff] }
  0x98   : > { %4783 = vmatmul.msk.bf16.gmra.mxu2 %vm294_vm2, %v714_v12  ;;  %444 = vst.msk [vmem:[#allocation2 + $0x69] sm:$0xff] %vm294_vm2, %v411_v17  ;;  %v5497_v35 = vpack.c.bf16 %v639_v31, %v638_v30  ;;  %v654_v43 = vld [vmem:[#allocation2 + $0x109] sm:$0xff]  ;;  %v416_v17 = vld [vmem:[%s5380_s12 + $0x60] sm:$0xff] }
  0x99   : > { %459 = vst.msk [vmem:[#allocation2 + $0x121] sm:$0xff] %vm294_vm2, %v426_v18  ;;  %v655_v44 = vld [vmem:[#allocation2 + $0x111] sm:$0xff]  ;;  %v417_v18 = vld [vmem:[%s5380_s12 + $0x68] sm:$0xff] }
  0x9a   : > { %4767 = vmatmul.msk.bf16.gmra.mxu0 %vm294_vm2, %v5471_v15  ;;  %460 = vst.msk [vmem:[#allocation2 + $0x129] sm:$0xff] %vm294_vm2, %v427_v19  ;;  %v686_v45 = vld [vmem:[#allocation3 + $0x109] sm:$0xff]  ;;  %v5516_v47 = vpack.c.bf16 %v655_v44, %v654_v43 }
  0x9b   : > { %524 = vst.msk [vmem:[#allocation3 + $0x121] sm:$0xff] %vm294_vm2, %v491_v20  ;;  %v687_v46 = vld [vmem:[#allocation3 + $0x111] sm:$0xff] }
  0x9c   : > { %525 = vst.msk [vmem:[#allocation3 + $0x129] sm:$0xff] %vm294_vm2, %v492_v21  ;;  %v672_v48 = vld [vmem:[#allocation3 + $0x61] sm:$0xff]  ;;  %v723_v50 = vpack.c.bf16 %v687_v46, %v686_v45  ;;  %v432_v19 = vld [vmem:[%s5380_s12 + $0xe0] sm:$0xff]  ;;  %v433_v20 = vld [vmem:[%s5380_s12 + $0xe8] sm:$0xff] }
  0x9d   : > { %510 = vst.msk [vmem:[#allocation3 + $0x79] sm:$0xff] %vm294_vm2, %v477_v33  ;;  %v673_v49 = vld [vmem:[#allocation3 + $0x69] sm:$0xff] }
  0x9e   : > { %511 = vst.msk [vmem:[#allocation3 + $0x81] sm:$0xff] %vm294_vm2, %v478_v34  ;;  %v640_v51 = vld [vmem:[#allocation2 + $0x61] sm:$0xff]  ;;  %v716_v53 = vpack.c.bf16 %v673_v49, %v672_v48  ;;  %v4961_v45 = vld [vmem:[%s6840_s2 + $0x18] sm:$0x7] }
  0x9f   : > { %445 = vst.msk [vmem:[#allocation2 + $0x79] sm:$0xff] %vm294_vm2, %v412_v36  ;;  %v641_v52 = vld [vmem:[#allocation2 + $0x69] sm:$0xff]  ;;  %v497_v21 = vld [vmem:[%s5390_s15 + $0xe0] sm:$0xff]  ;;  %v3095_v48 = vpack.c.bf16 %v4961_v45, %v4961_v45 }
  0xa0   : > { %446 = vst.msk [vmem:[#allocation2 + $0x81] sm:$0xff] %vm294_vm2, %v413_v37  ;;  %v5523_v57 = vpack.c.bf16 %v641_v52, %v640_v51  ;;  %v656_v0 = vld [vmem:[#allocation2 + $0x121] sm:$0xff] }
  0xa1   : > { %461 = vst.msk [vmem:[#allocation2 + $0x139] sm:$0xff] %vm294_vm2, %v428_v38  ;;  %v657_v1 = vld [vmem:[#allocation2 + $0x129] sm:$0xff]  ;;  %v3193_v52 = vand.u32 %v3095_v48, %v5140_v4 }
  0xa2   : > { %462 = vst.msk [vmem:[#allocation2 + $0x141] sm:$0xff] %vm294_vm2, %v429_v40  ;;  %v688_v2 = vld [vmem:[#allocation3 + $0x121] sm:$0xff]  ;;  %v5542_v6 = vpack.c.bf16 %v657_v1, %v656_v0 }
  0xa3   : > { %526 = vst.msk [vmem:[#allocation3 + $0x139] sm:$0xff] %vm294_vm2, %v493_v41  ;;  %v689_v5 = vld [vmem:[#allocation3 + $0x129] sm:$0xff]  ;;  %3202 = vmatpush.bf16.msra.mxu2 %v3193_v52  ;;  %v1707_v52 = vld [vmem:[#allocation2 + $0x50] sm:$0xff] }
  0xa4   : > { %4775 = vmatmul.msk.bf16.gmra.mxu1 %vm294_vm2, %v5490_v26  ;;  %527 = vst.msk [vmem:[#allocation3 + $0x141] sm:$0xff] %vm294_vm2, %v494_v42  ;;  %v674_v7 = vld [vmem:[#allocation3 + $0x79] sm:$0xff]  ;;  %v724_v9 = vpack.c.bf16 %v689_v5, %v688_v2 }
  0xa5   : > { %512 = vst.msk [vmem:[#allocation3 + $0x91] sm:$0xff] %vm294_vm2, %v479_v55  ;;  %v675_v8 = vld [vmem:[#allocation3 + $0x81] sm:$0xff]  ;;  %v4994_v55 = vld [vmem:[%s6840_s2 + $0x1c] sm:$0x7] }
  0xa6   : > { %4791 = vmatmul.msk.bf16.gmra.mxu3 %vm294_vm2, %v722_v29  ;;  %513 = vst.msk [vmem:[#allocation3 + $0x99] sm:$0xff] %vm294_vm2, %v480_v56  ;;  %v642_v10 = vld [vmem:[#allocation2 + $0x79] sm:$0xff]  ;;  %v717_v12 = vpack.c.bf16 %v675_v8, %v674_v7  ;;  %v4928_v56 = vld [vmem:[%s6840_s2 + $0x14] sm:$0x7] }
  0xa7   : > { %447 = vst.msk [vmem:[#allocation2 + $0x91] sm:$0xff] %vm294_vm2, %v414_v58  ;;  %v643_v11 = vld [vmem:[#allocation2 + $0x81] sm:$0xff]  ;;  %v3526_v58 = vpack.c.bf16 %v4994_v55, %v4994_v55 }
  0xa8   : > { %4784 = vmatmul.msk.bf16.gmra.mxu2 %vm294_vm2, %v715_v32  ;;  %448 = vst.msk [vmem:[#allocation2 + $0x99] sm:$0xff] %vm294_vm2, %v415_v59  ;;  %v5549_v16 = vpack.c.bf16 %v643_v11, %v642_v10  ;;  %v658_v23 = vld [vmem:[#allocation2 + $0x139] sm:$0xff]  ;;  %v2662_v59 = vpack.c.bf16 %v4928_v56, %v4928_v56  ;;  %v1272_v10 = vld [vmem:[#allocation2 + $0xa] sm:$0xff] }
  0xa9   : > { %463 = vst.msk [vmem:[#allocation2 + $0x151] sm:$0xff] %vm294_vm2, %v430_v60  ;;  %v659_v24 = vld [vmem:[#allocation2 + $0x141] sm:$0xff]  ;;  %v3624_v60 = vand.u32 %v3526_v58, %v5140_v4 }
  0xaa   : > { %4768 = vmatmul.msk.bf16.gmra.mxu0 %vm294_vm2, %v5497_v35  ;;  %464 = vst.msk [vmem:[#allocation2 + $0x159] sm:$0xff] %vm294_vm2, %v431_v61  ;;  %v690_v25 = vld [vmem:[#allocation3 + $0x139] sm:$0xff]  ;;  %v5568_v28 = vpack.c.bf16 %v659_v24, %v658_v23  ;;  %v2760_v61 = vand.u32 %v2662_v59, %v5140_v4  ;;  %v1273_v24 = vld [vmem:[#allocation2 + $0x1a] sm:$0xff] }
  0xab   : > { %528 = vst.msk [vmem:[#allocation3 + $0x151] sm:$0xff] %vm294_vm2, %v495_v62  ;;  %v691_v27 = vld [vmem:[#allocation3 + $0x141] sm:$0xff]  ;;  %v5027_v62 = vld [vmem:[%s6840_s2 + $0x20] sm:$0x7]  ;;  %3633 = vmatpush.bf16.msra.mxu3 %v3624_v60 }
  0xac   : > { %529 = vst.msk [vmem:[#allocation3 + $0x159] sm:$0xff] %vm294_vm2, %v496_v63  ;;  %v676_v29 = vld [vmem:[#allocation3 + $0x91] sm:$0xff]  ;;  %v725_v31 = vpack.c.bf16 %v691_v27, %v690_v25  ;;  %v3957_v63 = vpack.c.bf16 %v5027_v62, %v5027_v62  ;;  %2769 = vmatpush.bf16.msra.mxu1 %v2760_v61  ;;  %v1277_v59 = vld [vmem:[#allocation2 + $0x4a] sm:$0xff]  ;;  %v1278_v60 = vld [vmem:[#allocation2 + $0x52] sm:$0xff] }
  0xad   : > { %514 = vst.msk [vmem:[#allocation3 + $0xa9] sm:$0xff] %vm294_vm2, %v481_v13  ;;  %v677_v30 = vld [vmem:[#allocation3 + $0x99] sm:$0xff] }
  0xae   : > { %515 = vst.msk [vmem:[#allocation3 + $0xb1] sm:$0xff] %vm294_vm2, %v482_v14  ;;  %v644_v32 = vld [vmem:[#allocation2 + $0x91] sm:$0xff]  ;;  %v718_v34 = vpack.c.bf16 %v677_v30, %v676_v29  ;;  %v4055_v0 = vand.u32 %v3957_v63, %v5140_v4  ;;  %v5611_v14 = vpop.f32.mrf.mxu2  ;;  %v534_v4 = vld [vmem:[#allocation2] sm:$0xff]  ;;  %v1338_v63 = vpack.c.bf16 %v1278_v60, %v1277_v59 }
  0xaf   : > { %449 = vst.msk [vmem:[#allocation2 + $0xa9] sm:$0xff] %vm294_vm2, %v416_v17  ;;  %v645_v33 = vld [vmem:[#allocation2 + $0x99] sm:$0xff]  ;;  %v535_v17 = vld [vmem:[#allocation2 + $0x8] sm:$0xff] }
  0xb0   : > { %450 = vst.msk [vmem:[#allocation2 + $0xb1] sm:$0xff] %vm294_vm2, %v417_v18  ;;  %v5573_v36 = vpack.c.bf16 %v645_v33, %v644_v32  ;;  %v660_v37 = vld [vmem:[#allocation2 + $0x151] sm:$0xff]  ;;  %4064 = vmatpush.bf16.msra.mxu0 %v4055_v0  ;;  %v1274_v25 = vld [vmem:[#allocation2 + $0x22] sm:$0xff] }
  0xb1   : > { %465 = vst.msk [vmem:[#allocation2 + $0x169] sm:$0xff] %vm294_vm2, %v432_v19  ;;  %v661_v38 = vld [vmem:[#allocation2 + $0x159] sm:$0xff]  ;;  %v1336_v29 = vpack.c.bf16 %v1274_v25, %v1273_v24  ;;  %v1704_v33 = vld [vmem:[#allocation2 + $0x30] sm:$0xff] }
  0xb2   : > { %466 = vst.msk [vmem:[#allocation2 + $0x171] sm:$0xff] %vm294_vm2, %v433_v20  ;;  %v692_v40 = vld [vmem:[#allocation3 + $0x151] sm:$0xff]  ;;  %v5578_v42 = vpack.c.bf16 %v661_v38, %v660_v37  ;;  %v1702_v19 = vld [vmem:[#allocation2 + $0x18] sm:$0xff] }
  0xb3   : > { %530 = vst.msk [vmem:[#allocation3 + $0x169] sm:$0xff] %vm294_vm2, %v497_v21  ;;  %v693_v41 = vld [vmem:[#allocation3 + $0x159] sm:$0xff]  ;;  %v1703_v20 = vld [vmem:[#allocation2 + $0x20] sm:$0xff]  ;;  %v598_v21 = vpack.c.bf16 %v535_v17, %v534_v4 }
  0xb4   : > { %4776 = vmatmul.msk.bf16.gmra.mxu1 %vm294_vm2, %v5516_v47  ;;  %531 = vst.msk [vmem:[#allocation3 + $0x171] sm:$0xff] %vm294_vm2, %v498_v22  ;;  %v678_v43 = vld [vmem:[#allocation3 + $0xa9] sm:$0xff]  ;;  %v726_v46 = vpack.c.bf16 %v693_v41, %v692_v40  ;;  %v1766_v27 = vpack.c.bf16 %v1703_v20, %v1702_v19  ;;  %v1280_v4 = vld [vmem:[#allocation2 + $0x6a] sm:$0xff] }
  0xb5   : > { %v679_v44 = vld [vmem:[#allocation3 + $0xb1] sm:$0xff]  ;;  %v1275_v41 = vld [vmem:[#allocation2 + $0x32] sm:$0xff] }
  0xb6   : > { %4792 = vmatmul.msk.bf16.gmra.mxu3 %vm294_vm2, %v723_v50  ;;  %v646_v49 = vld [vmem:[#allocation2 + $0xa9] sm:$0xff]  ;;  %v719_v51 = vpack.c.bf16 %v679_v44, %v678_v43  ;;  %v5620_v23 = vpop.f32.mrf.mxu2  ;;  %v1276_v43 = vld [vmem:[#allocation2 + $0x3a] sm:$0xff] }
  0xb7   : > { %v647_v50 = vld [vmem:[#allocation2 + $0xb1] sm:$0xff] }
  0xb8   : > { %4785 = vmatmul.msk.bf16.gmra.mxu2 %vm294_vm2, %v716_v53  ;;  %v5587_v53 = vpack.c.bf16 %v647_v50, %v646_v49  ;;  %v662_v1 = vld [vmem:[#allocation2 + $0x169] sm:$0xff] }
  0xb9   : > { %v663_v2 = vld [vmem:[#allocation2 + $0x171] sm:$0xff] }
  0xba   : > { %4769 = vmatmul.msk.bf16.gmra.mxu0 %vm294_vm2, %v5523_v57  ;;  %v694_v5 = vld [vmem:[#allocation3 + $0x169] sm:$0xff]  ;;  %v5604_v8 = vpack.c.bf16 %v663_v2, %v662_v1 }
  0xbb   : > { %v695_v7 = vld [vmem:[#allocation3 + $0x171] sm:$0xff] }
  0xbc   : > { %v727_v11 = vpack.c.bf16 %v695_v7, %v694_v5  ;;  %v1708_v5 = vld [vmem:[#allocation2 + $0x60] sm:$0xff]  ;;  %v1709_v7 = vld [vmem:[#allocation2 + $0x68] sm:$0xff] }
  0xbd   : > { %v1769_v17 = vpack.c.bf16 %v1709_v7, %v1708_v5  ;;  %v1713_v5 = vld [vmem:[#allocation2 + $0x98] sm:$0xff] }
  0xc4   : > { %4777 = vmatmul.msk.bf16.gmra.mxu1 %vm294_vm2, %v5542_v6 }
  0xc6   : > { %4793 = vmatmul.msk.bf16.gmra.mxu3 %vm294_vm2, %v724_v9  ;;  %v1271_v9 = vld [vmem:[#allocation2 + $0x2] sm:$0xff] }
  0xc7   : > { %v1335_v13 = vpack.c.bf16 %v1272_v10, %v1271_v9 }
  0xc8   : > { %4786 = vmatmul.msk.bf16.gmra.mxu2 %vm294_vm2, %v717_v12  ;;  %v5606_v12 = vpop.f32.mrf.mxu0 }
  0xca   : > { %4770 = vmatmul.msk.bf16.gmra.mxu0 %vm294_vm2, %v5549_v16 }
  0xd0   : > { %v5616_v18 = vpop.f32.mrf.mxu0 }
  0xd4   : > { %4778 = vmatmul.msk.bf16.gmra.mxu1 %vm294_vm2, %v5568_v28 }
  0xd6   : > { %4794 = vmatmul.msk.bf16.gmra.mxu3 %vm294_vm2, %v725_v31 }
  0xd8   : > { %4787 = vmatmul.msk.bf16.gmra.mxu2 %vm294_vm2, %v718_v34  ;;  %v1705_v34 = vld [vmem:[#allocation2 + $0x38] sm:$0xff] }
  0xd9   : > { %v1767_v44 = vpack.c.bf16 %v1705_v34, %v1704_v33 }
  0xda   : > { %4771 = vmatmul.msk.bf16.gmra.mxu0 %vm294_vm2, %v5573_v36 }
  0xe4   : > { %4779 = vmatmul.msk.bf16.gmra.mxu1 %vm294_vm2, %v5578_v42 }
  0xe6   : > { %4795 = vmatmul.msk.bf16.gmra.mxu3 %vm294_vm2, %v726_v46  ;;  %v1337_v46 = vpack.c.bf16 %v1276_v43, %v1275_v41  ;;  %v1281_v43 = vld [vmem:[#allocation2 + $0x7a] sm:$0xff] }
  0xe8   : > { %4788 = vmatmul.msk.bf16.gmra.mxu2 %vm294_vm2, %v719_v51  ;;  %v1706_v51 = vld [vmem:[#allocation2 + $0x48] sm:$0xff] }
  0xe9   : > { %v1768_v61 = vpack.c.bf16 %v1707_v52, %v1706_v51 }
  0xea   : > { %4772 = vmatmul.msk.bf16.gmra.mxu0 %vm294_vm2, %v5587_v53 }
  0xf4   : > { %4780 = vmatmul.msk.bf16.gmra.mxu1 %vm294_vm2, %v5604_v8 }
  0xf6   : > { %4796 = vmatmul.msk.bf16.gmra.mxu3 %vm294_vm2, %v727_v11 }
  0xf8   : > { %4830 = vmatmul.msk.bf16.vlgmr.msrb.gmra.mxu2 %vm294_vm2, %v1335_v13  ;;  %v1279_v13 = vld [vmem:[#allocation2 + $0x62] sm:$0xff] }
  0xf9   : > { %v1339_v20 = vpack.c.bf16 %v1280_v4, %v1279_v13 }
  0xfa   : > { %4896 = vmatmul.msk.bf16.vlgmr.msrb.gmra.mxu0 %vm294_vm2, %v5437_v54 }
 0x101   : > { %v5618_v22 = vpop.f32.mrf.mxu1 }
 0x104   : > { %4797 = vmatmul.msk.bf16.vlgmr.msrb.gmra.mxu1 %vm294_vm2, %v598_v21 }
 0x106   : > { %4863 = vmatmul.msk.bf16.vlgmr.msrb.gmra.mxu3 %vm294_vm2, %v1766_v27 }
 0x107   : > { %v5624_v54 = vpop.f32.mrf.mxu0 }
 0x108   : > { %4831 = vmatmul.msk.bf16.gmra.mxu2 %vm294_vm2, %v1336_v29  ;;  %v1711_v29 = vld [vmem:[#allocation2 + $0x80] sm:$0xff] }
 0x109   : > { %v5627_v30 = vpop.f32.mrf.mxu3  ;;  %v5629_v31 = vpop.f32.mrf.mxu1 }
 0x10a   : > { %6876 = vst [vmem:[#allocation4_spill] sm:$0xff] %v5627_v30  ;;  %4897 = vmatmul.msk.bf16.gmra.mxu0 %vm294_vm2, %v5471_v15 }
 0x10b   : > { %v5633_v32 = vpop.f32.mrf.mxu2 }
 0x10f   : > { %v5635_v37 = vpop.f32.mrf.mxu0 }
 0x111   : > { %v5637_v38 = vpop.f32.mrf.mxu3  ;;  %v5639_v40 = vpop.f32.mrf.mxu1 }
 0x112   : > { %6877 = vst [vmem:[#allocation5_spill] sm:$0xff] %v5637_v38 }
 0x113   : > { %v5641_v45 = vpop.f32.mrf.mxu2 }
 0x114   : > { %4798 = vmatmul.msk.bf16.gmra.mxu1 %vm294_vm2, %v1766_v27  ;;  %v1710_v27 = vld [vmem:[#allocation2 + $0x78] sm:$0xff] }
 0x116   : > { %4864 = vmatmul.msk.bf16.gmra.mxu3 %vm294_vm2, %v1767_v44 }
 0x117   : > { %v5645_v15 = vpop.f32.mrf.mxu0 }
 0x118   : > { %4832 = vmatmul.msk.bf16.gmra.mxu2 %vm294_vm2, %v1337_v46  ;;  %v1770_v46 = vpack.c.bf16 %v1711_v29, %v1710_v27 }
 0x119   : > { %v5648_v48 = vpop.f32.mrf.mxu3  ;;  %v5650_v49 = vpop.f32.mrf.mxu1 }
 0x11a   : > { %6878 = vst [vmem:[#allocation6_spill] sm:$0xff] %v5648_v48  ;;  %4898 = vmatmul.msk.bf16.gmra.mxu0 %vm294_vm2, %v5497_v35  ;;  %v1288_v48 = vld [vmem:[#allocation2 + $0xca] sm:$0xff] }
 0x11b   : > { %v5654_v50 = vpop.f32.mrf.mxu2 }
 0x11f   : > { %v5656_v55 = vpop.f32.mrf.mxu0 }
 0x121   : > { %v5658_v56 = vpop.f32.mrf.mxu3  ;;  %v5660_v58 = vpop.f32.mrf.mxu1 }
 0x122   : > { %6879 = vst [vmem:[#allocation7_spill] sm:$0xff] %v5658_v56 }
 0x123   : > { %v5662_v62 = vpop.f32.mrf.mxu2 }
 0x124   : > { %6880 = vst [vmem:[#allocation8_spill] sm:$0xff] %v5662_v62  ;;  %4799 = vmatmul.msk.bf16.gmra.mxu1 %vm294_vm2, %v1767_v44  ;;  %v1282_v44 = vld [vmem:[#allocation2 + $0x82] sm:$0xff] }
 0x125   : > { %v1340_v52 = vpack.c.bf16 %v1282_v44, %v1281_v43 }
 0x126   : > { %4865 = vmatmul.msk.bf16.gmra.mxu3 %vm294_vm2, %v1768_v61 }
 0x127   : > { %v5666_v35 = vpop.f32.mrf.mxu0 }
 0x128   : > { %4833 = vmatmul.msk.bf16.gmra.mxu2 %vm294_vm2, %v1338_v63  ;;  %v1712_v63 = vld [vmem:[#allocation2 + $0x90] sm:$0xff] }
 0x129   : > { %v5669_v0 = vpop.f32.mrf.mxu3  ;;  %v5671_v1 = vpop.f32.mrf.mxu1  ;;  %v1771_v27 = vpack.c.bf16 %v1713_v5, %v1712_v63  ;;  %v1714_v63 = vld [vmem:[#allocation2 + $0xa8] sm:$0xff]  ;;  %v1715_v5 = vld [vmem:[#allocation2 + $0xb0] sm:$0xff] }
 0x12a   : > { %6881 = vst [vmem:[#allocation9_spill] sm:$0xff] %v5669_v0  ;;  %4899 = vmatmul.msk.bf16.gmra.mxu0 %vm294_vm2, %v5523_v57 }
 0x12b   : > { %v5675_v2 = vpop.f32.mrf.mxu2 }
 0x12c   : > { %6882 = vst [vmem:[#allocation10_spill] sm:$0xff] %v5675_v2  ;;  %v1292_v2 = vld [vmem:[#allocation2 + $0xfa] sm:$0xff] }
 0x12f   : > { %v5677_v9 = vpop.f32.mrf.mxu0 }
 0x131   : > { %v5679_v10 = vpop.f32.mrf.mxu3  ;;  %v5681_v11 = vpop.f32.mrf.mxu1 }
 0x132   : > { %6883 = vst [vmem:[#allocation11_spill] sm:$0xff] %v5679_v10 }
 0x133   : > { %v5683_v19 = vpop.f32.mrf.mxu2 }
 0x134   : > { %6884 = vst [vmem:[#allocation12_spill] sm:$0xff] %v5683_v19  ;;  %4800 = vmatmul.msk.bf16.gmra.mxu1 %vm294_vm2, %v1768_v61 }
 0x136   : > { %4866 = vmatmul.msk.bf16.gmra.mxu3 %vm294_vm2, %v1769_v17 }
 0x137   : > { %v5687_v57 = vpop.f32.mrf.mxu0 }
 0x138   : > { %4834 = vmatmul.msk.bf16.gmra.mxu2 %vm294_vm2, %v1339_v20  ;;  %v1284_v20 = vld [vmem:[#allocation2 + $0x9a] sm:$0xff] }
 0x139   : > { %v5690_v21 = vpop.f32.mrf.mxu3  ;;  %v5692_v24 = vpop.f32.mrf.mxu1 }
 0x13a   : > { %6885 = vst [vmem:[#allocation13_spill] sm:$0xff] %v5690_v21  ;;  %4900 = vmatmul.msk.bf16.gmra.mxu0 %vm294_vm2, %v5549_v16 }
 0x13b   : > { %v5696_v25 = vpop.f32.mrf.mxu2 }
 0x13c   : > { %6886 = vst [vmem:[#allocation14_spill] sm:$0xff] %v5696_v25 }
 0x13f   : > { %v5698_v33 = vpop.f32.mrf.mxu0 }
 0x141   : > { %v5700_v34 = vpop.f32.mrf.mxu3  ;;  %v5702_v41 = vpop.f32.mrf.mxu1 }
 0x142   : > { %6887 = vst [vmem:[#allocation15_spill] sm:$0xff] %v5700_v34  ;;  %v1286_v34 = vld [vmem:[#allocation2 + $0xb2] sm:$0xff] }
 0x143   : > { %v5704_v51 = vpop.f32.mrf.mxu2 }
 0x144   : > { %6888 = vst [vmem:[#allocation16_spill] sm:$0xff] %v5704_v51  ;;  %4801 = vmatmul.msk.bf16.gmra.mxu1 %vm294_vm2, %v1769_v17  ;;  %v1283_v17 = vld [vmem:[#allocation2 + $0x92] sm:$0xff] }
 0x145   : > { %v1341_v43 = vpack.c.bf16 %v1284_v20, %v1283_v17  ;;  %v1285_v20 = vld [vmem:[#allocation2 + $0xaa] sm:$0xff] }
 0x146   : > { %4867 = vmatmul.msk.bf16.gmra.mxu3 %vm294_vm2, %v1770_v46 }
 0x147   : > { %v5708_v16 = vpop.f32.mrf.mxu0 }
 0x148   : > { %4835 = vmatmul.msk.bf16.gmra.mxu2 %vm294_vm2, %v1340_v52 }
 0x149   : > { %v5711_v59 = vpop.f32.mrf.mxu3  ;;  %v5713_v60 = vpop.f32.mrf.mxu1 }
 0x14a   : > { %6889 = vst [vmem:[#allocation17_spill] sm:$0xff] %v5711_v59  ;;  %4901 = vmatmul.msk.bf16.gmra.mxu0 %vm294_vm2, %v5573_v36 }
 0x14b   : > { %v5717_v61 = vpop.f32.mrf.mxu2 }
 0x14c   : > { %6890 = vst [vmem:[#allocation18_spill] sm:$0xff] %v5717_v61 }
 0x14f   : > { %v5719_v7 = vpop.f32.mrf.mxu0 }
 0x151   : > { %v5721_v13 = vpop.f32.mrf.mxu3  ;;  %v5723_v4 = vpop.f32.mrf.mxu1 }
 0x152   : > { %6891 = vst [vmem:[#allocation19_spill] sm:$0xff] %v5721_v13 }
 0x153   : > { %v5725_v29 = vpop.f32.mrf.mxu2 }
 0x154   : > { %6892 = vst [vmem:[#allocation20_spill] sm:$0xff] %v5725_v29  ;;  %4802 = vmatmul.msk.bf16.gmra.mxu1 %vm294_vm2, %v1770_v46 }
 0x156   : > { %4868 = vmatmul.msk.bf16.gmra.mxu3 %vm294_vm2, %v1771_v27 }
 0x157   : > { %v5729_v36 = vpop.f32.mrf.mxu0 }
 0x158   : > { %4836 = vmatmul.msk.bf16.gmra.mxu2 %vm294_vm2, %v1341_v43  ;;  %v1772_v43 = vpack.c.bf16 %v1715_v5, %v1714_v63  ;;  %v1716_v63 = vld [vmem:[#allocation2 + $0xc0] sm:$0xff]  ;;  %v1717_v5 = vld [vmem:[#allocation2 + $0xc8] sm:$0xff] }
 0x159   : > { %v5732_v44 = vpop.f32.mrf.mxu3  ;;  %v5734_v52 = vpop.f32.mrf.mxu1 }
 0x15a   : > { %6893 = vst [vmem:[#allocation21_spill] sm:$0xff] %v5732_v44  ;;  %4902 = vmatmul.msk.bf16.gmra.mxu0 %vm294_vm2, %v5587_v53  ;;  %v1342_v44 = vpack.c.bf16 %v1286_v34, %v1285_v20  ;;  %v1287_v20 = vld [vmem:[#allocation2 + $0xc2] sm:$0xff] }
 0x15b   : > { %v5738_v13 = vpop.f32.mrf.mxu2 }
 0x15c   : > { %6894 = vst [vmem:[#allocation22_spill] sm:$0xff] %v5738_v13 }
 0x15f   : > { %v5740_v59 = vpop.f32.mrf.mxu0 }
 0x161   : > { %v5742_v46 = vpop.f32.mrf.mxu3  ;;  %v5744_v17 = vpop.f32.mrf.mxu1 }
 0x162   : > { %6895 = vst [vmem:[#allocation23_spill] sm:$0xff] %v5742_v46 }
 0x163   : > { %v5746_v21 = vpop.f32.mrf.mxu2 }
 0x164   : > { %6896 = vst [vmem:[#allocation24_spill] sm:$0xff] %v5746_v21  ;;  %4803 = vmatmul.msk.bf16.gmra.mxu1 %vm294_vm2, %v1771_v27  ;;  %v1718_v21 = vld [vmem:[#allocation2 + $0xd8] sm:$0xff] }
 0x166   : > { %4869 = vmatmul.msk.bf16.gmra.mxu3 %vm294_vm2, %v1772_v43 }
 0x167   : > { %v5750_v53 = vpop.f32.mrf.mxu0 }
 0x168   : > { %4837 = vmatmul.msk.bf16.gmra.mxu2 %vm294_vm2, %v1342_v44  ;;  %v1773_v44 = vpack.c.bf16 %v1717_v5, %v1716_v63  ;;  %v1719_v63 = vld [vmem:[#allocation2 + $0xe0] sm:$0xff] }
 0x169   : > { %v5753_v10 = vpop.f32.mrf.mxu3  ;;  %v5755_v0 = vpop.f32.mrf.mxu1  ;;  %v1774_v29 = vpack.c.bf16 %v1719_v63, %v1718_v21 }
 0x16a   : > { %6897 = vst [vmem:[#allocation25_spill] sm:$0xff] %v5753_v10  ;;  %4903 = vmatmul.msk.bf16.gmra.mxu0 %vm294_vm2, %v5419_v39  ;;  %v1343_v10 = vpack.c.bf16 %v1288_v48, %v1287_v20  ;;  %v1289_v48 = vld [vmem:[#allocation2 + $0xda] sm:$0xff]  ;;  %v1290_v20 = vld [vmem:[#allocation2 + $0xe2] sm:$0xff] }
 0x16b   : > { %v5759_v46 = vpop.f32.mrf.mxu2 }
 0x16c   : > { %6898 = vst [vmem:[#allocation26_spill] sm:$0xff] %v5759_v46 }
 0x16f   : > { %v5761_v56 = vpop.f32.mrf.mxu0 }
 0x171   : > { %v5763_v34 = vpop.f32.mrf.mxu3  ;;  %v5765_v27 = vpop.f32.mrf.mxu1 }
 0x172   : > { %6899 = vst [vmem:[#allocation27_spill] sm:$0xff] %v5763_v34 }
 0x173   : > { %v5767_v38 = vpop.f32.mrf.mxu2 }
 0x174   : > { %6900 = vst [vmem:[#allocation28_spill] sm:$0xff] %v5767_v38  ;;  %4804 = vmatmul.msk.bf16.gmra.mxu1 %vm294_vm2, %v1772_v43 }
 0x176   : > { %4870 = vmatmul.msk.bf16.gmra.mxu3 %vm294_vm2, %v1773_v44 }
 0x177   : > { %v2340_v39 = vpop.f32.mrf.mxu0 }
 0x178   : > { %4838 = vmatmul.msk.bf16.gmra.mxu2 %vm294_vm2, %v1343_v10 }
 0x179   : > { %v5772_v30 = vpop.f32.mrf.mxu3  ;;  %v5774_v46 = vpop.f32.mrf.mxu1 }
 0x17a   : > { %6901 = vst [vmem:[#allocation29_spill] sm:$0xff] %v5772_v30  ;;  %4904 = vmatmul.msk.bf16.gmra.mxu0 %vm294_vm2, %v5457_v3  ;;  %v1344_v30 = vpack.c.bf16 %v1290_v20, %v1289_v48  ;;  %v1291_v20 = vld [vmem:[#allocation2 + $0xf2] sm:$0xff] }
 0x17b   : > { %v1478_v34 = vpop.f32.mrf.mxu2 }
 0x17f   : > { %v2342_v5 = vpop.f32.mrf.mxu0 }
 0x181   : > { %v5778_v38 = vpop.f32.mrf.mxu3  ;;  %v1111_v43 = vpop.f32.mrf.mxu1 }
 0x182   : > { %6902 = vst [vmem:[#allocation30_spill] sm:$0xff] %v5778_v38  ;;  %v1112_v13 = vadd.f32 %v1111_v43, %v5606_v12 }
 0x183   : > { %v1480_v10 = vpop.f32.mrf.mxu2 }
 0x184   : > { %v1638_v61 = vadd.f32 %v1478_v34, %v1112_v13  ;;  %4805 = vmatmul.msk.bf16.gmra.mxu1 %vm294_vm2, %v1773_v44  ;;  %v1720_v13 = vld [vmem:[#allocation2 + $0xf0] sm:$0xff]  ;;  %v1721_v34 = vld [vmem:[#allocation2 + $0xf8] sm:$0xff] }
 0x186   : > { %4871 = vmatmul.msk.bf16.gmra.mxu3 %vm294_vm2, %v1774_v29 }
 0x187   : > { %v2345_v3 = vpop.f32.mrf.mxu0 }
 0x188   : > { %4839 = vmatmul.msk.bf16.gmra.mxu2 %vm294_vm2, %v1344_v30 }
 0x189   : > { %v1909_v51 = vpop.f32.mrf.mxu3  ;;  %v1113_v25 = vpop.f32.mrf.mxu1 }
 0x18a   : > { %v2069_v19 = vadd.f32 %v1909_v51, %v1638_v61  ;;  %v1114_v38 = vadd.f32 %v1113_v25, %v5616_v18  ;;  %4905 = vmatmul.msk.bf16.gmra.mxu0 %vm294_vm2, %v5490_v26  ;;  %v1775_v51 = vpack.c.bf16 %v1721_v34, %v1720_v13  ;;  %v1345_v26 = vpack.c.bf16 %v1292_v2, %v1291_v20  ;;  %v1722_v2 = vld [vmem:[#allocation2 + $0x108] sm:$0xff] }
 0x18b   : > { %v1483_v12 = vpop.f32.mrf.mxu2 }
 0x18c   : > { %v1639_v21 = vadd.f32 %v1480_v10, %v1114_v38  ;;  %v5787_v63 = vadd.f32 %v2340_v39, %v2069_v19 }
 0x18f   : > { %v2347_v44 = vpop.f32.mrf.mxu0 }
 0x191   : > { %v1911_v43 = vpop.f32.mrf.mxu3  ;;  %v1116_v48 = vpop.f32.mrf.mxu1 }
 0x192   : > { %v2070_v30 = vadd.f32 %v1911_v43, %v1639_v21  ;;  %v1117_v62 = vadd.f32 %v1116_v48, %v5624_v54  ;;  %v1293_v43 = vld [vmem:[#allocation2 + $0x10a] sm:$0xff]  ;;  %v1294_v48 = vld [vmem:[#allocation2 + $0x112] sm:$0xff] }
 0x193   : > { %v1485_v61 = vpop.f32.mrf.mxu2 }
 0x194   : > { %v1640_v18 = vadd.f32 %v1483_v12, %v1117_v62  ;;  %4806 = vmatmul.msk.bf16.gmra.mxu1 %vm294_vm2, %v1774_v29  ;;  %v5791_v25 = vadd.f32 %v2342_v5, %v2070_v30  ;;  %v1723_v29 = vld [vmem:[#allocation2 + $0x110] sm:$0xff] }
 0x196   : > { %4872 = vmatmul.msk.bf16.gmra.mxu3 %vm294_vm2, %v1775_v51 }
 0x197   : > { %v2350_v38 = vpop.f32.mrf.mxu0 }
 0x198   : > { %4840 = vmatmul.msk.bf16.gmra.mxu2 %vm294_vm2, %v1345_v26 }
 0x199   : > { %v1914_v19 = vpop.f32.mrf.mxu3  ;;  %v1118_v39 = vpop.f32.mrf.mxu1 }
 0x19a   : > { %v2071_v10 = vadd.f32 %v1914_v19, %v1640_v18  ;;  %v1119_v21 = vadd.f32 %v1118_v39, %v5635_v37  ;;  %4906 = vmatmul.msk.bf16.gmra.mxu0 %vm294_vm2, %v5516_v47  ;;  %v1776_v18 = vpack.c.bf16 %v1723_v29, %v1722_v2  ;;  %v1346_v47 = vpack.c.bf16 %v1294_v48, %v1293_v43  ;;  %v1296_v43 = vld [vmem:[#allocation2 + $0x12a] sm:$0xff] }
 0x19b   : > { %v1488_v54 = vpop.f32.mrf.mxu2 }
 0x19c   : > { %v1641_v62 = vadd.f32 %v1485_v61, %v1119_v21  ;;  %v5798_v12 = vadd.f32 %v2345_v3, %v2071_v10 }
 0x19f   : > { %v2352_v5 = vpop.f32.mrf.mxu0 }
 0x1a1   : > { %v1916_v13 = vpop.f32.mrf.mxu3  ;;  %v1121_v34 = vpop.f32.mrf.mxu1 }
 0x1a2   : > { %v2072_v20 = vadd.f32 %v1916_v13, %v1641_v62  ;;  %v1122_v30 = vadd.f32 %v1121_v34, %v5645_v15  ;;  %v1295_v34 = vld [vmem:[#allocation2 + $0x122] sm:$0xff] }
 0x1a3   : > { %v1490_v26 = vpop.f32.mrf.mxu2 }
 0x1a4   : > { %v1642_v37 = vadd.f32 %v1488_v54, %v1122_v30  ;;  %4807 = vmatmul.msk.bf16.gmra.mxu1 %vm294_vm2, %v1775_v51  ;;  %v5802_v19 = vadd.f32 %v2347_v44, %v2072_v20  ;;  %v1724_v51 = vld [vmem:[#allocation2 + $0x120] sm:$0xff]  ;;  %v1725_v44 = vld [vmem:[#allocation2 + $0x128] sm:$0xff] }
 0x1a5   : > { %v1777_v30 = vpack.c.bf16 %v1725_v44, %v1724_v51 }
 0x1a6   : > { %4873 = vmatmul.msk.bf16.gmra.mxu3 %vm294_vm2, %v1776_v18 }
 0x1a7   : > { %v2355_v3 = vpop.f32.mrf.mxu0 }
 0x1a8   : > { %4841 = vmatmul.msk.bf16.gmra.mxu2 %vm294_vm2, %v1346_v47 }
 0x1a9   : > { %v1919_v61 = vpop.f32.mrf.mxu3  ;;  %v1123_v39 = vpop.f32.mrf.mxu1 }
 0x1aa   : > { %v2073_v10 = vadd.f32 %v1919_v61, %v1642_v37  ;;  %v1124_v21 = vadd.f32 %v1123_v39, %v5656_v55  ;;  %4907 = vmatmul.msk.bf16.gmra.mxu0 %vm294_vm2, %v5542_v6  ;;  %v1347_v6 = vpack.c.bf16 %v1296_v43, %v1295_v34 }
 0x1ab   : > { %v1493_v15 = vpop.f32.mrf.mxu2 }
 0x1ac   : > { %v1643_v54 = vadd.f32 %v1490_v26, %v1124_v21  ;;  %v5809_v62 = vadd.f32 %v2350_v38, %v2073_v10 }
 0x1af   : > { %v2357_v2 = vpop.f32.mrf.mxu0 }
 0x1b1   : > { %v1921_v29 = vpop.f32.mrf.mxu3  ;;  %v1126_v13 = vpop.f32.mrf.mxu1 }
 0x1b2   : > { %v2074_v48 = vadd.f32 %v1921_v29, %v1643_v54  ;;  %v1127_v20 = vadd.f32 %v1126_v13, %v5666_v35  ;;  %v1297_v29 = vld [vmem:[#allocation2 + $0x13a] sm:$0xff]  ;;  %v1298_v13 = vld [vmem:[#allocation2 + $0x142] sm:$0xff] }
 0x1b3   : > { %v1495_v37 = vpop.f32.mrf.mxu2 }
 0x1b4   : > { %v1644_v55 = vadd.f32 %v1493_v15, %v1127_v20  ;;  %4808 = vmatmul.msk.bf16.gmra.mxu1 %vm294_vm2, %v1776_v18  ;;  %v5813_v47 = vadd.f32 %v2352_v5, %v2074_v48  ;;  %v1726_v18 = vld [vmem:[#allocation2 + $0x138] sm:$0xff]  ;;  %v1727_v5 = vld [vmem:[#allocation2 + $0x140] sm:$0xff] }
 0x1b5   : > { %v1778_v48 = vpack.c.bf16 %v1727_v5, %v1726_v18 }
 0x1b6   : > { %4874 = vmatmul.msk.bf16.gmra.mxu3 %vm294_vm2, %v1777_v30 }
 0x1b7   : > { %v2360_v38 = vpop.f32.mrf.mxu0 }
 0x1b8   : > { %4842 = vmatmul.msk.bf16.gmra.mxu2 %vm294_vm2, %v1347_v6 }
 0x1b9   : > { %v1924_v26 = vpop.f32.mrf.mxu3  ;;  %v1128_v61 = vpop.f32.mrf.mxu1 }
 0x1ba   : > { %v2075_v39 = vadd.f32 %v1924_v26, %v1644_v55  ;;  %v1129_v10 = vadd.f32 %v1128_v61, %v5677_v9  ;;  %4908 = vmatmul.msk.bf16.gmra.mxu0 %vm294_vm2, %v5568_v28  ;;  %v1348_v28 = vpack.c.bf16 %v1298_v13, %v1297_v29 }
 0x1bb   : > { %v1498_v35 = vpop.f32.mrf.mxu2 }
 0x1bc   : > { %v1645_v21 = vadd.f32 %v1495_v37, %v1129_v10  ;;  %v5820_v15 = vadd.f32 %v2355_v3, %v2075_v39  ;;  %v434_v39 = vld [vmem:[%s5380_s12 + $0xf0] sm:$0xff]  ;;  %v435_v10 = vld [vmem:[%s5380_s12 + $0xf8] sm:$0xff]  ;;  %s6555_s12 = scalar_lea.vmem %s6843_s5, %s5368_s9 }
 0x1bd   : > { %467 = vst.msk [vmem:[#allocation2 + $0x181] sm:$0xff] %vm294_vm2, %v434_v39 }
 0x1be   : > { %468 = vst.msk [vmem:[#allocation2 + $0x189] sm:$0xff] %vm294_vm2, %v435_v10 }
 0x1bf   : > { %v2362_v54 = vpop.f32.mrf.mxu0 }
 0x1c1   : > { %v1926_v51 = vpop.f32.mrf.mxu3  ;;  %v1131_v44 = vpop.f32.mrf.mxu1 }
 0x1c2   : > { %v2076_v34 = vadd.f32 %v1926_v51, %v1645_v21  ;;  %v1132_v43 = vadd.f32 %v1131_v44, %v5687_v57  ;;  %v1729_v21 = vld [vmem:[#allocation2 + $0x158] sm:$0xff] }
 0x1c3   : > { %v1500_v9 = vpop.f32.mrf.mxu2  ;;  %v1299_v44 = vld [vmem:[#allocation2 + $0x152] sm:$0xff] }
 0x1c4   : > { %v1646_v20 = vadd.f32 %v1498_v35, %v1132_v43  ;;  %4809 = vmatmul.msk.bf16.gmra.mxu1 %vm294_vm2, %v1777_v30  ;;  %v5824_v3 = vadd.f32 %v2357_v2, %v2076_v34  ;;  %v1728_v35 = vld [vmem:[#allocation2 + $0x150] sm:$0xff] }
 0x1c5   : > { %v1779_v13 = vpack.c.bf16 %v1729_v21, %v1728_v35  ;;  %v1301_v35 = vld [vmem:[#allocation2 + $0x16a] sm:$0xff]  ;;  %v1302_v21 = vld [vmem:[#allocation2 + $0x172] sm:$0xff] }
 0x1c6   : > { %4875 = vmatmul.msk.bf16.gmra.mxu3 %vm294_vm2, %v1778_v48 }
 0x1c7   : > { %v2365_v37 = vpop.f32.mrf.mxu0 }
 0x1c8   : > { %4843 = vmatmul.msk.bf16.gmra.mxu2 %vm294_vm2, %v1348_v28 }
 0x1c9   : > { %v1929_v55 = vpop.f32.mrf.mxu3  ;;  %v1133_v6 = vpop.f32.mrf.mxu1 }
 0x1ca   : > { %v2077_v26 = vadd.f32 %v1929_v55, %v1646_v20  ;;  %v1134_v57 = vadd.f32 %v1133_v6, %v5698_v33  ;;  %4909 = vmatmul.msk.bf16.gmra.mxu0 %vm294_vm2, %v5578_v42  ;;  %v1300_v33 = vld [vmem:[#allocation2 + $0x15a] sm:$0xff] }
 0x1cb   : > { %v1503_v61 = vpop.f32.mrf.mxu2 }
 0x1cc   : > { %v1647_v30 = vadd.f32 %v1500_v9, %v1134_v57  ;;  %v5834_v2 = vadd.f32 %v2360_v38, %v2077_v26  ;;  %v1349_v9 = vpack.c.bf16 %v1300_v33, %v1299_v44 }
 0x1cf   : > { %v2367_v18 = vpop.f32.mrf.mxu0 }
 0x1d1   : > { %v1931_v5 = vpop.f32.mrf.mxu3  ;;  %v1136_v51 = vpop.f32.mrf.mxu1 }
 0x1d2   : > { %v2078_v29 = vadd.f32 %v1931_v5, %v1647_v30  ;;  %v1137_v42 = vadd.f32 %v1136_v51, %v5708_v16 }
 0x1d3   : > { %v1505_v34 = vpop.f32.mrf.mxu2 }
 0x1d4   : > { %v1648_v43 = vadd.f32 %v1503_v61, %v1137_v42  ;;  %4810 = vmatmul.msk.bf16.gmra.mxu1 %vm294_vm2, %v1778_v48  ;;  %v5839_v38 = vadd.f32 %v2362_v54, %v2078_v29  ;;  %v1730_v48 = vld [vmem:[#allocation2 + $0x168] sm:$0xff]  ;;  %v1731_v54 = vld [vmem:[#allocation2 + $0x170] sm:$0xff] }
 0x1d5   : > { %v1780_v44 = vpack.c.bf16 %v1731_v54, %v1730_v48  ;;  %v2164_v29 = vld [vmem:[#allocation2 + $0x189] sm:$0xff] }
 0x1d6   : > { %4876 = vmatmul.msk.bf16.gmra.mxu3 %vm294_vm2, %v1779_v13 }
 0x1d7   : > { %v2370_v20 = vpop.f32.mrf.mxu0 }
 0x1d8   : > { %4844 = vmatmul.msk.bf16.gmra.mxu2 %vm294_vm2, %v1349_v9 }
 0x1d9   : > { %v1934_v28 = vpop.f32.mrf.mxu3  ;;  %v1138_v55 = vpop.f32.mrf.mxu1 }
 0x1da   : > { %v2079_v6 = vadd.f32 %v1934_v28, %v1648_v43  ;;  %v1139_v26 = vadd.f32 %v1138_v55, %v5719_v7  ;;  %4910 = vmatmul.msk.bf16.gmra.mxu0 %vm294_vm2, %v5604_v8  ;;  %v2163_v7 = vld [vmem:[#allocation2 + $0x181] sm:$0xff]  ;;  %v1350_v8 = vpack.c.bf16 %v1302_v21, %v1301_v35 }
 0x1db   : > { %v1508_v16 = vpop.f32.mrf.mxu2 }
 0x1dc   : > { %v1649_v57 = vadd.f32 %v1505_v34, %v1139_v26  ;;  %v5846_v61 = vadd.f32 %v2365_v37, %v2079_v6  ;;  %v2212_v34 = vpack.c.bf16 %v2164_v29, %v2163_v7  ;;  %v2165_v7 = vld [vmem:[#allocation3 + $0x19] sm:$0xff] }
 0x1df   : > { %v2372_v39 = vpop.f32.mrf.mxu0 }
 0x1e1   : > { %v1936_v10 = vpop.f32.mrf.mxu3  ;;  %v1141_v30 = vpop.f32.mrf.mxu1 }
 0x1e2   : > { %v2080_v5 = vadd.f32 %v1936_v10, %v1649_v57  ;;  %v1142_v51 = vadd.f32 %v1141_v30, %v5729_v36  ;;  %v1303_v10 = vld [vmem:[#allocation3 + $0x2] sm:$0xff]  ;;  %v1304_v30 = vld [vmem:[#allocation3 + $0xa] sm:$0xff] }
 0x1e3   : > { %v1510_v33 = vpop.f32.mrf.mxu2 }
 0x1e4   : > { %v1650_v42 = vadd.f32 %v1508_v16, %v1142_v51  ;;  %4811 = vmatmul.msk.bf16.gmra.mxu1 %vm294_vm2, %v1779_v13  ;;  %v5850_v37 = vadd.f32 %v2367_v18, %v2080_v5  ;;  %v1732_v13 = vld [vmem:[#allocation2 + $0x180] sm:$0xff]  ;;  %v1733_v18 = vld [vmem:[#allocation2 + $0x188] sm:$0xff] }
 0x1e5   : > { %v1781_v5 = vpack.c.bf16 %v1733_v18, %v1732_v13  ;;  %v1735_v13 = vld [vmem:[#allocation3 + $0x20] sm:$0xff] }
 0x1e6   : > { %4877 = vmatmul.msk.bf16.gmra.mxu3 %vm294_vm2, %v1780_v44 }
 0x1e7   : > { %v2375_v43 = vpop.f32.mrf.mxu0 }
 0x1e8   : > { %4845 = vmatmul.msk.bf16.gmra.mxu2 %vm294_vm2, %v1350_v8 }
 0x1e9   : > { %v1939_v9 = vpop.f32.mrf.mxu3  ;;  %v1143_v28 = vpop.f32.mrf.mxu1 }
 0x1ea   : > { %v2081_v55 = vadd.f32 %v1939_v9, %v1650_v42  ;;  %v1144_v36 = vadd.f32 %v1143_v28, %v5740_v59  ;;  %4911 = vmatmul.msk.bf16.gmra.mxu0 %vm294_vm2, %v2212_v34  ;;  %v2166_v59 = vld [vmem:[#allocation3 + $0x21] sm:$0xff] }
 0x1eb   : > { %v1513_v6 = vpop.f32.mrf.mxu2  ;;  %v2213_v42 = vpack.c.bf16 %v2166_v59, %v2165_v7  ;;  %v2167_v59 = vld [vmem:[#allocation3 + $0x31] sm:$0xff] }
 0x1ec   : > { %v1651_v26 = vadd.f32 %v1510_v33, %v1144_v36  ;;  %v5856_v16 = vadd.f32 %v2370_v20, %v2081_v55  ;;  %v1351_v33 = vpack.c.bf16 %v1304_v30, %v1303_v10  ;;  %v1305_v30 = vld [vmem:[#allocation3 + $0x1a] sm:$0xff] }
 0x1ef   : > { %v2377_v57 = vpop.f32.mrf.mxu0 }
 0x1f1   : > { %v1941_v48 = vpop.f32.mrf.mxu3  ;;  %v1146_v54 = vpop.f32.mrf.mxu1 }
 0x1f2   : > { %v2082_v35 = vadd.f32 %v1941_v48, %v1651_v26  ;;  %v1147_v21 = vadd.f32 %v1146_v54, %v5750_v53  ;;  %v1734_v26 = vld [vmem:[#allocation3 + $0x18] sm:$0xff] }
 0x1f3   : > { %v1515_v51 = vpop.f32.mrf.mxu2 }
 0x1f4   : > { %v1652_v29 = vadd.f32 %v1513_v6, %v1147_v21  ;;  %4812 = vmatmul.msk.bf16.gmra.mxu1 %vm294_vm2, %v1780_v44  ;;  %v5860_v20 = vadd.f32 %v2372_v39, %v2082_v35  ;;  %v566_v44 = vld [vmem:[#allocation3] sm:$0xff]  ;;  %v567_v39 = vld [vmem:[#allocation3 + $0x8] sm:$0xff] }
 0x1f5   : > { %v614_v48 = vpack.c.bf16 %v567_v39, %v566_v44  ;;  %v1306_v35 = vld [vmem:[#allocation3 + $0x22] sm:$0xff]  ;;  %v1736_v39 = vld [vmem:[#allocation3 + $0x30] sm:$0xff] }
 0x1f6   : > { %4878 = vmatmul.msk.bf16.gmra.mxu3 %vm294_vm2, %v1781_v5 }
 0x1f7   : > { %v2380_v8 = vpop.f32.mrf.mxu0 }
 0x1f8   : > { %4846 = vmatmul.msk.bf16.gmra.mxu2 %vm294_vm2, %v1351_v33 }
 0x1f9   : > { %v1944_v34 = vpop.f32.mrf.mxu3  ;;  %v1148_v9 = vpop.f32.mrf.mxu1 }
 0x1fa   : > { %v2083_v28 = vadd.f32 %v1944_v34, %v1652_v29  ;;  %v1149_v53 = vadd.f32 %v1148_v9, %v5761_v56  ;;  %4912 = vmatmul.msk.bf16.gmra.mxu0 %vm294_vm2, %v2213_v42  ;;  %v1782_v56 = vpack.c.bf16 %v1735_v13, %v1734_v26  ;;  %v2168_v29 = vld [vmem:[#allocation3 + $0x39] sm:$0xff] }
 0x1fb   : > { %v1518_v55 = vpop.f32.mrf.mxu2  ;;  %v2214_v42 = vpack.c.bf16 %v2168_v29, %v2167_v59  ;;  %v2169_v59 = vld [vmem:[#allocation3 + $0x49] sm:$0xff] }
 0x1fc   : > { %v1653_v36 = vadd.f32 %v1515_v51, %v1149_v53  ;;  %v5866_v6 = vadd.f32 %v2375_v43, %v2083_v28  ;;  %v1352_v43 = vpack.c.bf16 %v1306_v35, %v1305_v30 }
 0x1ff   : > { %v2382_v18 = vpop.f32.mrf.mxu0 }
 0x201   : > { %v1946_v54 = vpop.f32.mrf.mxu3  ;;  %v1151_v10 = vpop.f32.mrf.mxu1 }
 0x202   : > { %v2084_v21 = vadd.f32 %v1946_v54, %v1653_v36  ;;  %v1152_v5 = vadd.f32 %v1151_v10, %v5618_v22  ;;  %v1307_v54 = vld [vmem:[#allocation3 + $0x32] sm:$0xff]  ;;  %v1308_v10 = vld [vmem:[#allocation3 + $0x3a] sm:$0xff] }
 0x203   : > { %v1520_v7 = vpop.f32.mrf.mxu2 }
 0x204   : > { %v1654_v51 = vadd.f32 %v1518_v55, %v1152_v5  ;;  %4813 = vmatmul.msk.bf16.gmra.mxu1 %vm294_vm2, %v614_v48  ;;  %v5870_v33 = vadd.f32 %v2377_v57, %v2084_v21  ;;  %v1737_v57 = vld [vmem:[#allocation3 + $0x38] sm:$0xff] }
 0x205   : > { %v1783_v21 = vpack.c.bf16 %v1737_v57, %v1736_v39 }
 0x206   : > { %4879 = vmatmul.msk.bf16.gmra.mxu3 %vm294_vm2, %v1782_v56 }
 0x207   : > { %v2385_v34 = vpop.f32.mrf.mxu0 }
 0x208   : > { %4847 = vmatmul.msk.bf16.gmra.mxu2 %vm294_vm2, %v1352_v43 }
 0x209   : > { %v1949_v9 = vpop.f32.mrf.mxu3  ;;  %v1153_v28 = vpop.f32.mrf.mxu1 }
 0x20a   : > { %v2085_v53 = vadd.f32 %v1949_v9, %v1654_v51  ;;  %v1154_v22 = vadd.f32 %v1153_v28, %v5629_v31  ;;  %4913 = vmatmul.msk.bf16.gmra.mxu0 %vm294_vm2, %v2214_v42  ;;  %v2170_v31 = vld [vmem:[#allocation3 + $0x51] sm:$0xff] }
 0x20b   : > { %v1523_v36 = vpop.f32.mrf.mxu2  ;;  %v2215_v51 = vpack.c.bf16 %v2170_v31, %v2169_v59  ;;  %v2171_v59 = vld [vmem:[#allocation3 + $0x61] sm:$0xff] }
 0x20c   : > { %v1655_v55 = vadd.f32 %v1520_v7, %v1154_v22  ;;  %v5876_v44 = vadd.f32 %v2380_v8, %v2085_v53  ;;  %v1353_v7 = vpack.c.bf16 %v1308_v10, %v1307_v54 }
 0x20f   : > { %v2387_v26 = vpop.f32.mrf.mxu0 }
 0x211   : > { %v1951_v13 = vpop.f32.mrf.mxu3  ;;  %v1156_v48 = vpop.f32.mrf.mxu1 }
 0x212   : > { %v2086_v30 = vadd.f32 %v1951_v13, %v1655_v55  ;;  %v1157_v35 = vadd.f32 %v1156_v48, %v5639_v40  ;;  %v1309_v13 = vld [vmem:[#allocation3 + $0x4a] sm:$0xff]  ;;  %v1310_v48 = vld [vmem:[#allocation3 + $0x52] sm:$0xff] }
 0x213   : > { %v1525_v5 = vpop.f32.mrf.mxu2 }
 0x214   : > { %v1656_v29 = vadd.f32 %v1523_v36, %v1157_v35  ;;  %4814 = vmatmul.msk.bf16.gmra.mxu1 %vm294_vm2, %v1782_v56  ;;  %v5880_v8 = vadd.f32 %v2382_v18, %v2086_v30  ;;  %v1738_v56 = vld [vmem:[#allocation3 + $0x48] sm:$0xff]  ;;  %v1739_v18 = vld [vmem:[#allocation3 + $0x50] sm:$0xff] }
 0x215   : > { %v1784_v30 = vpack.c.bf16 %v1739_v18, %v1738_v56 }
 0x216   : > { %4880 = vmatmul.msk.bf16.gmra.mxu3 %vm294_vm2, %v1783_v21 }
 0x217   : > { %v2390_v43 = vpop.f32.mrf.mxu0 }
 0x218   : > { %4848 = vmatmul.msk.bf16.gmra.mxu2 %vm294_vm2, %v1353_v7 }
 0x219   : > { %v1954_v42 = vpop.f32.mrf.mxu3  ;;  %v1158_v9 = vpop.f32.mrf.mxu1 }
 0x21a   : > { %v2087_v28 = vadd.f32 %v1954_v42, %v1656_v29  ;;  %v1159_v40 = vadd.f32 %v1158_v9, %v5650_v49  ;;  %4914 = vmatmul.msk.bf16.gmra.mxu0 %vm294_vm2, %v2215_v51  ;;  %v2172_v49 = vld [vmem:[#allocation3 + $0x69] sm:$0xff] }
 0x21b   : > { %v1528_v53 = vpop.f32.mrf.mxu2  ;;  %v2216_v29 = vpack.c.bf16 %v2172_v49, %v2171_v59  ;;  %v2173_v59 = vld [vmem:[#allocation3 + $0x79] sm:$0xff] }
 0x21c   : > { %v1657_v22 = vadd.f32 %v1525_v5, %v1159_v40  ;;  %v5886_v36 = vadd.f32 %v2385_v34, %v2087_v28  ;;  %v1354_v5 = vpack.c.bf16 %v1310_v48, %v1309_v13 }
 0x21f   : > { %v2392_v55 = vpop.f32.mrf.mxu0 }
 0x221   : > { %v1956_v39 = vpop.f32.mrf.mxu3  ;;  %v1161_v57 = vpop.f32.mrf.mxu1 }
 0x222   : > { %v2088_v54 = vadd.f32 %v1956_v39, %v1657_v22  ;;  %v1162_v10 = vadd.f32 %v1161_v57, %v5660_v58  ;;  %v1311_v39 = vld [vmem:[#allocation3 + $0x62] sm:$0xff]  ;;  %v1312_v57 = vld [vmem:[#allocation3 + $0x6a] sm:$0xff] }
 0x223   : > { %v1530_v35 = vpop.f32.mrf.mxu2 }
 0x224   : > { %v1658_v31 = vadd.f32 %v1528_v53, %v1162_v10  ;;  %4815 = vmatmul.msk.bf16.gmra.mxu1 %vm294_vm2, %v1783_v21  ;;  %v5890_v34 = vadd.f32 %v2387_v26, %v2088_v54  ;;  %v1740_v21 = vld [vmem:[#allocation3 + $0x60] sm:$0xff]  ;;  %v1741_v26 = vld [vmem:[#allocation3 + $0x68] sm:$0xff] }
 0x225   : > { %v1785_v54 = vpack.c.bf16 %v1741_v26, %v1740_v21 }
 0x226   : > { %4881 = vmatmul.msk.bf16.gmra.mxu3 %vm294_vm2, %v1784_v30 }
 0x227   : > { %v2395_v7 = vpop.f32.mrf.mxu0 }
 0x228   : > { %4849 = vmatmul.msk.bf16.gmra.mxu2 %vm294_vm2, %v1354_v5 }
 0x229   : > { %v1959_v51 = vpop.f32.mrf.mxu3  ;;  %v1163_v42 = vpop.f32.mrf.mxu1 }
 0x22a   : > { %v2089_v9 = vadd.f32 %v1959_v51, %v1658_v31  ;;  %v1164_v58 = vadd.f32 %v1163_v42, %v5671_v1  ;;  %4915 = vmatmul.msk.bf16.gmra.mxu0 %vm294_vm2, %v2216_v29  ;;  %v2174_v1 = vld [vmem:[#allocation3 + $0x81] sm:$0xff] }
 0x22b   : > { %v1533_v28 = vpop.f32.mrf.mxu2  ;;  %v2217_v31 = vpack.c.bf16 %v2174_v1, %v2173_v59  ;;  %v2175_v59 = vld [vmem:[#allocation3 + $0x91] sm:$0xff] }
 0x22c   : > { %v1659_v40 = vadd.f32 %v1530_v35, %v1164_v58  ;;  %v5896_v53 = vadd.f32 %v2390_v43, %v2089_v9  ;;  %v1355_v35 = vpack.c.bf16 %v1312_v57, %v1311_v39 }
 0x22f   : > { %v2397_v22 = vpop.f32.mrf.mxu0 }
 0x231   : > { %v1961_v56 = vpop.f32.mrf.mxu3  ;;  %v1166_v18 = vpop.f32.mrf.mxu1 }
 0x232   : > { %v2090_v13 = vadd.f32 %v1961_v56, %v1659_v40  ;;  %v1167_v48 = vadd.f32 %v1166_v18, %v5681_v11  ;;  %v1313_v56 = vld [vmem:[#allocation3 + $0x7a] sm:$0xff]  ;;  %v1314_v18 = vld [vmem:[#allocation3 + $0x82] sm:$0xff] }
 0x233   : > { %v1535_v10 = vpop.f32.mrf.mxu2 }
 0x234   : > { %v1660_v49 = vadd.f32 %v1533_v28, %v1167_v48  ;;  %4816 = vmatmul.msk.bf16.gmra.mxu1 %vm294_vm2, %v1784_v30  ;;  %v5900_v43 = vadd.f32 %v2392_v55, %v2090_v13  ;;  %v1742_v30 = vld [vmem:[#allocation3 + $0x78] sm:$0xff]  ;;  %v1743_v55 = vld [vmem:[#allocation3 + $0x80] sm:$0xff] }
 0x235   : > { %v1786_v13 = vpack.c.bf16 %v1743_v55, %v1742_v30 }
 0x236   : > { %4882 = vmatmul.msk.bf16.gmra.mxu3 %vm294_vm2, %v1785_v54 }
 0x237   : > { %v2400_v5 = vpop.f32.mrf.mxu0 }
 0x238   : > { %4850 = vmatmul.msk.bf16.gmra.mxu2 %vm294_vm2, %v1355_v35 }
 0x239   : > { %v1964_v29 = vpop.f32.mrf.mxu3  ;;  %v1168_v51 = vpop.f32.mrf.mxu1 }
 0x23a   : > { %v2091_v42 = vadd.f32 %v1964_v29, %v1660_v49  ;;  %v1169_v11 = vadd.f32 %v1168_v51, %v5692_v24  ;;  %4916 = vmatmul.msk.bf16.gmra.mxu0 %vm294_vm2, %v2217_v31  ;;  %v2176_v24 = vld [vmem:[#allocation3 + $0x99] sm:$0xff] }
 0x23b   : > { %v1538_v9 = vpop.f32.mrf.mxu2  ;;  %v2218_v49 = vpack.c.bf16 %v2176_v24, %v2175_v59  ;;  %v2177_v59 = vld [vmem:[#allocation3 + $0xa9] sm:$0xff] }
 0x23c   : > { %v1661_v58 = vadd.f32 %v1535_v10, %v1169_v11  ;;  %v5906_v28 = vadd.f32 %v2395_v7, %v2091_v42  ;;  %v1356_v10 = vpack.c.bf16 %v1314_v18, %v1313_v56 }
 0x23f   : > { %v2402_v40 = vpop.f32.mrf.mxu0 }
 0x241   : > { %v1966_v21 = vpop.f32.mrf.mxu3  ;;  %v1171_v26 = vpop.f32.mrf.mxu1 }
 0x242   : > { %v2092_v39 = vadd.f32 %v1966_v21, %v1661_v58  ;;  %v1172_v57 = vadd.f32 %v1171_v26, %v5702_v41  ;;  %v1315_v21 = vld [vmem:[#allocation3 + $0x92] sm:$0xff]  ;;  %v1316_v26 = vld [vmem:[#allocation3 + $0x9a] sm:$0xff] }
 0x243   : > { %v1540_v48 = vpop.f32.mrf.mxu2 }
 0x244   : > { %v1662_v1 = vadd.f32 %v1538_v9, %v1172_v57  ;;  %4817 = vmatmul.msk.bf16.gmra.mxu1 %vm294_vm2, %v1785_v54  ;;  %v5910_v7 = vadd.f32 %v2397_v22, %v2092_v39  ;;  %v1744_v54 = vld [vmem:[#allocation3 + $0x90] sm:$0xff]  ;;  %v1745_v22 = vld [vmem:[#allocation3 + $0x98] sm:$0xff] }
 0x245   : > { %v1787_v39 = vpack.c.bf16 %v1745_v22, %v1744_v54 }
 0x246   : > { %4883 = vmatmul.msk.bf16.gmra.mxu3 %vm294_vm2, %v1786_v13 }
 0x247   : > { %v2405_v35 = vpop.f32.mrf.mxu0 }
 0x248   : > { %4851 = vmatmul.msk.bf16.gmra.mxu2 %vm294_vm2, %v1356_v10 }
 0x249   : > { %v1969_v31 = vpop.f32.mrf.mxu3  ;;  %v1173_v29 = vpop.f32.mrf.mxu1 }
 0x24a   : > { %v2093_v51 = vadd.f32 %v1969_v31, %v1662_v1  ;;  %v1174_v41 = vadd.f32 %v1173_v29, %v5713_v60  ;;  %4917 = vmatmul.msk.bf16.gmra.mxu0 %vm294_vm2, %v2218_v49  ;;  %v2178_v60 = vld [vmem:[#allocation3 + $0xb1] sm:$0xff] }
 0x24b   : > { %v1543_v42 = vpop.f32.mrf.mxu2  ;;  %v2219_v1 = vpack.c.bf16 %v2178_v60, %v2177_v59  ;;  %v2179_v59 = vld [vmem:[#allocation3 + $0xc1] sm:$0xff] }
 0x24c   : > { %v1663_v11 = vadd.f32 %v1540_v48, %v1174_v41  ;;  %v5916_v9 = vadd.f32 %v2400_v5, %v2093_v51  ;;  %v1357_v48 = vpack.c.bf16 %v1316_v26, %v1315_v21 }
 0x24f   : > { %v2407_v58 = vpop.f32.mrf.mxu0 }
 0x251   : > { %v1971_v30 = vpop.f32.mrf.mxu3  ;;  %v1176_v55 = vpop.f32.mrf.mxu1 }
 0x252   : > { %v2094_v56 = vadd.f32 %v1971_v30, %v1663_v11  ;;  %v1177_v18 = vadd.f32 %v1176_v55, %v5723_v4  ;;  %v1317_v30 = vld [vmem:[#allocation3 + $0xaa] sm:$0xff]  ;;  %v1318_v55 = vld [vmem:[#allocation3 + $0xb2] sm:$0xff] }
 0x253   : > { %v1545_v57 = vpop.f32.mrf.mxu2 }
 0x254   : > { %v1664_v24 = vadd.f32 %v1543_v42, %v1177_v18  ;;  %4818 = vmatmul.msk.bf16.gmra.mxu1 %vm294_vm2, %v1786_v13  ;;  %v5920_v5 = vadd.f32 %v2402_v40, %v2094_v56  ;;  %v1746_v13 = vld [vmem:[#allocation3 + $0xa8] sm:$0xff]  ;;  %v1747_v40 = vld [vmem:[#allocation3 + $0xb0] sm:$0xff] }
 0x255   : > { %v1788_v56 = vpack.c.bf16 %v1747_v40, %v1746_v13 }
 0x256   : > { %4884 = vmatmul.msk.bf16.gmra.mxu3 %vm294_vm2, %v1787_v39 }
 0x257   : > { %v2410_v10 = vpop.f32.mrf.mxu0 }
 0x258   : > { %4852 = vmatmul.msk.bf16.gmra.mxu2 %vm294_vm2, %v1357_v48 }
 0x259   : > { %v1974_v49 = vpop.f32.mrf.mxu3  ;;  %v1178_v31 = vpop.f32.mrf.mxu1 }
 0x25a   : > { %v2095_v29 = vadd.f32 %v1974_v49, %v1664_v24  ;;  %v1179_v4 = vadd.f32 %v1178_v31, %v5734_v52  ;;  %4918 = vmatmul.msk.bf16.gmra.mxu0 %vm294_vm2, %v2219_v1  ;;  %v2180_v52 = vld [vmem:[#allocation3 + $0xc9] sm:$0xff] }
 0x25b   : > { %v1548_v51 = vpop.f32.mrf.mxu2  ;;  %v2220_v24 = vpack.c.bf16 %v2180_v52, %v2179_v59  ;;  %v2181_v59 = vld [vmem:[#allocation3 + $0xd9] sm:$0xff] }
 0x25c   : > { %v1665_v41 = vadd.f32 %v1545_v57, %v1179_v4  ;;  %v5926_v42 = vadd.f32 %v2405_v35, %v2095_v29  ;;  %v1358_v57 = vpack.c.bf16 %v1318_v55, %v1317_v30 }
 0x25f   : > { %v2412_v11 = vpop.f32.mrf.mxu0 }
 0x261   : > { %v1976_v54 = vpop.f32.mrf.mxu3  ;;  %v1181_v22 = vpop.f32.mrf.mxu1 }
 0x262   : > { %v2096_v21 = vadd.f32 %v1976_v54, %v1665_v41  ;;  %v1182_v26 = vadd.f32 %v1181_v22, %v5744_v17  ;;  %v1319_v54 = vld [vmem:[#allocation3 + $0xc2] sm:$0xff]  ;;  %v1320_v22 = vld [vmem:[#allocation3 + $0xca] sm:$0xff] }
 0x263   : > { %v1550_v18 = vpop.f32.mrf.mxu2 }
 0x264   : > { %v1666_v60 = vadd.f32 %v1548_v51, %v1182_v26  ;;  %4819 = vmatmul.msk.bf16.gmra.mxu1 %vm294_vm2, %v1787_v39  ;;  %v5930_v35 = vadd.f32 %v2407_v58, %v2096_v21  ;;  %v1748_v39 = vld [vmem:[#allocation3 + $0xc0] sm:$0xff]  ;;  %v1749_v58 = vld [vmem:[#allocation3 + $0xc8] sm:$0xff] }
 0x265   : > { %v1789_v21 = vpack.c.bf16 %v1749_v58, %v1748_v39 }
 0x266   : > { %4885 = vmatmul.msk.bf16.gmra.mxu3 %vm294_vm2, %v1788_v56 }
 0x267   : > { %v2415_v48 = vpop.f32.mrf.mxu0 }
 0x268   : > { %4853 = vmatmul.msk.bf16.gmra.mxu2 %vm294_vm2, %v1358_v57 }
 0x269   : > { %v1979_v1 = vpop.f32.mrf.mxu3  ;;  %v1183_v49 = vpop.f32.mrf.mxu1 }
 0x26a   : > { %v2097_v31 = vadd.f32 %v1979_v1, %v1666_v60  ;;  %v1184_v17 = vadd.f32 %v1183_v49, %v5755_v0  ;;  %4919 = vmatmul.msk.bf16.gmra.mxu0 %vm294_vm2, %v2220_v24  ;;  %v2182_v0 = vld [vmem:[#allocation3 + $0xe1] sm:$0xff] }
 0x26b   : > { %v1553_v29 = vpop.f32.mrf.mxu2  ;;  %v2221_v60 = vpack.c.bf16 %v2182_v0, %v2181_v59  ;;  %v2183_v59 = vld [vmem:[#allocation3 + $0xf1] sm:$0xff] }
 0x26c   : > { %v1667_v4 = vadd.f32 %v1550_v18, %v1184_v17  ;;  %v5936_v51 = vadd.f32 %v2410_v10, %v2097_v31  ;;  %v1359_v18 = vpack.c.bf16 %v1320_v22, %v1319_v54 }
 0x26f   : > { %v2417_v41 = vpop.f32.mrf.mxu0 }
 0x271   : > { %v1981_v13 = vpop.f32.mrf.mxu3  ;;  %v1186_v40 = vpop.f32.mrf.mxu1 }
 0x272   : > { %v2098_v30 = vadd.f32 %v1981_v13, %v1667_v4  ;;  %v1187_v55 = vadd.f32 %v1186_v40, %v5765_v27  ;;  %v1321_v13 = vld [vmem:[#allocation3 + $0xda] sm:$0xff]  ;;  %v1322_v40 = vld [vmem:[#allocation3 + $0xe2] sm:$0xff] }
 0x273   : > { %v1555_v26 = vpop.f32.mrf.mxu2 }
 0x274   : > { %v1668_v52 = vadd.f32 %v1553_v29, %v1187_v55  ;;  %4820 = vmatmul.msk.bf16.gmra.mxu1 %vm294_vm2, %v1788_v56  ;;  %v5940_v10 = vadd.f32 %v2412_v11, %v2098_v30  ;;  %v1750_v56 = vld [vmem:[#allocation3 + $0xd8] sm:$0xff]  ;;  %v1751_v11 = vld [vmem:[#allocation3 + $0xe0] sm:$0xff] }
 0x275   : > { %v1790_v30 = vpack.c.bf16 %v1751_v11, %v1750_v56 }
 0x276   : > { %4886 = vmatmul.msk.bf16.gmra.mxu3 %vm294_vm2, %v1789_v21 }
 0x277   : > { %v2420_v57 = vpop.f32.mrf.mxu0 }
 0x278   : > { %4854 = vmatmul.msk.bf16.gmra.mxu2 %vm294_vm2, %v1359_v18 }
 0x279   : > { %v1984_v24 = vpop.f32.mrf.mxu3  ;;  %v1188_v1 = vpop.f32.mrf.mxu1 }
 0x27a   : > { %v2099_v49 = vadd.f32 %v1984_v24, %v1668_v52  ;;  %v1189_v27 = vadd.f32 %v1188_v1, %v5774_v46  ;;  %4920 = vmatmul.msk.bf16.gmra.mxu0 %vm294_vm2, %v2221_v60  ;;  %v2184_v46 = vld [vmem:[#allocation3 + $0xf9] sm:$0xff] }
 0x27b   : > { %v1558_v31 = vpop.f32.mrf.mxu2  ;;  %v2222_v52 = vpack.c.bf16 %v2184_v46, %v2183_v59  ;;  %v2185_v59 = vld [vmem:[#allocation3 + $0x109] sm:$0xff] }
 0x27c   : > { %v1669_v17 = vadd.f32 %v1555_v26, %v1189_v27  ;;  %v5946_v29 = vadd.f32 %v2415_v48, %v2099_v49  ;;  %v1360_v26 = vpack.c.bf16 %v1322_v40, %v1321_v13 }
 0x27f   : > { %v2422_v4 = vpop.f32.mrf.mxu0 }
 0x281   : > { %v1986_v39 = vpop.f32.mrf.mxu3  ;;  %v1191_v58 = vpop.f32.mrf.mxu1 }
 0x282   : > { %v2100_v54 = vadd.f32 %v1986_v39, %v1669_v17  ;;  %v1192_v22 = vadd.f32 %v1191_v58, %v5611_v14  ;;  %v1323_v39 = vld [vmem:[#allocation3 + $0xf2] sm:$0xff]  ;;  %v1324_v58 = vld [vmem:[#allocation3 + $0xfa] sm:$0xff] }
 0x283   : > { %v1560_v55 = vpop.f32.mrf.mxu2 }
 0x284   : > { %v1670_v0 = vadd.f32 %v1558_v31, %v1192_v22  ;;  %4821 = vmatmul.msk.bf16.gmra.mxu1 %vm294_vm2, %v1789_v21  ;;  %v5950_v48 = vadd.f32 %v2417_v41, %v2100_v54  ;;  %v1752_v21 = vld [vmem:[#allocation3 + $0xf0] sm:$0xff]  ;;  %v1753_v41 = vld [vmem:[#allocation3 + $0xf8] sm:$0xff] }
 0x285   : > { %v1791_v54 = vpack.c.bf16 %v1753_v41, %v1752_v21 }
 0x286   : > { %4887 = vmatmul.msk.bf16.gmra.mxu3 %vm294_vm2, %v1790_v30 }
 0x287   : > { %v2425_v18 = vpop.f32.mrf.mxu0 }
 0x288   : > { %4855 = vmatmul.msk.bf16.gmra.mxu2 %vm294_vm2, %v1360_v26 }
 0x289   : > { %v1989_v60 = vpop.f32.mrf.mxu3  ;;  %v1193_v24 = vpop.f32.mrf.mxu1 }
 0x28a   : > { %v2101_v1 = vadd.f32 %v1989_v60, %v1670_v0  ;;  %v1194_v14 = vadd.f32 %v1193_v24, %v5620_v23  ;;  %4921 = vmatmul.msk.bf16.gmra.mxu0 %vm294_vm2, %v2222_v52  ;;  %v2186_v23 = vld [vmem:[#allocation3 + $0x111] sm:$0xff] }
 0x28b   : > { %v1563_v49 = vpop.f32.mrf.mxu2  ;;  %v2223_v0 = vpack.c.bf16 %v2186_v23, %v2185_v59  ;;  %v2187_v59 = vld [vmem:[#allocation3 + $0x121] sm:$0xff] }
 0x28c   : > { %v1671_v27 = vadd.f32 %v1560_v55, %v1194_v14  ;;  %v5956_v31 = vadd.f32 %v2420_v57, %v2101_v1  ;;  %v1361_v55 = vpack.c.bf16 %v1324_v58, %v1323_v39 }
 0x28f   : > { %v2427_v17 = vpop.f32.mrf.mxu0 }
 0x291   : > { %v1991_v56 = vpop.f32.mrf.mxu3  ;;  %v1196_v11 = vpop.f32.mrf.mxu1 }
 0x292   : > { %v2102_v13 = vadd.f32 %v1991_v56, %v1671_v27  ;;  %v1197_v40 = vadd.f32 %v1196_v11, %v5633_v32  ;;  %v1325_v56 = vld [vmem:[#allocation3 + $0x10a] sm:$0xff]  ;;  %v1326_v11 = vld [vmem:[#allocation3 + $0x112] sm:$0xff] }
 0x293   : > { %v1565_v22 = vpop.f32.mrf.mxu2 }
 0x294   : > { %v1672_v46 = vadd.f32 %v1563_v49, %v1197_v40  ;;  %4822 = vmatmul.msk.bf16.gmra.mxu1 %vm294_vm2, %v1790_v30  ;;  %v5960_v57 = vadd.f32 %v2422_v4, %v2102_v13  ;;  %v1754_v30 = vld [vmem:[#allocation3 + $0x108] sm:$0xff]  ;;  %v1755_v4 = vld [vmem:[#allocation3 + $0x110] sm:$0xff] }
 0x295   : > { %v1792_v13 = vpack.c.bf16 %v1755_v4, %v1754_v30 }
 0x296   : > { %4888 = vmatmul.msk.bf16.gmra.mxu3 %vm294_vm2, %v1791_v54 }
 0x297   : > { %v2430_v26 = vpop.f32.mrf.mxu0 }
 0x298   : > { %4856 = vmatmul.msk.bf16.gmra.mxu2 %vm294_vm2, %v1361_v55 }
 0x299   : > { %v1994_v52 = vpop.f32.mrf.mxu3  ;;  %v1198_v60 = vpop.f32.mrf.mxu1 }
 0x29a   : > { %v2103_v24 = vadd.f32 %v1994_v52, %v1672_v46  ;;  %v1199_v32 = vadd.f32 %v1198_v60, %v5641_v45  ;;  %4922 = vmatmul.msk.bf16.gmra.mxu0 %vm294_vm2, %v2223_v0  ;;  %v2188_v45 = vld [vmem:[#allocation3 + $0x129] sm:$0xff] }
 0x29b   : > { %v1568_v1 = vpop.f32.mrf.mxu2  ;;  %v2224_v46 = vpack.c.bf16 %v2188_v45, %v2187_v59 }
 0x29c   : > { %v1673_v14 = vadd.f32 %v1565_v22, %v1199_v32  ;;  %v5966_v49 = vadd.f32 %v2425_v18, %v2103_v24  ;;  %v1362_v22 = vpack.c.bf16 %v1326_v11, %v1325_v56  ;;  %v1328_v56 = vld [vmem:[#allocation3 + $0x12a] sm:$0xff] }
 0x29f   : > { %v2432_v27 = vpop.f32.mrf.mxu0 }
 0x2a1   : > { %v1996_v21 = vpop.f32.mrf.mxu3  ;;  %v1201_v41 = vpop.f32.mrf.mxu1 }
 0x2a2   : > { %v2104_v39 = vadd.f32 %v1996_v21, %v1673_v14  ;;  %v1202_v58 = vadd.f32 %v1201_v41, %v5654_v50  ;;  %v6903_v50 = vld [vmem:[#allocation8_spill] sm:$0xff]  ;;  %v1327_v41 = vld [vmem:[#allocation3 + $0x122] sm:$0xff] }
 0x2a3   : > { %v1570_v40 = vpop.f32.mrf.mxu2 }
 0x2a4   : > { %v1674_v23 = vadd.f32 %v1568_v1, %v1202_v58  ;;  %4823 = vmatmul.msk.bf16.gmra.mxu1 %vm294_vm2, %v1791_v54  ;;  %v5970_v18 = vadd.f32 %v2427_v17, %v2104_v39  ;;  %v1756_v54 = vld [vmem:[#allocation3 + $0x120] sm:$0xff]  ;;  %v1757_v17 = vld [vmem:[#allocation3 + $0x128] sm:$0xff] }
 0x2a5   : > { %v6904_v39 = vld [vmem:[#allocation10_spill] sm:$0xff]  ;;  %v1793_v59 = vpack.c.bf16 %v1757_v17, %v1756_v54 }
 0x2a6   : > { %4889 = vmatmul.msk.bf16.gmra.mxu3 %vm294_vm2, %v1792_v13 }
 0x2a7   : > { %v2435_v55 = vpop.f32.mrf.mxu0 }
 0x2a8   : > { %4857 = vmatmul.msk.bf16.gmra.mxu2 %vm294_vm2, %v1362_v22  ;;  %v2190_v22 = vld [vmem:[#allocation3 + $0x141] sm:$0xff] }
 0x2a9   : > { %v1999_v0 = vpop.f32.mrf.mxu3  ;;  %v1203_v52 = vpop.f32.mrf.mxu1 }
 0x2aa   : > { %v2105_v60 = vadd.f32 %v1999_v0, %v1674_v23  ;;  %v1204_v24 = vadd.f32 %v1203_v52, %v6903_v50  ;;  %4923 = vmatmul.msk.bf16.gmra.mxu0 %vm294_vm2, %v2224_v46  ;;  %v2189_v23 = vld [vmem:[#allocation3 + $0x139] sm:$0xff] }
 0x2ab   : > { %v1573_v32 = vpop.f32.mrf.mxu2  ;;  %v2225_v46 = vpack.c.bf16 %v2190_v22, %v2189_v23  ;;  %v6908_v23 = vld [vmem:[#allocation14_spill] sm:$0xff] }
 0x2ac   : > { %v1675_v1 = vadd.f32 %v1570_v40, %v1204_v24  ;;  %v5976_v14 = vadd.f32 %v2430_v26, %v2105_v60  ;;  %v1363_v40 = vpack.c.bf16 %v1328_v56, %v1327_v41 }
 0x2af   : > { %v2437_v30 = vpop.f32.mrf.mxu0 }
 0x2b1   : > { %v2001_v4 = vpop.f32.mrf.mxu3  ;;  %v1206_v21 = vpop.f32.mrf.mxu1 }
 0x2b2   : > { %v2106_v11 = vadd.f32 %v2001_v4, %v1675_v1  ;;  %v1207_v58 = vadd.f32 %v1206_v21, %v6904_v39  ;;  %v6906_v1 = vld [vmem:[#allocation12_spill] sm:$0xff]  ;;  %v1330_v39 = vld [vmem:[#allocation3 + $0x142] sm:$0xff] }
 0x2b3   : > { %v1575_v45 = vpop.f32.mrf.mxu2 }
 0x2b4   : > { %v1676_v0 = vadd.f32 %v1573_v32, %v1207_v58  ;;  %4824 = vmatmul.msk.bf16.gmra.mxu1 %vm294_vm2, %v1792_v13  ;;  %v5980_v26 = vadd.f32 %v2432_v27, %v2106_v11  ;;  %v1758_v13 = vld [vmem:[#allocation3 + $0x138] sm:$0xff]  ;;  %v1759_v27 = vld [vmem:[#allocation3 + $0x140] sm:$0xff] }
 0x2b5   : > { %v1329_v11 = vld [vmem:[#allocation3 + $0x13a] sm:$0xff] }
 0x2b6   : > { %6905 = vst [vmem:[#allocation8_spill] sm:$0xff] %v5980_v26  ;;  %4890 = vmatmul.msk.bf16.gmra.mxu3 %vm294_vm2, %v1793_v59  ;;  %v3862_v26 = vld [vmem:[#allocation2 + $0x52] sm:$0xff] }
 0x2b7   : > { %v2440_v52 = vpop.f32.mrf.mxu0 }
 0x2b8   : > { %4858 = vmatmul.msk.bf16.gmra.mxu2 %vm294_vm2, %v1363_v40  ;;  %v1794_v40 = vpack.c.bf16 %v1759_v27, %v1758_v13  ;;  %v6910_v27 = vld [vmem:[#allocation16_spill] sm:$0xff] }
 0x2b9   : > { %v2004_v60 = vpop.f32.mrf.mxu3  ;;  %v1208_v50 = vpop.f32.mrf.mxu1 }
 0x2ba   : > { %v2107_v24 = vadd.f32 %v2004_v60, %v1676_v0  ;;  %v1209_v54 = vadd.f32 %v1208_v50, %v6906_v1  ;;  %4924 = vmatmul.msk.bf16.gmra.mxu0 %vm294_vm2, %v2225_v46  ;;  %v2191_v60 = vld [vmem:[#allocation3 + $0x151] sm:$0xff]  ;;  %v2192_v50 = vld [vmem:[#allocation3 + $0x159] sm:$0xff] }
 0x2bb   : > { %v1578_v17 = vpop.f32.mrf.mxu2 }
 0x2bc   : > { %v1677_v32 = vadd.f32 %v1575_v45, %v1209_v54  ;;  %v5986_v4 = vadd.f32 %v2435_v55, %v2107_v24  ;;  %v1364_v55 = vpack.c.bf16 %v1330_v39, %v1329_v11  ;;  %v2226_v24 = vpack.c.bf16 %v2192_v50, %v2191_v60  ;;  %v1760_v11 = vld [vmem:[#allocation3 + $0x150] sm:$0xff]  ;;  %v1761_v39 = vld [vmem:[#allocation3 + $0x158] sm:$0xff] }
 0x2bd   : > { %v1331_v50 = vld [vmem:[#allocation3 + $0x152] sm:$0xff] }
 0x2be   : > { %6907 = vst [vmem:[#allocation10_spill] sm:$0xff] %v5986_v4 }
 0x2bf   : > { %v2442_v21 = vpop.f32.mrf.mxu0 }
 0x2c1   : > { %v2006_v41 = vpop.f32.mrf.mxu3  ;;  %v1211_v56 = vpop.f32.mrf.mxu1 }
 0x2c2   : > { %v2108_v58 = vadd.f32 %v2006_v41, %v1677_v32  ;;  %v1212_v22 = vadd.f32 %v1211_v56, %v6908_v23  ;;  %v500_v23 = vld [vmem:[%s5390_s15 + $0xf8] sm:$0xff] }
 0x2c3   : > { %v1580_v0 = vpop.f32.mrf.mxu2  ;;  %533 = vst.msk [vmem:[#allocation3 + $0x189] sm:$0xff] %vm294_vm2, %v500_v23 }
 0x2c4   : > { %v1678_v46 = vadd.f32 %v1578_v17, %v1212_v22  ;;  %4825 = vmatmul.msk.bf16.gmra.mxu1 %vm294_vm2, %v1793_v59  ;;  %v5990_v45 = vadd.f32 %v2437_v30, %v2108_v58  ;;  %v499_v17 = vld [vmem:[%s5390_s15 + $0xf0] sm:$0xff] }
 0x2c5   : > { %532 = vst.msk [vmem:[#allocation3 + $0x181] sm:$0xff] %vm294_vm2, %v499_v17 }
 0x2c6   : > { %6909 = vst [vmem:[#allocation12_spill] sm:$0xff] %v5990_v45  ;;  %4891 = vmatmul.msk.bf16.gmra.mxu3 %vm294_vm2, %v1794_v40  ;;  %v2193_v45 = vld [vmem:[#allocation3 + $0x169] sm:$0xff] }
 0x2c7   : > { %v2445_v1 = vpop.f32.mrf.mxu0 }
 0x2c8   : > { %4859 = vmatmul.msk.bf16.gmra.mxu2 %vm294_vm2, %v1364_v55 }
 0x2c9   : > { %v2009_v54 = vpop.f32.mrf.mxu3  ;;  %v1213_v32 = vpop.f32.mrf.mxu1 }
 0x2ca   : > { %v2109_v13 = vadd.f32 %v2009_v54, %v1678_v46  ;;  %v1214_v41 = vadd.f32 %v1213_v32, %v6910_v27  ;;  %4925 = vmatmul.msk.bf16.gmra.mxu0 %vm294_vm2, %v2226_v24  ;;  %v1332_v46 = vld [vmem:[#allocation3 + $0x15a] sm:$0xff]  ;;  %v1795_v32 = vpack.c.bf16 %v1761_v39, %v1760_v11 }
 0x2cb   : > { %v1583_v56 = vpop.f32.mrf.mxu2  ;;  %v6912_v54 = vld [vmem:[#allocation18_spill] sm:$0xff] }
 0x2cc   : > { %v1679_v59 = vadd.f32 %v1580_v0, %v1214_v41  ;;  %v5999_v30 = vadd.f32 %v2440_v52, %v2109_v13  ;;  %v2194_v0 = vld [vmem:[#allocation3 + $0x171] sm:$0xff]  ;;  %v1365_v52 = vpack.c.bf16 %v1332_v46, %v1331_v50 }
 0x2cd   : > { %v2227_v17 = vpack.c.bf16 %v2194_v0, %v2193_v45  ;;  %v1333_v45 = vld [vmem:[#allocation3 + $0x16a] sm:$0xff] }
 0x2ce   : > { %6911 = vst [vmem:[#allocation14_spill] sm:$0xff] %v5999_v30 }
 0x2cf   : > { %v2447_v58 = vpop.f32.mrf.mxu0 }
 0x2d1   : > { %v2011_v22 = vpop.f32.mrf.mxu3  ;;  %v1216_v60 = vpop.f32.mrf.mxu1 }
 0x2d2   : > { %v2110_v55 = vadd.f32 %v2011_v22, %v1679_v59  ;;  %v1217_v24 = vadd.f32 %v1216_v60, %v6912_v54  ;;  %v6914_v60 = vld [vmem:[#allocation20_spill] sm:$0xff] }
 0x2d3   : > { %v1585_v27 = vpop.f32.mrf.mxu2 }
 0x2d4   : > { %v1680_v41 = vadd.f32 %v1583_v56, %v1217_v24  ;;  %4826 = vmatmul.msk.bf16.gmra.mxu1 %vm294_vm2, %v1794_v40  ;;  %v6004_v13 = vadd.f32 %v2442_v21, %v2110_v55  ;;  %v1762_v40 = vld [vmem:[#allocation3 + $0x168] sm:$0xff]  ;;  %v1763_v21 = vld [vmem:[#allocation3 + $0x170] sm:$0xff] }
 0x2d5   : > { %v1334_v24 = vld [vmem:[#allocation3 + $0x172] sm:$0xff]  ;;  %v1796_v4 = vpack.c.bf16 %v1763_v21, %v1762_v40 }
 0x2d6   : > { %6913 = vst [vmem:[#allocation16_spill] sm:$0xff] %v6004_v13  ;;  %4892 = vmatmul.msk.bf16.gmra.mxu3 %vm294_vm2, %v1795_v32 }
 0x2d7   : > { %v2450_v23 = vpop.f32.mrf.mxu0 }
 0x2d8   : > { %4860 = vmatmul.msk.bf16.gmra.mxu2 %vm294_vm2, %v1365_v52  ;;  %v6916_v52 = vld [vmem:[#allocation22_spill] sm:$0xff] }
 0x2d9   : > { %v2014_v30 = vpop.f32.mrf.mxu3  ;;  %v1218_v59 = vpop.f32.mrf.mxu1 }
 0x2da   : > { %v2111_v22 = vadd.f32 %v2014_v30, %v1680_v41  ;;  %v1219_v11 = vadd.f32 %v1218_v59, %v6914_v60  ;;  %4926 = vmatmul.msk.bf16.gmra.mxu0 %vm294_vm2, %v2227_v17  ;;  %v2195_v41 = vld [vmem:[#allocation3 + $0x181] sm:$0xff]  ;;  %v2196_v59 = vld [vmem:[#allocation3 + $0x189] sm:$0xff] }
 0x2db   : > { %v1588_v39 = vpop.f32.mrf.mxu2  ;;  %v2228_v17 = vpack.c.bf16 %v2196_v59, %v2195_v41  ;;  %v2997_v41 = vld [vmem:[#allocation2 + $0x38] sm:$0xff] }
 0x2dc   : > { %v1681_v56 = vadd.f32 %v1585_v27, %v1219_v11  ;;  %v6010_v54 = vadd.f32 %v2445_v1, %v2111_v22  ;;  %v1366_v27 = vpack.c.bf16 %v1334_v24, %v1333_v45 }
 0x2de   : > { %6915 = vst [vmem:[#allocation18_spill] sm:$0xff] %v6010_v54 }
 0x2df   : > { %v2452_v50 = vpop.f32.mrf.mxu0 }
 0x2e1   : > { %v2016_v46 = vpop.f32.mrf.mxu3  ;;  %v1221_v55 = vpop.f32.mrf.mxu1 }
 0x2e2   : > { %v2112_v0 = vadd.f32 %v2016_v46, %v1681_v56  ;;  %v1222_v13 = vadd.f32 %v1221_v55, %v6916_v52  ;;  %v6918_v55 = vld [vmem:[#allocation24_spill] sm:$0xff]  ;;  %v2996_v52 = vld [vmem:[#allocation2 + $0x30] sm:$0xff] }
 0x2e3   : > { %v1590_v30 = vpop.f32.mrf.mxu2 }
 0x2e4   : > { %v1682_v60 = vadd.f32 %v1588_v39, %v1222_v13  ;;  %4827 = vmatmul.msk.bf16.gmra.mxu1 %vm294_vm2, %v1795_v32  ;;  %v6014_v1 = vadd.f32 %v2447_v58, %v2112_v0  ;;  %v1764_v32 = vld [vmem:[#allocation3 + $0x180] sm:$0xff]  ;;  %v1765_v58 = vld [vmem:[#allocation3 + $0x188] sm:$0xff] }
 0x2e5   : > { %v1797_v54 = vpack.c.bf16 %v1765_v58, %v1764_v32 }
 0x2e6   : > { %6917 = vst [vmem:[#allocation20_spill] sm:$0xff] %v6014_v1  ;;  %4893 = vmatmul.msk.bf16.gmra.mxu3 %vm294_vm2, %v1796_v4 }
 0x2e7   : > { %v2455_v22 = vpop.f32.mrf.mxu0 }
 0x2e8   : > { %4861 = vmatmul.msk.bf16.gmra.mxu2 %vm294_vm2, %v1366_v27  ;;  %v6920_v27 = vld [vmem:[#allocation26_spill] sm:$0xff] }
 0x2e9   : > { %v2019_v11 = vpop.f32.mrf.mxu3  ;;  %v1223_v56 = vpop.f32.mrf.mxu1 }
 0x2ea   : > { %v2113_v46 = vadd.f32 %v2019_v11, %v1682_v60  ;;  %v1224_v40 = vadd.f32 %v1223_v56, %v6918_v55  ;;  %4927 = vmatmul.msk.bf16.gmra.mxu0 %vm294_vm2, %v2228_v17  ;;  %v3859_v11 = vld [vmem:[#allocation2 + $0x32] sm:$0xff]  ;;  %v3860_v56 = vld [vmem:[#allocation2 + $0x3a] sm:$0xff] }
 0x2eb   : > { %v1593_v21 = vpop.f32.mrf.mxu2  ;;  %v3923_v17 = vpack.c.bf16 %v3860_v56, %v3859_v11  ;;  %v2998_v56 = vld [vmem:[#allocation2 + $0x48] sm:$0xff] }
 0x2ec   : > { %v1683_v13 = vadd.f32 %v1590_v30, %v1224_v40  ;;  %v6020_v39 = vadd.f32 %v2450_v23, %v2113_v46  ;;  %v3061_v30 = vpack.c.bf16 %v2997_v41, %v2996_v52  ;;  %v3428_v52 = vld [vmem:[#allocation2 + $0x31] sm:$0xff]  ;;  %v3429_v41 = vld [vmem:[#allocation2 + $0x39] sm:$0xff] }
 0x2ee   : > { %6919 = vst [vmem:[#allocation22_spill] sm:$0xff] %v6020_v39  ;;  %v3861_v39 = vld [vmem:[#allocation2 + $0x4a] sm:$0xff] }
 0x2ef   : > { %v2457_v45 = vpop.f32.mrf.mxu0 }
 0x2f1   : > { %v2021_v24 = vpop.f32.mrf.mxu3  ;;  %v1226_v0 = vpop.f32.mrf.mxu1 }
 0x2f2   : > { %v2114_v59 = vadd.f32 %v2021_v24, %v1683_v13  ;;  %v1227_v1 = vadd.f32 %v1226_v0, %v6920_v27  ;;  %v6922_v0 = vld [vmem:[#allocation28_spill] sm:$0xff] }
 0x2f3   : > { %v1595_v60 = vpop.f32.mrf.mxu2 }
 0x2f4   : > { %v1684_v55 = vadd.f32 %v1593_v21, %v1227_v1  ;;  %4828 = vmatmul.msk.bf16.gmra.mxu1 %vm294_vm2, %v1796_v4  ;;  %v6024_v23 = vadd.f32 %v2452_v50, %v2114_v59  ;;  %v2564_v4 = vld [vmem:[#allocation2 + $0x1a] sm:$0xff]  ;;  %v2565_v50 = vld [vmem:[#allocation2 + $0x22] sm:$0xff] }
 0x2f5   : > { %v2628_v59 = vpack.c.bf16 %v2565_v50, %v2564_v4 }
 0x2f6   : > { %6921 = vst [vmem:[#allocation24_spill] sm:$0xff] %v6024_v23  ;;  %4894 = vmatmul.msk.bf16.gmra.mxu3 %vm294_vm2, %v1797_v54 }
 0x2f7   : > { %v2460_v46 = vpop.f32.mrf.mxu0 }
 0x2f8   : > { %4962 = vmatmul.msk.bf16.vlgmr.msra.gmra.mxu2 %vm294_vm2, %v3061_v30  ;;  %v2999_v30 = vld [vmem:[#allocation2 + $0x50] sm:$0xff] }
 0x2f9   : > { %v2024_v40 = vpop.f32.mrf.mxu3  ;;  %v1228_v13 = vpop.f32.mrf.mxu1 }
 0x2fa   : > { %v2115_v24 = vadd.f32 %v2024_v40, %v1684_v55  ;;  %v1229_v32 = vadd.f32 %v1228_v13, %v6922_v0  ;;  %5028 = vmatmul.msk.bf16.vlgmr.msra.gmra.mxu0 %vm294_vm2, %v3923_v17  ;;  %v6923_v55 = vld [vmem:[#allocation4_spill] sm:$0xff]  ;;  %v3492_v13 = vpack.c.bf16 %v3429_v41, %v3428_v52 }
 0x2fb   : > { %v1598_v58 = vpop.f32.mrf.mxu2 }
 0x2fc   : > { %v1685_v1 = vadd.f32 %v1595_v60, %v1229_v32  ;;  %v6030_v21 = vadd.f32 %v2455_v22, %v2115_v24  ;;  %v3062_v22 = vpack.c.bf16 %v2999_v30, %v2998_v56  ;;  %v3924_v32 = vpack.c.bf16 %v3862_v26, %v3861_v39  ;;  %v3000_v26 = vld [vmem:[#allocation2 + $0x60] sm:$0xff]  ;;  %v3001_v39 = vld [vmem:[#allocation2 + $0x68] sm:$0xff] }
 0x2ff   : > { %v2462_v54 = vpop.f32.mrf.mxu0 }
 0x301   : > { %v2026_v27 = vpop.f32.mrf.mxu3  ;;  %v1231_v11 = vpop.f32.mrf.mxu1 }
 0x302   : > { %v2116_v23 = vadd.f32 %v2026_v27, %v1685_v1  ;;  %v1232_v40 = vadd.f32 %v1231_v11, %v6923_v55  ;;  %v6925_v11 = vld [vmem:[#allocation5_spill] sm:$0xff] }
 0x303   : > { %v1600_v0 = vpop.f32.mrf.mxu2 }
 0x304   : > { %v1686_v60 = vadd.f32 %v1598_v58, %v1232_v40  ;;  %4929 = vmatmul.msk.bf16.vlgmr.msra.gmra.mxu1 %vm294_vm2, %v2628_v59  ;;  %v6034_v24 = vadd.f32 %v2457_v45, %v2116_v23  ;;  %v3430_v59 = vld [vmem:[#allocation2 + $0x49] sm:$0xff]  ;;  %v3431_v45 = vld [vmem:[#allocation2 + $0x51] sm:$0xff] }
 0x306   : > { %6924 = vst [vmem:[#allocation26_spill] sm:$0xff] %v6034_v24  ;;  %4995 = vmatmul.msk.bf16.vlgmr.msra.gmra.mxu3 %vm294_vm2, %v3492_v13  ;;  %v6927_v13 = vld [vmem:[#allocation6_spill] sm:$0xff]  ;;  %v3493_v24 = vpack.c.bf16 %v3431_v45, %v3430_v59 }
 0x307   : > { %v2465_v4 = vpop.f32.mrf.mxu0 }
 0x308   : > { %4963 = vmatmul.msk.bf16.gmra.mxu2 %vm294_vm2, %v3062_v22 }
 0x309   : > { %v2029_v50 = vpop.f32.mrf.mxu3  ;;  %v1233_v1 = vpop.f32.mrf.mxu1 }
 0x30a   : > { %v2117_v27 = vadd.f32 %v2029_v50, %v1686_v60  ;;  %v1234_v52 = vadd.f32 %v1233_v1, %v6925_v11  ;;  %5029 = vmatmul.msk.bf16.gmra.mxu0 %vm294_vm2, %v3924_v32  ;;  %v3863_v50 = vld [vmem:[#allocation2 + $0x62] sm:$0xff]  ;;  %v3864_v1 = vld [vmem:[#allocation2 + $0x6a] sm:$0xff] }
 0x30b   : > { %v1603_v41 = vpop.f32.mrf.mxu2 }
 0x30c   : > { %v1687_v58 = vadd.f32 %v1600_v0, %v1234_v52  ;;  %v6040_v55 = vadd.f32 %v2460_v46, %v2117_v27  ;;  %v3063_v0 = vpack.c.bf16 %v3001_v39, %v3000_v26  ;;  %v3925_v27 = vpack.c.bf16 %v3864_v1, %v3863_v50  ;;  %v6931_v1 = vld [vmem:[#allocation9_spill] sm:$0xff] }
 0x30e   : > { %6926 = vst [vmem:[#allocation28_spill] sm:$0xff] %v6040_v55 }
 0x30f   : > { %v2467_v23 = vpop.f32.mrf.mxu0 }
 0x311   : > { %v2031_v56 = vpop.f32.mrf.mxu3  ;;  %v1236_v30 = vpop.f32.mrf.mxu1 }
 0x312   : > { %v2118_v40 = vadd.f32 %v2031_v56, %v1687_v58  ;;  %v1237_v22 = vadd.f32 %v1236_v30, %v6927_v13  ;;  %v6929_v30 = vld [vmem:[#allocation7_spill] sm:$0xff] }
 0x313   : > { %v1605_v60 = vpop.f32.mrf.mxu2 }
 0x314   : > { %v1688_v11 = vadd.f32 %v1603_v41, %v1237_v22  ;;  %4930 = vmatmul.msk.bf16.gmra.mxu1 %vm294_vm2, %v3923_v17  ;;  %v6044_v46 = vadd.f32 %v2462_v54, %v2118_v40  ;;  %v3432_v17 = vld [vmem:[#allocation2 + $0x61] sm:$0xff]  ;;  %v3433_v54 = vld [vmem:[#allocation2 + $0x69] sm:$0xff]  ;;  %v3002_v40 = vld [vmem:[#allocation2 + $0x78] sm:$0xff] }
 0x315   : > { %v3003_v22 = vld [vmem:[#allocation2 + $0x80] sm:$0xff] }
 0x316   : > { %6928 = vst [vmem:[#allocation4_spill] sm:$0xff] %v6044_v46  ;;  %4996 = vmatmul.msk.bf16.gmra.mxu3 %vm294_vm2, %v3493_v24  ;;  %v3494_v46 = vpack.c.bf16 %v3433_v54, %v3432_v17 }
 0x317   : > { %v2470_v52 = vpop.f32.mrf.mxu0 }
 0x318   : > { %4964 = vmatmul.msk.bf16.gmra.mxu2 %vm294_vm2, %v3063_v0 }
 0x319   : > { %v2034_v55 = vpop.f32.mrf.mxu3  ;;  %v1238_v58 = vpop.f32.mrf.mxu1 }
 0x31a   : > { %v2119_v56 = vadd.f32 %v2034_v55, %v1688_v11  ;;  %v1239_v59 = vadd.f32 %v1238_v58, %v6929_v30  ;;  %5030 = vmatmul.msk.bf16.gmra.mxu0 %vm294_vm2, %v3925_v27  ;;  %v3865_v11 = vld [vmem:[#allocation2 + $0x7a] sm:$0xff]  ;;  %v3866_v58 = vld [vmem:[#allocation2 + $0x82] sm:$0xff] }
 0x31b   : > { %v1608_v45 = vpop.f32.mrf.mxu2 }
 0x31c   : > { %v1689_v41 = vadd.f32 %v1605_v60, %v1239_v59  ;;  %v6050_v13 = vadd.f32 %v2465_v4, %v2119_v56  ;;  %v3064_v60 = vpack.c.bf16 %v3003_v22, %v3002_v40  ;;  %v3926_v56 = vpack.c.bf16 %v3866_v58, %v3865_v11  ;;  %v6935_v58 = vld [vmem:[#allocation13_spill] sm:$0xff] }
 0x31e   : > { %6930 = vst [vmem:[#allocation5_spill] sm:$0xff] %v6050_v13 }
 0x31f   : > { %v2472_v26 = vpop.f32.mrf.mxu0 }
 0x321   : > { %v2036_v39 = vpop.f32.mrf.mxu3  ;;  %v1241_v24 = vpop.f32.mrf.mxu1 }
 0x322   : > { %v2120_v50 = vadd.f32 %v2036_v39, %v1689_v41  ;;  %v1242_v0 = vadd.f32 %v1241_v24, %v6931_v1  ;;  %v6933_v24 = vld [vmem:[#allocation11_spill] sm:$0xff] }
 0x323   : > { %v1610_v55 = vpop.f32.mrf.mxu2 }
 0x324   : > { %v1690_v30 = vadd.f32 %v1608_v45, %v1242_v0  ;;  %4931 = vmatmul.msk.bf16.gmra.mxu1 %vm294_vm2, %v3924_v32  ;;  %v6054_v4 = vadd.f32 %v2467_v23, %v2120_v50  ;;  %v3434_v32 = vld [vmem:[#allocation2 + $0x79] sm:$0xff]  ;;  %v3435_v23 = vld [vmem:[#allocation2 + $0x81] sm:$0xff]  ;;  %v3004_v50 = vld [vmem:[#allocation2 + $0x90] sm:$0xff] }
 0x325   : > { %v3005_v0 = vld [vmem:[#allocation2 + $0x98] sm:$0xff] }
 0x326   : > { %6932 = vst [vmem:[#allocation6_spill] sm:$0xff] %v6054_v4  ;;  %4997 = vmatmul.msk.bf16.gmra.mxu3 %vm294_vm2, %v3494_v46  ;;  %v3495_v4 = vpack.c.bf16 %v3435_v23, %v3434_v32 }
 0x327   : > { %v2475_v59 = vpop.f32.mrf.mxu0 }
 0x328   : > { %4965 = vmatmul.msk.bf16.gmra.mxu2 %vm294_vm2, %v3064_v60 }
 0x329   : > { %v2039_v13 = vpop.f32.mrf.mxu3  ;;  %v1243_v41 = vpop.f32.mrf.mxu1 }
 0x32a   : > { %v2121_v39 = vadd.f32 %v2039_v13, %v1690_v30  ;;  %v1244_v17 = vadd.f32 %v1243_v41, %v6933_v24  ;;  %5031 = vmatmul.msk.bf16.gmra.mxu0 %vm294_vm2, %v3926_v56  ;;  %v3867_v30 = vld [vmem:[#allocation2 + $0x92] sm:$0xff]  ;;  %v3868_v41 = vld [vmem:[#allocation2 + $0x9a] sm:$0xff] }
 0x32b   : > { %v1613_v54 = vpop.f32.mrf.mxu2 }
 0x32c   : > { %v1691_v45 = vadd.f32 %v1610_v55, %v1244_v17  ;;  %v6060_v1 = vadd.f32 %v2470_v52, %v2121_v39  ;;  %v3065_v55 = vpack.c.bf16 %v3005_v0, %v3004_v50  ;;  %v3927_v39 = vpack.c.bf16 %v3868_v41, %v3867_v30  ;;  %v6939_v41 = vld [vmem:[#allocation17_spill] sm:$0xff] }
 0x32e   : > { %6934 = vst [vmem:[#allocation7_spill] sm:$0xff] %v6060_v1 }
 0x32f   : > { %v2477_v40 = vpop.f32.mrf.mxu0 }
 0x331   : > { %v2041_v22 = vpop.f32.mrf.mxu3  ;;  %v1246_v46 = vpop.f32.mrf.mxu1 }
 0x332   : > { %v2122_v11 = vadd.f32 %v2041_v22, %v1691_v45  ;;  %v1247_v60 = vadd.f32 %v1246_v46, %v6935_v58  ;;  %v6937_v46 = vld [vmem:[#allocation15_spill] sm:$0xff] }
 0x333   : > { %v1615_v13 = vpop.f32.mrf.mxu2 }
 0x334   : > { %v1692_v24 = vadd.f32 %v1613_v54, %v1247_v60  ;;  %4932 = vmatmul.msk.bf16.gmra.mxu1 %vm294_vm2, %v3925_v27  ;;  %v6064_v52 = vadd.f32 %v2472_v26, %v2122_v11  ;;  %v3436_v27 = vld [vmem:[#allocation2 + $0x91] sm:$0xff]  ;;  %v3437_v26 = vld [vmem:[#allocation2 + $0x99] sm:$0xff]  ;;  %v3006_v11 = vld [vmem:[#allocation2 + $0xa8] sm:$0xff] }
 0x335   : > { %v3007_v60 = vld [vmem:[#allocation2 + $0xb0] sm:$0xff] }
 0x336   : > { %6936 = vst [vmem:[#allocation9_spill] sm:$0xff] %v6064_v52  ;;  %4998 = vmatmul.msk.bf16.gmra.mxu3 %vm294_vm2, %v3495_v4  ;;  %v3496_v52 = vpack.c.bf16 %v3437_v26, %v3436_v27 }
 0x337   : > { %v2480_v17 = vpop.f32.mrf.mxu0 }
 0x338   : > { %4966 = vmatmul.msk.bf16.gmra.mxu2 %vm294_vm2, %v3065_v55 }
 0x339   : > { %v2044_v1 = vpop.f32.mrf.mxu3  ;;  %v1248_v45 = vpop.f32.mrf.mxu1 }
 0x33a   : > { %v2123_v22 = vadd.f32 %v2044_v1, %v1692_v24  ;;  %v1249_v32 = vadd.f32 %v1248_v45, %v6937_v46  ;;  %5032 = vmatmul.msk.bf16.gmra.mxu0 %vm294_vm2, %v3927_v39  ;;  %v3869_v24 = vld [vmem:[#allocation2 + $0xaa] sm:$0xff]  ;;  %v3870_v45 = vld [vmem:[#allocation2 + $0xb2] sm:$0xff] }
 0x33b   : > { %v1618_v23 = vpop.f32.mrf.mxu2 }
 0x33c   : > { %v1693_v54 = vadd.f32 %v1615_v13, %v1249_v32  ;;  %v6070_v58 = vadd.f32 %v2475_v59, %v2123_v22  ;;  %v3066_v13 = vpack.c.bf16 %v3007_v60, %v3006_v11  ;;  %v3928_v22 = vpack.c.bf16 %v3870_v45, %v3869_v24  ;;  %v6943_v45 = vld [vmem:[#allocation21_spill] sm:$0xff] }
 0x33e   : > { %6938 = vst [vmem:[#allocation11_spill] sm:$0xff] %v6070_v58 }
 0x33f   : > { %v2482_v50 = vpop.f32.mrf.mxu0 }
 0x341   : > { %v2046_v0 = vpop.f32.mrf.mxu3  ;;  %v1251_v4 = vpop.f32.mrf.mxu1 }
 0x342   : > { %v2124_v30 = vadd.f32 %v2046_v0, %v1693_v54  ;;  %v1252_v55 = vadd.f32 %v1251_v4, %v6939_v41  ;;  %v6941_v4 = vld [vmem:[#allocation19_spill] sm:$0xff] }
 0x343   : > { %v1620_v1 = vpop.f32.mrf.mxu2 }
 0x344   : > { %v1694_v46 = vadd.f32 %v1618_v23, %v1252_v55  ;;  %4933 = vmatmul.msk.bf16.gmra.mxu1 %vm294_vm2, %v3926_v56  ;;  %v6074_v59 = vadd.f32 %v2477_v40, %v2124_v30  ;;  %v3438_v56 = vld [vmem:[#allocation2 + $0xa9] sm:$0xff]  ;;  %v3439_v40 = vld [vmem:[#allocation2 + $0xb1] sm:$0xff]  ;;  %v3008_v30 = vld [vmem:[#allocation2 + $0xc0] sm:$0xff] }
 0x345   : > { %v3009_v55 = vld [vmem:[#allocation2 + $0xc8] sm:$0xff] }
 0x346   : > { %6940 = vst [vmem:[#allocation13_spill] sm:$0xff] %v6074_v59  ;;  %4999 = vmatmul.msk.bf16.gmra.mxu3 %vm294_vm2, %v3496_v52  ;;  %v3497_v59 = vpack.c.bf16 %v3439_v40, %v3438_v56 }
 0x347   : > { %v2485_v32 = vpop.f32.mrf.mxu0 }
 0x348   : > { %4967 = vmatmul.msk.bf16.gmra.mxu2 %vm294_vm2, %v3066_v13 }
 0x349   : > { %v2049_v58 = vpop.f32.mrf.mxu3  ;;  %v1253_v54 = vpop.f32.mrf.mxu1 }
 0x34a   : > { %v2125_v0 = vadd.f32 %v2049_v58, %v1694_v46  ;;  %v1254_v27 = vadd.f32 %v1253_v54, %v6941_v4  ;;  %5033 = vmatmul.msk.bf16.gmra.mxu0 %vm294_vm2, %v3928_v22  ;;  %v3871_v46 = vld [vmem:[#allocation2 + $0xc2] sm:$0xff]  ;;  %v3872_v54 = vld [vmem:[#allocation2 + $0xca] sm:$0xff] }
 0x34b   : > { %v1623_v26 = vpop.f32.mrf.mxu2 }
 0x34c   : > { %v1695_v23 = vadd.f32 %v1620_v1, %v1254_v27  ;;  %v6080_v41 = vadd.f32 %v2480_v17, %v2125_v0  ;;  %v3067_v1 = vpack.c.bf16 %v3009_v55, %v3008_v30  ;;  %v3929_v0 = vpack.c.bf16 %v3872_v54, %v3871_v46  ;;  %v6947_v54 = vld [vmem:[#allocation25_spill] sm:$0xff] }
 0x34e   : > { %6942 = vst [vmem:[#allocation15_spill] sm:$0xff] %v6080_v41 }
 0x34f   : > { %v2487_v11 = vpop.f32.mrf.mxu0 }
 0x351   : > { %v2051_v60 = vpop.f32.mrf.mxu3  ;;  %v1256_v52 = vpop.f32.mrf.mxu1 }
 0x352   : > { %v2126_v24 = vadd.f32 %v2051_v60, %v1695_v23  ;;  %v1257_v13 = vadd.f32 %v1256_v52, %v6943_v45  ;;  %v6945_v52 = vld [vmem:[#allocation23_spill] sm:$0xff] }
 0x353   : > { %v1625_v58 = vpop.f32.mrf.mxu2 }
 0x354   : > { %v1696_v4 = vadd.f32 %v1623_v26, %v1257_v13  ;;  %4934 = vmatmul.msk.bf16.gmra.mxu1 %vm294_vm2, %v3927_v39  ;;  %v6084_v17 = vadd.f32 %v2482_v50, %v2126_v24  ;;  %v3440_v39 = vld [vmem:[#allocation2 + $0xc1] sm:$0xff]  ;;  %v3441_v50 = vld [vmem:[#allocation2 + $0xc9] sm:$0xff]  ;;  %v3010_v24 = vld [vmem:[#allocation2 + $0xd8] sm:$0xff] }
 0x355   : > { %v3011_v13 = vld [vmem:[#allocation2 + $0xe0] sm:$0xff] }
 0x356   : > { %6944 = vst [vmem:[#allocation17_spill] sm:$0xff] %v6084_v17  ;;  %5000 = vmatmul.msk.bf16.gmra.mxu3 %vm294_vm2, %v3497_v59  ;;  %v3498_v17 = vpack.c.bf16 %v3441_v50, %v3440_v39 }
 0x357   : > { %v2490_v27 = vpop.f32.mrf.mxu0 }
 0x358   : > { %4968 = vmatmul.msk.bf16.gmra.mxu2 %vm294_vm2, %v3067_v1 }
 0x359   : > { %v2054_v41 = vpop.f32.mrf.mxu3  ;;  %v1258_v23 = vpop.f32.mrf.mxu1 }
 0x35a   : > { %v2127_v60 = vadd.f32 %v2054_v41, %v1696_v4  ;;  %v1259_v56 = vadd.f32 %v1258_v23, %v6945_v52  ;;  %5034 = vmatmul.msk.bf16.gmra.mxu0 %vm294_vm2, %v3929_v0  ;;  %v3873_v4 = vld [vmem:[#allocation2 + $0xda] sm:$0xff]  ;;  %v3874_v23 = vld [vmem:[#allocation2 + $0xe2] sm:$0xff] }
 0x35b   : > { %v1628_v40 = vpop.f32.mrf.mxu2 }
 0x35c   : > { %v1697_v26 = vadd.f32 %v1625_v58, %v1259_v56  ;;  %v6090_v45 = vadd.f32 %v2485_v32, %v2127_v60  ;;  %v3068_v58 = vpack.c.bf16 %v3011_v13, %v3010_v24  ;;  %v3930_v60 = vpack.c.bf16 %v3874_v23, %v3873_v4  ;;  %v6951_v23 = vld [vmem:[#allocation29_spill] sm:$0xff] }
 0x35e   : > { %6946 = vst [vmem:[#allocation19_spill] sm:$0xff] %v6090_v45 }
 0x35f   : > { %v2492_v30 = vpop.f32.mrf.mxu0 }
 0x361   : > { %v2056_v55 = vpop.f32.mrf.mxu3  ;;  %v1261_v59 = vpop.f32.mrf.mxu1 }
 0x362   : > { %v2128_v46 = vadd.f32 %v2056_v55, %v1697_v26  ;;  %v1262_v1 = vadd.f32 %v1261_v59, %v6947_v54  ;;  %v6949_v59 = vld [vmem:[#allocation27_spill] sm:$0xff] }
 0x363   : > { %v1630_v41 = vpop.f32.mrf.mxu2 }
 0x364   : > { %v1698_v52 = vadd.f32 %v1628_v40, %v1262_v1  ;;  %4935 = vmatmul.msk.bf16.gmra.mxu1 %vm294_vm2, %v3928_v22  ;;  %v6094_v32 = vadd.f32 %v2487_v11, %v2128_v46  ;;  %v3442_v22 = vld [vmem:[#allocation2 + $0xd9] sm:$0xff]  ;;  %v3443_v11 = vld [vmem:[#allocation2 + $0xe1] sm:$0xff]  ;;  %v3012_v46 = vld [vmem:[#allocation2 + $0xf0] sm:$0xff] }
 0x365   : > { %v3013_v1 = vld [vmem:[#allocation2 + $0xf8] sm:$0xff] }
 0x366   : > { %6948 = vst [vmem:[#allocation21_spill] sm:$0xff] %v6094_v32  ;;  %5001 = vmatmul.msk.bf16.gmra.mxu3 %vm294_vm2, %v3498_v17  ;;  %v3499_v32 = vpack.c.bf16 %v3443_v11, %v3442_v22 }
 0x367   : > { %v2495_v56 = vpop.f32.mrf.mxu0 }
 0x368   : > { %4969 = vmatmul.msk.bf16.gmra.mxu2 %vm294_vm2, %v3068_v58 }
 0x369   : > { %v2059_v45 = vpop.f32.mrf.mxu3  ;;  %v1263_v26 = vpop.f32.mrf.mxu1 }
 0x36a   : > { %v2129_v55 = vadd.f32 %v2059_v45, %v1698_v52  ;;  %v1264_v39 = vadd.f32 %v1263_v26, %v6949_v59  ;;  %5035 = vmatmul.msk.bf16.gmra.mxu0 %vm294_vm2, %v3930_v60  ;;  %v3875_v52 = vld [vmem:[#allocation2 + $0xf2] sm:$0xff]  ;;  %v3876_v26 = vld [vmem:[#allocation2 + $0xfa] sm:$0xff] }
 0x36b   : > { %v1633_v50 = vpop.f32.mrf.mxu2 }
 0x36c   : > { %v1699_v40 = vadd.f32 %v1630_v41, %v1264_v39  ;;  %v6100_v54 = vadd.f32 %v2490_v27, %v2129_v55  ;;  %v3069_v41 = vpack.c.bf16 %v3013_v1, %v3012_v46  ;;  %v3931_v55 = vpack.c.bf16 %v3876_v26, %v3875_v52 }
 0x36e   : > { %6950 = vst [vmem:[#allocation23_spill] sm:$0xff] %v6100_v54 }
 0x36f   : > { %v2497_v24 = vpop.f32.mrf.mxu0 }
 0x371   : > { %v2061_v13 = vpop.f32.mrf.mxu3  ;;  %v1266_v17 = vpop.f32.mrf.mxu1 }
 0x372   : > { %v2130_v4 = vadd.f32 %v2061_v13, %v1699_v40  ;;  %v1267_v58 = vadd.f32 %v1266_v17, %v6951_v23  ;;  %v6953_v17 = vld [vmem:[#allocation30_spill] sm:$0xff] }
 0x373   : > { %v1635_v45 = vpop.f32.mrf.mxu2 }
 0x374   : > { %v1700_v59 = vadd.f32 %v1633_v50, %v1267_v58  ;;  %4936 = vmatmul.msk.bf16.gmra.mxu1 %vm294_vm2, %v3929_v0  ;;  %v6104_v27 = vadd.f32 %v2492_v30, %v2130_v4  ;;  %v3444_v0 = vld [vmem:[#allocation2 + $0xf1] sm:$0xff]  ;;  %v3445_v30 = vld [vmem:[#allocation2 + $0xf9] sm:$0xff]  ;;  %v3014_v4 = vld [vmem:[#allocation2 + $0x108] sm:$0xff] }
 0x375   : > { %v3015_v58 = vld [vmem:[#allocation2 + $0x110] sm:$0xff]  ;;  %v3500_v26 = vpack.c.bf16 %v3445_v30, %v3444_v0 }
 0x376   : > { %6952 = vst [vmem:[#allocation25_spill] sm:$0xff] %v6104_v27  ;;  %5002 = vmatmul.msk.bf16.gmra.mxu3 %vm294_vm2, %v3499_v32  ;;  %v3877_v27 = vld [vmem:[#allocation2 + $0x10a] sm:$0xff] }
 0x377   : > { %v4066_v39 = vpop.f32.mrf.mxu0 }
 0x378   : > { %4970 = vmatmul.msk.bf16.gmra.mxu2 %vm294_vm2, %v3069_v41 }
 0x379   : > { %v2064_v54 = vpop.f32.mrf.mxu3  ;;  %v1268_v40 = vpop.f32.mrf.mxu1 }
 0x37a   : > { %v2131_v13 = vadd.f32 %v2064_v54, %v1700_v59  ;;  %v1269_v22 = vadd.f32 %v1268_v40, %v6953_v17  ;;  %5036 = vmatmul.msk.bf16.gmra.mxu0 %vm294_vm2, %v3931_v55  ;;  %v3878_v54 = vld [vmem:[#allocation2 + $0x112] sm:$0xff]  ;;  %v3070_v40 = vpack.c.bf16 %v3015_v58, %v3014_v4 }
 0x37b   : > { %v3204_v11 = vpop.f32.mrf.mxu2 }
 0x37c   : > { %v1701_v50 = vadd.f32 %v1635_v45, %v1269_v22  ;;  %v6110_v23 = vadd.f32 %v2495_v56, %v2131_v13  ;;  %v6117_v45 = vpack.c.bf16 %v3878_v54, %v3877_v27 }
 0x37f   : > { %v4068_v46 = vpop.f32.mrf.mxu0 }
 0x381   : > { %v2066_v1 = vpop.f32.mrf.mxu3  ;;  %v2771_v32 = vpop.f32.mrf.mxu1 }
 0x382   : > { %v2132_v52 = vadd.f32 %v2066_v1, %v1701_v50  ;;  %v2931_v59 = vadd.f32 %v2771_v32, %v5787_v63  ;;  %v6123_v63 = vld [vmem:[%s6841_s3] ss:$0 sm:$0xff]  ;;  %v3447_v1 = vld [vmem:[#allocation2 + $0x111] sm:$0xff] }
 0x383   : > { %v3206_v41 = vpop.f32.mrf.mxu2 }
 0x384   : > { %4937 = vmatmul.msk.bf16.gmra.mxu1 %vm294_vm2, %v3930_v60  ;;  %v6114_v56 = vadd.f32 %v2497_v24, %v2132_v52  ;;  %v3364_v17 = vadd.f32 %v3204_v11, %v2931_v59  ;;  %v3446_v11 = vld [vmem:[#allocation2 + $0x109] sm:$0xff] }
 0x385   : > { %v3501_v59 = vpack.c.bf16 %v3447_v1, %v3446_v11 }
 0x386   : > { %6954 = vst [vmem:[#allocation27_spill] sm:$0xff] %v6114_v56  ;;  %5003 = vmatmul.msk.bf16.gmra.mxu3 %vm294_vm2, %v3500_v26  ;;  %v3016_v26 = vld [vmem:[#allocation2 + $0x120] sm:$0xff] }
 0x387   : > { %v4071_v13 = vpop.f32.mrf.mxu0 }
 0x388   : > { %4971 = vmatmul.msk.bf16.gmra.mxu2 %vm294_vm2, %v3070_v40 }
 0x389   : > { %v3635_v22 = vpop.f32.mrf.mxu3  ;;  %v2773_v50 = vpop.f32.mrf.mxu1 }
 0x38a   : > { %v3795_v0 = vadd.f32 %v3635_v22, %v3364_v17  ;;  %5037 = vmatmul.msk.bf16.gmra.mxu0 %vm294_vm2, %v6117_v45  ;;  %v2932_v27 = vadd.f32 %v2773_v50, %v5791_v25  ;;  %v3017_v25 = vld [vmem:[#allocation2 + $0x128] sm:$0xff] }
 0x38b   : > { %v3209_v60 = vpop.f32.mrf.mxu2  ;;  %v3879_v17 = vld [vmem:[#allocation2 + $0x122] sm:$0xff]  ;;  %v3880_v22 = vld [vmem:[#allocation2 + $0x12a] sm:$0xff] }
 0x38c   : > { %v4226_v24 = vadd.f32 %v4066_v39, %v3795_v0  ;;  %v3365_v58 = vadd.f32 %v3206_v41, %v2932_v27  ;;  %v3071_v41 = vpack.c.bf16 %v3017_v25, %v3016_v26  ;;  %v6148_v27 = vpack.c.bf16 %v3880_v22, %v3879_v17  ;;  %v3449_v25 = vld [vmem:[#allocation2 + $0x129] sm:$0xff] }
 0x38e   : > { %v6129_v30 = vadd.f32 %v6123_v63, %v4226_v24 }
 0x38f   : > { %v4073_v32 = vpop.f32.mrf.mxu0 }
 0x390   : > { %v6845_v4 = vmax.f32 %v6129_v30, 0.0 }
 0x391   : > { %v3637_v52 = vpop.f32.mrf.mxu3  ;;  %v2776_v39 = vpop.f32.mrf.mxu1 }
 0x392   : > { %4423 = vst.msk [vmem:[%s6135_s30] sm:$0xff] %vm4422_vm4, %v6845_v4  ;;  %v3796_v54 = vadd.f32 %v3637_v52, %v3365_v58  ;;  %v2933_v0 = vadd.f32 %v2776_v39, %v5798_v12 }
 0x393   : > { %v3211_v40 = vpop.f32.mrf.mxu2 }
 0x394   : > { %v4227_v50 = vadd.f32 %v4068_v46, %v3796_v54  ;;  %4938 = vmatmul.msk.bf16.gmra.mxu1 %vm294_vm2, %v3931_v55  ;;  %v3366_v1 = vadd.f32 %v3209_v60, %v2933_v0  ;;  %v3448_v60 = vld [vmem:[#allocation2 + $0x121] sm:$0xff]  ;;  %v3018_v0 = vld [vmem:[#allocation2 + $0x138] sm:$0xff] }
 0x396   : > { %v6145_v24 = vadd.f32 %v6123_v63, %v4227_v50  ;;  %5004 = vmatmul.msk.bf16.gmra.mxu3 %vm294_vm2, %v3501_v59 }
 0x397   : > { %v4076_v4 = vpop.f32.mrf.mxu0 }
 0x398   : > { %v6846_v11 = vmax.f32 %v6145_v24, 0.0  ;;  %4972 = vmatmul.msk.bf16.gmra.mxu2 %vm294_vm2, %v3071_v41  ;;  %v3019_v41 = vld [vmem:[#allocation2 + $0x140] sm:$0xff] }
 0x399   : > { %v3640_v58 = vpop.f32.mrf.mxu3  ;;  %v2778_v46 = vpop.f32.mrf.mxu1 }
 0x39a   : > { %4424 = vst.msk [vmem:[%s6135_s30 + $0x8] sm:$0xff] %vm4422_vm4, %v6846_v11  ;;  %v3797_v12 = vadd.f32 %v3640_v58, %v3366_v1  ;;  %5038 = vmatmul.msk.bf16.gmra.mxu0 %vm294_vm2, %v6148_v27  ;;  %v2934_v39 = vadd.f32 %v2778_v46, %v5802_v19  ;;  %v3502_v1 = vpack.c.bf16 %v3449_v25, %v3448_v60  ;;  %v3881_v58 = vld [vmem:[#allocation2 + $0x13a] sm:$0xff]  ;;  %v3882_v46 = vld [vmem:[#allocation2 + $0x142] sm:$0xff] }
 0x39b   : > { %v3214_v55 = vpop.f32.mrf.mxu2  ;;  %v6174_v11 = vpack.c.bf16 %v3882_v46, %v3881_v58 }
 0x39c   : > { %v4228_v52 = vadd.f32 %v4071_v13, %v3797_v12  ;;  %v3367_v17 = vadd.f32 %v3211_v40, %v2934_v39  ;;  %v3072_v40 = vpack.c.bf16 %v3019_v41, %v3018_v0 }
 0x39e   : > { %v6160_v26 = vadd.f32 %v6123_v63, %v4228_v52 }
 0x39f   : > { %v4078_v54 = vpop.f32.mrf.mxu0 }
 0x3a0   : > { %v6848_v59 = vmax.f32 %v6160_v26, 0.0 }
 0x3a1   : > { %v3642_v22 = vpop.f32.mrf.mxu3  ;;  %v2781_v50 = vpop.f32.mrf.mxu1 }
 0x3a2   : > { %4425 = vst.msk [vmem:[%s6135_s30 + $0x10] sm:$0xff] %vm4422_vm4, %v6848_v59  ;;  %v3798_v13 = vadd.f32 %v3642_v22, %v3367_v17  ;;  %v2935_v52 = vadd.f32 %v2781_v50, %v5809_v62 }
 0x3a3   : > { %v3216_v19 = vpop.f32.mrf.mxu2 }
 0x3a4   : > { %v4229_v12 = vadd.f32 %v4073_v32, %v3798_v13  ;;  %4939 = vmatmul.msk.bf16.gmra.mxu1 %vm294_vm2, %v6117_v45  ;;  %v3368_v25 = vadd.f32 %v3214_v55, %v2935_v52  ;;  %v3450_v55 = vld [vmem:[#allocation2 + $0x139] sm:$0xff]  ;;  %v3451_v13 = vld [vmem:[#allocation2 + $0x141] sm:$0xff] }
 0x3a6   : > { %v6171_v39 = vadd.f32 %v6123_v63, %v4229_v12  ;;  %5005 = vmatmul.msk.bf16.gmra.mxu3 %vm294_vm2, %v3502_v1 }
 0x3a7   : > { %v4081_v17 = vpop.f32.mrf.mxu0 }
 0x3a8   : > { %v6847_v60 = vmax.f32 %v6171_v39, 0.0  ;;  %4973 = vmatmul.msk.bf16.gmra.mxu2 %vm294_vm2, %v3072_v40  ;;  %v3020_v40 = vld [vmem:[#allocation2 + $0x150] sm:$0xff] }
 0x3a9   : > { %v3645_v32 = vpop.f32.mrf.mxu3  ;;  %v2783_v22 = vpop.f32.mrf.mxu1 }
 0x3aa   : > { %4426 = vst.msk [vmem:[%s6135_s30 + $0x18] sm:$0xff] %vm4422_vm4, %v6847_v60  ;;  %v3799_v62 = vadd.f32 %v3645_v32, %v3368_v25  ;;  %5039 = vmatmul.msk.bf16.gmra.mxu0 %vm294_vm2, %v6174_v11  ;;  %v2936_v0 = vadd.f32 %v2783_v22, %v5813_v47  ;;  %v3021_v25 = vld [vmem:[#allocation2 + $0x158] sm:$0xff]  ;;  %v3503_v32 = vpack.c.bf16 %v3451_v13, %v3450_v55 }
 0x3ab   : > { %v3219_v45 = vpop.f32.mrf.mxu2  ;;  %v3883_v22 = vld [vmem:[#allocation2 + $0x152] sm:$0xff] }
 0x3ac   : > { %v4230_v50 = vadd.f32 %v4076_v4, %v3799_v62  ;;  %v3369_v46 = vadd.f32 %v3216_v19, %v2936_v0  ;;  %v3884_v62 = vld [vmem:[#allocation2 + $0x15a] sm:$0xff]  ;;  %v3073_v19 = vpack.c.bf16 %v3021_v25, %v3020_v40 }
 0x3ad   : > { %v6200_v59 = vpack.c.bf16 %v3884_v62, %v3883_v22 }
 0x3ae   : > { %v6186_v41 = vadd.f32 %v6123_v63, %v4230_v50 }
 0x3af   : > { %v4083_v1 = vpop.f32.mrf.mxu0 }
 0x3b0   : > { %v6850_v58 = vmax.f32 %v6186_v41, 0.0 }
 0x3b1   : > { %v3647_v12 = vpop.f32.mrf.mxu3  ;;  %v2786_v52 = vpop.f32.mrf.mxu1 }
 0x3b2   : > { %4427 = vst.msk [vmem:[%s6135_s30 + $0x20] sm:$0xff] %vm4422_vm4, %v6850_v58  ;;  %v3800_v4 = vadd.f32 %v3647_v12, %v3369_v46  ;;  %v2937_v60 = vadd.f32 %v2786_v52, %v5820_v15 }
 0x3b3   : > { %v3221_v47 = vpop.f32.mrf.mxu2 }
 0x3b4   : > { %v4231_v50 = vadd.f32 %v4078_v54, %v3800_v4  ;;  %4940 = vmatmul.msk.bf16.gmra.mxu1 %vm294_vm2, %v6148_v27  ;;  %v3370_v13 = vadd.f32 %v3219_v45, %v2937_v60  ;;  %v3452_v60 = vld [vmem:[#allocation2 + $0x151] sm:$0xff]  ;;  %v3453_v45 = vld [vmem:[#allocation2 + $0x159] sm:$0xff] }
 0x3b6   : > { %v6197_v0 = vadd.f32 %v6123_v63, %v4231_v50  ;;  %5006 = vmatmul.msk.bf16.gmra.mxu3 %vm294_vm2, %v3503_v32 }
 0x3b7   : > { %v4086_v46 = vpop.f32.mrf.mxu0 }
 0x3b8   : > { %v6849_v55 = vmax.f32 %v6197_v0, 0.0  ;;  %4974 = vmatmul.msk.bf16.gmra.mxu2 %vm294_vm2, %v3073_v19  ;;  %v3022_v19 = vld [vmem:[#allocation2 + $0x168] sm:$0xff] }
 0x3b9   : > { %v3650_v54 = vpop.f32.mrf.mxu3  ;;  %v2788_v12 = vpop.f32.mrf.mxu1 }
 0x3ba   : > { %4428 = vst.msk [vmem:[%s6135_s30 + $0x28] sm:$0xff] %vm4422_vm4, %v6849_v55  ;;  %v3801_v15 = vadd.f32 %v3650_v54, %v3370_v13  ;;  %5040 = vmatmul.msk.bf16.gmra.mxu0 %vm294_vm2, %v6200_v59  ;;  %v2938_v40 = vadd.f32 %v2788_v12, %v5824_v3  ;;  %v3023_v13 = vld [vmem:[#allocation2 + $0x170] sm:$0xff]  ;;  %v3504_v54 = vpack.c.bf16 %v3453_v45, %v3452_v60 }
 0x3bb   : > { %v3224_v27 = vpop.f32.mrf.mxu2  ;;  %v3885_v12 = vld [vmem:[#allocation2 + $0x16a] sm:$0xff] }
 0x3bc   : > { %v4232_v52 = vadd.f32 %v4081_v17, %v3801_v15  ;;  %v3371_v22 = vadd.f32 %v3221_v47, %v2938_v40  ;;  %v3886_v15 = vld [vmem:[#allocation2 + $0x172] sm:$0xff]  ;;  %v3074_v47 = vpack.c.bf16 %v3023_v13, %v3022_v19 }
 0x3bd   : > { %v6226_v58 = vpack.c.bf16 %v3886_v15, %v3885_v12 }
 0x3be   : > { %v6212_v25 = vadd.f32 %v6123_v63, %v4232_v52 }
 0x3bf   : > { %v4088_v4 = vpop.f32.mrf.mxu0 }
 0x3c0   : > { %v6852_v32 = vmax.f32 %v6212_v25, 0.0 }
 0x3c1   : > { %v3652_v62 = vpop.f32.mrf.mxu3  ;;  %v2791_v50 = vpop.f32.mrf.mxu1 }
 0x3c2   : > { %4429 = vst.msk [vmem:[%s6135_s30 + $0x30] sm:$0xff] %vm4422_vm4, %v6852_v32  ;;  %v3802_v17 = vadd.f32 %v3652_v62, %v3371_v22  ;;  %v2939_v55 = vadd.f32 %v2791_v50, %v5834_v2 }
 0x3c3   : > { %v3226_v3 = vpop.f32.mrf.mxu2 }
 0x3c4   : > { %v4233_v52 = vadd.f32 %v4083_v1, %v3802_v17  ;;  %4941 = vmatmul.msk.bf16.gmra.mxu1 %vm294_vm2, %v6174_v11  ;;  %v3372_v45 = vadd.f32 %v3224_v27, %v2939_v55  ;;  %v3454_v55 = vld [vmem:[#allocation2 + $0x169] sm:$0xff]  ;;  %v3455_v27 = vld [vmem:[#allocation2 + $0x171] sm:$0xff] }
 0x3c6   : > { %v6223_v40 = vadd.f32 %v6123_v63, %v4233_v52  ;;  %5007 = vmatmul.msk.bf16.gmra.mxu3 %vm294_vm2, %v3504_v54 }
 0x3c7   : > { %v4091_v22 = vpop.f32.mrf.mxu0 }
 0x3c8   : > { %v6851_v60 = vmax.f32 %v6223_v40, 0.0  ;;  %4975 = vmatmul.msk.bf16.gmra.mxu2 %vm294_vm2, %v3074_v47  ;;  %v3024_v47 = vld [vmem:[#allocation2 + $0x180] sm:$0xff] }
 0x3c9   : > { %v3655_v1 = vpop.f32.mrf.mxu3  ;;  %v2793_v62 = vpop.f32.mrf.mxu1 }
 0x3ca   : > { %4430 = vst.msk [vmem:[%s6135_s30 + $0x38] sm:$0xff] %vm4422_vm4, %v6851_v60  ;;  %v3803_v2 = vadd.f32 %v3655_v1, %v3372_v45  ;;  %5041 = vmatmul.msk.bf16.gmra.mxu0 %vm294_vm2, %v6226_v58  ;;  %v2940_v19 = vadd.f32 %v2793_v62, %v5839_v38  ;;  %v3025_v45 = vld [vmem:[#allocation2 + $0x188] sm:$0xff]  ;;  %v3505_v1 = vpack.c.bf16 %v3455_v27, %v3454_v55 }
 0x3cb   : > { %v3229_v11 = vpop.f32.mrf.mxu2  ;;  %v3887_v62 = vld [vmem:[#allocation2 + $0x182] sm:$0xff] }
 0x3cc   : > { %v4234_v50 = vadd.f32 %v4086_v46, %v3803_v2  ;;  %v3373_v12 = vadd.f32 %v3226_v3, %v2940_v19  ;;  %v3888_v2 = vld [vmem:[#allocation2 + $0x18a] sm:$0xff]  ;;  %v3075_v3 = vpack.c.bf16 %v3025_v45, %v3024_v47 }
 0x3cd   : > { %v6252_v32 = vpack.c.bf16 %v3888_v2, %v3887_v62 }
 0x3ce   : > { %v6238_v13 = vadd.f32 %v6123_v63, %v4234_v50 }
 0x3cf   : > { %v4093_v17 = vpop.f32.mrf.mxu0 }
 0x3d0   : > { %v6854_v54 = vmax.f32 %v6238_v13, 0.0 }
 0x3d1   : > { %v3657_v15 = vpop.f32.mrf.mxu3  ;;  %v2796_v52 = vpop.f32.mrf.mxu1 }
 0x3d2   : > { %4431 = vst.msk [vmem:[%s6135_s30 + $0x40] sm:$0xff] %vm4422_vm4, %v6854_v54  ;;  %v3804_v46 = vadd.f32 %v3657_v15, %v3373_v12  ;;  %v2941_v60 = vadd.f32 %v2796_v52, %v5846_v61 }
 0x3d3   : > { %v3231_v38 = vpop.f32.mrf.mxu2 }
 0x3d4   : > { %v4235_v50 = vadd.f32 %v4088_v4, %v3804_v46  ;;  %4942 = vmatmul.msk.bf16.gmra.mxu1 %vm294_vm2, %v6200_v59  ;;  %v3374_v27 = vadd.f32 %v3229_v11, %v2941_v60  ;;  %v3456_v60 = vld [vmem:[#allocation2 + $0x181] sm:$0xff]  ;;  %v3457_v11 = vld [vmem:[#allocation2 + $0x189] sm:$0xff] }
 0x3d6   : > { %v6249_v19 = vadd.f32 %v6123_v63, %v4235_v50  ;;  %5008 = vmatmul.msk.bf16.gmra.mxu3 %vm294_vm2, %v3505_v1 }
 0x3d7   : > { %v4096_v12 = vpop.f32.mrf.mxu0 }
 0x3d8   : > { %v6853_v55 = vmax.f32 %v6249_v19, 0.0  ;;  %4976 = vmatmul.msk.bf16.gmra.mxu2 %vm294_vm2, %v3075_v3  ;;  %v3026_v3 = vld [vmem:[#allocation2 + $0x198] sm:$0xff] }
 0x3d9   : > { %v3660_v4 = vpop.f32.mrf.mxu3  ;;  %v2798_v15 = vpop.f32.mrf.mxu1 }
 0x3da   : > { %4432 = vst.msk [vmem:[%s6135_s30 + $0x48] sm:$0xff] %vm4422_vm4, %v6853_v55  ;;  %v3805_v61 = vadd.f32 %v3660_v4, %v3374_v27  ;;  %5042 = vmatmul.msk.bf16.gmra.mxu0 %vm294_vm2, %v6252_v32  ;;  %v2942_v47 = vadd.f32 %v2798_v15, %v5850_v37  ;;  %v3027_v27 = vld [vmem:[#allocation2 + $0x1a0] sm:$0xff]  ;;  %v3506_v4 = vpack.c.bf16 %v3457_v11, %v3456_v60 }
 0x3db   : > { %v3234_v59 = vpop.f32.mrf.mxu2  ;;  %v3889_v15 = vld [vmem:[#allocation2 + $0x19a] sm:$0xff] }
 0x3dc   : > { %v4236_v52 = vadd.f32 %v4091_v22, %v3805_v61  ;;  %v3375_v62 = vadd.f32 %v3231_v38, %v2942_v47  ;;  %v3890_v61 = vld [vmem:[#allocation2 + $0x1a2] sm:$0xff]  ;;  %v3076_v38 = vpack.c.bf16 %v3027_v27, %v3026_v3 }
 0x3dd   : > { %v3938_v54 = vpack.c.bf16 %v3890_v61, %v3889_v15 }
 0x3de   : > { %v6264_v45 = vadd.f32 %v6123_v63, %v4236_v52 }
 0x3df   : > { %v4098_v46 = vpop.f32.mrf.mxu0 }
 0x3e0   : > { %v6855_v1 = vmax.f32 %v6264_v45, 0.0 }
 0x3e1   : > { %v3662_v2 = vpop.f32.mrf.mxu3  ;;  %v2801_v50 = vpop.f32.mrf.mxu1 }
 0x3e2   : > { %4433 = vst.msk [vmem:[%s6135_s30 + $0x50] sm:$0xff] %vm4422_vm4, %v6855_v1  ;;  %v3806_v22 = vadd.f32 %v3662_v2, %v3375_v62  ;;  %v2943_v55 = vadd.f32 %v2801_v50, %v5856_v16 }
 0x3e3   : > { %v3236_v37 = vpop.f32.mrf.mxu2 }
 0x3e4   : > { %v4237_v52 = vadd.f32 %v4093_v17, %v3806_v22  ;;  %4943 = vmatmul.msk.bf16.gmra.mxu1 %vm294_vm2, %v6226_v58  ;;  %v3376_v11 = vadd.f32 %v3234_v59, %v2943_v55  ;;  %v3458_v55 = vld [vmem:[#allocation2 + $0x199] sm:$0xff]  ;;  %v3459_v59 = vld [vmem:[#allocation2 + $0x1a1] sm:$0xff] }
 0x3e6   : > { %v6275_v47 = vadd.f32 %v6123_v63, %v4237_v52  ;;  %5009 = vmatmul.msk.bf16.gmra.mxu3 %vm294_vm2, %v3506_v4  ;;  %v3029_v52 = vld [vmem:[#allocation3 + $0x30] sm:$0xff] }
 0x3e7   : > { %v4101_v1 = vpop.f32.mrf.mxu0 }
 0x3e8   : > { %v6858_v60 = vmax.f32 %v6275_v47, 0.0  ;;  %4977 = vmatmul.msk.bf16.gmra.mxu2 %vm294_vm2, %v3076_v38  ;;  %v3030_v38 = vld [vmem:[#allocation3 + $0x38] sm:$0xff] }
 0x3e9   : > { %v3665_v62 = vpop.f32.mrf.mxu3  ;;  %v2803_v17 = vpop.f32.mrf.mxu1 }
 0x3ea   : > { %4434 = vst.msk [vmem:[%s6135_s30 + $0x58] sm:$0xff] %vm4422_vm4, %v6858_v60  ;;  %v3807_v16 = vadd.f32 %v3665_v62, %v3376_v11  ;;  %5043 = vmatmul.msk.bf16.gmra.mxu0 %vm294_vm2, %v3938_v54  ;;  %v2944_v50 = vadd.f32 %v2803_v17, %v5860_v20  ;;  %v3891_v11 = vld [vmem:[#allocation3 + $0x32] sm:$0xff]  ;;  %v3892_v62 = vld [vmem:[#allocation3 + $0x3a] sm:$0xff] }
 0x3eb   : > { %v3239_v58 = vpop.f32.mrf.mxu2 }
 0x3ec   : > { %v4238_v2 = vadd.f32 %v4096_v12, %v3807_v16  ;;  %v3377_v4 = vadd.f32 %v3236_v37, %v2944_v50  ;;  %v3507_v12 = vpack.c.bf16 %v3459_v59, %v3458_v55  ;;  %v3077_v37 = vpack.c.bf16 %v3030_v38, %v3029_v52  ;;  %v2596_v38 = vld [vmem:[#allocation3 + $0x1a] sm:$0xff] }
 0x3ed   : > { %v6301_v50 = vpack.c.bf16 %v3892_v62, %v3891_v11  ;;  %v3461_v11 = vld [vmem:[#allocation3 + $0x39] sm:$0xff] }
 0x3ee   : > { %v6287_v3 = vadd.f32 %v6123_v63, %v4238_v2 }
 0x3ef   : > { %v4103_v27 = vpop.f32.mrf.mxu0 }
 0x3f0   : > { %v6857_v22 = vmax.f32 %v6287_v3, 0.0 }
 0x3f1   : > { %v3667_v15 = vpop.f32.mrf.mxu3  ;;  %v2806_v61 = vpop.f32.mrf.mxu1 }
 0x3f2   : > { %4435 = vst.msk [vmem:[%s6135_s30 + $0x60] sm:$0xff] %vm4422_vm4, %v6857_v22  ;;  %v3808_v54 = vadd.f32 %v3667_v15, %v3377_v4  ;;  %v2945_v16 = vadd.f32 %v2806_v61, %v5866_v6  ;;  %v3032_v22 = vld [vmem:[#allocation3 + $0x50] sm:$0xff] }
 0x3f3   : > { %v3241_v20 = vpop.f32.mrf.mxu2 }
 0x3f4   : > { %v4239_v17 = vadd.f32 %v4098_v46, %v3808_v54  ;;  %4944 = vmatmul.msk.bf16.gmra.mxu1 %vm294_vm2, %v6252_v32  ;;  %v3378_v59 = vadd.f32 %v3239_v58, %v2945_v16  ;;  %v2597_v54 = vld [vmem:[#allocation3 + $0x22] sm:$0xff] }
 0x3f6   : > { %v6298_v2 = vadd.f32 %v6123_v63, %v4239_v17  ;;  %5010 = vmatmul.msk.bf16.gmra.mxu3 %vm294_vm2, %v3507_v12  ;;  %v3460_v12 = vld [vmem:[#allocation3 + $0x31] sm:$0xff] }
 0x3f7   : > { %v4106_v4 = vpop.f32.mrf.mxu0 }
 0x3f8   : > { %v6856_v55 = vmax.f32 %v6298_v2, 0.0  ;;  %4978 = vmatmul.msk.bf16.gmra.mxu2 %vm294_vm2, %v3077_v37  ;;  %v2644_v37 = vpack.c.bf16 %v2597_v54, %v2596_v38 }
 0x3f9   : > { %v3670_v46 = vpop.f32.mrf.mxu3  ;;  %v2808_v15 = vpop.f32.mrf.mxu1 }
 0x3fa   : > { %4436 = vst.msk [vmem:[%s6135_s30 + $0x68] sm:$0xff] %vm4422_vm4, %v6856_v55  ;;  %v3809_v6 = vadd.f32 %v3670_v46, %v3378_v59  ;;  %5044 = vmatmul.msk.bf16.gmra.mxu0 %vm294_vm2, %v6301_v50  ;;  %v2946_v52 = vadd.f32 %v2808_v15, %v5870_v33  ;;  %v3031_v55 = vld [vmem:[#allocation3 + $0x48] sm:$0xff] }
 0x3fb   : > { %v3244_v32 = vpop.f32.mrf.mxu2 }
 0x3fc   : > { %v4240_v61 = vadd.f32 %v4101_v1, %v3809_v6  ;;  %v3379_v16 = vadd.f32 %v3241_v20, %v2946_v52  ;;  %v3508_v1 = vpack.c.bf16 %v3461_v11, %v3460_v12  ;;  %v3893_v6 = vld [vmem:[#allocation3 + $0x4a] sm:$0xff]  ;;  %v3078_v20 = vpack.c.bf16 %v3032_v22, %v3031_v55 }
 0x3fe   : > { %v6313_v58 = vadd.f32 %v6123_v63, %v4240_v61  ;;  %v3894_v61 = vld [vmem:[#allocation3 + $0x52] sm:$0xff] }
 0x3ff   : > { %v4108_v62 = vpop.f32.mrf.mxu0  ;;  %v6326_v38 = vpack.c.bf16 %v3894_v61, %v3893_v6  ;;  %v3033_v61 = vld [vmem:[#allocation3 + $0x60] sm:$0xff] }
 0x400   : > { %v4372_v17 = vmax.f32 %v6313_v58, 0.0 }
 0x401   : > { %v3672_v59 = vpop.f32.mrf.mxu3  ;;  %v2811_v46 = vpop.f32.mrf.mxu1 }
 0x402   : > { %4437 = vst.msk [vmem:[%s6135_s30 + $0x70] sm:$0xff] %vm4422_vm4, %v4372_v17  ;;  %v3810_v33 = vadd.f32 %v3672_v59, %v3379_v16  ;;  %v2947_v56 = vadd.f32 %v2811_v46, %v5876_v44 }
 0x403   : > { %v3246_v15 = vpop.f32.mrf.mxu2 }
 0x404   : > { %v4241_v60 = vadd.f32 %v4103_v27, %v3810_v33  ;;  %4945 = vmatmul.msk.bf16.gmra.mxu1 %vm294_vm2, %v2644_v37  ;;  %v3380_v11 = vadd.f32 %v3244_v32, %v2947_v56  ;;  %v3462_v56 = vld [vmem:[#allocation3 + $0x49] sm:$0xff]  ;;  %v3463_v32 = vld [vmem:[#allocation3 + $0x51] sm:$0xff] }
 0x406   : > { %v6323_v52 = vadd.f32 %v6123_v63, %v4241_v60  ;;  %5011 = vmatmul.msk.bf16.gmra.mxu3 %vm294_vm2, %v3508_v1 }
 0x407   : > { %v4111_v54 = vpop.f32.mrf.mxu0 }
 0x408   : > { %v6859_v12 = vmax.f32 %v6323_v52, 0.0  ;;  %4979 = vmatmul.msk.bf16.gmra.mxu2 %vm294_vm2, %v3078_v20  ;;  %v3034_v20 = vld [vmem:[#allocation3 + $0x68] sm:$0xff]  ;;  %v6980_v58 = vmax.f32 %v6323_v52, 0.0 }
 0x409   : > { %v3675_v16 = vpop.f32.mrf.mxu3  ;;  %v2813_v27 = vpop.f32.mrf.mxu1 }
 0x40a   : > { %4438 = vst.msk [vmem:[%s6135_s30 + $0x78] sm:$0xff] %vm4422_vm4, %v6859_v12  ;;  %v3811_v44 = vadd.f32 %v3675_v16, %v3380_v11  ;;  %5045 = vmatmul.msk.bf16.gmra.mxu0 %vm294_vm2, %v6326_v38  ;;  %v2948_v55 = vadd.f32 %v2813_v27, %v5880_v8  ;;  %v3509_v11 = vpack.c.bf16 %v3463_v32, %v3462_v56  ;;  %v3895_v16 = vld [vmem:[#allocation3 + $0x62] sm:$0xff]  ;;  %v3896_v27 = vld [vmem:[#allocation3 + $0x6a] sm:$0xff] }
 0x40b   : > { %v3249_v60 = vpop.f32.mrf.mxu2  ;;  %v6352_v12 = vpack.c.bf16 %v3896_v27, %v3895_v16 }
 0x40c   : > { %v4242_v22 = vadd.f32 %v4106_v4, %v3811_v44  ;;  %v3381_v33 = vadd.f32 %v3246_v15, %v2948_v55  ;;  %v3079_v15 = vpack.c.bf16 %v3034_v20, %v3033_v61 }
 0x40e   : > { %v6338_v37 = vadd.f32 %v6123_v63, %v4242_v22 }
 0x40f   : > { %v4113_v59 = vpop.f32.mrf.mxu0 }
 0x410   : > { %v6861_v46 = vmax.f32 %v6338_v37, 0.0  ;;  %v6982_v52 = vmax.f32 %v6338_v37, 0.0 }
 0x411   : > { %v3677_v1 = vpop.f32.mrf.mxu3  ;;  %v2816_v6 = vpop.f32.mrf.mxu1 }
 0x412   : > { %4439 = vst.msk [vmem:[%s6135_s30 + $0x80] sm:$0xff] %vm4422_vm4, %v6861_v46  ;;  %v3812_v4 = vadd.f32 %v3677_v1, %v3381_v33  ;;  %v2949_v22 = vadd.f32 %v2816_v6, %v5886_v36 }
 0x413   : > { %v3251_v8 = vpop.f32.mrf.mxu2 }
 0x414   : > { %v4243_v44 = vadd.f32 %v4108_v62, %v3812_v4  ;;  %4946 = vmatmul.msk.bf16.gmra.mxu1 %vm294_vm2, %v6301_v50  ;;  %v3382_v32 = vadd.f32 %v3249_v60, %v2949_v22  ;;  %v3464_v60 = vld [vmem:[#allocation3 + $0x61] sm:$0xff]  ;;  %v3465_v4 = vld [vmem:[#allocation3 + $0x69] sm:$0xff] }
 0x416   : > { %v6349_v55 = vadd.f32 %v6123_v63, %v4243_v44  ;;  %5012 = vmatmul.msk.bf16.gmra.mxu3 %vm294_vm2, %v3509_v11 }
 0x417   : > { %v4116_v33 = vpop.f32.mrf.mxu0 }
 0x418   : > { %v6860_v56 = vmax.f32 %v6349_v55, 0.0  ;;  %4980 = vmatmul.msk.bf16.gmra.mxu2 %vm294_vm2, %v3079_v15  ;;  %v3035_v15 = vld [vmem:[#allocation3 + $0x78] sm:$0xff]  ;;  %v6984_v37 = vmax.f32 %v6349_v55, 0.0 }
 0x419   : > { %v3680_v62 = vpop.f32.mrf.mxu3  ;;  %v2818_v1 = vpop.f32.mrf.mxu1 }
 0x41a   : > { %4440 = vst.msk [vmem:[%s6135_s30 + $0x88] sm:$0xff] %vm4422_vm4, %v6860_v56  ;;  %v3813_v36 = vadd.f32 %v3680_v62, %v3382_v32  ;;  %5046 = vmatmul.msk.bf16.gmra.mxu0 %vm294_vm2, %v6352_v12  ;;  %v2950_v61 = vadd.f32 %v2818_v1, %v5890_v34  ;;  %v3036_v32 = vld [vmem:[#allocation3 + $0x80] sm:$0xff]  ;;  %v3510_v62 = vpack.c.bf16 %v3465_v4, %v3464_v60 }
 0x41b   : > { %v3254_v50 = vpop.f32.mrf.mxu2  ;;  %v3897_v1 = vld [vmem:[#allocation3 + $0x7a] sm:$0xff] }
 0x41c   : > { %v4244_v6 = vadd.f32 %v4111_v54, %v3813_v36  ;;  %v3383_v27 = vadd.f32 %v3251_v8, %v2950_v61  ;;  %v3898_v36 = vld [vmem:[#allocation3 + $0x82] sm:$0xff]  ;;  %v3080_v8 = vpack.c.bf16 %v3036_v32, %v3035_v15 }
 0x41d   : > { %v6378_v46 = vpack.c.bf16 %v3898_v36, %v3897_v1 }
 0x41e   : > { %v6364_v20 = vadd.f32 %v6123_v63, %v4244_v6 }
 0x41f   : > { %v4118_v11 = vpop.f32.mrf.mxu0 }
 0x420   : > { %v6863_v16 = vmax.f32 %v6364_v20, 0.0  ;;  %v6986_v55 = vmax.f32 %v6364_v20, 0.0 }
 0x421   : > { %v3682_v44 = vpop.f32.mrf.mxu3  ;;  %v2821_v22 = vpop.f32.mrf.mxu1 }
 0x422   : > { %4441 = vst.msk [vmem:[%s6135_s30 + $0x90] sm:$0xff] %vm4422_vm4, %v6863_v16  ;;  %v3814_v54 = vadd.f32 %v3682_v44, %v3383_v27  ;;  %v2951_v56 = vadd.f32 %v2821_v22, %v5896_v53 }
 0x423   : > { %v3256_v34 = vpop.f32.mrf.mxu2 }
 0x424   : > { %v4245_v6 = vadd.f32 %v4113_v59, %v3814_v54  ;;  %4947 = vmatmul.msk.bf16.gmra.mxu1 %vm294_vm2, %v6326_v38  ;;  %v3384_v4 = vadd.f32 %v3254_v50, %v2951_v56  ;;  %v3466_v56 = vld [vmem:[#allocation3 + $0x79] sm:$0xff]  ;;  %v3467_v50 = vld [vmem:[#allocation3 + $0x81] sm:$0xff] }
 0x426   : > { %v6375_v61 = vadd.f32 %v6123_v63, %v4245_v6  ;;  %5013 = vmatmul.msk.bf16.gmra.mxu3 %vm294_vm2, %v3510_v62 }
 0x427   : > { %v4121_v27 = vpop.f32.mrf.mxu0 }
 0x428   : > { %v6862_v60 = vmax.f32 %v6375_v61, 0.0  ;;  %4981 = vmatmul.msk.bf16.gmra.mxu2 %vm294_vm2, %v3080_v8  ;;  %v3037_v8 = vld [vmem:[#allocation3 + $0x90] sm:$0xff]  ;;  %v6988_v20 = vmax.f32 %v6375_v61, 0.0 }
 0x429   : > { %v3685_v59 = vpop.f32.mrf.mxu3  ;;  %v2823_v44 = vpop.f32.mrf.mxu1 }
 0x42a   : > { %4442 = vst.msk [vmem:[%s6135_s30 + $0x98] sm:$0xff] %vm4422_vm4, %v6862_v60  ;;  %v3815_v53 = vadd.f32 %v3685_v59, %v3384_v4  ;;  %5047 = vmatmul.msk.bf16.gmra.mxu0 %vm294_vm2, %v6378_v46  ;;  %v2952_v15 = vadd.f32 %v2823_v44, %v5900_v43  ;;  %v3038_v4 = vld [vmem:[#allocation3 + $0x98] sm:$0xff]  ;;  %v3511_v59 = vpack.c.bf16 %v3467_v50, %v3466_v56 }
 0x42b   : > { %v3259_v38 = vpop.f32.mrf.mxu2  ;;  %v3899_v44 = vld [vmem:[#allocation3 + $0x92] sm:$0xff] }
 0x42c   : > { %v4246_v22 = vadd.f32 %v4116_v33, %v3815_v53  ;;  %v3385_v1 = vadd.f32 %v3256_v34, %v2952_v15  ;;  %v3900_v53 = vld [vmem:[#allocation3 + $0x9a] sm:$0xff]  ;;  %v3081_v34 = vpack.c.bf16 %v3038_v4, %v3037_v8 }
 0x42d   : > { %v6404_v16 = vpack.c.bf16 %v3900_v53, %v3899_v44 }
 0x42e   : > { %v6390_v32 = vadd.f32 %v6123_v63, %v4246_v22 }
 0x42f   : > { %v4123_v54 = vpop.f32.mrf.mxu0 }
 0x430   : > { %v6865_v62 = vmax.f32 %v6390_v32, 0.0  ;;  %v6990_v61 = vmax.f32 %v6390_v32, 0.0 }
 0x431   : > { %v3687_v36 = vpop.f32.mrf.mxu3  ;;  %v2826_v6 = vpop.f32.mrf.mxu1 }
 0x432   : > { %4443 = vst.msk [vmem:[%s6135_s30 + $0xa0] sm:$0xff] %vm4422_vm4, %v6865_v62  ;;  %v3816_v33 = vadd.f32 %v3687_v36, %v3385_v1  ;;  %v2953_v60 = vadd.f32 %v2826_v6, %v5906_v28 }
 0x433   : > { %v3261_v43 = vpop.f32.mrf.mxu2 }
 0x434   : > { %v4247_v22 = vadd.f32 %v4118_v11, %v3816_v33  ;;  %4948 = vmatmul.msk.bf16.gmra.mxu1 %vm294_vm2, %v6352_v12  ;;  %v3386_v50 = vadd.f32 %v3259_v38, %v2953_v60  ;;  %v3468_v60 = vld [vmem:[#allocation3 + $0x91] sm:$0xff]  ;;  %v3469_v38 = vld [vmem:[#allocation3 + $0x99] sm:$0xff] }
 0x436   : > { %v6401_v15 = vadd.f32 %v6123_v63, %v4247_v22  ;;  %5014 = vmatmul.msk.bf16.gmra.mxu3 %vm294_vm2, %v3511_v59 }
 0x437   : > { %v4126_v1 = vpop.f32.mrf.mxu0 }
 0x438   : > { %v6864_v56 = vmax.f32 %v6401_v15, 0.0  ;;  %4982 = vmatmul.msk.bf16.gmra.mxu2 %vm294_vm2, %v3081_v34  ;;  %v3039_v34 = vld [vmem:[#allocation3 + $0xa8] sm:$0xff]  ;;  %v6992_v32 = vmax.f32 %v6401_v15, 0.0 }
 0x439   : > { %v3690_v11 = vpop.f32.mrf.mxu3  ;;  %v2828_v36 = vpop.f32.mrf.mxu1 }
 0x43a   : > { %4444 = vst.msk [vmem:[%s6135_s30 + $0xa8] sm:$0xff] %vm4422_vm4, %v6864_v56  ;;  %v3817_v28 = vadd.f32 %v3690_v11, %v3386_v50  ;;  %5048 = vmatmul.msk.bf16.gmra.mxu0 %vm294_vm2, %v6404_v16  ;;  %v2954_v8 = vadd.f32 %v2828_v36, %v5910_v7  ;;  %v3040_v50 = vld [vmem:[#allocation3 + $0xb0] sm:$0xff]  ;;  %v3512_v11 = vpack.c.bf16 %v3469_v38, %v3468_v60 }
 0x43b   : > { %v3264_v12 = vpop.f32.mrf.mxu2  ;;  %v3901_v36 = vld [vmem:[#allocation3 + $0xaa] sm:$0xff] }
 0x43c   : > { %v4248_v6 = vadd.f32 %v4121_v27, %v3817_v28  ;;  %v3387_v44 = vadd.f32 %v3261_v43, %v2954_v8  ;;  %v3902_v28 = vld [vmem:[#allocation3 + $0xb2] sm:$0xff]  ;;  %v3082_v43 = vpack.c.bf16 %v3040_v50, %v3039_v34 }
 0x43d   : > { %v6430_v62 = vpack.c.bf16 %v3902_v28, %v3901_v36 }
 0x43e   : > { %v6416_v4 = vadd.f32 %v6123_v63, %v4248_v6 }
 0x43f   : > { %v4128_v33 = vpop.f32.mrf.mxu0 }
 0x440   : > { %v6867_v59 = vmax.f32 %v6416_v4, 0.0  ;;  %v6994_v15 = vmax.f32 %v6416_v4, 0.0 }
 0x441   : > { %v3692_v53 = vpop.f32.mrf.mxu3  ;;  %v2831_v22 = vpop.f32.mrf.mxu1 }
 0x442   : > { %4445 = vst.msk [vmem:[%s6135_s30 + $0xb0] sm:$0xff] %vm4422_vm4, %v6867_v59  ;;  %v3818_v27 = vadd.f32 %v3692_v53, %v3387_v44  ;;  %v2955_v56 = vadd.f32 %v2831_v22, %v5916_v9 }
 0x443   : > { %v3266_v7 = vpop.f32.mrf.mxu2 }
 0x444   : > { %v4249_v6 = vadd.f32 %v4123_v54, %v3818_v27  ;;  %4949 = vmatmul.msk.bf16.gmra.mxu1 %vm294_vm2, %v6378_v46  ;;  %v3388_v38 = vadd.f32 %v3264_v12, %v2955_v56  ;;  %v3470_v56 = vld [vmem:[#allocation3 + $0xa9] sm:$0xff]  ;;  %v3471_v12 = vld [vmem:[#allocation3 + $0xb1] sm:$0xff] }
 0x446   : > { %v6427_v8 = vadd.f32 %v6123_v63, %v4249_v6  ;;  %5015 = vmatmul.msk.bf16.gmra.mxu3 %vm294_vm2, %v3512_v11 }
 0x447   : > { %v4131_v44 = vpop.f32.mrf.mxu0 }
 0x448   : > { %v6866_v60 = vmax.f32 %v6427_v8, 0.0  ;;  %4983 = vmatmul.msk.bf16.gmra.mxu2 %vm294_vm2, %v3082_v43  ;;  %v3041_v43 = vld [vmem:[#allocation3 + $0xc0] sm:$0xff]  ;;  %v6996_v4 = vmax.f32 %v6427_v8, 0.0 }
 0x449   : > { %v3695_v54 = vpop.f32.mrf.mxu3  ;;  %v2833_v53 = vpop.f32.mrf.mxu1 }
 0x44a   : > { %4446 = vst.msk [vmem:[%s6135_s30 + $0xb8] sm:$0xff] %vm4422_vm4, %v6866_v60  ;;  %v3819_v9 = vadd.f32 %v3695_v54, %v3388_v38  ;;  %5049 = vmatmul.msk.bf16.gmra.mxu0 %vm294_vm2, %v6430_v62  ;;  %v2956_v34 = vadd.f32 %v2833_v53, %v5920_v5  ;;  %v3042_v38 = vld [vmem:[#allocation3 + $0xc8] sm:$0xff]  ;;  %v3513_v54 = vpack.c.bf16 %v3471_v12, %v3470_v56 }
 0x44b   : > { %v3269_v46 = vpop.f32.mrf.mxu2  ;;  %v3903_v53 = vld [vmem:[#allocation3 + $0xc2] sm:$0xff] }
 0x44c   : > { %v4250_v22 = vadd.f32 %v4126_v1, %v3819_v9  ;;  %v3389_v36 = vadd.f32 %v3266_v7, %v2956_v34  ;;  %v3904_v9 = vld [vmem:[#allocation3 + $0xca] sm:$0xff]  ;;  %v3083_v7 = vpack.c.bf16 %v3042_v38, %v3041_v43 }
 0x44d   : > { %v6456_v59 = vpack.c.bf16 %v3904_v9, %v3903_v53 }
 0x44e   : > { %v6442_v50 = vadd.f32 %v6123_v63, %v4250_v22 }
 0x44f   : > { %v4133_v27 = vpop.f32.mrf.mxu0 }
 0x450   : > { %v6869_v11 = vmax.f32 %v6442_v50, 0.0  ;;  %v6998_v8 = vmax.f32 %v6442_v50, 0.0 }
 0x451   : > { %v3697_v28 = vpop.f32.mrf.mxu3  ;;  %v2836_v6 = vpop.f32.mrf.mxu1 }
 0x452   : > { %4447 = vst.msk [vmem:[%s6135_s30 + $0xc0] sm:$0xff] %vm4422_vm4, %v6869_v11  ;;  %v3820_v1 = vadd.f32 %v3697_v28, %v3389_v36  ;;  %v2957_v60 = vadd.f32 %v2836_v6, %v5926_v42 }
 0x453   : > { %v3271_v5 = vpop.f32.mrf.mxu2 }
 0x454   : > { %v4251_v22 = vadd.f32 %v4128_v33, %v3820_v1  ;;  %4950 = vmatmul.msk.bf16.gmra.mxu1 %vm294_vm2, %v6404_v16  ;;  %v3390_v12 = vadd.f32 %v3269_v46, %v2957_v60  ;;  %v3472_v60 = vld [vmem:[#allocation3 + $0xc1] sm:$0xff]  ;;  %v3473_v46 = vld [vmem:[#allocation3 + $0xc9] sm:$0xff] }
 0x456   : > { %v6453_v34 = vadd.f32 %v6123_v63, %v4251_v22  ;;  %5016 = vmatmul.msk.bf16.gmra.mxu3 %vm294_vm2, %v3513_v54 }
 0x457   : > { %v4136_v36 = vpop.f32.mrf.mxu0 }
 0x458   : > { %v6868_v56 = vmax.f32 %v6453_v34, 0.0  ;;  %4984 = vmatmul.msk.bf16.gmra.mxu2 %vm294_vm2, %v3083_v7  ;;  %v3043_v7 = vld [vmem:[#allocation3 + $0xd8] sm:$0xff]  ;;  %v7000_v50 = vmax.f32 %v6453_v34, 0.0 }
 0x459   : > { %v3700_v33 = vpop.f32.mrf.mxu3  ;;  %v2838_v28 = vpop.f32.mrf.mxu1 }
 0x45a   : > { %4448 = vst.msk [vmem:[%s6135_s30 + $0xc8] sm:$0xff] %vm4422_vm4, %v6868_v56  ;;  %v3821_v42 = vadd.f32 %v3700_v33, %v3390_v12  ;;  %5050 = vmatmul.msk.bf16.gmra.mxu0 %vm294_vm2, %v6456_v59  ;;  %v2958_v43 = vadd.f32 %v2838_v28, %v5930_v35  ;;  %v3044_v12 = vld [vmem:[#allocation3 + $0xe0] sm:$0xff]  ;;  %v3514_v33 = vpack.c.bf16 %v3473_v46, %v3472_v60 }
 0x45b   : > { %v3274_v16 = vpop.f32.mrf.mxu2  ;;  %v3905_v28 = vld [vmem:[#allocation3 + $0xda] sm:$0xff] }
 0x45c   : > { %v4252_v6 = vadd.f32 %v4131_v44, %v3821_v42  ;;  %v3391_v53 = vadd.f32 %v3271_v5, %v2958_v43  ;;  %v3906_v42 = vld [vmem:[#allocation3 + $0xe2] sm:$0xff]  ;;  %v3084_v5 = vpack.c.bf16 %v3044_v12, %v3043_v7 }
 0x45d   : > { %v6482_v11 = vpack.c.bf16 %v3906_v42, %v3905_v28 }
 0x45e   : > { %v6468_v38 = vadd.f32 %v6123_v63, %v4252_v6 }
 0x45f   : > { %v4138_v1 = vpop.f32.mrf.mxu0 }
 0x460   : > { %v6875_v54 = vmax.f32 %v6468_v38, 0.0 }
 0x461   : > { %v3702_v9 = vpop.f32.mrf.mxu3  ;;  %v2841_v22 = vpop.f32.mrf.mxu1 }
 0x462   : > { %4449 = vst.msk [vmem:[%s6135_s30 + $0xd0] sm:$0xff] %vm4422_vm4, %v6875_v54  ;;  %v3822_v44 = vadd.f32 %v3702_v9, %v3391_v53  ;;  %v2959_v56 = vadd.f32 %v2841_v22, %v5936_v51 }
 0x463   : > { %v3276_v35 = vpop.f32.mrf.mxu2 }
 0x464   : > { %v4253_v6 = vadd.f32 %v4133_v27, %v3822_v44  ;;  %4951 = vmatmul.msk.bf16.gmra.mxu1 %vm294_vm2, %v6430_v62  ;;  %v3392_v46 = vadd.f32 %v3274_v16, %v2959_v56  ;;  %v3474_v56 = vld [vmem:[#allocation3 + $0xd9] sm:$0xff]  ;;  %v3475_v16 = vld [vmem:[#allocation3 + $0xe1] sm:$0xff] }
 0x466   : > { %v6479_v43 = vadd.f32 %v6123_v63, %v4253_v6  ;;  %5017 = vmatmul.msk.bf16.gmra.mxu3 %vm294_vm2, %v3514_v33 }
 0x467   : > { %v4141_v53 = vpop.f32.mrf.mxu0 }
 0x468   : > { %v6872_v60 = vmax.f32 %v6479_v43, 0.0  ;;  %4985 = vmatmul.msk.bf16.gmra.mxu2 %vm294_vm2, %v3084_v5  ;;  %v3045_v5 = vld [vmem:[#allocation3 + $0xf0] sm:$0xff] }
 0x469   : > { %v3705_v27 = vpop.f32.mrf.mxu3  ;;  %v2843_v9 = vpop.f32.mrf.mxu1 }
 0x46a   : > { %4450 = vst.msk [vmem:[%s6135_s30 + $0xd8] sm:$0xff] %vm4422_vm4, %v6872_v60  ;;  %v3823_v51 = vadd.f32 %v3705_v27, %v3392_v46  ;;  %5051 = vmatmul.msk.bf16.gmra.mxu0 %vm294_vm2, %v6482_v11  ;;  %v2960_v7 = vadd.f32 %v2843_v9, %v5940_v10  ;;  %v3046_v46 = vld [vmem:[#allocation3 + $0xf8] sm:$0xff]  ;;  %v3515_v27 = vpack.c.bf16 %v3475_v16, %v3474_v56 }
 0x46b   : > { %v3279_v62 = vpop.f32.mrf.mxu2  ;;  %v3907_v9 = vld [vmem:[#allocation3 + $0xf2] sm:$0xff] }
 0x46c   : > { %v4254_v22 = vadd.f32 %v4136_v36, %v3823_v51  ;;  %v3393_v28 = vadd.f32 %v3276_v35, %v2960_v7  ;;  %v3085_v35 = vpack.c.bf16 %v3046_v46, %v3045_v5  ;;  %v6507_v7 = vld [vmem:[%s6841_s3] ss:$0 sm:$0xff] }
 0x46e   : > { %v6494_v12 = vadd.f32 %v6123_v63, %v4254_v22  ;;  %v3908_v63 = vld [vmem:[#allocation3 + $0xfa] sm:$0xff] }
 0x46f   : > { %v4143_v44 = vpop.f32.mrf.mxu0  ;;  %v6513_v56 = vpack.c.bf16 %v3908_v63, %v3907_v9 }
 0x470   : > { %v6870_v33 = vmax.f32 %v6494_v12, 0.0 }
 0x471   : > { %v3707_v42 = vpop.f32.mrf.mxu3  ;;  %v2846_v6 = vpop.f32.mrf.mxu1 }
 0x472   : > { %4451 = vst.msk [vmem:[%s6135_s30 + $0xe0] sm:$0xff] %vm4422_vm4, %v6870_v33  ;;  %v3824_v36 = vadd.f32 %v3707_v42, %v3393_v28  ;;  %v2961_v22 = vadd.f32 %v2846_v6, %v5946_v29 }
 0x473   : > { %v3281_v10 = vpop.f32.mrf.mxu2 }
 0x474   : > { %v4255_v51 = vadd.f32 %v4138_v1, %v3824_v36  ;;  %4952 = vmatmul.msk.bf16.gmra.mxu1 %vm294_vm2, %v6456_v59  ;;  %v3394_v29 = vadd.f32 %v3279_v62, %v2961_v22  ;;  %v3476_v62 = vld [vmem:[#allocation3 + $0xf1] sm:$0xff] }
 0x476   : > { %v6510_v33 = vadd.f32 %v6507_v7, %v4255_v51  ;;  %5018 = vmatmul.msk.bf16.gmra.mxu3 %vm294_vm2, %v3515_v27  ;;  %v3477_v27 = vld [vmem:[#allocation3 + $0xf9] sm:$0xff] }
 0x477   : > { %v4146_v16 = vpop.f32.mrf.mxu0 }
 0x478   : > { %v6871_v1 = vmax.f32 %v6510_v33, 0.0  ;;  %4986 = vmatmul.msk.bf16.gmra.mxu2 %vm294_vm2, %v3085_v35 }
 0x479   : > { %v3710_v59 = vpop.f32.mrf.mxu3  ;;  %v2848_v28 = vpop.f32.mrf.mxu1 }
 0x47a   : > { %4452 = vst.msk [vmem:[%s6135_s30 + $0xe8] sm:$0xff] %vm4422_vm4, %v6871_v1  ;;  %v3825_v42 = vadd.f32 %v3710_v59, %v3394_v29  ;;  %5052 = vmatmul.msk.bf16.gmra.mxu0 %vm294_vm2, %v6513_v56  ;;  %v2962_v46 = vadd.f32 %v2848_v28, %v5950_v48  ;;  %v3047_v1 = vld [vmem:[#allocation3 + $0x108] sm:$0xff]  ;;  %v3048_v29 = vld [vmem:[#allocation3 + $0x110] sm:$0xff]  ;;  %v3516_v59 = vpack.c.bf16 %v3477_v27, %v3476_v62 }
 0x47b   : > { %v3284_v6 = vpop.f32.mrf.mxu2  ;;  %v3909_v28 = vld [vmem:[#allocation3 + $0x10a] sm:$0xff] }
 0x47c   : > { %v4256_v5 = vadd.f32 %v4141_v53, %v3825_v42  ;;  %v3395_v51 = vadd.f32 %v3281_v10, %v2962_v46  ;;  %v3910_v42 = vld [vmem:[#allocation3 + $0x112] sm:$0xff]  ;;  %v3086_v10 = vpack.c.bf16 %v3048_v29, %v3047_v1 }
 0x47d   : > { %v3479_v29 = vld [vmem:[#allocation3 + $0x111] sm:$0xff] }
 0x47e   : > { %v6525_v36 = vadd.f32 %v6507_v7, %v4256_v5 }
 0x47f   : > { %v4148_v9 = vpop.f32.mrf.mxu0 }
 0x480   : > { %v6873_v63 = vmax.f32 %v6525_v36, 0.0 }
 0x481   : > { %v3712_v22 = vpop.f32.mrf.mxu3  ;;  %v2851_v35 = vpop.f32.mrf.mxu1 }
 0x482   : > { %4453 = vst.msk [vmem:[%s6135_s30 + $0xf0] sm:$0xff] %vm4422_vm4, %v6873_v63  ;;  %v3826_v53 = vadd.f32 %v3712_v22, %v3395_v51  ;;  %v2963_v60 = vadd.f32 %v2851_v35, %v5956_v31  ;;  %v6539_v63 = vpack.c.bf16 %v3910_v42, %v3909_v28 }
 0x483   : > { %v3286_v48 = vpop.f32.mrf.mxu2 }
 0x484   : > { %v4257_v5 = vadd.f32 %v4143_v44, %v3826_v53  ;;  %4953 = vmatmul.msk.bf16.gmra.mxu1 %vm294_vm2, %v6482_v11  ;;  %v3396_v27 = vadd.f32 %v3284_v6, %v2963_v60  ;;  %v3478_v6 = vld [vmem:[#allocation3 + $0x109] sm:$0xff] }
 0x486   : > { %v6536_v46 = vadd.f32 %v6507_v7, %v4257_v5  ;;  %5019 = vmatmul.msk.bf16.gmra.mxu3 %vm294_vm2, %v3516_v59 }
 0x487   : > { %v4151_v62 = vpop.f32.mrf.mxu0 }
 0x488   : > { %4987 = vmatmul.msk.bf16.gmra.mxu2 %vm294_vm2, %v3086_v10  ;;  %v6874_v44 = vmax.f32 %v6536_v46, 0.0  ;;  %v3049_v10 = vld [vmem:[#allocation3 + $0x120] sm:$0xff] }
 0x489   : > { %v3715_v51 = vpop.f32.mrf.mxu3  ;;  %v2853_v31 = vpop.f32.mrf.mxu1 }
 0x48a   : > { %v3827_v22 = vadd.f32 %v3715_v51, %v3396_v27  ;;  %5053 = vmatmul.msk.bf16.gmra.mxu0 %vm294_vm2, %v6539_v63  ;;  %4454 = vst.msk [vmem:[%s6135_s30 + $0xf8] sm:$0xff] %vm4422_vm4, %v6874_v44  ;;  %v2964_v35 = vadd.f32 %v2853_v31, %v5960_v57  ;;  %v3050_v27 = vld [vmem:[#allocation3 + $0x128] sm:$0xff] }
 0x48b   : > { %v3289_v11 = vpop.f32.mrf.mxu2  ;;  %v3911_v31 = vld [vmem:[#allocation3 + $0x122] sm:$0xff] }
 0x48c   : > { %v4258_v1 = vadd.f32 %v4146_v16, %v3827_v22  ;;  %v3397_v28 = vadd.f32 %v3286_v48, %v2964_v35  ;;  %v3517_v16 = vpack.c.bf16 %v3479_v29, %v3478_v6  ;;  %v3912_v22 = vld [vmem:[#allocation3 + $0x12a] sm:$0xff]  ;;  %v6955_v48 = vmax.f32 %v6129_v30, 0.0 }
 0x48e   : > { %v4326_v60 = vadd.f32 %v6507_v7, %v4258_v1 }
 0x48f   : > { %v4153_v53 = vpop.f32.mrf.mxu0 }
 0x490   : > { %v4390_v59 = vmax.f32 %v4326_v60, 0.0  ;;  %v3087_v60 = vpack.c.bf16 %v3050_v27, %v3049_v10 }
 0x491   : > { %v3717_v42 = vpop.f32.mrf.mxu3  ;;  %v2856_v5 = vpop.f32.mrf.mxu1 }
 0x492   : > { %4455 = vst.msk [vmem:[%s6555_s12] sm:$0xff] %vm4422_vm4, %v4390_v59  ;;  %v3828_v57 = vadd.f32 %v3717_v42, %v3397_v28  ;;  %v2965_v44 = vadd.f32 %v2856_v5, %v5966_v49  ;;  %v4487_v35 = vsub.f32 %v6955_v48, %v4390_v59  ;;  %v6566_v28 = vpack.c.bf16 %v3912_v22, %v3911_v31  ;;  %v3480_v22 = vld [vmem:[#allocation3 + $0x121] sm:$0xff] }
 0x493   : > { %v3291_v51 = vpop.f32.mrf.mxu2 }
 0x494   : > { %v4259_v1 = vadd.f32 %v4148_v9, %v3828_v57  ;;  %4954 = vmatmul.msk.bf16.gmra.mxu1 %vm294_vm2, %v6513_v56  ;;  %v3398_v42 = vadd.f32 %v3289_v11, %v2965_v44  ;;  %v4519_v5 = vand.u32 2147483647, %v4487_v35  ;;  %v6956_v56 = vmax.f32 %v6145_v24, 0.0  ;;  %v3481_v24 = vld [vmem:[#allocation3 + $0x129] sm:$0xff] }
 0x496   : > { %v4327_v54 = vadd.f32 %v6507_v7, %v4259_v1  ;;  %5020 = vmatmul.msk.bf16.gmra.mxu3 %vm294_vm2, %v3517_v16  ;;  %v4551_v44 = vsel %vm4422_vm4, %v4519_v5, 0.0  ;;  %v3518_v5 = vpack.c.bf16 %v3481_v24, %v3480_v22 }
 0x497   : > { %v4156_v6 = vpop.f32.mrf.mxu0 }
 0x498   : > { %v4391_v29 = vmax.f32 %v4327_v54, 0.0  ;;  %4988 = vmatmul.msk.bf16.gmra.mxu2 %vm294_vm2, %v3087_v60 }
 0x499   : > { %v3720_v9 = vpop.f32.mrf.mxu3  ;;  %v2858_v49 = vpop.f32.mrf.mxu1 }
 0x49a   : > { %4456 = vst.msk [vmem:[%s6555_s12 + $0x8] sm:$0xff] %vm4422_vm4, %v4391_v29  ;;  %v4488_v30 = vsub.f32 %v6956_v56, %v4391_v29  ;;  %v3829_v59 = vadd.f32 %v3720_v9, %v3398_v42  ;;  %5054 = vmatmul.msk.bf16.gmra.mxu0 %vm294_vm2, %v6566_v28  ;;  %v2966_v54 = vadd.f32 %v2858_v49, %v5970_v18  ;;  %v3051_v42 = vld [vmem:[#allocation3 + $0x138] sm:$0xff]  ;;  %v3052_v9 = vld [vmem:[#allocation3 + $0x140] sm:$0xff]  ;;  %v6957_v18 = vmax.f32 %v6160_v26, 0.0 }
 0x49b   : > { %v3294_v10 = vpop.f32.mrf.mxu2 }
 0x49c   : > { %v4520_v27 = vand.u32 2147483647, %v4488_v30  ;;  %v4260_v57 = vadd.f32 %v4151_v62, %v3829_v59  ;;  %v3399_v48 = vadd.f32 %v3291_v51, %v2966_v54  ;;  %v3913_v30 = vld [vmem:[#allocation3 + $0x13a] sm:$0xff]  ;;  %v3914_v59 = vld [vmem:[#allocation3 + $0x142] sm:$0xff]  ;;  %v3088_v51 = vpack.c.bf16 %v3052_v9, %v3051_v42  ;;  %v6959_v9 = vld [vmem:[#allocation8_spill] sm:$0xff] }
 0x49d   : > { %v6589_v26 = vpack.c.bf16 %v3914_v59, %v3913_v30  ;;  %v3483_v30 = vld [vmem:[#allocation3 + $0x141] sm:$0xff] }
 0x49e   : > { %v4552_v11 = vsel %vm4422_vm4, %v4520_v27, 0.0  ;;  %v4328_v16 = vadd.f32 %v6507_v7, %v4260_v57 }
 0x49f   : > { %v4553_v31 = vadd.f32 %v4552_v11, %v4551_v44  ;;  %v4158_v1 = vpop.f32.mrf.mxu0 }
 0x4a0   : > { %v4392_v60 = vmax.f32 %v4328_v16, 0.0 }
 0x4a1   : > { %v3722_v35 = vpop.f32.mrf.mxu3  ;;  %v2861_v29 = vpop.f32.mrf.mxu1 }
 0x4a2   : > { %4457 = vst.msk [vmem:[%s6555_s12 + $0x10] sm:$0xff] %vm4422_vm4, %v4392_v60  ;;  %v4489_v62 = vsub.f32 %v6957_v18, %v4392_v60  ;;  %v3830_v49 = vadd.f32 %v3722_v35, %v3399_v48  ;;  %v2967_v44 = vadd.f32 %v2861_v29, %v5976_v14 }
 0x4a3   : > { %v3296_v56 = vpop.f32.mrf.mxu2 }
 0x4a4   : > { %v4521_v27 = vand.u32 2147483647, %v4489_v62  ;;  %v4261_v57 = vadd.f32 %v4153_v53, %v3830_v49  ;;  %4955 = vmatmul.msk.bf16.gmra.mxu1 %vm294_vm2, %v6539_v63  ;;  %v3400_v60 = vadd.f32 %v3294_v10, %v2967_v44  ;;  %v6958_v63 = vmax.f32 %v6171_v39, 0.0 }
 0x4a6   : > { %v4554_v54 = vsel %vm4422_vm4, %v4521_v27, 0.0  ;;  %v4329_v11 = vadd.f32 %v6507_v7, %v4261_v57  ;;  %5021 = vmatmul.msk.bf16.gmra.mxu3 %vm294_vm2, %v3518_v5  ;;  %v3482_v5 = vld [vmem:[#allocation3 + $0x139] sm:$0xff] }
 0x4a7   : > { %v4555_v16 = vadd.f32 %v4554_v54, %v4553_v31  ;;  %v4161_v22 = vpop.f32.mrf.mxu0  ;;  %v3054_v54 = vld [vmem:[#allocation3 + $0x158] sm:$0xff] }
 0x4a8   : > { %v4393_v24 = vmax.f32 %v4329_v11, 0.0  ;;  %4989 = vmatmul.msk.bf16.gmra.mxu2 %vm294_vm2, %v3088_v51  ;;  %v3053_v51 = vld [vmem:[#allocation3 + $0x150] sm:$0xff] }
 0x4a9   : > { %v3725_v53 = vpop.f32.mrf.mxu3  ;;  %v2863_v14 = vpop.f32.mrf.mxu1 }
 0x4aa   : > { %4458 = vst.msk [vmem:[%s6555_s12 + $0x18] sm:$0xff] %vm4422_vm4, %v4393_v24  ;;  %v4490_v48 = vsub.f32 %v6958_v63, %v4393_v24  ;;  %v3831_v35 = vadd.f32 %v3725_v53, %v3400_v60  ;;  %5055 = vmatmul.msk.bf16.gmra.mxu0 %vm294_vm2, %v6589_v26  ;;  %v2968_v18 = vadd.f32 %v2863_v14, %v6959_v9  ;;  %v3915_v14 = vld [vmem:[#allocation3 + $0x152] sm:$0xff]  ;;  %v3916_v63 = vld [vmem:[#allocation3 + $0x15a] sm:$0xff] }
 0x4ab   : > { %v3299_v29 = vpop.f32.mrf.mxu2  ;;  %v3519_v60 = vpack.c.bf16 %v3483_v30, %v3482_v5 }
 0x4ac   : > { %v4522_v42 = vand.u32 2147483647, %v4490_v48  ;;  %v4262_v31 = vadd.f32 %v4156_v6, %v3831_v35  ;;  %v3401_v27 = vadd.f32 %v3296_v56, %v2968_v18  ;;  %v6960_v6 = vmax.f32 %v6186_v41, 0.0  ;;  %v6961_v35 = vld [vmem:[#allocation10_spill] sm:$0xff] }
 0x4ad   : > { %v3089_v56 = vpack.c.bf16 %v3054_v54, %v3053_v51  ;;  %v6611_v41 = vpack.c.bf16 %v3916_v63, %v3915_v14  ;;  %v6963_v51 = vld [vmem:[#allocation12_spill] sm:$0xff] }
 0x4ae   : > { %v4556_v10 = vsel %vm4422_vm4, %v4522_v42, 0.0  ;;  %v4330_v62 = vadd.f32 %v6507_v7, %v4262_v31 }
 0x4af   : > { %v4557_v49 = vadd.f32 %v4556_v10, %v4555_v16  ;;  %v4163_v59 = vpop.f32.mrf.mxu0 }
 0x4b0   : > { %v4394_v39 = vmax.f32 %v4330_v62, 0.0 }
 0x4b1   : > { %v3727_v57 = vpop.f32.mrf.mxu3  ;;  %v2866_v44 = vpop.f32.mrf.mxu1 }
 0x4b2   : > { %4459 = vst.msk [vmem:[%s6555_s12 + $0x20] sm:$0xff] %vm4422_vm4, %v4394_v39  ;;  %v4491_v11 = vsub.f32 %v6960_v6, %v4394_v39  ;;  %v3832_v24 = vadd.f32 %v3727_v57, %v3401_v27  ;;  %v2969_v42 = vadd.f32 %v2866_v44, %v6961_v35  ;;  %v3055_v35 = vld [vmem:[#allocation3 + $0x168] sm:$0xff] }
 0x4b3   : > { %v3301_v53 = vpop.f32.mrf.mxu2 }
 0x4b4   : > { %v4523_v16 = vand.u32 2147483647, %v4491_v11  ;;  %v4263_v48 = vadd.f32 %v4158_v1, %v3832_v24  ;;  %4956 = vmatmul.msk.bf16.gmra.mxu1 %vm294_vm2, %v6566_v28  ;;  %v3402_v5 = vadd.f32 %v3299_v29, %v2969_v42  ;;  %v6962_v28 = vmax.f32 %v6197_v0, 0.0  ;;  %v3484_v24 = vld [vmem:[#allocation3 + $0x151] sm:$0xff] }
 0x4b5   : > { %v3056_v42 = vld [vmem:[#allocation3 + $0x170] sm:$0xff] }
 0x4b6   : > { %v4558_v31 = vsel %vm4422_vm4, %v4523_v16, 0.0  ;;  %v4331_v9 = vadd.f32 %v6507_v7, %v4263_v48  ;;  %5022 = vmatmul.msk.bf16.gmra.mxu3 %vm294_vm2, %v3519_v60  ;;  %v3485_v60 = vld [vmem:[#allocation3 + $0x159] sm:$0xff] }
 0x4b7   : > { %v4559_v18 = vadd.f32 %v4558_v31, %v4557_v49  ;;  %v4166_v10 = vpop.f32.mrf.mxu0 }
 0x4b8   : > { %v4395_v62 = vmax.f32 %v4331_v9, 0.0  ;;  %4990 = vmatmul.msk.bf16.gmra.mxu2 %vm294_vm2, %v3089_v56  ;;  %v3520_v9 = vpack.c.bf16 %v3485_v60, %v3484_v24 }
 0x4b9   : > { %v3730_v1 = vpop.f32.mrf.mxu3  ;;  %v2868_v30 = vpop.f32.mrf.mxu1 }
 0x4ba   : > { %4460 = vst.msk [vmem:[%s6555_s12 + $0x28] sm:$0xff] %vm4422_vm4, %v4395_v62  ;;  %v4492_v39 = vsub.f32 %v6962_v28, %v4395_v62  ;;  %v3833_v27 = vadd.f32 %v3730_v1, %v3402_v5  ;;  %5056 = vmatmul.msk.bf16.gmra.mxu0 %vm294_vm2, %v6611_v41  ;;  %v2970_v54 = vadd.f32 %v2868_v30, %v6963_v51  ;;  %v3917_v5 = vld [vmem:[#allocation3 + $0x16a] sm:$0xff]  ;;  %v3918_v1 = vld [vmem:[#allocation3 + $0x172] sm:$0xff]  ;;  %v6965_v28 = vld [vmem:[#allocation14_spill] sm:$0xff] }
 0x4bb   : > { %v3304_v57 = vpop.f32.mrf.mxu2 }
 0x4bc   : > { %v4524_v44 = vand.u32 2147483647, %v4492_v39  ;;  %v4264_v49 = vadd.f32 %v4161_v22, %v3833_v27  ;;  %v3403_v63 = vadd.f32 %v3301_v53, %v2970_v54  ;;  %v6964_v22 = vmax.f32 %v6212_v25, 0.0 }
 0x4bd   : > { %v3090_v53 = vpack.c.bf16 %v3056_v42, %v3055_v35  ;;  %v6633_v25 = vpack.c.bf16 %v3918_v1, %v3917_v5 }
 0x4be   : > { %v4560_v29 = vsel %vm4422_vm4, %v4524_v44, 0.0  ;;  %v4332_v6 = vadd.f32 %v6507_v7, %v4264_v49 }
 0x4bf   : > { %v4561_v11 = vadd.f32 %v4560_v29, %v4559_v18  ;;  %v4168_v14 = vpop.f32.mrf.mxu0 }
 0x4c0   : > { %v4396_v0 = vmax.f32 %v4332_v6, 0.0 }
 0x4c1   : > { %v3732_v16 = vpop.f32.mrf.mxu3  ;;  %v2871_v48 = vpop.f32.mrf.mxu1 }
 0x4c2   : > { %4461 = vst.msk [vmem:[%s6555_s12 + $0x30] sm:$0xff] %vm4422_vm4, %v4396_v0  ;;  %v4493_v56 = vsub.f32 %v6964_v22, %v4396_v0  ;;  %v3834_v31 = vadd.f32 %v3732_v16, %v3403_v63  ;;  %v2971_v39 = vadd.f32 %v2871_v48, %v6965_v28  ;;  %v6967_v16 = vld [vmem:[#allocation16_spill] sm:$0xff] }
 0x4c3   : > { %v3306_v62 = vpop.f32.mrf.mxu2  ;;  %v3486_v22 = vld [vmem:[#allocation3 + $0x169] sm:$0xff] }
 0x4c4   : > { %v4525_v18 = vand.u32 2147483647, %v4493_v56  ;;  %v4265_v30 = vadd.f32 %v4163_v59, %v3834_v31  ;;  %4957 = vmatmul.msk.bf16.gmra.mxu1 %vm294_vm2, %v6589_v26  ;;  %v3404_v29 = vadd.f32 %v3304_v57, %v2971_v39  ;;  %v6966_v26 = vmax.f32 %v6223_v40, 0.0  ;;  %v3487_v56 = vld [vmem:[#allocation3 + $0x171] sm:$0xff] }
 0x4c6   : > { %v4562_v27 = vsel %vm4422_vm4, %v4525_v18, 0.0  ;;  %v4333_v44 = vadd.f32 %v6507_v7, %v4265_v30  ;;  %5023 = vmatmul.msk.bf16.gmra.mxu3 %vm294_vm2, %v3520_v9  ;;  %v3057_v18 = vld [vmem:[#allocation3 + $0x180] sm:$0xff]  ;;  %v3058_v30 = vld [vmem:[#allocation3 + $0x188] sm:$0xff] }
 0x4c7   : > { %v4563_v49 = vadd.f32 %v4562_v27, %v4561_v11  ;;  %v4171_v51 = vpop.f32.mrf.mxu0 }
 0x4c8   : > { %v4397_v54 = vmax.f32 %v4333_v44, 0.0  ;;  %4991 = vmatmul.msk.bf16.gmra.mxu2 %vm294_vm2, %v3090_v53  ;;  %v3521_v53 = vpack.c.bf16 %v3487_v56, %v3486_v22  ;;  %v3919_v44 = vld [vmem:[#allocation3 + $0x182] sm:$0xff] }
 0x4c9   : > { %v3735_v59 = vpop.f32.mrf.mxu3  ;;  %v2873_v6 = vpop.f32.mrf.mxu1 }
 0x4ca   : > { %4462 = vst.msk [vmem:[%s6555_s12 + $0x38] sm:$0xff] %vm4422_vm4, %v4397_v54  ;;  %v4494_v24 = vsub.f32 %v6966_v26, %v4397_v54  ;;  %v3835_v60 = vadd.f32 %v3735_v59, %v3404_v29  ;;  %5057 = vmatmul.msk.bf16.gmra.mxu0 %vm294_vm2, %v6633_v25  ;;  %v2972_v48 = vadd.f32 %v2873_v6, %v6967_v16  ;;  %v3920_v54 = vld [vmem:[#allocation3 + $0x18a] sm:$0xff]  ;;  %v6969_v59 = vld [vmem:[#allocation18_spill] sm:$0xff] }
 0x4cb   : > { %v3309_v0 = vpop.f32.mrf.mxu2 }
 0x4cc   : > { %v4526_v63 = vand.u32 2147483647, %v4494_v24  ;;  %v4266_v11 = vadd.f32 %v4166_v10, %v3835_v60  ;;  %v3405_v9 = vadd.f32 %v3306_v62, %v2972_v48  ;;  %v6968_v10 = vmax.f32 %v6238_v13, 0.0 }
 0x4cd   : > { %v3091_v62 = vpack.c.bf16 %v3058_v30, %v3057_v18  ;;  %v6655_v13 = vpack.c.bf16 %v3920_v54, %v3919_v44  ;;  %v3488_v18 = vld [vmem:[#allocation3 + $0x181] sm:$0xff]  ;;  %v3489_v30 = vld [vmem:[#allocation3 + $0x189] sm:$0xff]  ;;  %v3059_v44 = vld [vmem:[#allocation3 + $0x198] sm:$0xff] }
 0x4ce   : > { %v4564_v57 = vsel %vm4422_vm4, %v4526_v63, 0.0  ;;  %v4334_v35 = vadd.f32 %v6507_v7, %v4266_v11  ;;  %v3060_v54 = vld [vmem:[#allocation3 + $0x1a0] sm:$0xff] }
 0x4cf   : > { %v4565_v42 = vadd.f32 %v4564_v57, %v4563_v49  ;;  %v4173_v31 = vpop.f32.mrf.mxu0 }
 0x4d0   : > { %v4398_v40 = vmax.f32 %v4334_v35, 0.0 }
 0x4d1   : > { %v3737_v5 = vpop.f32.mrf.mxu3  ;;  %v2876_v1 = vpop.f32.mrf.mxu1 }
 0x4d2   : > { %4463 = vst.msk [vmem:[%s6555_s12 + $0x40] sm:$0xff] %vm4422_vm4, %v4398_v40  ;;  %v4495_v28 = vsub.f32 %v6968_v10, %v4398_v40  ;;  %v3836_v39 = vadd.f32 %v3737_v5, %v3405_v9  ;;  %v2973_v6 = vadd.f32 %v2876_v1, %v6969_v59  ;;  %v6971_v40 = vld [vmem:[#allocation20_spill] sm:$0xff]  ;;  %v3522_v59 = vpack.c.bf16 %v3489_v30, %v3488_v18 }
 0x4d3   : > { %v3311_v27 = vpop.f32.mrf.mxu2 }
 0x4d4   : > { %v4527_v49 = vand.u32 2147483647, %v4495_v28  ;;  %v4267_v29 = vadd.f32 %v4168_v14, %v3836_v39  ;;  %4958 = vmatmul.msk.bf16.gmra.mxu1 %vm294_vm2, %v6611_v41  ;;  %v3406_v16 = vadd.f32 %v3309_v0, %v2973_v6  ;;  %v6970_v41 = vmax.f32 %v6249_v19, 0.0 }
 0x4d6   : > { %v4566_v26 = vsel %vm4422_vm4, %v4527_v49, 0.0  ;;  %v4335_v24 = vadd.f32 %v6507_v7, %v4267_v29  ;;  %5024 = vmatmul.msk.bf16.gmra.mxu3 %vm294_vm2, %v3521_v53 }
 0x4d7   : > { %v4567_v60 = vadd.f32 %v4566_v26, %v4565_v42  ;;  %v4176_v63 = vpop.f32.mrf.mxu0  ;;  %v3922_v26 = vld [vmem:[#allocation3 + $0x1a2] sm:$0xff] }
 0x4d8   : > { %v4399_v11 = vmax.f32 %v4335_v24, 0.0  ;;  %4992 = vmatmul.msk.bf16.gmra.mxu2 %vm294_vm2, %v3091_v62  ;;  %v3921_v62 = vld [vmem:[#allocation3 + $0x19a] sm:$0xff] }
 0x4d9   : > { %v3740_v14 = vpop.f32.mrf.mxu3  ;;  %v2878_v48 = vpop.f32.mrf.mxu1 }
 0x4da   : > { %4464 = vst.msk [vmem:[%s6555_s12 + $0x48] sm:$0xff] %vm4422_vm4, %v4399_v11  ;;  %v4496_v57 = vsub.f32 %v6970_v41, %v4399_v11  ;;  %v3837_v35 = vadd.f32 %v3740_v14, %v3406_v16  ;;  %5058 = vmatmul.msk.bf16.gmra.mxu0 %vm294_vm2, %v6655_v13  ;;  %v2974_v9 = vadd.f32 %v2878_v48, %v6971_v40  ;;  %v6973_v11 = vld [vmem:[#allocation22_spill] sm:$0xff] }
 0x4db   : > { %v3314_v22 = vpop.f32.mrf.mxu2 }
 0x4dc   : > { %v4528_v56 = vand.u32 2147483647, %v4496_v57  ;;  %v4268_v42 = vadd.f32 %v4171_v51, %v3837_v35  ;;  %v3407_v28 = vadd.f32 %v3311_v27, %v2974_v9  ;;  %v6972_v51 = vmax.f32 %v6264_v45, 0.0 }
 0x4dd   : > { %v3092_v27 = vpack.c.bf16 %v3060_v54, %v3059_v44  ;;  %v3954_v45 = vpack.c.bf16 %v3922_v26, %v3921_v62 }
 0x4de   : > { %v4568_v0 = vsel %vm4422_vm4, %v4528_v56, 0.0  ;;  %v4336_v5 = vadd.f32 %v6507_v7, %v4268_v42 }
 0x4df   : > { %v4569_v1 = vadd.f32 %v4568_v0, %v4567_v60  ;;  %v4178_v10 = vpop.f32.mrf.mxu0 }
 0x4e0   : > { %v4400_v19 = vmax.f32 %v4336_v5, 0.0 }
 0x4e1   : > { %v3742_v39 = vpop.f32.mrf.mxu3  ;;  %v2881_v53 = vpop.f32.mrf.mxu1 }
 0x4e2   : > { %4465 = vst.msk [vmem:[%s6555_s12 + $0x50] sm:$0xff] %vm4422_vm4, %v4400_v19  ;;  %v4497_v49 = vsub.f32 %v6972_v51, %v4400_v19  ;;  %v3838_v29 = vadd.f32 %v3742_v39, %v3407_v28  ;;  %v2975_v16 = vadd.f32 %v2881_v53, %v6973_v11  ;;  %v3490_v39 = vld [vmem:[#allocation3 + $0x199] sm:$0xff]  ;;  %v3491_v53 = vld [vmem:[#allocation3 + $0x1a1] sm:$0xff] }
 0x4e3   : > { %v3316_v6 = vpop.f32.mrf.mxu2  ;;  %v3523_v62 = vpack.c.bf16 %v3491_v53, %v3490_v39  ;;  %v6979_v53 = vld [vmem:[#allocation28_spill] sm:$0xff] }
 0x4e4   : > { %v4529_v24 = vand.u32 2147483647, %v4497_v49  ;;  %v4269_v60 = vadd.f32 %v4173_v31, %v3838_v29  ;;  %4959 = vmatmul.msk.bf16.gmra.mxu1 %vm294_vm2, %v6633_v25  ;;  %v3408_v56 = vadd.f32 %v3314_v22, %v2975_v16  ;;  %v6974_v25 = vmax.f32 %v6275_v47, 0.0 }
 0x4e5   : > { %v6976_v29 = vmax.f32 %v6287_v3, 0.0 }
 0x4e6   : > { %v4570_v14 = vsel %vm4422_vm4, %v4529_v24, 0.0  ;;  %v4337_v48 = vadd.f32 %v6507_v7, %v4269_v60  ;;  %5025 = vmatmul.msk.bf16.gmra.mxu3 %vm294_vm2, %v3522_v59 }
 0x4e7   : > { %v4571_v41 = vadd.f32 %v4570_v14, %v4569_v1  ;;  %v4181_v57 = vpop.f32.mrf.mxu0  ;;  %v6975_v1 = vld [vmem:[#allocation24_spill] sm:$0xff] }
 0x4e8   : > { %v4401_v35 = vmax.f32 %v4337_v48, 0.0  ;;  %4993 = vmatmul.msk.bf16.gmra.mxu2 %vm294_vm2, %v3092_v27 }
 0x4e9   : > { %v3745_v31 = vpop.f32.mrf.mxu3  ;;  %v2883_v42 = vpop.f32.mrf.mxu1 }
 0x4ea   : > { %4466 = vst.msk [vmem:[%s6555_s12 + $0x58] sm:$0xff] %vm4422_vm4, %v4401_v35  ;;  %v4498_v40 = vsub.f32 %v6974_v25, %v4401_v35  ;;  %v3839_v9 = vadd.f32 %v3745_v31, %v3408_v56  ;;  %5059 = vmatmul.msk.bf16.gmra.mxu0 %vm294_vm2, %v3954_v45  ;;  %v2976_v30 = vadd.f32 %v2883_v42, %v6975_v1  ;;  %v6978_v42 = vld [vmem:[#allocation26_spill] sm:$0xff] }
 0x4eb   : > { %v3319_v0 = vpop.f32.mrf.mxu2 }
 0x4ec   : > { %v4530_v5 = vand.u32 2147483647, %v4498_v40  ;;  %v4270_v18 = vadd.f32 %v4176_v63, %v3839_v9  ;;  %v3409_v47 = vadd.f32 %v3316_v6, %v2976_v30 }
 0x4ee   : > { %v4572_v22 = vsel %vm4422_vm4, %v4530_v5, 0.0  ;;  %v4338_v19 = vadd.f32 %v6507_v7, %v4270_v18 }
 0x4ef   : > { %v4573_v28 = vadd.f32 %v4572_v22, %v4571_v41  ;;  %v4183_v44 = vpop.f32.mrf.mxu0 }
 0x4f0   : > { %v4402_v54 = vmax.f32 %v4338_v19, 0.0 }
 0x4f1   : > { %v3747_v51 = vpop.f32.mrf.mxu3  ;;  %v2886_v49 = vpop.f32.mrf.mxu1 }
 0x4f2   : > { %4467 = vst.msk [vmem:[%s6555_s12 + $0x60] sm:$0xff] %vm4422_vm4, %v4402_v54  ;;  %v4499_v59 = vsub.f32 %v6976_v29, %v4402_v54  ;;  %v3840_v63 = vadd.f32 %v3747_v51, %v3409_v47  ;;  %v2977_v11 = vadd.f32 %v2886_v49, %v6030_v21  ;;  %v6977_v21 = vmax.f32 %v6298_v2, 0.0 }
 0x4f3   : > { %v3321_v26 = vpop.f32.mrf.mxu2 }
 0x4f4   : > { %v4531_v24 = vand.u32 2147483647, %v4499_v59  ;;  %v4271_v60 = vadd.f32 %v4178_v10, %v3840_v63  ;;  %4960 = vmatmul.msk.bf16.gmra.mxu1 %vm294_vm2, %v6655_v13  ;;  %v3410_v48 = vadd.f32 %v3319_v0, %v2977_v11 }
 0x4f6   : > { %v4574_v6 = vsel %vm4422_vm4, %v4531_v24, 0.0  ;;  %v4339_v16 = vadd.f32 %v6507_v7, %v4271_v60  ;;  %5026 = vmatmul.msk.bf16.gmra.mxu3 %vm294_vm2, %v3523_v62 }
 0x4f7   : > { %v4575_v27 = vadd.f32 %v4574_v6, %v4573_v28  ;;  %v4186_v3 = vpop.f32.mrf.mxu0  ;;  %v6981_v6 = vld [vmem:[#allocation4_spill] sm:$0xff] }
 0x4f8   : > { %v4403_v14 = vmax.f32 %v4339_v16, 0.0 }
 0x4f9   : > { %v3750_v45 = vpop.f32.mrf.mxu3  ;;  %v2888_v41 = vpop.f32.mrf.mxu1 }
 0x4fa   : > { %4468 = vst.msk [vmem:[%s6555_s12 + $0x68] sm:$0xff] %vm4422_vm4, %v4403_v14  ;;  %v4500_v10 = vsub.f32 %v6977_v21, %v4403_v14  ;;  %v3841_v35 = vadd.f32 %v3750_v45, %v3410_v48  ;;  %v2978_v25 = vadd.f32 %v2888_v41, %v6978_v42 }
 0x4fb   : > { %v3324_v13 = vpop.f32.mrf.mxu2 }
 0x4fc   : > { %v4532_v56 = vand.u32 2147483647, %v4500_v10  ;;  %v4272_v31 = vadd.f32 %v4181_v57, %v3841_v35  ;;  %v3411_v1 = vadd.f32 %v3321_v26, %v2978_v25  ;;  %v6983_v25 = vld [vmem:[#allocation5_spill] sm:$0xff] }
 0x4fe   : > { %v4576_v40 = vsel %vm4422_vm4, %v4532_v56, 0.0  ;;  %v4340_v9 = vadd.f32 %v6507_v7, %v4272_v31 }
 0x4ff   : > { %v4577_v5 = vadd.f32 %v4576_v40, %v4575_v27  ;;  %v4188_v0 = vpop.f32.mrf.mxu0 }
 0x500   : > { %v4404_v18 = vmax.f32 %v4340_v9, 0.0 }
 0x501   : > { %v3752_v30 = vpop.f32.mrf.mxu3  ;;  %v2891_v22 = vpop.f32.mrf.mxu1 }
 0x502   : > { %4469 = vst.msk [vmem:[%s6555_s12 + $0x70] sm:$0xff] %vm4422_vm4, %v4404_v18  ;;  %v4501_v2 = vsub.f32 %v4372_v17, %v4404_v18  ;;  %v3842_v19 = vadd.f32 %v3752_v30, %v3411_v1  ;;  %v2979_v54 = vadd.f32 %v2891_v22, %v6979_v53 }
 0x503   : > { %v3326_v57 = vpop.f32.mrf.mxu2 }
 0x504   : > { %v4533_v28 = vand.u32 2147483647, %v4501_v2  ;;  %v4273_v39 = vadd.f32 %v4183_v44, %v3842_v19  ;;  %v3412_v63 = vadd.f32 %v3324_v13, %v2979_v54  ;;  %v6985_v54 = vld [vmem:[#allocation6_spill] sm:$0xff] }
 0x506   : > { %v4578_v47 = vsel %vm4422_vm4, %v4533_v28, 0.0  ;;  %v4341_v51 = vadd.f32 %v6507_v7, %v4273_v39 }
 0x507   : > { %v4579_v49 = vadd.f32 %v4578_v47, %v4577_v5  ;;  %v4191_v29 = vpop.f32.mrf.mxu0 }
 0x508   : > { %v4405_v59 = vmax.f32 %v4341_v51, 0.0 }
 0x509   : > { %v3755_v62 = vpop.f32.mrf.mxu3  ;;  %v2893_v26 = vpop.f32.mrf.mxu1 }
 0x50a   : > { %4470 = vst.msk [vmem:[%s6555_s12 + $0x78] sm:$0xff] %vm4422_vm4, %v4405_v59  ;;  %v4502_v17 = vsub.f32 %v6980_v58, %v4405_v59  ;;  %v3843_v24 = vadd.f32 %v3755_v62, %v3412_v63  ;;  %v2980_v16 = vadd.f32 %v2893_v26, %v6981_v6  ;;  %v6987_v6 = vld [vmem:[#allocation7_spill] sm:$0xff] }
 0x50b   : > { %v3329_v44 = vpop.f32.mrf.mxu2 }
 0x50c   : > { %v4534_v60 = vand.u32 2147483647, %v4502_v17  ;;  %v4274_v11 = vadd.f32 %v4186_v3, %v3843_v24  ;;  %v3413_v21 = vadd.f32 %v3326_v57, %v2980_v16 }
 0x50e   : > { %v4580_v27 = vsel %vm4422_vm4, %v4534_v60, 0.0  ;;  %v4342_v14 = vadd.f32 %v6507_v7, %v4274_v11 }
 0x50f   : > { %v4581_v48 = vadd.f32 %v4580_v27, %v4579_v49  ;;  %v4193_v45 = vpop.f32.mrf.mxu0 }
 0x510   : > { %v4406_v41 = vmax.f32 %v4342_v14, 0.0 }
 0x511   : > { %v3757_v10 = vpop.f32.mrf.mxu3  ;;  %v2896_v35 = vpop.f32.mrf.mxu1 }
 0x512   : > { %4471 = vst.msk [vmem:[%s6555_s12 + $0x80] sm:$0xff] %vm4422_vm4, %v4406_v41  ;;  %v4503_v13 = vsub.f32 %v6982_v52, %v4406_v41  ;;  %v3844_v56 = vadd.f32 %v3757_v10, %v3413_v21  ;;  %v2981_v40 = vadd.f32 %v2896_v35, %v6983_v25 }
 0x513   : > { %v3331_v3 = vpop.f32.mrf.mxu2 }
 0x514   : > { %v4535_v31 = vand.u32 2147483647, %v4503_v13  ;;  %v4275_v42 = vadd.f32 %v4188_v0, %v3844_v56  ;;  %v3414_v22 = vadd.f32 %v3329_v44, %v2981_v40 }
 0x516   : > { %v4582_v9 = vsel %vm4422_vm4, %v4535_v31, 0.0  ;;  %v4343_v5 = vadd.f32 %v6507_v7, %v4275_v42  ;;  %v6989_v42 = vld [vmem:[#allocation9_spill] sm:$0xff] }
 0x517   : > { %v4583_v18 = vadd.f32 %v4582_v9, %v4581_v48  ;;  %v4196_v1 = vpop.f32.mrf.mxu0 }
 0x518   : > { %v4407_v30 = vmax.f32 %v4343_v5, 0.0 }
 0x519   : > { %v3760_v2 = vpop.f32.mrf.mxu3  ;;  %v2898_v19 = vpop.f32.mrf.mxu1 }
 0x51a   : > { %4472 = vst.msk [vmem:[%s6555_s12 + $0x88] sm:$0xff] %vm4422_vm4, %v4407_v30  ;;  %v4504_v57 = vsub.f32 %v6984_v37, %v4407_v30  ;;  %v3845_v28 = vadd.f32 %v3760_v2, %v3414_v22  ;;  %v2982_v47 = vadd.f32 %v2898_v19, %v6985_v54 }
 0x51b   : > { %v3334_v0 = vpop.f32.mrf.mxu2 }
 0x51c   : > { %v4536_v39 = vand.u32 2147483647, %v4504_v57  ;;  %v4276_v53 = vadd.f32 %v4191_v29, %v3845_v28  ;;  %v3415_v26 = vadd.f32 %v3331_v3, %v2982_v47 }
 0x51e   : > { %v4584_v51 = vsel %vm4422_vm4, %v4536_v39, 0.0  ;;  %v4344_v49 = vadd.f32 %v6507_v7, %v4276_v53  ;;  %v6991_v39 = vld [vmem:[#allocation11_spill] sm:$0xff] }
 0x51f   : > { %v4585_v59 = vadd.f32 %v4584_v51, %v4583_v18  ;;  %v4198_v63 = vpop.f32.mrf.mxu0 }
 0x520   : > { %v4408_v62 = vmax.f32 %v4344_v49, 0.0 }
 0x521   : > { %v3762_v58 = vpop.f32.mrf.mxu3  ;;  %v2901_v17 = vpop.f32.mrf.mxu1 }
 0x522   : > { %4473 = vst.msk [vmem:[%s6555_s12 + $0x90] sm:$0xff] %vm4422_vm4, %v4408_v62  ;;  %v4505_v24 = vsub.f32 %v6986_v55, %v4408_v62  ;;  %v3846_v44 = vadd.f32 %v3762_v58, %v3415_v26  ;;  %v2983_v16 = vadd.f32 %v2901_v17, %v6987_v6 }
 0x523   : > { %v3336_v29 = vpop.f32.mrf.mxu2 }
 0x524   : > { %v4537_v60 = vand.u32 2147483647, %v4505_v24  ;;  %v4277_v11 = vadd.f32 %v4193_v45, %v3846_v44  ;;  %v3416_v21 = vadd.f32 %v3334_v0, %v2983_v16  ;;  %v6993_v44 = vld [vmem:[#allocation13_spill] sm:$0xff] }
 0x526   : > { %v4586_v27 = vsel %vm4422_vm4, %v4537_v60, 0.0  ;;  %v4345_v14 = vadd.f32 %v6507_v7, %v4277_v11 }
 0x527   : > { %v4587_v48 = vadd.f32 %v4586_v27, %v4585_v59  ;;  %v4201_v10 = vpop.f32.mrf.mxu0 }
 0x528   : > { %v4409_v41 = vmax.f32 %v4345_v14, 0.0 }
 0x529   : > { %v3765_v35 = vpop.f32.mrf.mxu3  ;;  %v2903_v52 = vpop.f32.mrf.mxu1 }
 0x52a   : > { %4474 = vst.msk [vmem:[%s6555_s12 + $0x98] sm:$0xff] %vm4422_vm4, %v4409_v41  ;;  %v4506_v13 = vsub.f32 %v6988_v20, %v4409_v41  ;;  %v3847_v56 = vadd.f32 %v3765_v35, %v3416_v21  ;;  %v2984_v25 = vadd.f32 %v2903_v52, %v6989_v42 }
 0x52b   : > { %v3339_v45 = vpop.f32.mrf.mxu2 }
 0x52c   : > { %v4538_v3 = vand.u32 2147483647, %v4506_v13  ;;  %v4278_v31 = vadd.f32 %v4196_v1, %v3847_v56  ;;  %v3417_v30 = vadd.f32 %v3336_v29, %v2984_v25  ;;  %v6995_v13 = vld [vmem:[#allocation15_spill] sm:$0xff] }
 0x52e   : > { %v4588_v40 = vsel %vm4422_vm4, %v4538_v3, 0.0  ;;  %v4346_v9 = vadd.f32 %v6507_v7, %v4278_v31 }
 0x52f   : > { %v4589_v5 = vadd.f32 %v4588_v40, %v4587_v48  ;;  %v4203_v57 = vpop.f32.mrf.mxu0 }
 0x530   : > { %v4410_v18 = vmax.f32 %v4346_v9, 0.0 }
 0x531   : > { %v3767_v22 = vpop.f32.mrf.mxu3  ;;  %v2906_v2 = vpop.f32.mrf.mxu1 }
 0x532   : > { %4475 = vst.msk [vmem:[%s6555_s12 + $0xa0] sm:$0xff] %vm4422_vm4, %v4410_v18  ;;  %v4507_v19 = vsub.f32 %v6990_v61, %v4410_v18  ;;  %v3848_v37 = vadd.f32 %v3767_v22, %v3417_v30  ;;  %v2985_v53 = vadd.f32 %v2906_v2, %v6991_v39  ;;  %v6997_v61 = vld [vmem:[#allocation17_spill] sm:$0xff] }
 0x533   : > { %v3341_v1 = vpop.f32.mrf.mxu2 }
 0x534   : > { %v4539_v28 = vand.u32 2147483647, %v4507_v19  ;;  %v4279_v0 = vadd.f32 %v4198_v63, %v3848_v37  ;;  %v3418_v59 = vadd.f32 %v3339_v45, %v2985_v53 }
 0x536   : > { %v4590_v54 = vsel %vm4422_vm4, %v4539_v28, 0.0  ;;  %v4347_v47 = vadd.f32 %v6507_v7, %v4279_v0 }
 0x537   : > { %v4591_v51 = vadd.f32 %v4590_v54, %v4589_v5  ;;  %v4206_v60 = vpop.f32.mrf.mxu0 }
 0x538   : > { %v4411_v49 = vmax.f32 %v4347_v47, 0.0 }
 0x539   : > { %v3770_v62 = vpop.f32.mrf.mxu3  ;;  %v2908_v26 = vpop.f32.mrf.mxu1 }
 0x53a   : > { %4476 = vst.msk [vmem:[%s6555_s12 + $0xa8] sm:$0xff] %vm4422_vm4, %v4411_v49  ;;  %v4508_v58 = vsub.f32 %v6992_v32, %v4411_v49  ;;  %v3849_v17 = vadd.f32 %v3770_v62, %v3418_v59  ;;  %v2986_v29 = vadd.f32 %v2908_v26, %v6993_v44  ;;  %v6999_v26 = vld [vmem:[#allocation19_spill] sm:$0xff] }
 0x53b   : > { %v3344_v55 = vpop.f32.mrf.mxu2 }
 0x53c   : > { %v4540_v63 = vand.u32 2147483647, %v4508_v58  ;;  %v4280_v24 = vadd.f32 %v4201_v10, %v3849_v17  ;;  %v3419_v14 = vadd.f32 %v3341_v1, %v2986_v29 }
 0x53e   : > { %v4592_v11 = vsel %vm4422_vm4, %v4540_v63, 0.0  ;;  %v4348_v6 = vadd.f32 %v6507_v7, %v4280_v24 }
 0x53f   : > { %v4593_v16 = vadd.f32 %v4592_v11, %v4591_v51  ;;  %v4208_v31 = vpop.f32.mrf.mxu0 }
 0x540   : > { %v4412_v27 = vmax.f32 %v4348_v6, 0.0 }
 0x541   : > { %v3772_v48 = vpop.f32.mrf.mxu3  ;;  %v2911_v41 = vpop.f32.mrf.mxu1 }
 0x542   : > { %4477 = vst.msk [vmem:[%s6555_s12 + $0xb0] sm:$0xff] %vm4422_vm4, %v4412_v27  ;;  %v4509_v21 = vsub.f32 %v6994_v15, %v4412_v27  ;;  %v3850_v35 = vadd.f32 %v3772_v48, %v3419_v14  ;;  %v2987_v56 = vadd.f32 %v2911_v41, %v6995_v13  ;;  %v7001_v48 = vld [vmem:[#allocation21_spill] sm:$0xff]  ;;  %v6789_v15 = vld [vmem:[%s6841_s3] ss:$0 sm:$0xff] }
 0x543   : > { %v3346_v10 = vpop.f32.mrf.mxu2 }
 0x544   : > { %v4541_v52 = vand.u32 2147483647, %v4509_v21  ;;  %v4281_v20 = vadd.f32 %v4203_v57, %v3850_v35  ;;  %v3420_v40 = vadd.f32 %v3344_v55, %v2987_v56  ;;  %v7002_v56 = vmax.f32 %v6468_v38, 0.0 }
 0x545   : > { %v7004_v38 = vmax.f32 %v6479_v43, 0.0  ;;  %v7006_v43 = vmax.f32 %v6494_v12, 0.0  ;;  %v7007_v12 = vmax.f32 %v6510_v33, 0.0  ;;  %v7009_v33 = vmax.f32 %v6525_v36, 0.0 }
 0x546   : > { %v4594_v45 = vsel %vm4422_vm4, %v4541_v52, 0.0  ;;  %v4349_v3 = vadd.f32 %v6507_v7, %v4281_v20 }
 0x547   : > { %v4595_v42 = vadd.f32 %v4594_v45, %v4593_v16  ;;  %v4211_v53 = vpop.f32.mrf.mxu0 }
 0x548   : > { %v4413_v25 = vmax.f32 %v4349_v3, 0.0 }
 0x549   : > { %v3775_v9 = vpop.f32.mrf.mxu3  ;;  %v2913_v5 = vpop.f32.mrf.mxu1 }
 0x54a   : > { %4478 = vst.msk [vmem:[%s6555_s12 + $0xb8] sm:$0xff] %vm4422_vm4, %v4413_v25  ;;  %v4510_v18 = vsub.f32 %v6996_v4, %v4413_v25  ;;  %v3851_v30 = vadd.f32 %v3775_v9, %v3420_v40  ;;  %v2988_v19 = vadd.f32 %v2913_v5, %v6997_v61  ;;  %v7003_v25 = vld [vmem:[#allocation23_spill] sm:$0xff] }
 0x54b   : > { %v3349_v37 = vpop.f32.mrf.mxu2 }
 0x54c   : > { %v4542_v22 = vand.u32 2147483647, %v4510_v18  ;;  %v4282_v2 = vadd.f32 %v4206_v60, %v3851_v30  ;;  %v3421_v39 = vadd.f32 %v3346_v10, %v2988_v19 }
 0x54e   : > { %v4596_v57 = vsel %vm4422_vm4, %v4542_v22, 0.0  ;;  %v4350_v1 = vadd.f32 %v6507_v7, %v4282_v2 }
 0x54f   : > { %v4597_v28 = vadd.f32 %v4596_v57, %v4595_v42  ;;  %v4213_v16 = vpop.f32.mrf.mxu0 }
 0x550   : > { %v4414_v0 = vmax.f32 %v4350_v1, 0.0 }
 0x551   : > { %v3777_v54 = vpop.f32.mrf.mxu3  ;;  %v2916_v47 = vpop.f32.mrf.mxu1 }
 0x552   : > { %4479 = vst.msk [vmem:[%s6555_s12 + $0xc0] sm:$0xff] %vm4422_vm4, %v4414_v0  ;;  %v4511_v51 = vsub.f32 %v6998_v8, %v4414_v0  ;;  %v3852_v49 = vadd.f32 %v3777_v54, %v3421_v39  ;;  %v2989_v32 = vadd.f32 %v2916_v47, %v6999_v26  ;;  %v7005_v0 = vld [vmem:[#allocation25_spill] sm:$0xff] }
 0x553   : > { %v3351_v55 = vpop.f32.mrf.mxu2 }
 0x554   : > { %v4543_v59 = vand.u32 2147483647, %v4511_v51  ;;  %v4283_v62 = vadd.f32 %v4208_v31, %v3852_v49  ;;  %v3422_v44 = vadd.f32 %v3349_v37, %v2989_v32 }
 0x556   : > { %v4598_v58 = vsel %vm4422_vm4, %v4543_v59, 0.0  ;;  %v4351_v17 = vadd.f32 %v6507_v7, %v4283_v62 }
 0x557   : > { %v4599_v63 = vadd.f32 %v4598_v58, %v4597_v28  ;;  %v4216_v9 = vpop.f32.mrf.mxu0 }
 0x558   : > { %v4415_v24 = vmax.f32 %v4351_v17, 0.0 }
 0x559   : > { %v3780_v29 = vpop.f32.mrf.mxu3  ;;  %v2918_v60 = vpop.f32.mrf.mxu1 }
 0x55a   : > { %4480 = vst.msk [vmem:[%s6555_s12 + $0xc8] sm:$0xff] %vm4422_vm4, %v4415_v24  ;;  %v4512_v11 = vsub.f32 %v7000_v50, %v4415_v24  ;;  %v3853_v6 = vadd.f32 %v3780_v29, %v3422_v44  ;;  %v2990_v41 = vadd.f32 %v2918_v60, %v7001_v48 }
 0x55b   : > { %v3354_v52 = vpop.f32.mrf.mxu2 }
 0x55c   : > { %v4544_v27 = vand.u32 2147483647, %v4512_v11  ;;  %v4284_v14 = vadd.f32 %v4211_v53, %v3853_v6  ;;  %v3423_v34 = vadd.f32 %v3351_v55, %v2990_v41 }
 0x55e   : > { %v4600_v7 = vsel %vm4422_vm4, %v4544_v27, 0.0  ;;  %v4352_v21 = vadd.f32 %v6789_v15, %v4284_v14 }
 0x55f   : > { %v4601_v35 = vadd.f32 %v4600_v7, %v4599_v63  ;;  %v4218_v54 = vpop.f32.mrf.mxu0 }
 0x560   : > { %v4416_v10 = vmax.f32 %v4352_v21, 0.0 }
 0x561   : > { %v3782_v20 = vpop.f32.mrf.mxu3  ;;  %v2921_v13 = vpop.f32.mrf.mxu1 }
 0x562   : > { %4481 = vst.msk [vmem:[%s6555_s12 + $0xd0] sm:$0xff] %vm4422_vm4, %v4416_v10  ;;  %v4513_v45 = vsub.f32 %v7002_v56, %v4416_v10  ;;  %v3854_v3 = vadd.f32 %v3782_v20, %v3423_v34  ;;  %v2991_v40 = vadd.f32 %v2921_v13, %v7003_v25 }
 0x563   : > { %v3356_v57 = vpop.f32.mrf.mxu2 }
 0x564   : > { %v4545_v31 = vand.u32 2147483647, %v4513_v45  ;;  %v4285_v42 = vadd.f32 %v4213_v16, %v3854_v3  ;;  %v3424_v22 = vadd.f32 %v3354_v52, %v2991_v40 }
 0x566   : > { %v4602_v5 = vsel %vm4422_vm4, %v4545_v31, 0.0  ;;  %v4353_v4 = vadd.f32 %v6789_v15, %v4285_v42 }
 0x567   : > { %v4603_v18 = vadd.f32 %v4602_v5, %v4601_v35  ;;  %v4221_v11 = vpop.f32.mrf.mxu0 }
 0x568   : > { %v4417_v30 = vmax.f32 %v4353_v4, 0.0  ;;  %v7010_v4 = vmax.f32 %v6536_v46, 0.0 }
 0x569   : > { %v3785_v2 = vpop.f32.mrf.mxu3  ;;  %v2923_v61 = vpop.f32.mrf.mxu1 }
 0x56a   : > { %4482 = vst.msk [vmem:[%s6555_s12 + $0xd8] sm:$0xff] %vm4422_vm4, %v4417_v30  ;;  %v4514_v19 = vsub.f32 %v7004_v38, %v4417_v30  ;;  %v3855_v37 = vadd.f32 %v3785_v2, %v3424_v22  ;;  %v2992_v39 = vadd.f32 %v2923_v61, %v7005_v0 }
 0x56b   : > { %v3359_v63 = vpop.f32.mrf.mxu2 }
 0x56c   : > { %v4546_v1 = vand.u32 2147483647, %v4514_v19  ;;  %v4286_v28 = vadd.f32 %v4216_v9, %v3855_v37  ;;  %v3425_v49 = vadd.f32 %v3356_v57, %v2992_v39 }
 0x56e   : > { %v4354_v53 = vadd.f32 %v6789_v15, %v4286_v28  ;;  %v4604_v47 = vsel %vm4422_vm4, %v4546_v1, 0.0 }
 0x56f   : > { %v4605_v8 = vadd.f32 %v4604_v47, %v4603_v18  ;;  %v4223_v3 = vpop.f32.mrf.mxu0 }
 0x570   : > { %v4418_v51 = vmax.f32 %v4354_v53, 0.0 }
 0x571   : > { %v3787_v59 = vpop.f32.mrf.mxu3  ;;  %v2926_v62 = vpop.f32.mrf.mxu1 }
 0x572   : > { %4483 = vst.msk [vmem:[%s6555_s12 + $0xe0] sm:$0xff] %vm4422_vm4, %v4418_v51  ;;  %v4515_v26 = vsub.f32 %v7006_v43, %v4418_v51  ;;  %v3856_v32 = vadd.f32 %v3787_v59, %v3425_v49  ;;  %v2993_v55 = vadd.f32 %v2926_v62, %v6110_v23  ;;  %v7008_v23 = vld [vmem:[#allocation27_spill] sm:$0xff] }
 0x573   : > { %v3361_v10 = vpop.f32.mrf.mxu2 }
 0x574   : > { %v4547_v58 = vand.u32 2147483647, %v4515_v26  ;;  %v4287_v17 = vadd.f32 %v4218_v54, %v3856_v32  ;;  %v3426_v50 = vadd.f32 %v3359_v63, %v2993_v55 }
 0x576   : > { %v4355_v24 = vadd.f32 %v6789_v15, %v4287_v17  ;;  %v4606_v44 = vsel %vm4422_vm4, %v4547_v58, 0.0 }
 0x577   : > { %v4607_v29 = vadd.f32 %v4606_v44, %v4605_v8 }
 0x578   : > { %v4419_v60 = vmax.f32 %v4355_v24, 0.0 }
 0x579   : > { %v3790_v6 = vpop.f32.mrf.mxu3  ;;  %v2928_v16 = vpop.f32.mrf.mxu1 }
 0x57a   : > { %4484 = vst.msk [vmem:[%s6555_s12 + $0xe8] sm:$0xff] %vm4422_vm4, %v4419_v60  ;;  %v4516_v27 = vsub.f32 %v7007_v12, %v4419_v60  ;;  %v3857_v14 = vadd.f32 %v3790_v6, %v3426_v50  ;;  %v2994_v41 = vadd.f32 %v2928_v16, %v7008_v23 }
 0x57c   : > { %v4288_v48 = vadd.f32 %v4221_v11, %v3857_v14  ;;  %v4548_v7 = vand.u32 2147483647, %v4516_v27  ;;  %v3427_v20 = vadd.f32 %v3361_v10, %v2994_v41 }
 0x57e   : > { %v4356_v21 = vadd.f32 %v6789_v15, %v4288_v48  ;;  %v4608_v35 = vsel %vm4422_vm4, %v4548_v7, 0.0 }
 0x57f   : > { %v4609_v34 = vadd.f32 %v4608_v35, %v4607_v29 }
 0x580   : > { %v4420_v52 = vmax.f32 %v4356_v21, 0.0 }
 0x581   : > { %v3792_v13 = vpop.f32.mrf.mxu3 }
 0x582   : > { %4485 = vst.msk [vmem:[%s6555_s12 + $0xf0] sm:$0xff] %vm4422_vm4, %v4420_v52  ;;  %v3858_v56 = vadd.f32 %v3792_v13, %v3427_v20  ;;  %v4517_v45 = vsub.f32 %v7009_v33, %v4420_v52 }
 0x584   : > { %v4289_v31 = vadd.f32 %v4223_v3, %v3858_v56  ;;  %v4549_v42 = vand.u32 2147483647, %v4517_v45 }
 0x586   : > { %v4357_v25 = vadd.f32 %v6789_v15, %v4289_v31  ;;  %v4610_v40 = vsel %vm4422_vm4, %v4549_v42, 0.0 }
 0x587   : > { %v4611_v9 = vadd.f32 %v4610_v40, %v4609_v34 }
 0x588   : > { %v4421_v5 = vmax.f32 %v4357_v25, 0.0 }
 0x58a   : > { %4486 = vst.msk [vmem:[%s6555_s12 + $0xf8] sm:$0xff] %vm4422_vm4, %v4421_v5  ;;  %v4518_v18 = vsub.f32 %v7010_v4, %v4421_v5 }
 0x58c   : > { %v4550_v30 = vand.u32 2147483647, %v4518_v18 }
 0x58e   : > { %v4612_v22 = vsel %vm4422_vm4, %v4550_v30, 0.0 }
 0x58f   : > { %v4613_v36 = vadd.f32 %v4612_v22, %v4611_v9 }
 0x591   : > { %4614 = vadd.xlane.f32.xlu0 %v4613_v36 }
 0x604   : > { %v4615_v2 = vpop.xlane.xlu0 %4614 }
 0x605   : > { %v4616_v61 = vrot.slane %v4615_v2, 4 }
 0x607   : > { %v4617_v38 = vadd.f32 %v4616_v61, %v4615_v2 }
 0x609   : > { %v4618_v19 = vrot.slane %v4617_v38, 2 }
 0x60b   : > { %v4619_v15 = vadd.f32 %v4618_v19, %v4617_v38 }
 0x60d   : > { %v4620_v37 = vrot.slane %v4619_v15, 1 }
 0x60f   : > { %v4621_v57 = vadd.f32 %v4620_v37, %v4619_v15 }
 0x611   : > { %5069 = vpush %v4621_v57 }
 0x642   : > { %s5070_s17 = spop %5069 }
 0x643   : > { %v4623_v46 = vstv %s5070_s17 }
 0x644   : > { %4625 = vst.msk [vmem:[%s292_s16] sm:$0x1] %vm4624_vm5, %v4623_v46 }
 0x645 PF: > { %s17_s21 = sadd.s32 1, %s5090_s21  }
 0x646   : > { %p14_p4 = scmp.ge.s32.totalorder %s17_s21, 4  }
 0x648   :  { %16 = sbr.rel (!%p14_p4) target bundleno = 1 (0x1), region = 105 }

</bundles_post_ra>
